<compile_context>
chip_gen: v7x
topology: tpu7x:2x2x1
jax: 0.10.0
libtpu: 0.0.40
codegen_flags: <defaults>
</compile_context>

<pallas_src>
import jax
import jax.numpy as jnp
from jax.experimental import pallas as pl
from jax.experimental.pallas import tpu as pltpu


ENCODER_DIMS = [(784, 500), (500, 500), (500, 2000), (2000, 10)]
DECODER_DIMS = [(10, 2000), (2000, 500), (500, 500), (500, 784)]


def _round_up(x, m):
    return (x + m - 1) // m * m


# ----------------------------------------------------------------------------
# Fused kernel: the entire encoder + decoder for one row-tile of the batch.
# ----------------------------------------------------------------------------
def _ae_fused_kernel(
    x_ref,
    w1, b1, w2, b2, w3, b3, w4, b4,      # encoder
    w5, b5, w6, b6, w7, b7, w8, b8,      # decoder
    recon_ref, z_ref,
):
    def lin(h, w_ref, b_ref):
        # bf16 x bf16 on the MXU, f32 accumulate; bias add in f32.
        return (
            jnp.dot(
                h.astype(jnp.bfloat16),
                w_ref[...],
                preferred_element_type=jnp.float32,
            )
            + b_ref[...]
        )

    h = x_ref[...]                                   # (TM, 784) f32

    # Encoder: Linear+ReLU x3, final Linear (no activation).
    h = jnp.maximum(lin(h, w1, b1), 0.0)             # (TM, 500)
    h = jnp.maximum(lin(h, w2, b2), 0.0)             # (TM, 500)
    h = jnp.maximum(lin(h, w3, b3), 0.0)             # (TM, 2000)
    z = lin(h, w4, b4)                               # (TM, 10)
    z_ref[...] = z

    # Decoder: Linear+ReLU x3, final Linear + Sigmoid.
    h = jnp.maximum(lin(z, w5, b5), 0.0)             # (TM, 2000)
    h = jnp.maximum(lin(h, w6, b6), 0.0)             # (TM, 500)
    h = jnp.maximum(lin(h, w7, b7), 0.0)             # (TM, 500)
    recon_ref[...] = jax.nn.sigmoid(lin(h, w8, b8))  # (TM, 784)


# ----------------------------------------------------------------------------
# Parameter construction (deterministic, mimics nn.Linear default init:
# U(-1/sqrt(fan_in), 1/sqrt(fan_in)) for both weight and bias).
# Weights stored in bf16 (streamed to the MXU), biases in f32.
# ----------------------------------------------------------------------------
def init_params(key):
    params = {"encoder": [], "decoder": []}
    for name, dims in (("encoder", ENCODER_DIMS), ("decoder", DECODER_DIMS)):
        for fan_in, fan_out in dims:
            key, kw, kb = jax.random.split(key, 3)
            bound = 1.0 / jnp.sqrt(jnp.float32(fan_in))
            w = jax.random.uniform(
                kw, (fan_in, fan_out), jnp.float32, minval=-bound, maxval=bound
            )
            b = jax.random.uniform(
                kb, (fan_out,), jnp.float32, minval=-bound, maxval=bound
            )
            params[name].append((w.astype(jnp.bfloat16), b))
    return params


# ----------------------------------------------------------------------------
# Forward pass: mirrors AE.forward -> (recon_x, z)
# ----------------------------------------------------------------------------
def ae_forward(params, x):
    # x.view(-1, 784)
    x = x.reshape(-1, 784).astype(jnp.float32)
    batch = x.shape[0]

    # Row tile: pad the batch to a sublane multiple (8); cap the tile at 128
    # and tile larger batches along a parallel grid axis.
    tm = 128 if batch >= 128 else _round_up(max(batch, 1), 8)
    b_pad = _round_up(batch, tm)
    if b_pad != batch:
        x = jnp.pad(x, ((0, b_pad - batch), (0, 0)))

    layers = params["encoder"] + params["decoder"]

    # Flatten (W, b) pairs; biases as (1, N) f32 rows for lane-wise broadcast.
    flat_args = []
    in_specs = [pl.BlockSpec((tm, 784), lambda m: (m, 0))]
    for (w, b) in layers:
        b2 = b.reshape(1, -1).astype(jnp.float32)
        flat_args.append(w)
        flat_args.append(b2)
        # Constant index_map -> weights/bias DMA'd once, resident across M tiles.
        in_specs.append(pl.BlockSpec(w.shape, lambda m: (0, 0)))
        in_specs.append(pl.BlockSpec(b2.shape, lambda m: (0, 0)))

    out_shape = (
        jax.ShapeDtypeStruct((b_pad, 784), jnp.float32),  # recon_x
        jax.ShapeDtypeStruct((b_pad, 10), jnp.float32),   # z
    )
    # NOTE: z (10 lanes) / recon (784 lanes) outputs use masked tail stores;
    # negligible here, so we keep the natural feature widths.
    out_specs = (
        pl.BlockSpec((tm, 784), lambda m: (m, 0)),
        pl.BlockSpec((tm, 10), lambda m: (m, 0)),
    )

    recon, z = pl.pallas_call(
        _ae_fused_kernel,
        out_shape=out_shape,
        grid=(b_pad // tm,),
        in_specs=in_specs,
        out_specs=out_specs,
        compiler_params=pltpu.CompilerParams(
            dimension_semantics=("parallel",),
            # ~20 MB actual footprint; 48 MiB is safe on v7x (64 MiB VMEM)
            # as well as v5e/v6e (128 MiB).
            vmem_limit_bytes=48 * 1024 * 1024,
        ),
    )(x, *flat_args)

    return recon[:batch], z[:batch]


def ae_reference(params, x):
    """Pure-JAX reference (same bf16-weight math) for a correctness check."""
    x = x.reshape(-1, 784).astype(jnp.float32)

    def lin(h, w, b):
        return (
            jnp.dot(
                h.astype(jnp.bfloat16), w, preferred_element_type=jnp.float32
            )
            + b
        )

    enc = params["encoder"]
    dec = params["decoder"]
    h = x
    for (w, b) in enc[:-1]:
        h = jnp.maximum(lin(h, w, b), 0.0)
    z = lin(h, enc[-1][0], enc[-1][1])
    h = z
    for (w, b) in dec[:-1]:
        h = jnp.maximum(lin(h, w, b), 0.0)
    recon_x = jax.nn.sigmoid(lin(h, dec[-1][0], dec[-1][1]))
    return recon_x, z


if __name__ == "__main__":
    key = jax.random.PRNGKey(0)
    pkey, xkey = jax.random.split(key)
    params = init_params(pkey)

    # Small MNIST-like input: batch=2, 1x28x28 -> flattened to (2, 784).
    x = jax.random.normal(xkey, (2, 1, 28, 28), dtype=jnp.float32)

    recon_x, z = jax.jit(ae_forward)(params, x)
    jax.block_until_ready((recon_x, z))

    # Sanity check against pure-JAX reference (same bf16 weight math).
    ref_recon, ref_z = ae_reference(params, x)
    assert recon_x.shape == (2, 784) and z.shape == (2, 10)
    assert jnp.allclose(z, ref_z, atol=2e-3, rtol=2e-3)
    assert jnp.allclose(recon_x, ref_recon, atol=2e-3, rtol=2e-3)

    print("KERNEL_OK")
</pallas_src>

<mosaic_0001>
module attributes {stable_mosaic.version = 11 : i64} {
  func.func @_ae_fused_kernel(%arg0: i32, %arg1: memref<8x784xf32, #tpu.memory_space<vmem>>, %arg2: memref<784x500xbf16, #tpu.memory_space<vmem>>, %arg3: memref<1x500xf32, #tpu.memory_space<vmem>>, %arg4: memref<500x500xbf16, #tpu.memory_space<vmem>>, %arg5: memref<1x500xf32, #tpu.memory_space<vmem>>, %arg6: memref<500x2000xbf16, #tpu.memory_space<vmem>>, %arg7: memref<1x2000xf32, #tpu.memory_space<vmem>>, %arg8: memref<2000x10xbf16, #tpu.memory_space<vmem>>, %arg9: memref<1x10xf32, #tpu.memory_space<vmem>>, %arg10: memref<10x2000xbf16, #tpu.memory_space<vmem>>, %arg11: memref<1x2000xf32, #tpu.memory_space<vmem>>, %arg12: memref<2000x500xbf16, #tpu.memory_space<vmem>>, %arg13: memref<1x500xf32, #tpu.memory_space<vmem>>, %arg14: memref<500x500xbf16, #tpu.memory_space<vmem>>, %arg15: memref<1x500xf32, #tpu.memory_space<vmem>>, %arg16: memref<500x784xbf16, #tpu.memory_space<vmem>>, %arg17: memref<1x784xf32, #tpu.memory_space<vmem>>, %arg18: memref<8x784xf32, #tpu.memory_space<vmem>>, %arg19: memref<8x10xf32, #tpu.memory_space<vmem>>) attributes {dimension_semantics = [#tpu.dimension_semantics<parallel>], iteration_bounds = array<i64: 1>, scalar_prefetch = 0 : i64, scratch_operands = 0 : i64, tpu.core_type = #tpu.core_type<tc>, window_params = [{transform_indices = @transform_0, window_bounds = array<i64: 8, 784>}, {pipeline_mode = #tpu.pipeline_mode<synchronous>, transform_indices = @transform_1, window_bounds = array<i64: 784, 500>}, {pipeline_mode = #tpu.pipeline_mode<synchronous>, transform_indices = @transform_2, window_bounds = array<i64: 1, 500>}, {pipeline_mode = #tpu.pipeline_mode<synchronous>, transform_indices = @transform_3, window_bounds = array<i64: 500, 500>}, {pipeline_mode = #tpu.pipeline_mode<synchronous>, transform_indices = @transform_4, window_bounds = array<i64: 1, 500>}, {pipeline_mode = #tpu.pipeline_mode<synchronous>, transform_indices = @transform_5, window_bounds = array<i64: 500, 2000>}, {pipeline_mode = #tpu.pipeline_mode<synchronous>, transform_indices = @transform_6, window_bounds = array<i64: 1, 2000>}, {pipeline_mode = #tpu.pipeline_mode<synchronous>, transform_indices = @transform_7, window_bounds = array<i64: 2000, 10>}, {pipeline_mode = #tpu.pipeline_mode<synchronous>, transform_indices = @transform_8, window_bounds = array<i64: 1, 10>}, {pipeline_mode = #tpu.pipeline_mode<synchronous>, transform_indices = @transform_9, window_bounds = array<i64: 10, 2000>}, {pipeline_mode = #tpu.pipeline_mode<synchronous>, transform_indices = @transform_10, window_bounds = array<i64: 1, 2000>}, {pipeline_mode = #tpu.pipeline_mode<synchronous>, transform_indices = @transform_11, window_bounds = array<i64: 2000, 500>}, {pipeline_mode = #tpu.pipeline_mode<synchronous>, transform_indices = @transform_12, window_bounds = array<i64: 1, 500>}, {pipeline_mode = #tpu.pipeline_mode<synchronous>, transform_indices = @transform_13, window_bounds = array<i64: 500, 500>}, {pipeline_mode = #tpu.pipeline_mode<synchronous>, transform_indices = @transform_14, window_bounds = array<i64: 1, 500>}, {pipeline_mode = #tpu.pipeline_mode<synchronous>, transform_indices = @transform_15, window_bounds = array<i64: 500, 784>}, {pipeline_mode = #tpu.pipeline_mode<synchronous>, transform_indices = @transform_16, window_bounds = array<i64: 1, 784>}, {transform_indices = @transform_17, window_bounds = array<i64: 8, 784>}, {transform_indices = @transform_18, window_bounds = array<i64: 8, 10>}]} {
    %c0 = arith.constant 0 : index
    %c0_0 = arith.constant 0 : index
    %0 = vector.load %arg1[%c0, %c0_0] : memref<8x784xf32, #tpu.memory_space<vmem>>, vector<8x784xf32>
    %1 = arith.truncf %0 : vector<8x784xf32> to vector<8x784xbf16>
    %c0_1 = arith.constant 0 : index
    %c0_2 = arith.constant 0 : index
    %2 = vector.load %arg2[%c0_1, %c0_2] : memref<784x500xbf16, #tpu.memory_space<vmem>>, vector<784x500xbf16>
    %cst = arith.constant dense<0.000000e+00> : vector<8x500xf32>
    %3 = tpu.matmul %1, %2, %cst {dimension_numbers = #tpu.dot_dimension_numbers<[1], [0], [0], [1], [0, 0, 1, 1], [], []>} : vector<8x784xbf16>, vector<784x500xbf16>, vector<8x500xf32> -> vector<8x500xf32>
    %c0_3 = arith.constant 0 : index
    %c0_4 = arith.constant 0 : index
    %4 = vector.load %arg3[%c0_3, %c0_4] : memref<1x500xf32, #tpu.memory_space<vmem>>, vector<1x500xf32>
    %5 = vector.broadcast %4 : vector<1x500xf32> to vector<8x500xf32>
    %6 = arith.addf %3, %5 : vector<8x500xf32>
    %cst_5 = arith.constant 0.000000e+00 : f32
    %7 = vector.broadcast %cst_5 : f32 to vector<8x500xf32>
    %8 = arith.maximumf %6, %7 : vector<8x500xf32>
    %9 = arith.truncf %8 : vector<8x500xf32> to vector<8x500xbf16>
    %c0_6 = arith.constant 0 : index
    %c0_7 = arith.constant 0 : index
    %10 = vector.load %arg4[%c0_6, %c0_7] : memref<500x500xbf16, #tpu.memory_space<vmem>>, vector<500x500xbf16>
    %cst_8 = arith.constant dense<0.000000e+00> : vector<8x500xf32>
    %11 = tpu.matmul %9, %10, %cst_8 {dimension_numbers = #tpu.dot_dimension_numbers<[1], [0], [0], [1], [0, 0, 1, 1], [], []>} : vector<8x500xbf16>, vector<500x500xbf16>, vector<8x500xf32> -> vector<8x500xf32>
    %c0_9 = arith.constant 0 : index
    %c0_10 = arith.constant 0 : index
    %12 = vector.load %arg5[%c0_9, %c0_10] : memref<1x500xf32, #tpu.memory_space<vmem>>, vector<1x500xf32>
    %13 = vector.broadcast %12 : vector<1x500xf32> to vector<8x500xf32>
    %14 = arith.addf %11, %13 : vector<8x500xf32>
    %cst_11 = arith.constant 0.000000e+00 : f32
    %15 = vector.broadcast %cst_11 : f32 to vector<8x500xf32>
    %16 = arith.maximumf %14, %15 : vector<8x500xf32>
    %17 = arith.truncf %16 : vector<8x500xf32> to vector<8x500xbf16>
    %c0_12 = arith.constant 0 : index
    %c0_13 = arith.constant 0 : index
    %18 = vector.load %arg6[%c0_12, %c0_13] : memref<500x2000xbf16, #tpu.memory_space<vmem>>, vector<500x2000xbf16>
    %cst_14 = arith.constant dense<0.000000e+00> : vector<8x2000xf32>
    %19 = tpu.matmul %17, %18, %cst_14 {dimension_numbers = #tpu.dot_dimension_numbers<[1], [0], [0], [1], [0, 0, 1, 1], [], []>} : vector<8x500xbf16>, vector<500x2000xbf16>, vector<8x2000xf32> -> vector<8x2000xf32>
    %c0_15 = arith.constant 0 : index
    %c0_16 = arith.constant 0 : index
    %20 = vector.load %arg7[%c0_15, %c0_16] : memref<1x2000xf32, #tpu.memory_space<vmem>>, vector<1x2000xf32>
    %21 = vector.broadcast %20 : vector<1x2000xf32> to vector<8x2000xf32>
    %22 = arith.addf %19, %21 : vector<8x2000xf32>
    %cst_17 = arith.constant 0.000000e+00 : f32
    %23 = vector.broadcast %cst_17 : f32 to vector<8x2000xf32>
    %24 = arith.maximumf %22, %23 : vector<8x2000xf32>
    %25 = arith.truncf %24 : vector<8x2000xf32> to vector<8x2000xbf16>
    %c0_18 = arith.constant 0 : index
    %c0_19 = arith.constant 0 : index
    %26 = vector.load %arg8[%c0_18, %c0_19] : memref<2000x10xbf16, #tpu.memory_space<vmem>>, vector<2000x10xbf16>
    %cst_20 = arith.constant dense<0.000000e+00> : vector<8x10xf32>
    %27 = tpu.matmul %25, %26, %cst_20 {dimension_numbers = #tpu.dot_dimension_numbers<[1], [0], [0], [1], [0, 0, 1, 1], [], []>} : vector<8x2000xbf16>, vector<2000x10xbf16>, vector<8x10xf32> -> vector<8x10xf32>
    %c0_21 = arith.constant 0 : index
    %c0_22 = arith.constant 0 : index
    %28 = vector.load %arg9[%c0_21, %c0_22] : memref<1x10xf32, #tpu.memory_space<vmem>>, vector<1x10xf32>
    %29 = vector.broadcast %28 : vector<1x10xf32> to vector<8x10xf32>
    %30 = arith.addf %27, %29 : vector<8x10xf32>
    %c0_23 = arith.constant 0 : index
    %c0_24 = arith.constant 0 : index
    %31 = vector.load %arg19[%c0_23, %c0_24] : memref<8x10xf32, #tpu.memory_space<vmem>>, vector<8x10xf32>
    tpu.vector_store %arg19[%c0_23, %c0_24], %30 {strides = array<i32>} : memref<8x10xf32, #tpu.memory_space<vmem>>, vector<8x10xf32>,
    %32 = arith.truncf %30 : vector<8x10xf32> to vector<8x10xbf16>
    %c0_25 = arith.constant 0 : index
    %c0_26 = arith.constant 0 : index
    %33 = vector.load %arg10[%c0_25, %c0_26] : memref<10x2000xbf16, #tpu.memory_space<vmem>>, vector<10x2000xbf16>
    %cst_27 = arith.constant dense<0.000000e+00> : vector<8x2000xf32>
    %34 = tpu.matmul %32, %33, %cst_27 {dimension_numbers = #tpu.dot_dimension_numbers<[1], [0], [0], [1], [0, 0, 1, 1], [], []>} : vector<8x10xbf16>, vector<10x2000xbf16>, vector<8x2000xf32> -> vector<8x2000xf32>
    %c0_28 = arith.constant 0 : index
    %c0_29 = arith.constant 0 : index
    %35 = vector.load %arg11[%c0_28, %c0_29] : memref<1x2000xf32, #tpu.memory_space<vmem>>, vector<1x2000xf32>
    %36 = vector.broadcast %35 : vector<1x2000xf32> to vector<8x2000xf32>
    %37 = arith.addf %34, %36 : vector<8x2000xf32>
    %cst_30 = arith.constant 0.000000e+00 : f32
    %38 = vector.broadcast %cst_30 : f32 to vector<8x2000xf32>
    %39 = arith.maximumf %37, %38 : vector<8x2000xf32>
    %40 = arith.truncf %39 : vector<8x2000xf32> to vector<8x2000xbf16>
    %c0_31 = arith.constant 0 : index
    %c0_32 = arith.constant 0 : index
    %41 = vector.load %arg12[%c0_31, %c0_32] : memref<2000x500xbf16, #tpu.memory_space<vmem>>, vector<2000x500xbf16>
    %cst_33 = arith.constant dense<0.000000e+00> : vector<8x500xf32>
    %42 = tpu.matmul %40, %41, %cst_33 {dimension_numbers = #tpu.dot_dimension_numbers<[1], [0], [0], [1], [0, 0, 1, 1], [], []>} : vector<8x2000xbf16>, vector<2000x500xbf16>, vector<8x500xf32> -> vector<8x500xf32>
    %c0_34 = arith.constant 0 : index
    %c0_35 = arith.constant 0 : index
    %43 = vector.load %arg13[%c0_34, %c0_35] : memref<1x500xf32, #tpu.memory_space<vmem>>, vector<1x500xf32>
    %44 = vector.broadcast %43 : vector<1x500xf32> to vector<8x500xf32>
    %45 = arith.addf %42, %44 : vector<8x500xf32>
    %cst_36 = arith.constant 0.000000e+00 : f32
    %46 = vector.broadcast %cst_36 : f32 to vector<8x500xf32>
    %47 = arith.maximumf %45, %46 : vector<8x500xf32>
    %48 = arith.truncf %47 : vector<8x500xf32> to vector<8x500xbf16>
    %c0_37 = arith.constant 0 : index
    %c0_38 = arith.constant 0 : index
    %49 = vector.load %arg14[%c0_37, %c0_38] : memref<500x500xbf16, #tpu.memory_space<vmem>>, vector<500x500xbf16>
    %cst_39 = arith.constant dense<0.000000e+00> : vector<8x500xf32>
    %50 = tpu.matmul %48, %49, %cst_39 {dimension_numbers = #tpu.dot_dimension_numbers<[1], [0], [0], [1], [0, 0, 1, 1], [], []>} : vector<8x500xbf16>, vector<500x500xbf16>, vector<8x500xf32> -> vector<8x500xf32>
    %c0_40 = arith.constant 0 : index
    %c0_41 = arith.constant 0 : index
    %51 = vector.load %arg15[%c0_40, %c0_41] : memref<1x500xf32, #tpu.memory_space<vmem>>, vector<1x500xf32>
    %52 = vector.broadcast %51 : vector<1x500xf32> to vector<8x500xf32>
    %53 = arith.addf %50, %52 : vector<8x500xf32>
    %cst_42 = arith.constant 0.000000e+00 : f32
    %54 = vector.broadcast %cst_42 : f32 to vector<8x500xf32>
    %55 = arith.maximumf %53, %54 : vector<8x500xf32>
    %56 = arith.truncf %55 : vector<8x500xf32> to vector<8x500xbf16>
    %c0_43 = arith.constant 0 : index
    %c0_44 = arith.constant 0 : index
    %57 = vector.load %arg16[%c0_43, %c0_44] : memref<500x784xbf16, #tpu.memory_space<vmem>>, vector<500x784xbf16>
    %cst_45 = arith.constant dense<0.000000e+00> : vector<8x784xf32>
    %58 = tpu.matmul %56, %57, %cst_45 {dimension_numbers = #tpu.dot_dimension_numbers<[1], [0], [0], [1], [0, 0, 1, 1], [], []>} : vector<8x500xbf16>, vector<500x784xbf16>, vector<8x784xf32> -> vector<8x784xf32>
    %c0_46 = arith.constant 0 : index
    %c0_47 = arith.constant 0 : index
    %59 = vector.load %arg17[%c0_46, %c0_47] : memref<1x784xf32, #tpu.memory_space<vmem>>, vector<1x784xf32>
    %60 = vector.broadcast %59 : vector<1x784xf32> to vector<8x784xf32>
    %61 = arith.addf %58, %60 : vector<8x784xf32>
    %62 = arith.negf %61 : vector<8x784xf32>
    %63 = math.exp %62 : vector<8x784xf32>
    %cst_48 = arith.constant 1.000000e+00 : f32
    %64 = vector.broadcast %cst_48 : f32 to vector<8x784xf32>
    %65 = arith.addf %64, %63 : vector<8x784xf32>
    %66 = arith.divf %64, %65 : vector<8x784xf32>
    %c0_49 = arith.constant 0 : index
    %c0_50 = arith.constant 0 : index
    %67 = vector.load %arg18[%c0_49, %c0_50] : memref<8x784xf32, #tpu.memory_space<vmem>>, vector<8x784xf32>
    tpu.vector_store %arg18[%c0_49, %c0_50], %66 {strides = array<i32>} : memref<8x784xf32, #tpu.memory_space<vmem>>, vector<8x784xf32>,
    return
  }
  func.func @transform_0(%arg0: i32) -> (i32, i32) {
    %c0_i32 = arith.constant 0 : i32
    %c0_i32_0 = arith.constant 0 : i32
    return %arg0, %c0_i32 : i32, i32
  }
  func.func @transform_1(%arg0: i32) -> (i32, i32) {
    %c0_i32 = arith.constant 0 : i32
    %c0_i32_0 = arith.constant 0 : i32
    %c0_i32_1 = arith.constant 0 : i32
    return %c0_i32, %c0_i32_0 : i32, i32
  }
  func.func @transform_2(%arg0: i32) -> (i32, i32) {
    %c0_i32 = arith.constant 0 : i32
    %c0_i32_0 = arith.constant 0 : i32
    %c0_i32_1 = arith.constant 0 : i32
    return %c0_i32, %c0_i32_0 : i32, i32
  }
  func.func @transform_3(%arg0: i32) -> (i32, i32) {
    %c0_i32 = arith.constant 0 : i32
    %c0_i32_0 = arith.constant 0 : i32
    %c0_i32_1 = arith.constant 0 : i32
    return %c0_i32, %c0_i32_0 : i32, i32
  }
  func.func @transform_4(%arg0: i32) -> (i32, i32) {
    %c0_i32 = arith.constant 0 : i32
    %c0_i32_0 = arith.constant 0 : i32
    %c0_i32_1 = arith.constant 0 : i32
    return %c0_i32, %c0_i32_0 : i32, i32
  }
  func.func @transform_5(%arg0: i32) -> (i32, i32) {
    %c0_i32 = arith.constant 0 : i32
    %c0_i32_0 = arith.constant 0 : i32
    %c0_i32_1 = arith.constant 0 : i32
    return %c0_i32, %c0_i32_0 : i32, i32
  }
  func.func @transform_6(%arg0: i32) -> (i32, i32) {
    %c0_i32 = arith.constant 0 : i32
    %c0_i32_0 = arith.constant 0 : i32
    %c0_i32_1 = arith.constant 0 : i32
    return %c0_i32, %c0_i32_0 : i32, i32
  }
  func.func @transform_7(%arg0: i32) -> (i32, i32) {
    %c0_i32 = arith.constant 0 : i32
    %c0_i32_0 = arith.constant 0 : i32
    %c0_i32_1 = arith.constant 0 : i32
    return %c0_i32, %c0_i32_0 : i32, i32
  }
  func.func @transform_8(%arg0: i32) -> (i32, i32) {
    %c0_i32 = arith.constant 0 : i32
    %c0_i32_0 = arith.constant 0 : i32
    %c0_i32_1 = arith.constant 0 : i32
    return %c0_i32, %c0_i32_0 : i32, i32
  }
  func.func @transform_9(%arg0: i32) -> (i32, i32) {
    %c0_i32 = arith.constant 0 : i32
    %c0_i32_0 = arith.constant 0 : i32
    %c0_i32_1 = arith.constant 0 : i32
    return %c0_i32, %c0_i32_0 : i32, i32
  }
  func.func @transform_10(%arg0: i32) -> (i32, i32) {
    %c0_i32 = arith.constant 0 : i32
    %c0_i32_0 = arith.constant 0 : i32
    %c0_i32_1 = arith.constant 0 : i32
    return %c0_i32, %c0_i32_0 : i32, i32
  }
  func.func @transform_11(%arg0: i32) -> (i32, i32) {
    %c0_i32 = arith.constant 0 : i32
    %c0_i32_0 = arith.constant 0 : i32
    %c0_i32_1 = arith.constant 0 : i32
    return %c0_i32, %c0_i32_0 : i32, i32
  }
  func.func @transform_12(%arg0: i32) -> (i32, i32) {
    %c0_i32 = arith.constant 0 : i32
    %c0_i32_0 = arith.constant 0 : i32
    %c0_i32_1 = arith.constant 0 : i32
    return %c0_i32, %c0_i32_0 : i32, i32
  }
  func.func @transform_13(%arg0: i32) -> (i32, i32) {
    %c0_i32 = arith.constant 0 : i32
    %c0_i32_0 = arith.constant 0 : i32
    %c0_i32_1 = arith.constant 0 : i32
    return %c0_i32, %c0_i32_0 : i32, i32
  }
  func.func @transform_14(%arg0: i32) -> (i32, i32) {
    %c0_i32 = arith.constant 0 : i32
    %c0_i32_0 = arith.constant 0 : i32
    %c0_i32_1 = arith.constant 0 : i32
    return %c0_i32, %c0_i32_0 : i32, i32
  }
  func.func @transform_15(%arg0: i32) -> (i32, i32) {
    %c0_i32 = arith.constant 0 : i32
    %c0_i32_0 = arith.constant 0 : i32
    %c0_i32_1 = arith.constant 0 : i32
    return %c0_i32, %c0_i32_0 : i32, i32
  }
  func.func @transform_16(%arg0: i32) -> (i32, i32) {
    %c0_i32 = arith.constant 0 : i32
    %c0_i32_0 = arith.constant 0 : i32
    %c0_i32_1 = arith.constant 0 : i32
    return %c0_i32, %c0_i32_0 : i32, i32
  }
  func.func @transform_17(%arg0: i32) -> (i32, i32) {
    %c0_i32 = arith.constant 0 : i32
    %c0_i32_0 = arith.constant 0 : i32
    return %arg0, %c0_i32 : i32, i32
  }
  func.func @transform_18(%arg0: i32) -> (i32, i32) {
    %c0_i32 = arith.constant 0 : i32
    %c0_i32_0 = arith.constant 0 : i32
    return %arg0, %c0_i32 : i32, i32
  }
}

</mosaic_0001>

<bundles_post_ra>
// kernel: ae_forward.1
= control target key start
LH: loop header
LB: loop body
LE: loop exit
PB: predicated region body
PF: predicated region fallthrough
CT: control target
= control target key end

     0   :  { %vm1271_vm0 = vcmask 130048   ;;  %vm2389_vm1 = vcmask 949248   ;;  %vm2393_vm2 = vcmask 1041408   ;;  %vm7432_vm3 = vcmask 654336   ;;  %s25019_s1 = inlined_call_operand.vmem [shape: bf16[784,500], index: 1, kind: input, shape index: {}]   ;;  %s25020_s0 = inlined_call_operand.vmem [shape: f32[8,784], index: 0, kind: input, shape index: {}]   ;;  %s25021_s3 = inlined_call_operand.vmem [shape: bf16[500,500], index: 3, kind: input, shape index: {}]   ;;  %s25022_s2 = inlined_call_operand.vmem [shape: f32[1,500], index: 2, kind: input, shape index: {}]   ;;  %s25023_s5 = inlined_call_operand.vmem [shape: bf16[500,2000], index: 5, kind: input, shape index: {}]   ;;  %s25024_s4 = inlined_call_operand.vmem [shape: f32[1,500], index: 4, kind: input, shape index: {}]   ;;  %s25025_s7 = inlined_call_operand.vmem [shape: bf16[2000,10], index: 7, kind: input, shape index: {}]   ;;  %s25026_s6 = inlined_call_operand.vmem [shape: f32[1,2000], index: 6, kind: input, shape index: {}]   ;;  %s25027_s8 = inlined_call_operand.vmem [shape: f32[1,10], index: 8, kind: input, shape index: {}]   ;;  %s25028_s9 = inlined_call_operand.vmem [shape: bf16[10,2000], index: 9, kind: input, shape index: {}]   ;;  %s25029_s11 = inlined_call_operand.vmem [shape: bf16[2000,500], index: 11, kind: input, shape index: {}]   ;;  %s25030_s18 = inlined_call_operand.vmem [shape: f32[8,10], index: 18, kind: output, shape index: {1}]   ;;  %s25031_s10 = inlined_call_operand.vmem [shape: f32[1,2000], index: 10, kind: input, shape index: {}]   ;;  %s25032_s13 = inlined_call_operand.vmem [shape: bf16[500,500], index: 13, kind: input, shape index: {}]   ;;  %s25033_s15 = inlined_call_operand.vmem [shape: bf16[500,784], index: 15, kind: input, shape index: {}]   ;;  %s25034_s12 = inlined_call_operand.vmem [shape: f32[1,500], index: 12, kind: input, shape index: {}]   ;;  %s25035_s14 = inlined_call_operand.vmem [shape: f32[1,500], index: 14, kind: input, shape index: {}]   ;;  %s25036_s16 = inlined_call_operand.vmem [shape: f32[1,784], index: 16, kind: input, shape index: {}]   ;;  %s25037_s17 = inlined_call_operand.vmem [shape: f32[8,784], index: 17, kind: output, shape index: {0}]  }
   0x1   :  { %25041 = sst [smem:[#allocation2_spill]] %s25019_s1  ;;  %vm7926_vm4 = vcmask 1044480   ;;  %vm7756_vm5 = vcmask 80896  }
   0x2   :  { %25042 = sst [smem:[#allocation3_spill]] %s25020_s0  ;;  %s25044_s29 = sld [smem:[#allocation2_spill]] }
   0x3   :  { %25043 = sst [smem:[#allocation4_spill]] %s25021_s3  ;;  %s25045_s23 = sld [smem:[#allocation3_spill]] }
   0x4   :  { %s25046_s24 = sld [smem:[#allocation4_spill]] }
   0x8   :  { %v17086_v0 = vld [vmem:[%s25044_s29 + $0x4] ss:$16 sps:$4 sm:$0xff]   ;;  %v17088_v1 = vld [vmem:[%s25044_s29 + $0xc] ss:$16 sps:$4 sm:$0xff]   ;;  %v17090_v2 = vld [vmem:[%s25044_s29] ss:$16 sps:$4 sm:$0xff]  }
   0x9   :  { %1275 = vmatprep.subr.bf16.mxu0 %v17086_v0  ;;  %v17091_v3 = vld [vmem:[%s25044_s29 + $0x8] ss:$16 sps:$4 sm:$0xff]   ;;  %1439 = vmatprep.subr.bf16.mxu1 %v17088_v1  ;;  %v17092_v4 = vld [vmem:[%s25044_s29 + $0x24] ss:$16 sps:$4 sm:$0xff]   ;;  %v17094_v5 = vld [vmem:[%s25044_s29 + $0x2c] ss:$16 sps:$4 sm:$0xff]  }
   0xa   :  { %1276 = vmatpush1.bf16.msra.mxu0 %v17090_v2  ;;  %1440 = vmatpush1.bf16.msra.mxu1 %v17091_v3  ;;  %v17096_v6 = vld [vmem:[%s25044_s29 + $0x20] ss:$16 sps:$4 sm:$0xff]   ;;  %v17097_v7 = vld [vmem:[%s25044_s29 + $0x28] ss:$16 sps:$4 sm:$0xff]   ;;  %v17098_v8 = vld [vmem:[%s25044_s29 + $0x44] ss:$16 sps:$4 sm:$0xff]  }
   0xb   :  { %1277 = vmatprep.subr.bf16.mxu0 %v17092_v4  ;;  %1441 = vmatprep.subr.bf16.mxu1 %v17094_v5  ;;  %v17100_v9 = vld [vmem:[%s25044_s29 + $0x4c] ss:$16 sps:$4 sm:$0xff]   ;;  %v17102_v10 = vld [vmem:[%s25044_s29 + $0x40] ss:$16 sps:$4 sm:$0xff]   ;;  %v17103_v11 = vld [vmem:[%s25044_s29 + $0x48] ss:$16 sps:$4 sm:$0xff]  }
   0xc   :  { %v17104_v12 = vld [vmem:[%s25044_s29 + $0x64] ss:$16 sps:$4 sm:$0xff]   ;;  %v17106_v13 = vld [vmem:[%s25044_s29 + $0x6c] ss:$16 sps:$4 sm:$0xff]   ;;  %v17108_v14 = vld [vmem:[%s25044_s29 + $0x60] ss:$16 sps:$4 sm:$0xff]  }
   0xd   :  { %v17109_v15 = vld [vmem:[%s25044_s29 + $0x68] ss:$16 sps:$4 sm:$0xff]   ;;  %v17110_v16 = vld [vmem:[%s25044_s29 + $0x84] ss:$16 sps:$4 sm:$0xff]   ;;  %v17112_v17 = vld [vmem:[%s25044_s29 + $0x8c] ss:$16 sps:$4 sm:$0xff]  }
   0xe   :  { %1278 = vmatpush1.bf16.msra.mxu0 %v17096_v6  ;;  %1442 = vmatpush1.bf16.msra.mxu1 %v17097_v7  ;;  %v17114_v18 = vld [vmem:[%s25044_s29 + $0x80] ss:$16 sps:$4 sm:$0xff]   ;;  %v17115_v19 = vld [vmem:[%s25044_s29 + $0x88] ss:$16 sps:$4 sm:$0xff]   ;;  %v17116_v20 = vld [vmem:[%s25044_s29 + $0xa4] ss:$16 sps:$4 sm:$0xff]  }
   0xf   :  { %1279 = vmatprep.subr.bf16.mxu0 %v17098_v8  ;;  %1443 = vmatprep.subr.bf16.mxu1 %v17100_v9  ;;  %v17118_v21 = vld [vmem:[%s25044_s29 + $0xac] ss:$16 sps:$4 sm:$0xff]   ;;  %v17120_v22 = vld [vmem:[%s25044_s29 + $0xa0] ss:$16 sps:$4 sm:$0xff]   ;;  %v17121_v23 = vld [vmem:[%s25044_s29 + $0xa8] ss:$16 sps:$4 sm:$0xff]  }
  0x10   :  { %v17122_v24 = vld [vmem:[%s25044_s29 + $0xc4] ss:$16 sps:$4 sm:$0xff]   ;;  %v17124_v25 = vld [vmem:[%s25044_s29 + $0xcc] ss:$16 sps:$4 sm:$0xff]   ;;  %v17126_v26 = vld [vmem:[%s25044_s29 + $0xc0] ss:$16 sps:$4 sm:$0xff]  }
  0x11   :  { %v17127_v27 = vld [vmem:[%s25044_s29 + $0xc8] ss:$16 sps:$4 sm:$0xff]   ;;  %v17128_v28 = vld [vmem:[%s25044_s29 + $0xe4] ss:$16 sps:$4 sm:$0xff]   ;;  %v17130_v29 = vld [vmem:[%s25044_s29 + $0xec] ss:$16 sps:$4 sm:$0xff]  }
  0x12   :  { %1280 = vmatpush1.bf16.msra.mxu0 %v17102_v10  ;;  %1444 = vmatpush1.bf16.msra.mxu1 %v17103_v11  ;;  %v17132_v30 = vld [vmem:[%s25044_s29 + $0xe0] ss:$16 sps:$4 sm:$0xff]   ;;  %v17133_v31 = vld [vmem:[%s25044_s29 + $0xe8] ss:$16 sps:$4 sm:$0xff]   ;;  %v17134_v32 = vld [vmem:[%s25044_s29 + $0x104] ss:$16 sps:$4 sm:$0xff]  }
  0x13   :  { %1281 = vmatprep.subr.bf16.mxu0 %v17104_v12  ;;  %1445 = vmatprep.subr.bf16.mxu1 %v17106_v13  ;;  %v17136_v33 = vld [vmem:[%s25044_s29 + $0x10c] ss:$16 sps:$4 sm:$0xff]   ;;  %v17138_v34 = vld [vmem:[%s25044_s29 + $0x100] ss:$16 sps:$4 sm:$0xff]   ;;  %v17139_v35 = vld [vmem:[%s25044_s29 + $0x108] ss:$16 sps:$4 sm:$0xff]  }
  0x14   :  { %v17140_v36 = vld [vmem:[%s25044_s29 + $0x124] ss:$16 sps:$4 sm:$0xff]   ;;  %v17142_v37 = vld [vmem:[%s25044_s29 + $0x12c] ss:$16 sps:$4 sm:$0xff]   ;;  %v17144_v38 = vld [vmem:[%s25044_s29 + $0x120] ss:$16 sps:$4 sm:$0xff]  }
  0x15   :  { %v17145_v39 = vld [vmem:[%s25044_s29 + $0x128] ss:$16 sps:$4 sm:$0xff]   ;;  %v17146_v40 = vld [vmem:[%s25044_s29 + $0x144] ss:$16 sps:$4 sm:$0xff]   ;;  %v17148_v41 = vld [vmem:[%s25044_s29 + $0x14c] ss:$16 sps:$4 sm:$0xff]  }
  0x16   :  { %1282 = vmatpush1.bf16.msra.mxu0 %v17108_v14  ;;  %1446 = vmatpush1.bf16.msra.mxu1 %v17109_v15  ;;  %v17150_v42 = vld [vmem:[%s25044_s29 + $0x140] ss:$16 sps:$4 sm:$0xff]   ;;  %v17151_v43 = vld [vmem:[%s25044_s29 + $0x148] ss:$16 sps:$4 sm:$0xff]   ;;  %v17152_v44 = vld [vmem:[%s25044_s29 + $0x164] ss:$16 sps:$4 sm:$0xff]  }
  0x17   :  { %1283 = vmatprep.subr.bf16.mxu0 %v17110_v16  ;;  %1447 = vmatprep.subr.bf16.mxu1 %v17112_v17  ;;  %v17154_v45 = vld [vmem:[%s25044_s29 + $0x16c] ss:$16 sps:$4 sm:$0xff]   ;;  %v17156_v47 = vld [vmem:[%s25044_s29 + $0x160] ss:$16 sps:$4 sm:$0xff]   ;;  %v17157_v49 = vld [vmem:[%s25044_s29 + $0x168] ss:$16 sps:$4 sm:$0xff]  }
  0x18   :  { %v60_v46 = vld [vmem:[%s25045_s23 + $0x8] sm:$0xff]  ;;  %v17158_v50 = vld [vmem:[%s25044_s29 + $0x184] ss:$16 sps:$4 sm:$0xff]   ;;  %v17162_v52 = vld [vmem:[%s25044_s29 + $0x180] ss:$16 sps:$4 sm:$0xff]  }
  0x19   :  { %v67_v48 = vpack.c.bf16 %v60_v46, %v60_v46  ;;  %v17160_v51 = vld [vmem:[%s25044_s29 + $0x18c] ss:$16 sps:$4 sm:$0xff]   ;;  %v17163_v53 = vld [vmem:[%s25044_s29 + $0x188] ss:$16 sps:$4 sm:$0xff]   ;;  %v17164_v54 = vld [vmem:[%s25044_s29 + $0x1a4] ss:$16 sps:$4 sm:$0xff]  }
  0x1a   :  { %1284 = vmatpush1.bf16.msra.mxu0 %v17114_v18  ;;  %1448 = vmatpush1.bf16.msra.mxu1 %v17115_v19  ;;  %v17166_v55 = vld [vmem:[%s25044_s29 + $0x1ac] ss:$16 sps:$4 sm:$0xff]   ;;  %v17168_v56 = vld [vmem:[%s25044_s29 + $0x1a0] ss:$16 sps:$4 sm:$0xff]   ;;  %v17169_v57 = vld [vmem:[%s25044_s29 + $0x1a8] ss:$16 sps:$4 sm:$0xff]  }
  0x1b   :  { %1285 = vmatprep.subr.bf16.mxu0 %v17116_v20  ;;  %1449 = vmatprep.subr.bf16.mxu1 %v17118_v21  ;;  %v17170_v58 = vld [vmem:[%s25044_s29 + $0x1c4] ss:$16 sps:$4 sm:$0xff]   ;;  %v17172_v59 = vld [vmem:[%s25044_s29 + $0x1cc] ss:$16 sps:$4 sm:$0xff]   ;;  %v17174_v60 = vld [vmem:[%s25044_s29 + $0x1c0] ss:$16 sps:$4 sm:$0xff]  }
  0x1c   :  { %1307 = vmatprep.mubr.bf16.mxu0 %v67_v48  ;;  %1471 = vmatprep.mubr.bf16.mxu1 %v67_v48  ;;  %v17175_v61 = vld [vmem:[%s25044_s29 + $0x1c8] ss:$16 sps:$4 sm:$0xff]   ;;  %v17176_v62 = vld [vmem:[%s25044_s29 + $0x1e4] ss:$16 sps:$4 sm:$0xff]   ;;  %v17178_v63 = vld [vmem:[%s25044_s29 + $0x1ec] ss:$16 sps:$4 sm:$0xff]  }
  0x1d   :  { %v17180_v0 = vld [vmem:[%s25044_s29 + $0x1e0] ss:$16 sps:$4 sm:$0xff]   ;;  %v17181_v1 = vld [vmem:[%s25044_s29 + $0x1e8] ss:$16 sps:$4 sm:$0xff]   ;;  %v17184_v3 = vld [vmem:[%s25044_s29 + $0x204] ss:$16 sps:$4 sm:$0xff]  }
  0x1e   :  { %1286 = vmatpush1.bf16.msra.mxu0 %v17120_v22  ;;  %1450 = vmatpush1.bf16.msra.mxu1 %v17121_v23  ;;  %v59_v2 = vld [vmem:[%s25045_s23] sm:$0xff]  ;;  %v17187_v4 = vld [vmem:[%s25044_s29 + $0x20c] ss:$16 sps:$4 sm:$0xff]   ;;  %v17185_v7 = vld [vmem:[%s25044_s29 + $0x208] ss:$16 sps:$4 sm:$0xff]  }
  0x1f   :  { %1287 = vmatprep.subr.bf16.mxu0 %v17122_v24  ;;  %1451 = vmatprep.subr.bf16.mxu1 %v17124_v25  ;;  %v66_v5 = vpack.c.bf16 %v59_v2, %v59_v2  ;;  %v17182_v6 = vld [vmem:[%s25044_s29 + $0x200] ss:$16 sps:$4 sm:$0xff]   ;;  %v17190_v8 = vld [vmem:[%s25044_s29 + $0x224] ss:$16 sps:$4 sm:$0xff]   ;;  %v17193_v9 = vld [vmem:[%s25044_s29 + $0x22c] ss:$16 sps:$4 sm:$0xff]  }
  0x20   :  { %v17188_v10 = vld [vmem:[%s25044_s29 + $0x220] ss:$16 sps:$4 sm:$0xff]   ;;  %v17191_v11 = vld [vmem:[%s25044_s29 + $0x228] ss:$16 sps:$4 sm:$0xff]   ;;  %v17196_v12 = vld [vmem:[%s25044_s29 + $0x244] ss:$16 sps:$4 sm:$0xff]  }
  0x21   :  { %v17199_v13 = vld [vmem:[%s25044_s29 + $0x24c] ss:$16 sps:$4 sm:$0xff]   ;;  %v17194_v14 = vld [vmem:[%s25044_s29 + $0x240] ss:$16 sps:$4 sm:$0xff]   ;;  %v17197_v15 = vld [vmem:[%s25044_s29 + $0x248] ss:$16 sps:$4 sm:$0xff]  }
  0x22   :  { %1288 = vmatpush1.bf16.msra.mxu0 %v17126_v26  ;;  %1452 = vmatpush1.bf16.msra.mxu1 %v17127_v27  ;;  %v17202_v16 = vld [vmem:[%s25044_s29 + $0x264] ss:$16 sps:$4 sm:$0xff]   ;;  %v17205_v17 = vld [vmem:[%s25044_s29 + $0x26c] ss:$16 sps:$4 sm:$0xff]   ;;  %v17200_v18 = vld [vmem:[%s25044_s29 + $0x260] ss:$16 sps:$4 sm:$0xff]  }
  0x23   :  { %1289 = vmatprep.subr.bf16.mxu0 %v17128_v28  ;;  %1453 = vmatprep.subr.bf16.mxu1 %v17130_v29  ;;  %v17203_v19 = vld [vmem:[%s25044_s29 + $0x268] ss:$16 sps:$4 sm:$0xff]   ;;  %v17208_v20 = vld [vmem:[%s25044_s29 + $0x284] ss:$16 sps:$4 sm:$0xff]   ;;  %v17211_v21 = vld [vmem:[%s25044_s29 + $0x28c] ss:$16 sps:$4 sm:$0xff]  }
  0x24   :  { %v17206_v22 = vld [vmem:[%s25044_s29 + $0x280] ss:$16 sps:$4 sm:$0xff]   ;;  %v17209_v23 = vld [vmem:[%s25044_s29 + $0x288] ss:$16 sps:$4 sm:$0xff]   ;;  %v17214_v24 = vld [vmem:[%s25044_s29 + $0x2a4] ss:$16 sps:$4 sm:$0xff]  }
  0x25   :  { %v17217_v25 = vld [vmem:[%s25044_s29 + $0x2ac] ss:$16 sps:$4 sm:$0xff]   ;;  %v17212_v26 = vld [vmem:[%s25044_s29 + $0x2a0] ss:$16 sps:$4 sm:$0xff]   ;;  %v17215_v27 = vld [vmem:[%s25044_s29 + $0x2a8] ss:$16 sps:$4 sm:$0xff]  }
  0x26   :  { %1290 = vmatpush1.bf16.msra.mxu0 %v17132_v30  ;;  %1454 = vmatpush1.bf16.msra.mxu1 %v17133_v31  ;;  %v17220_v28 = vld [vmem:[%s25044_s29 + $0x2c4] ss:$16 sps:$4 sm:$0xff]   ;;  %v17223_v29 = vld [vmem:[%s25044_s29 + $0x2cc] ss:$16 sps:$4 sm:$0xff]   ;;  %v17218_v31 = vld [vmem:[%s25044_s29 + $0x2c0] ss:$16 sps:$4 sm:$0xff]  }
  0x27   :  { %1291 = vmatprep.subr.bf16.mxu0 %v17134_v32  ;;  %1455 = vmatprep.subr.bf16.mxu1 %v17136_v33  ;;  %v62_v30 = vld [vmem:[%s25045_s23 + $0x18] sm:$0xff]  ;;  %v17244_v46 = vld [vmem:[%s25044_s29 + $0x344] ss:$16 sps:$4 sm:$0xff]   ;;  %v17242_v48 = vld [vmem:[%s25044_s29 + $0x340] ss:$16 sps:$4 sm:$0xff]  }
  0x28   :  { %v69_v32 = vpack.c.bf16 %v62_v30, %v62_v30  ;;  %v17221_v33 = vld [vmem:[%s25044_s29 + $0x2c8] ss:$16 sps:$4 sm:$0xff]   ;;  %v17274_v2 = vld [vmem:[%s25044_s29 + $0x3e4] ss:$16 sps:$4 sm:$0xff]  }
  0x29   :  { %v17310_v30 = vld [vmem:[%s25044_s29 + $0x4a4] ss:$16 sps:$4 sm:$0xff]  }
  0x2a   :  { %1292 = vmatpush1.bf16.msra.mxu0 %v17138_v34  ;;  %1456 = vmatpush1.bf16.msra.mxu1 %v17139_v35  ;;  %v17226_v34 = vld [vmem:[%s25044_s29 + $0x2e4] ss:$16 sps:$4 sm:$0xff]   ;;  %v17229_v35 = vld [vmem:[%s25044_s29 + $0x2ec] ss:$16 sps:$4 sm:$0xff]  }
  0x2b   :  { %1293 = vmatprep.subr.bf16.mxu0 %v17140_v36  ;;  %1457 = vmatprep.subr.bf16.mxu1 %v17142_v37  ;;  %v17224_v36 = vld [vmem:[%s25044_s29 + $0x2e0] ss:$16 sps:$4 sm:$0xff]   ;;  %v17227_v37 = vld [vmem:[%s25044_s29 + $0x2e8] ss:$16 sps:$4 sm:$0xff]  }
  0x2e   :  { %1294 = vmatpush1.bf16.msra.mxu0 %v17144_v38  ;;  %1458 = vmatpush1.bf16.msra.mxu1 %v17145_v39  ;;  %v17232_v38 = vld [vmem:[%s25044_s29 + $0x304] ss:$16 sps:$4 sm:$0xff]   ;;  %v17235_v39 = vld [vmem:[%s25044_s29 + $0x30c] ss:$16 sps:$4 sm:$0xff]  }
  0x2f   :  { %1295 = vmatprep.subr.bf16.mxu0 %v17146_v40  ;;  %1459 = vmatprep.subr.bf16.mxu1 %v17148_v41  ;;  %v17230_v40 = vld [vmem:[%s25044_s29 + $0x300] ss:$16 sps:$4 sm:$0xff]   ;;  %v17233_v41 = vld [vmem:[%s25044_s29 + $0x308] ss:$16 sps:$4 sm:$0xff]  }
  0x32   :  { %1296 = vmatpush1.bf16.msra.mxu0 %v17150_v42  ;;  %1460 = vmatpush1.bf16.msra.mxu1 %v17151_v43  ;;  %v17238_v42 = vld [vmem:[%s25044_s29 + $0x324] ss:$16 sps:$4 sm:$0xff]   ;;  %v17241_v43 = vld [vmem:[%s25044_s29 + $0x32c] ss:$16 sps:$4 sm:$0xff]  }
  0x33   :  { %1297 = vmatprep.subr.bf16.mxu0 %v17152_v44  ;;  %1461 = vmatprep.subr.bf16.mxu1 %v17154_v45  ;;  %v17236_v44 = vld [vmem:[%s25044_s29 + $0x320] ss:$16 sps:$4 sm:$0xff]   ;;  %v17239_v45 = vld [vmem:[%s25044_s29 + $0x328] ss:$16 sps:$4 sm:$0xff]  }
  0x36   :  { %1298 = vmatpush1.bf16.msra.mxu0 %v17156_v47  ;;  %1462 = vmatpush1.bf16.msra.mxu1 %v17157_v49  ;;  %v17247_v47 = vld [vmem:[%s25044_s29 + $0x34c] ss:$16 sps:$4 sm:$0xff]   ;;  %v17245_v49 = vld [vmem:[%s25044_s29 + $0x348] ss:$16 sps:$4 sm:$0xff]  }
  0x37   :  { %1299 = vmatprep.subr.bf16.mxu0 %v17158_v50  ;;  %1463 = vmatprep.subr.bf16.mxu1 %v17160_v51  ;;  %v17250_v50 = vld [vmem:[%s25044_s29 + $0x364] ss:$16 sps:$4 sm:$0xff]   ;;  %v17253_v51 = vld [vmem:[%s25044_s29 + $0x36c] ss:$16 sps:$4 sm:$0xff]  }
  0x3a   :  { %1300 = vmatpush1.bf16.msra.mxu0 %v17162_v52  ;;  %1464 = vmatpush1.bf16.msra.mxu1 %v17163_v53  ;;  %v17248_v52 = vld [vmem:[%s25044_s29 + $0x360] ss:$16 sps:$4 sm:$0xff]   ;;  %v17251_v53 = vld [vmem:[%s25044_s29 + $0x368] ss:$16 sps:$4 sm:$0xff]  }
  0x3b   :  { %1301 = vmatprep.subr.bf16.mxu0 %v17164_v54  ;;  %1465 = vmatprep.subr.bf16.mxu1 %v17166_v55  ;;  %v17256_v54 = vld [vmem:[%s25044_s29 + $0x384] ss:$16 sps:$4 sm:$0xff]   ;;  %v17259_v55 = vld [vmem:[%s25044_s29 + $0x38c] ss:$16 sps:$4 sm:$0xff]  }
  0x3e   :  { %1302 = vmatpush1.bf16.msra.mxu0 %v17168_v56  ;;  %1466 = vmatpush1.bf16.msra.mxu1 %v17169_v57  ;;  %v17254_v56 = vld [vmem:[%s25044_s29 + $0x380] ss:$16 sps:$4 sm:$0xff]   ;;  %v17257_v57 = vld [vmem:[%s25044_s29 + $0x388] ss:$16 sps:$4 sm:$0xff]  }
  0x3f   :  { %1303 = vmatprep.subr.bf16.mxu0 %v17170_v58  ;;  %1467 = vmatprep.subr.bf16.mxu1 %v17172_v59  ;;  %v17262_v58 = vld [vmem:[%s25044_s29 + $0x3a4] ss:$16 sps:$4 sm:$0xff]   ;;  %v17265_v59 = vld [vmem:[%s25044_s29 + $0x3ac] ss:$16 sps:$4 sm:$0xff]  }
  0x42   :  { %1304 = vmatpush1.bf16.msra.mxu0 %v17174_v60  ;;  %1468 = vmatpush1.bf16.msra.mxu1 %v17175_v61  ;;  %v17260_v60 = vld [vmem:[%s25044_s29 + $0x3a0] ss:$16 sps:$4 sm:$0xff]   ;;  %v17263_v61 = vld [vmem:[%s25044_s29 + $0x3a8] ss:$16 sps:$4 sm:$0xff]  }
  0x43   :  { %1305 = vmatprep.subr.bf16.mxu0 %v17176_v62  ;;  %1469 = vmatprep.subr.bf16.mxu1 %v17178_v63  ;;  %v17268_v62 = vld [vmem:[%s25044_s29 + $0x3c4] ss:$16 sps:$4 sm:$0xff]   ;;  %v17271_v63 = vld [vmem:[%s25044_s29 + $0x3cc] ss:$16 sps:$4 sm:$0xff]  }
  0x46   :  { %1306 = vmatpush1.bf16.msra.mxu0 %v17180_v0  ;;  %1470 = vmatpush1.bf16.msra.mxu1 %v17181_v1  ;;  %v17266_v0 = vld [vmem:[%s25044_s29 + $0x3c0] ss:$16 sps:$4 sm:$0xff]   ;;  %v17269_v1 = vld [vmem:[%s25044_s29 + $0x3c8] ss:$16 sps:$4 sm:$0xff]  }
  0x47   :  { %1316 = vmatprep.subr.bf16.mxu0 %v17184_v3  ;;  %1480 = vmatprep.subr.bf16.mxu1 %v17187_v4  ;;  %v17277_v3 = vld [vmem:[%s25044_s29 + $0x3ec] ss:$16 sps:$4 sm:$0xff]   ;;  %v17272_v4 = vld [vmem:[%s25044_s29 + $0x3e0] ss:$16 sps:$4 sm:$0xff]  }
  0x49   :  { %1308 = vmatmul.mubr.bf16.vlgmr.msra.gmra.mrb[0].mxu0 %v66_v5  ;;  %1472 = vmatmul.mubr.bf16.vlgmr.msra.gmra.mrb[0].mxu1 %v66_v5  ;;  %v17275_v5 = vld [vmem:[%s25044_s29 + $0x3e8] ss:$16 sps:$4 sm:$0xff]  }
  0x4a   :  { %1317 = vmatpush1.bf16.msra.mxu0 %v17182_v6  ;;  %1481 = vmatpush1.bf16.msra.mxu1 %v17185_v7  ;;  %v17280_v6 = vld [vmem:[%s25044_s29 + $0x404] ss:$16 sps:$4 sm:$0xff]  }
  0x4b   :  { %1318 = vmatprep.subr.bf16.mxu0 %v17190_v8  ;;  %1482 = vmatprep.subr.bf16.mxu1 %v17193_v9  ;;  %v61_v7 = vld [vmem:[%s25045_s23 + $0x10] sm:$0xff]  ;;  %v17283_v8 = vld [vmem:[%s25044_s29 + $0x40c] ss:$16 sps:$4 sm:$0xff]  }
  0x4c   :  { %1348 = vmatprep.mubr.bf16.mxu0 %v69_v32  ;;  %1512 = vmatprep.mubr.bf16.mxu1 %v69_v32  ;;  %v17278_v9 = vld [vmem:[%s25044_s29 + $0x400] ss:$16 sps:$4 sm:$0xff]  }
  0x4d   :  { %v17308_v32 = vld [vmem:[%s25044_s29 + $0x4a0] ss:$16 sps:$4 sm:$0xff]  }
  0x4e   :  { %1319 = vmatpush1.bf16.msra.mxu0 %v17188_v10  ;;  %1483 = vmatpush1.bf16.msra.mxu1 %v17191_v11  ;;  %v68_v10 = vpack.c.bf16 %v61_v7, %v61_v7  ;;  %v17281_v11 = vld [vmem:[%s25044_s29 + $0x408] ss:$16 sps:$4 sm:$0xff]   ;;  %v17373_v7 = vld [vmem:[%s25044_s29 + $0x5ec] ss:$16 sps:$4 sm:$0xff]  }
  0x4f   :  { %1320 = vmatprep.subr.bf16.mxu0 %v17196_v12  ;;  %1484 = vmatprep.subr.bf16.mxu1 %v17199_v13  ;;  %v17286_v12 = vld [vmem:[%s25044_s29 + $0x424] ss:$16 sps:$4 sm:$0xff]   ;;  %v17289_v13 = vld [vmem:[%s25044_s29 + $0x42c] ss:$16 sps:$4 sm:$0xff]  }
  0x52   :  { %1321 = vmatpush1.bf16.msra.mxu0 %v17194_v14  ;;  %1485 = vmatpush1.bf16.msra.mxu1 %v17197_v15  ;;  %v64_v14 = vld [vmem:[%s25045_s23 + $0x28] sm:$0xff] }
  0x53   :  { %1322 = vmatprep.subr.bf16.mxu0 %v17202_v16  ;;  %1486 = vmatprep.subr.bf16.mxu1 %v17205_v17  ;;  %v71_v15 = vpack.c.bf16 %v64_v14, %v64_v14  ;;  %v17284_v16 = vld [vmem:[%s25044_s29 + $0x420] ss:$16 sps:$4 sm:$0xff]   ;;  %v17287_v17 = vld [vmem:[%s25044_s29 + $0x428] ss:$16 sps:$4 sm:$0xff]  }
  0x54   :  { %v17377_v14 = vld [vmem:[%s25044_s29 + $0x608] ss:$16 sps:$4 sm:$0xff]  }
  0x56   :  { %1323 = vmatpush1.bf16.msra.mxu0 %v17200_v18  ;;  %1487 = vmatpush1.bf16.msra.mxu1 %v17203_v19  ;;  %v17292_v18 = vld [vmem:[%s25044_s29 + $0x444] ss:$16 sps:$4 sm:$0xff]   ;;  %v17295_v19 = vld [vmem:[%s25044_s29 + $0x44c] ss:$16 sps:$4 sm:$0xff]  }
  0x57   :  { %1324 = vmatprep.subr.bf16.mxu0 %v17208_v20  ;;  %1488 = vmatprep.subr.bf16.mxu1 %v17211_v21  ;;  %v17290_v20 = vld [vmem:[%s25044_s29 + $0x440] ss:$16 sps:$4 sm:$0xff]   ;;  %v17293_v21 = vld [vmem:[%s25044_s29 + $0x448] ss:$16 sps:$4 sm:$0xff]  }
  0x5a   :  { %1325 = vmatpush1.bf16.msra.mxu0 %v17206_v22  ;;  %1489 = vmatpush1.bf16.msra.mxu1 %v17209_v23  ;;  %v17298_v22 = vld [vmem:[%s25044_s29 + $0x464] ss:$16 sps:$4 sm:$0xff]   ;;  %v17301_v23 = vld [vmem:[%s25044_s29 + $0x46c] ss:$16 sps:$4 sm:$0xff]  }
  0x5b   :  { %1326 = vmatprep.subr.bf16.mxu0 %v17214_v24  ;;  %1490 = vmatprep.subr.bf16.mxu1 %v17217_v25  ;;  %v17296_v24 = vld [vmem:[%s25044_s29 + $0x460] ss:$16 sps:$4 sm:$0xff]   ;;  %v17299_v25 = vld [vmem:[%s25044_s29 + $0x468] ss:$16 sps:$4 sm:$0xff]  }
  0x5e   :  { %1327 = vmatpush1.bf16.msra.mxu0 %v17212_v26  ;;  %1491 = vmatpush1.bf16.msra.mxu1 %v17215_v27  ;;  %v17304_v26 = vld [vmem:[%s25044_s29 + $0x484] ss:$16 sps:$4 sm:$0xff]   ;;  %v17307_v27 = vld [vmem:[%s25044_s29 + $0x48c] ss:$16 sps:$4 sm:$0xff]  }
  0x5f   :  { %1328 = vmatprep.subr.bf16.mxu0 %v17220_v28  ;;  %1492 = vmatprep.subr.bf16.mxu1 %v17223_v29  ;;  %v17302_v28 = vld [vmem:[%s25044_s29 + $0x480] ss:$16 sps:$4 sm:$0xff]   ;;  %v17305_v29 = vld [vmem:[%s25044_s29 + $0x488] ss:$16 sps:$4 sm:$0xff]  }
  0x62   :  { %1329 = vmatpush1.bf16.msra.mxu0 %v17218_v31  ;;  %1493 = vmatpush1.bf16.msra.mxu1 %v17221_v33  ;;  %v17313_v31 = vld [vmem:[%s25044_s29 + $0x4ac] ss:$16 sps:$4 sm:$0xff]   ;;  %v17311_v33 = vld [vmem:[%s25044_s29 + $0x4a8] ss:$16 sps:$4 sm:$0xff]  }
  0x63   :  { %1330 = vmatprep.subr.bf16.mxu0 %v17226_v34  ;;  %1494 = vmatprep.subr.bf16.mxu1 %v17229_v35  ;;  %v17316_v34 = vld [vmem:[%s25044_s29 + $0x4c4] ss:$16 sps:$4 sm:$0xff]   ;;  %v17319_v35 = vld [vmem:[%s25044_s29 + $0x4cc] ss:$16 sps:$4 sm:$0xff]  }
  0x66   :  { %1331 = vmatpush1.bf16.msra.mxu0 %v17224_v36  ;;  %1495 = vmatpush1.bf16.msra.mxu1 %v17227_v37  ;;  %v17314_v36 = vld [vmem:[%s25044_s29 + $0x4c0] ss:$16 sps:$4 sm:$0xff]   ;;  %v17317_v37 = vld [vmem:[%s25044_s29 + $0x4c8] ss:$16 sps:$4 sm:$0xff]  }
  0x67   :  { %1332 = vmatprep.subr.bf16.mxu0 %v17232_v38  ;;  %1496 = vmatprep.subr.bf16.mxu1 %v17235_v39  ;;  %v17322_v38 = vld [vmem:[%s25044_s29 + $0x4e4] ss:$16 sps:$4 sm:$0xff]   ;;  %v17325_v39 = vld [vmem:[%s25044_s29 + $0x4ec] ss:$16 sps:$4 sm:$0xff]  }
  0x6a   :  { %1333 = vmatpush1.bf16.msra.mxu0 %v17230_v40  ;;  %1497 = vmatpush1.bf16.msra.mxu1 %v17233_v41  ;;  %v17320_v40 = vld [vmem:[%s25044_s29 + $0x4e0] ss:$16 sps:$4 sm:$0xff]   ;;  %v17323_v41 = vld [vmem:[%s25044_s29 + $0x4e8] ss:$16 sps:$4 sm:$0xff]  }
  0x6b   :  { %1334 = vmatprep.subr.bf16.mxu0 %v17238_v42  ;;  %1498 = vmatprep.subr.bf16.mxu1 %v17241_v43  ;;  %v17328_v42 = vld [vmem:[%s25044_s29 + $0x504] ss:$16 sps:$4 sm:$0xff]   ;;  %v17331_v43 = vld [vmem:[%s25044_s29 + $0x50c] ss:$16 sps:$4 sm:$0xff]  }
  0x6e   :  { %1335 = vmatpush1.bf16.msra.mxu0 %v17236_v44  ;;  %1499 = vmatpush1.bf16.msra.mxu1 %v17239_v45  ;;  %v17326_v44 = vld [vmem:[%s25044_s29 + $0x500] ss:$16 sps:$4 sm:$0xff]   ;;  %v17329_v45 = vld [vmem:[%s25044_s29 + $0x508] ss:$16 sps:$4 sm:$0xff]  }
  0x6f   :  { %1336 = vmatprep.subr.bf16.mxu0 %v17244_v46  ;;  %1500 = vmatprep.subr.bf16.mxu1 %v17247_v47  ;;  %v17334_v46 = vld [vmem:[%s25044_s29 + $0x524] ss:$16 sps:$4 sm:$0xff]   ;;  %v17337_v47 = vld [vmem:[%s25044_s29 + $0x52c] ss:$16 sps:$4 sm:$0xff]  }
  0x72   :  { %1337 = vmatpush1.bf16.msra.mxu0 %v17242_v48  ;;  %1501 = vmatpush1.bf16.msra.mxu1 %v17245_v49  ;;  %v17332_v48 = vld [vmem:[%s25044_s29 + $0x520] ss:$16 sps:$4 sm:$0xff]   ;;  %v17335_v49 = vld [vmem:[%s25044_s29 + $0x528] ss:$16 sps:$4 sm:$0xff]  }
  0x73   :  { %1338 = vmatprep.subr.bf16.mxu0 %v17250_v50  ;;  %1502 = vmatprep.subr.bf16.mxu1 %v17253_v51  ;;  %v17340_v50 = vld [vmem:[%s25044_s29 + $0x544] ss:$16 sps:$4 sm:$0xff]   ;;  %v17343_v51 = vld [vmem:[%s25044_s29 + $0x54c] ss:$16 sps:$4 sm:$0xff]  }
  0x76   :  { %1339 = vmatpush1.bf16.msra.mxu0 %v17248_v52  ;;  %1503 = vmatpush1.bf16.msra.mxu1 %v17251_v53  ;;  %v17338_v52 = vld [vmem:[%s25044_s29 + $0x540] ss:$16 sps:$4 sm:$0xff]   ;;  %v17341_v53 = vld [vmem:[%s25044_s29 + $0x548] ss:$16 sps:$4 sm:$0xff]  }
  0x77   :  { %1340 = vmatprep.subr.bf16.mxu0 %v17256_v54  ;;  %1504 = vmatprep.subr.bf16.mxu1 %v17259_v55  ;;  %v17346_v54 = vld [vmem:[%s25044_s29 + $0x564] ss:$16 sps:$4 sm:$0xff]   ;;  %v17349_v55 = vld [vmem:[%s25044_s29 + $0x56c] ss:$16 sps:$4 sm:$0xff]  }
  0x7a   :  { %1341 = vmatpush1.bf16.msra.mxu0 %v17254_v56  ;;  %1505 = vmatpush1.bf16.msra.mxu1 %v17257_v57  ;;  %v17344_v56 = vld [vmem:[%s25044_s29 + $0x560] ss:$16 sps:$4 sm:$0xff]   ;;  %v17347_v57 = vld [vmem:[%s25044_s29 + $0x568] ss:$16 sps:$4 sm:$0xff]  }
  0x7b   :  { %1342 = vmatprep.subr.bf16.mxu0 %v17262_v58  ;;  %1506 = vmatprep.subr.bf16.mxu1 %v17265_v59  ;;  %v17352_v58 = vld [vmem:[%s25044_s29 + $0x584] ss:$16 sps:$4 sm:$0xff]   ;;  %v17355_v59 = vld [vmem:[%s25044_s29 + $0x58c] ss:$16 sps:$4 sm:$0xff]  }
  0x7e   :  { %1343 = vmatpush1.bf16.msra.mxu0 %v17260_v60  ;;  %1507 = vmatpush1.bf16.msra.mxu1 %v17263_v61  ;;  %v17350_v60 = vld [vmem:[%s25044_s29 + $0x580] ss:$16 sps:$4 sm:$0xff]   ;;  %v17353_v61 = vld [vmem:[%s25044_s29 + $0x588] ss:$16 sps:$4 sm:$0xff]  }
  0x7f   :  { %1344 = vmatprep.subr.bf16.mxu0 %v17268_v62  ;;  %1508 = vmatprep.subr.bf16.mxu1 %v17271_v63  ;;  %v17358_v62 = vld [vmem:[%s25044_s29 + $0x5a4] ss:$16 sps:$4 sm:$0xff]   ;;  %v17361_v63 = vld [vmem:[%s25044_s29 + $0x5ac] ss:$16 sps:$4 sm:$0xff]  }
  0x82   :  { %1345 = vmatpush1.bf16.msra.mxu0 %v17266_v0  ;;  %1509 = vmatpush1.bf16.msra.mxu1 %v17269_v1  ;;  %v17356_v0 = vld [vmem:[%s25044_s29 + $0x5a0] ss:$16 sps:$4 sm:$0xff]   ;;  %v17359_v1 = vld [vmem:[%s25044_s29 + $0x5a8] ss:$16 sps:$4 sm:$0xff]  }
  0x83   :  { %1346 = vmatprep.subr.bf16.mxu0 %v17274_v2  ;;  %1510 = vmatprep.subr.bf16.mxu1 %v17277_v3  ;;  %v17364_v2 = vld [vmem:[%s25044_s29 + $0x5c4] ss:$16 sps:$4 sm:$0xff]   ;;  %v17367_v3 = vld [vmem:[%s25044_s29 + $0x5cc] ss:$16 sps:$4 sm:$0xff]  }
  0x86   :  { %1347 = vmatpush1.bf16.msra.mxu0 %v17272_v4  ;;  %1511 = vmatpush1.bf16.msra.mxu1 %v17275_v5  ;;  %v17362_v4 = vld [vmem:[%s25044_s29 + $0x5c0] ss:$16 sps:$4 sm:$0xff]   ;;  %v17365_v5 = vld [vmem:[%s25044_s29 + $0x5c8] ss:$16 sps:$4 sm:$0xff]  }
  0x87   :  { %1357 = vmatprep.subr.bf16.mxu0 %v17280_v6  ;;  %1521 = vmatprep.subr.bf16.mxu1 %v17283_v8  ;;  %v17370_v6 = vld [vmem:[%s25044_s29 + $0x5e4] ss:$16 sps:$4 sm:$0xff]   ;;  %v17368_v8 = vld [vmem:[%s25044_s29 + $0x5e0] ss:$16 sps:$4 sm:$0xff]  }
  0x89   :  { %1349 = vmatmul.mubr.bf16.vlgmr.msra.gmra.mrb[0].mxu0 %v68_v10  ;;  %1513 = vmatmul.mubr.bf16.vlgmr.msra.gmra.mrb[0].mxu1 %v68_v10  ;;  %v63_v10 = vld [vmem:[%s25045_s23 + $0x20] sm:$0xff] }
  0x8a   :  { %1358 = vmatpush1.bf16.msra.mxu0 %v17278_v9  ;;  %1522 = vmatpush1.bf16.msra.mxu1 %v17281_v11  ;;  %v17371_v9 = vld [vmem:[%s25044_s29 + $0x5e8] ss:$16 sps:$4 sm:$0xff]   ;;  %v17376_v11 = vld [vmem:[%s25044_s29 + $0x604] ss:$16 sps:$4 sm:$0xff]  }
  0x8b   :  { %1359 = vmatprep.subr.bf16.mxu0 %v17286_v12  ;;  %1523 = vmatprep.subr.bf16.mxu1 %v17289_v13  ;;  %v17379_v12 = vld [vmem:[%s25044_s29 + $0x60c] ss:$16 sps:$4 sm:$0xff]   ;;  %v17374_v13 = vld [vmem:[%s25044_s29 + $0x600] ss:$16 sps:$4 sm:$0xff]  }
  0x8c   :  { %1389 = vmatprep.mubr.bf16.mxu0 %v71_v15  ;;  %1553 = vmatprep.mubr.bf16.mxu1 %v71_v15  ;;  %v70_v15 = vpack.c.bf16 %v63_v10, %v63_v10  ;;  %v17461_v10 = vld [vmem:[%s25046_s24 + $0x1a8] ss:$16 sps:$4 sm:$0xff]  }
  0x8e   :  { %1360 = vmatpush1.bf16.msra.mxu0 %v17284_v16  ;;  %1524 = vmatpush1.bf16.msra.mxu1 %v17287_v17  ;;  %v17382_v16 = vld [vmem:[%s25046_s24 + $0x4] ss:$16 sps:$4 sm:$0xff]   ;;  %v17385_v17 = vld [vmem:[%s25046_s24 + $0xc] ss:$16 sps:$4 sm:$0xff]  }
  0x8f   :  { %1361 = vmatprep.subr.bf16.mxu0 %v17292_v18  ;;  %1525 = vmatprep.subr.bf16.mxu1 %v17295_v19  ;;  %v18997_v18 = vmov 0   ;;  %v65_v19 = vld [vmem:[%s25045_s23 + $0x30] sm:$0xff] }
  0x92   :  { %1362 = vmatpush1.bf16.msra.mxu0 %v17290_v20  ;;  %1526 = vmatpush1.bf16.msra.mxu1 %v17293_v21  ;;  %v72_v20 = vpack.c.bf16 %v65_v19, %v65_v19  ;;  %v17380_v21 = vld [vmem:[%s25046_s24] ss:$16 sps:$4 sm:$0xff]   ;;  %v17473_v19 = vld [vmem:[%s25046_s24 + $0x1e8] ss:$16 sps:$4 sm:$0xff]  }
  0x93   :  { %1363 = vmatprep.subr.bf16.mxu0 %v17298_v22  ;;  %1527 = vmatprep.subr.bf16.mxu1 %v17301_v23  ;;  %v17383_v22 = vld [vmem:[%s25046_s24 + $0x8] ss:$16 sps:$4 sm:$0xff]   ;;  %v17388_v23 = vld [vmem:[%s25046_s24 + $0x24] ss:$16 sps:$4 sm:$0xff]  }
  0x96   :  { %1364 = vmatpush1.bf16.msra.mxu0 %v17296_v24  ;;  %1528 = vmatpush1.bf16.msra.mxu1 %v17299_v25  ;;  %v17391_v24 = vld [vmem:[%s25046_s24 + $0x2c] ss:$16 sps:$4 sm:$0xff]   ;;  %v17386_v25 = vld [vmem:[%s25046_s24 + $0x20] ss:$16 sps:$4 sm:$0xff]  }
  0x97   :  { %1365 = vmatprep.subr.bf16.mxu0 %v17304_v26  ;;  %1529 = vmatprep.subr.bf16.mxu1 %v17307_v27  ;;  %v17389_v26 = vld [vmem:[%s25046_s24 + $0x28] ss:$16 sps:$4 sm:$0xff]   ;;  %v17394_v27 = vld [vmem:[%s25046_s24 + $0x44] ss:$16 sps:$4 sm:$0xff]  }
  0x9a   :  { %1366 = vmatpush1.bf16.msra.mxu0 %v17302_v28  ;;  %1530 = vmatpush1.bf16.msra.mxu1 %v17305_v29  ;;  %v17397_v28 = vld [vmem:[%s25046_s24 + $0x4c] ss:$16 sps:$4 sm:$0xff]   ;;  %v17392_v29 = vld [vmem:[%s25046_s24 + $0x40] ss:$16 sps:$4 sm:$0xff]  }
  0x9b   :  { %1367 = vmatprep.subr.bf16.mxu0 %v17310_v30  ;;  %1531 = vmatprep.subr.bf16.mxu1 %v17313_v31  ;;  %v17395_v30 = vld [vmem:[%s25046_s24 + $0x48] ss:$16 sps:$4 sm:$0xff]   ;;  %v17400_v31 = vld [vmem:[%s25046_s24 + $0x64] ss:$16 sps:$4 sm:$0xff]  }
  0x9e   :  { %1368 = vmatpush1.bf16.msra.mxu0 %v17308_v32  ;;  %1532 = vmatpush1.bf16.msra.mxu1 %v17311_v33  ;;  %v17403_v32 = vld [vmem:[%s25046_s24 + $0x6c] ss:$16 sps:$4 sm:$0xff]   ;;  %v17398_v33 = vld [vmem:[%s25046_s24 + $0x60] ss:$16 sps:$4 sm:$0xff]  }
  0x9f   :  { %1369 = vmatprep.subr.bf16.mxu0 %v17316_v34  ;;  %1533 = vmatprep.subr.bf16.mxu1 %v17319_v35  ;;  %v17401_v34 = vld [vmem:[%s25046_s24 + $0x68] ss:$16 sps:$4 sm:$0xff]   ;;  %v17406_v35 = vld [vmem:[%s25046_s24 + $0x84] ss:$16 sps:$4 sm:$0xff]  }
  0xa2   :  { %1370 = vmatpush1.bf16.msra.mxu0 %v17314_v36  ;;  %1534 = vmatpush1.bf16.msra.mxu1 %v17317_v37  ;;  %v17409_v36 = vld [vmem:[%s25046_s24 + $0x8c] ss:$16 sps:$4 sm:$0xff]   ;;  %v17404_v37 = vld [vmem:[%s25046_s24 + $0x80] ss:$16 sps:$4 sm:$0xff]  }
  0xa3   :  { %1371 = vmatprep.subr.bf16.mxu0 %v17322_v38  ;;  %1535 = vmatprep.subr.bf16.mxu1 %v17325_v39  ;;  %v17407_v38 = vld [vmem:[%s25046_s24 + $0x88] ss:$16 sps:$4 sm:$0xff]   ;;  %v17412_v39 = vld [vmem:[%s25046_s24 + $0xa4] ss:$16 sps:$4 sm:$0xff]  }
  0xa6   :  { %1372 = vmatpush1.bf16.msra.mxu0 %v17320_v40  ;;  %1536 = vmatpush1.bf16.msra.mxu1 %v17323_v41  ;;  %v17415_v40 = vld [vmem:[%s25046_s24 + $0xac] ss:$16 sps:$4 sm:$0xff]   ;;  %v17410_v41 = vld [vmem:[%s25046_s24 + $0xa0] ss:$16 sps:$4 sm:$0xff]  }
  0xa7   :  { %1373 = vmatprep.subr.bf16.mxu0 %v17328_v42  ;;  %1537 = vmatprep.subr.bf16.mxu1 %v17331_v43  ;;  %v17413_v42 = vld [vmem:[%s25046_s24 + $0xa8] ss:$16 sps:$4 sm:$0xff]   ;;  %v17418_v43 = vld [vmem:[%s25046_s24 + $0xc4] ss:$16 sps:$4 sm:$0xff]  }
  0xaa   :  { %1374 = vmatpush1.bf16.msra.mxu0 %v17326_v44  ;;  %1538 = vmatpush1.bf16.msra.mxu1 %v17329_v45  ;;  %v17421_v44 = vld [vmem:[%s25046_s24 + $0xcc] ss:$16 sps:$4 sm:$0xff]   ;;  %v17416_v45 = vld [vmem:[%s25046_s24 + $0xc0] ss:$16 sps:$4 sm:$0xff]  }
  0xab   :  { %1375 = vmatprep.subr.bf16.mxu0 %v17334_v46  ;;  %1539 = vmatprep.subr.bf16.mxu1 %v17337_v47  ;;  %v17419_v46 = vld [vmem:[%s25046_s24 + $0xc8] ss:$16 sps:$4 sm:$0xff]   ;;  %v17424_v47 = vld [vmem:[%s25046_s24 + $0xe4] ss:$16 sps:$4 sm:$0xff]  }
  0xae   :  { %1376 = vmatpush1.bf16.msra.mxu0 %v17332_v48  ;;  %1540 = vmatpush1.bf16.msra.mxu1 %v17335_v49  ;;  %v17427_v48 = vld [vmem:[%s25046_s24 + $0xec] ss:$16 sps:$4 sm:$0xff]   ;;  %v17422_v49 = vld [vmem:[%s25046_s24 + $0xe0] ss:$16 sps:$4 sm:$0xff]  }
  0xaf   :  { %1377 = vmatprep.subr.bf16.mxu0 %v17340_v50  ;;  %1541 = vmatprep.subr.bf16.mxu1 %v17343_v51  ;;  %v17425_v50 = vld [vmem:[%s25046_s24 + $0xe8] ss:$16 sps:$4 sm:$0xff]   ;;  %v17430_v51 = vld [vmem:[%s25046_s24 + $0x104] ss:$16 sps:$4 sm:$0xff]  }
  0xb2   :  { %1378 = vmatpush1.bf16.msra.mxu0 %v17338_v52  ;;  %1542 = vmatpush1.bf16.msra.mxu1 %v17341_v53  ;;  %v17433_v52 = vld [vmem:[%s25046_s24 + $0x10c] ss:$16 sps:$4 sm:$0xff]   ;;  %v17428_v53 = vld [vmem:[%s25046_s24 + $0x100] ss:$16 sps:$4 sm:$0xff]  }
  0xb3   :  { %1379 = vmatprep.subr.bf16.mxu0 %v17346_v54  ;;  %1543 = vmatprep.subr.bf16.mxu1 %v17349_v55  ;;  %v17431_v54 = vld [vmem:[%s25046_s24 + $0x108] ss:$16 sps:$4 sm:$0xff]   ;;  %v17436_v55 = vld [vmem:[%s25046_s24 + $0x124] ss:$16 sps:$4 sm:$0xff]  }
  0xb6   :  { %1380 = vmatpush1.bf16.msra.mxu0 %v17344_v56  ;;  %1544 = vmatpush1.bf16.msra.mxu1 %v17347_v57  ;;  %v17439_v56 = vld [vmem:[%s25046_s24 + $0x12c] ss:$16 sps:$4 sm:$0xff]   ;;  %v17434_v57 = vld [vmem:[%s25046_s24 + $0x120] ss:$16 sps:$4 sm:$0xff]  }
  0xb7   :  { %1381 = vmatprep.subr.bf16.mxu0 %v17352_v58  ;;  %1545 = vmatprep.subr.bf16.mxu1 %v17355_v59  ;;  %v17437_v58 = vld [vmem:[%s25046_s24 + $0x128] ss:$16 sps:$4 sm:$0xff]   ;;  %v17442_v59 = vld [vmem:[%s25046_s24 + $0x144] ss:$16 sps:$4 sm:$0xff]  }
  0xba   :  { %1382 = vmatpush1.bf16.msra.mxu0 %v17350_v60  ;;  %1546 = vmatpush1.bf16.msra.mxu1 %v17353_v61  ;;  %v17445_v60 = vld [vmem:[%s25046_s24 + $0x14c] ss:$16 sps:$4 sm:$0xff]   ;;  %v17440_v61 = vld [vmem:[%s25046_s24 + $0x140] ss:$16 sps:$4 sm:$0xff]  }
  0xbb   :  { %1383 = vmatprep.subr.bf16.mxu0 %v17358_v62  ;;  %1547 = vmatprep.subr.bf16.mxu1 %v17361_v63  ;;  %v17443_v62 = vld [vmem:[%s25046_s24 + $0x148] ss:$16 sps:$4 sm:$0xff]   ;;  %v17448_v63 = vld [vmem:[%s25046_s24 + $0x164] ss:$16 sps:$4 sm:$0xff]  }
  0xbe   :  { %1384 = vmatpush1.bf16.msra.mxu0 %v17356_v0  ;;  %1548 = vmatpush1.bf16.msra.mxu1 %v17359_v1  ;;  %v17451_v0 = vld [vmem:[%s25046_s24 + $0x16c] ss:$16 sps:$4 sm:$0xff]   ;;  %v17446_v1 = vld [vmem:[%s25046_s24 + $0x160] ss:$16 sps:$4 sm:$0xff]  }
  0xbf   :  { %1385 = vmatprep.subr.bf16.mxu0 %v17364_v2  ;;  %1549 = vmatprep.subr.bf16.mxu1 %v17367_v3  ;;  %v17449_v2 = vld [vmem:[%s25046_s24 + $0x168] ss:$16 sps:$4 sm:$0xff]   ;;  %v17454_v3 = vld [vmem:[%s25046_s24 + $0x184] ss:$16 sps:$4 sm:$0xff]  }
  0xc2   :  { %1386 = vmatpush1.bf16.msra.mxu0 %v17362_v4  ;;  %1550 = vmatpush1.bf16.msra.mxu1 %v17365_v5  ;;  %v17457_v4 = vld [vmem:[%s25046_s24 + $0x18c] ss:$16 sps:$4 sm:$0xff]   ;;  %v17452_v5 = vld [vmem:[%s25046_s24 + $0x180] ss:$16 sps:$4 sm:$0xff]  }
  0xc3   :  { %1387 = vmatprep.subr.bf16.mxu0 %v17370_v6  ;;  %1551 = vmatprep.subr.bf16.mxu1 %v17373_v7  ;;  %v17455_v6 = vld [vmem:[%s25046_s24 + $0x188] ss:$16 sps:$4 sm:$0xff]   ;;  %v17460_v7 = vld [vmem:[%s25046_s24 + $0x1a4] ss:$16 sps:$4 sm:$0xff]  }
  0xc6   :  { %1388 = vmatpush1.bf16.msra.mxu0 %v17368_v8  ;;  %1552 = vmatpush1.bf16.msra.mxu1 %v17371_v9  ;;  %v17463_v8 = vld [vmem:[%s25046_s24 + $0x1ac] ss:$16 sps:$4 sm:$0xff]   ;;  %v17458_v9 = vld [vmem:[%s25046_s24 + $0x1a0] ss:$16 sps:$4 sm:$0xff]  }
  0xc7   :  { %1398 = vmatprep.subr.bf16.mxu0 %v17376_v11  ;;  %1562 = vmatprep.subr.bf16.mxu1 %v17379_v12  ;;  %v17466_v11 = vld [vmem:[%s25046_s24 + $0x1c4] ss:$16 sps:$4 sm:$0xff]   ;;  %v17469_v12 = vld [vmem:[%s25046_s24 + $0x1cc] ss:$16 sps:$4 sm:$0xff]  }
  0xc9   :  { %1390 = vmatmul.mubr.bf16.vlgmr.msra.gmra.mrb[0].mxu0 %v70_v15  ;;  %1554 = vmatmul.mubr.bf16.vlgmr.msra.gmra.mrb[0].mxu1 %v70_v15  ;;  %v17472_v15 = vld [vmem:[%s25046_s24 + $0x1e4] ss:$16 sps:$4 sm:$0xff]  }
  0xca   :  { %1399 = vmatpush1.bf16.msra.mxu0 %v17374_v13  ;;  %1563 = vmatpush1.bf16.msra.mxu1 %v17377_v14  ;;  %v17464_v13 = vld [vmem:[%s25046_s24 + $0x1c0] ss:$16 sps:$4 sm:$0xff]   ;;  %v17467_v14 = vld [vmem:[%s25046_s24 + $0x1c8] ss:$16 sps:$4 sm:$0xff]  }
  0xcb   :  { %1430 = vmatprep.mubr.bf16.mxu0 %v18997_v18  ;;  %1594 = vmatprep.mubr.bf16.mxu1 %v18997_v18 }
  0xcc   :  { %2406 = vmatprep.subr.bf16.mxu0 %v17382_v16  ;;  %2488 = vmatprep.subr.bf16.mxu1 %v17385_v17  ;;  %v17475_v16 = vld [vmem:[%s25046_s24 + $0x1ec] ss:$16 sps:$4 sm:$0xff]   ;;  %v17470_v17 = vld [vmem:[%s25046_s24 + $0x1e0] ss:$16 sps:$4 sm:$0xff]  }
  0xd5   :  { %15015 = vmatmul.mubr.msk.bf16.vlgmr.msra.gmra.mrb[0].mxu0 %vm1271_vm0, %v72_v20  ;;  %15016 = vmatmul.mubr.msk.bf16.vlgmr.msra.gmra.mrb[0].mxu1 %vm1271_vm0, %v72_v20  ;;  %v17478_v20 = vld [vmem:[%s25046_s24 + $0x204] ss:$16 sps:$4 sm:$0xff]  }
  0xd6   :  { %2407 = vmatpush1.bf16.msra.mxu0 %v17380_v21  ;;  %2489 = vmatpush1.bf16.msra.mxu1 %v17383_v22  ;;  %v17481_v21 = vld [vmem:[%s25046_s24 + $0x20c] ss:$16 sps:$4 sm:$0xff]   ;;  %v271_v22 = vlaneseq }
  0xd7   :  { %2408 = vmatprep.subr.bf16.mxu0 %v17388_v23  ;;  %2490 = vmatprep.subr.bf16.mxu1 %v17391_v24 }
  0xd8   :  { %v19904_v23 = vshrl.u32 %v271_v22, 7  ;;  %v17533_v22 = vld [vmem:[%s25046_s24 + $0x328] ss:$16 sps:$4 sm:$0xff]  }
  0xda   :  { %2409 = vmatpush1.bf16.msra.mxu0 %v17386_v25  ;;  %2491 = vmatpush1.bf16.msra.mxu1 %v17389_v26  ;;  %v19907_v24 = vsub.s32 0, %v19904_v23  ;;  %v19912_v25 = vld [vmem:[%s25022_s2] sm:$0xf]  ;;  %v19915_v26 = vsub.s32 1, %v19904_v23 }
  0xdb   :  { %2410 = vmatprep.subr.bf16.mxu0 %v17394_v27  ;;  %2492 = vmatprep.subr.bf16.mxu1 %v17397_v28  ;;  %v19918_v27 = vsub.s32 3, %v19904_v23 }
  0xdc   :  { %v274_v28 = vrot.slane %v19912_v25, %v19907_v24 }
  0xde   :  { %2411 = vmatpush1.bf16.msra.mxu0 %v17392_v29  ;;  %2493 = vmatpush1.bf16.msra.mxu1 %v17395_v30  ;;  %v278_v29 = vrot.slane %v19912_v25, %v19915_v26  ;;  %v286_v30 = vrot.slane %v19912_v25, %v19918_v27 }
  0xdf   :  { %2412 = vmatprep.subr.bf16.mxu0 %v17400_v31  ;;  %2494 = vmatprep.subr.bf16.mxu1 %v17403_v32 }
  0xe2   :  { %2413 = vmatpush1.bf16.msra.mxu0 %v17398_v33  ;;  %2495 = vmatpush1.bf16.msra.mxu1 %v17401_v34 }
  0xe3   :  { %2414 = vmatprep.subr.bf16.mxu0 %v17406_v35  ;;  %2496 = vmatprep.subr.bf16.mxu1 %v17409_v36 }
  0xe6   :  { %2415 = vmatpush1.bf16.msra.mxu0 %v17404_v37  ;;  %2497 = vmatpush1.bf16.msra.mxu1 %v17407_v38 }
  0xe7   :  { %2416 = vmatprep.subr.bf16.mxu0 %v17412_v39  ;;  %2498 = vmatprep.subr.bf16.mxu1 %v17415_v40 }
  0xea   :  { %2417 = vmatpush1.bf16.msra.mxu0 %v17410_v41  ;;  %2499 = vmatpush1.bf16.msra.mxu1 %v17413_v42 }
  0xeb   :  { %2418 = vmatprep.subr.bf16.mxu0 %v17418_v43  ;;  %2500 = vmatprep.subr.bf16.mxu1 %v17421_v44 }
  0xee   :  { %2419 = vmatpush1.bf16.msra.mxu0 %v17416_v45  ;;  %2501 = vmatpush1.bf16.msra.mxu1 %v17419_v46  ;;  %v17476_v46 = vld [vmem:[%s25046_s24 + $0x200] ss:$16 sps:$4 sm:$0xff]  }
  0xef   :  { %2420 = vmatprep.subr.bf16.mxu0 %v17424_v47  ;;  %2502 = vmatprep.subr.bf16.mxu1 %v17427_v48  ;;  %v17479_v47 = vld [vmem:[%s25046_s24 + $0x208] ss:$16 sps:$4 sm:$0xff]  }
  0xf2   :  { %2421 = vmatpush1.bf16.msra.mxu0 %v17422_v49  ;;  %2503 = vmatpush1.bf16.msra.mxu1 %v17425_v50  ;;  %v17484_v49 = vld [vmem:[%s25046_s24 + $0x224] ss:$16 sps:$4 sm:$0xff]   ;;  %v17487_v50 = vld [vmem:[%s25046_s24 + $0x22c] ss:$16 sps:$4 sm:$0xff]  }
  0xf3   :  { %2422 = vmatprep.subr.bf16.mxu0 %v17430_v51  ;;  %2504 = vmatprep.subr.bf16.mxu1 %v17433_v52  ;;  %v17482_v52 = vld [vmem:[%s25046_s24 + $0x220] ss:$16 sps:$4 sm:$0xff]  }
  0xf6   :  { %2423 = vmatpush1.bf16.msra.mxu0 %v17428_v53  ;;  %2505 = vmatpush1.bf16.msra.mxu1 %v17431_v54  ;;  %v17485_v53 = vld [vmem:[%s25046_s24 + $0x228] ss:$16 sps:$4 sm:$0xff]   ;;  %v17490_v54 = vld [vmem:[%s25046_s24 + $0x244] ss:$16 sps:$4 sm:$0xff]  }
  0xf7   :  { %2424 = vmatprep.subr.bf16.mxu0 %v17436_v55  ;;  %2506 = vmatprep.subr.bf16.mxu1 %v17439_v56  ;;  %v17493_v55 = vld [vmem:[%s25046_s24 + $0x24c] ss:$16 sps:$4 sm:$0xff]   ;;  %v17488_v56 = vld [vmem:[%s25046_s24 + $0x240] ss:$16 sps:$4 sm:$0xff]  }
  0xfa   :  { %2425 = vmatpush1.bf16.msra.mxu0 %v17434_v57  ;;  %2507 = vmatpush1.bf16.msra.mxu1 %v17437_v58  ;;  %v17491_v57 = vld [vmem:[%s25046_s24 + $0x248] ss:$16 sps:$4 sm:$0xff]   ;;  %v17496_v58 = vld [vmem:[%s25046_s24 + $0x264] ss:$16 sps:$4 sm:$0xff]  }
  0xfb   :  { %2426 = vmatprep.subr.bf16.mxu0 %v17442_v59  ;;  %2508 = vmatprep.subr.bf16.mxu1 %v17445_v60  ;;  %v17499_v59 = vld [vmem:[%s25046_s24 + $0x26c] ss:$16 sps:$4 sm:$0xff]   ;;  %v17494_v60 = vld [vmem:[%s25046_s24 + $0x260] ss:$16 sps:$4 sm:$0xff]  }
  0xfe   :  { %2427 = vmatpush1.bf16.msra.mxu0 %v17440_v61  ;;  %2509 = vmatpush1.bf16.msra.mxu1 %v17443_v62  ;;  %v17497_v61 = vld [vmem:[%s25046_s24 + $0x268] ss:$16 sps:$4 sm:$0xff]   ;;  %v17502_v62 = vld [vmem:[%s25046_s24 + $0x284] ss:$16 sps:$4 sm:$0xff]  }
  0xff   :  { %2428 = vmatprep.subr.bf16.mxu0 %v17448_v63  ;;  %2510 = vmatprep.subr.bf16.mxu1 %v17451_v0  ;;  %v17505_v63 = vld [vmem:[%s25046_s24 + $0x28c] ss:$16 sps:$4 sm:$0xff]   ;;  %v17500_v0 = vld [vmem:[%s25046_s24 + $0x280] ss:$16 sps:$4 sm:$0xff]  }
 0x102   :  { %2429 = vmatpush1.bf16.msra.mxu0 %v17446_v1  ;;  %2511 = vmatpush1.bf16.msra.mxu1 %v17449_v2  ;;  %v17503_v1 = vld [vmem:[%s25046_s24 + $0x288] ss:$16 sps:$4 sm:$0xff]   ;;  %v17508_v2 = vld [vmem:[%s25046_s24 + $0x2a4] ss:$16 sps:$4 sm:$0xff]  }
 0x103   :  { %2430 = vmatprep.subr.bf16.mxu0 %v17454_v3  ;;  %2512 = vmatprep.subr.bf16.mxu1 %v17457_v4  ;;  %v17511_v3 = vld [vmem:[%s25046_s24 + $0x2ac] ss:$16 sps:$4 sm:$0xff]   ;;  %v17506_v4 = vld [vmem:[%s25046_s24 + $0x2a0] ss:$16 sps:$4 sm:$0xff]  }
 0x106   :  { %2431 = vmatpush1.bf16.msra.mxu0 %v17452_v5  ;;  %2513 = vmatpush1.bf16.msra.mxu1 %v17455_v6  ;;  %v17509_v5 = vld [vmem:[%s25046_s24 + $0x2a8] ss:$16 sps:$4 sm:$0xff]   ;;  %v17514_v6 = vld [vmem:[%s25046_s24 + $0x2c4] ss:$16 sps:$4 sm:$0xff]  }
 0x107   :  { %2432 = vmatprep.subr.bf16.mxu0 %v17460_v7  ;;  %2514 = vmatprep.subr.bf16.mxu1 %v17463_v8  ;;  %v17517_v7 = vld [vmem:[%s25046_s24 + $0x2cc] ss:$16 sps:$4 sm:$0xff]   ;;  %v17512_v8 = vld [vmem:[%s25046_s24 + $0x2c0] ss:$16 sps:$4 sm:$0xff]  }
 0x10a   :  { %2433 = vmatpush1.bf16.msra.mxu0 %v17458_v9  ;;  %2515 = vmatpush1.bf16.msra.mxu1 %v17461_v10  ;;  %v17515_v9 = vld [vmem:[%s25046_s24 + $0x2c8] ss:$16 sps:$4 sm:$0xff]   ;;  %v17520_v10 = vld [vmem:[%s25046_s24 + $0x2e4] ss:$16 sps:$4 sm:$0xff]  }
 0x10b   :  { %2434 = vmatprep.subr.bf16.mxu0 %v17466_v11  ;;  %2516 = vmatprep.subr.bf16.mxu1 %v17469_v12  ;;  %v17523_v11 = vld [vmem:[%s25046_s24 + $0x2ec] ss:$16 sps:$4 sm:$0xff]   ;;  %v17518_v12 = vld [vmem:[%s25046_s24 + $0x2e0] ss:$16 sps:$4 sm:$0xff]  }
 0x10e   :  { %2435 = vmatpush1.bf16.msra.mxu0 %v17464_v13  ;;  %2517 = vmatpush1.bf16.msra.mxu1 %v17467_v14  ;;  %v17521_v13 = vld [vmem:[%s25046_s24 + $0x2e8] ss:$16 sps:$4 sm:$0xff]   ;;  %v17526_v14 = vld [vmem:[%s25046_s24 + $0x304] ss:$16 sps:$4 sm:$0xff]  }
 0x10f   :  { %2436 = vmatprep.subr.bf16.mxu0 %v17472_v15  ;;  %2518 = vmatprep.subr.bf16.mxu1 %v17475_v16  ;;  %v17529_v15 = vld [vmem:[%s25046_s24 + $0x30c] ss:$16 sps:$4 sm:$0xff]   ;;  %v17524_v16 = vld [vmem:[%s25046_s24 + $0x300] ss:$16 sps:$4 sm:$0xff]  }
 0x112   :  { %2437 = vmatpush1.bf16.msra.mxu0 %v17470_v17  ;;  %2519 = vmatpush1.bf16.msra.mxu1 %v17473_v19  ;;  %v17527_v17 = vld [vmem:[%s25046_s24 + $0x308] ss:$16 sps:$4 sm:$0xff]   ;;  %v17532_v19 = vld [vmem:[%s25046_s24 + $0x324] ss:$16 sps:$4 sm:$0xff]  }
 0x113   :  { %2447 = vmatprep.subr.bf16.mxu0 %v17478_v20  ;;  %2529 = vmatprep.subr.bf16.mxu1 %v17481_v21  ;;  %v17535_v20 = vld [vmem:[%s25046_s24 + $0x32c] ss:$16 sps:$4 sm:$0xff]   ;;  %v17530_v21 = vld [vmem:[%s25046_s24 + $0x320] ss:$16 sps:$4 sm:$0xff]  }
 0x1a8   :  { %v1432_v31 = vpop.f32.mrb[0].mxu0  ;;  %v19926_v32 = vpop.f32.mrb[0].mxu1 }
 0x1a9   :  { %v16906_v33 = vadd.f32 %v1432_v31, %v274_v28  ;;  %v1434_v34 = vpop.f32.mrb[1].mxu0  ;;  %v1598_v35 = vpop.f32.mrb[1].mxu1  ;;  %v17538_v28 = vld [vmem:[%s25046_s24 + $0x344] ss:$16 sps:$4 sm:$0xff]   ;;  %v17539_v31 = vld [vmem:[%s25046_s24 + $0x348] ss:$16 sps:$4 sm:$0xff]  }
 0x1aa   :  { %v16907_v36 = vadd.f32 %v1434_v34, %v278_v29  ;;  %v16909_v37 = vadd.f32 %v1598_v35, %v286_v30  ;;  %v1436_v38 = vpop.f32.mrb[2].mxu0  ;;  %v1600_v39 = vpop.f32.mrb[2].mxu1  ;;  %v17541_v29 = vld [vmem:[%s25046_s24 + $0x34c] ss:$16 sps:$4 sm:$0xff]   ;;  %v17536_v30 = vld [vmem:[%s25046_s24 + $0x340] ss:$16 sps:$4 sm:$0xff]  }
 0x1ab   :  { %v1603_v40 = vmax.f32 %v16906_v33, 0.0  ;;  %v1437_v41 = vpop.f32.mrb[3].mxu0  ;;  %v1601_v42 = vpop.f32.mrb[3].mxu1  ;;  %v17544_v33 = vld [vmem:[%s25046_s24 + $0x364] ss:$16 sps:$4 sm:$0xff]  }
 0x1ac   :  { %v1604_v43 = vmax.f32 %v16907_v36, 0.0  ;;  %v1606_v44 = vmax.f32 %v16909_v37, 0.0  ;;  %v17547_v34 = vld [vmem:[%s25046_s24 + $0x36c] ss:$16 sps:$4 sm:$0xff]   ;;  %v17542_v35 = vld [vmem:[%s25046_s24 + $0x360] ss:$16 sps:$4 sm:$0xff]  }
 0x1ad   :  { %v1607_v48 = vpack.c.bf16 %v1603_v40, %v1603_v40  ;;  %v17545_v36 = vld [vmem:[%s25046_s24 + $0x368] ss:$16 sps:$4 sm:$0xff]   ;;  %v17550_v37 = vld [vmem:[%s25046_s24 + $0x384] ss:$16 sps:$4 sm:$0xff]   ;;  %v17553_v38 = vld [vmem:[%s25046_s24 + $0x38c] ss:$16 sps:$4 sm:$0xff]  }
 0x1ae   :  { %v1608_v45 = vpack.c.bf16 %v1604_v43, %v1604_v43  ;;  %v1610_v51 = vpack.c.bf16 %v1606_v44, %v1606_v44  ;;  %v17548_v39 = vld [vmem:[%s25046_s24 + $0x380] ss:$16 sps:$4 sm:$0xff]   ;;  %v17551_v40 = vld [vmem:[%s25046_s24 + $0x388] ss:$16 sps:$4 sm:$0xff]   ;;  %v20081_v41 = vsub.s32 2, %v19904_v23 }
 0x1af   :  { %v17556_v42 = vld [vmem:[%s25046_s24 + $0x3a4] ss:$16 sps:$4 sm:$0xff]   ;;  %v17559_v43 = vld [vmem:[%s25046_s24 + $0x3ac] ss:$16 sps:$4 sm:$0xff]   ;;  %v17554_v44 = vld [vmem:[%s25046_s24 + $0x3a0] ss:$16 sps:$4 sm:$0xff]  }
 0x1b0   :  { %2438 = vmatprep.mubr.bf16.mxu0 %v1608_v45  ;;  %2520 = vmatprep.mubr.bf16.mxu1 %v1608_v45  ;;  %v17557_v45 = vld [vmem:[%s25046_s24 + $0x3a8] ss:$16 sps:$4 sm:$0xff]  }
 0x1b1   :  { %2439 = vmatmul.mubr.bf16.vlgmr.msra.gmra.mrb[4].mxu0 %v1607_v48  ;;  %2521 = vmatmul.mubr.bf16.vlgmr.msra.gmra.mrb[4].mxu1 %v1607_v48  ;;  %v17565_v48 = vld [vmem:[%s25046_s24 + $0x3cc] ss:$16 sps:$4 sm:$0xff]  }
 0x1b2   :  { %2448 = vmatpush1.bf16.msra.mxu0 %v17476_v46  ;;  %2530 = vmatpush1.bf16.msra.mxu1 %v17479_v47  ;;  %v282_v46 = vrot.slane %v19912_v25, %v20081_v41  ;;  %v17562_v47 = vld [vmem:[%s25046_s24 + $0x3c4] ss:$16 sps:$4 sm:$0xff]   ;;  %v17560_v25 = vld [vmem:[%s25046_s24 + $0x3c0] ss:$16 sps:$4 sm:$0xff]  }
 0x1b3   :  { %15146 = vmatprep.mubr.msk.bf16.mxu0 %vm2389_vm1, %v1610_v51  ;;  %15148 = vmatprep.mubr.msk.bf16.mxu1 %vm2389_vm1, %v1610_v51  ;;  %v17563_v51 = vld [vmem:[%s25046_s24 + $0x3c8] ss:$16 sps:$4 sm:$0xff]  }
 0x1b4   :  { %2449 = vmatprep.subr.bf16.mxu0 %v17484_v49  ;;  %2531 = vmatprep.subr.bf16.mxu1 %v17487_v50  ;;  %v1735_v49 = vld [vmem:[%s25046_s24 + $0x3e0] sm:$0x33]  ;;  %v1736_v50 = vld [vmem:[%s25046_s24 + $0x3e8] sm:$0x33] }
 0x1b6   :  { %2450 = vmatpush1.bf16.msra.mxu0 %v17482_v52  ;;  %2532 = vmatpush1.bf16.msra.mxu1 %v17485_v53  ;;  %v15142_v52 = vcombine.high %v1735_v49, %v1735_v49  ;;  %v15141_v53 = vcombine.low %v1735_v49, %v1735_v49 }
 0x1b7   :  { %2451 = vmatprep.subr.bf16.mxu0 %v17490_v54  ;;  %2533 = vmatprep.subr.bf16.mxu1 %v17493_v55  ;;  %v16908_v54 = vadd.f32 %v19926_v32, %v282_v46  ;;  %v15144_v55 = vcombine.high %v1736_v50, %v1736_v50  ;;  %v2587_v32 = vld [vmem:[%s25023_s5 + $0x48] sm:$0xff] }
 0x1ba   :  { %2452 = vmatpush1.bf16.msra.mxu0 %v17488_v56  ;;  %2534 = vmatpush1.bf16.msra.mxu1 %v17491_v57  ;;  %v15143_v56 = vcombine.low %v1736_v50, %v1736_v50  ;;  %v2578_v57 = vld [vmem:[%s25023_s5] sm:$0xff] }
 0x1bb   :  { %2453 = vmatprep.subr.bf16.mxu0 %v17496_v58  ;;  %2535 = vmatprep.subr.bf16.mxu1 %v17499_v59  ;;  %v2586_v58 = vld [vmem:[%s25023_s5 + $0x40] sm:$0xff]  ;;  %v2579_v59 = vld [vmem:[%s25023_s5 + $0x8] sm:$0xff] }
 0x1bc   :  { %v2674_v50 = vld [vmem:[%s25023_s5 + $0x300] sm:$0xff] }
 0x1be   :  { %2454 = vmatpush1.bf16.msra.mxu0 %v17494_v60  ;;  %2536 = vmatpush1.bf16.msra.mxu1 %v17497_v61  ;;  %v2395_v60 = vsel %vm2393_vm2, %v15141_v53, 0  ;;  %v1605_v61 = vmax.f32 %v16908_v54, 0.0 }
 0x1bf   :  { %2455 = vmatprep.subr.bf16.mxu0 %v17502_v62  ;;  %2537 = vmatprep.subr.bf16.mxu1 %v17505_v63  ;;  %v2401_v62 = vsel %vm2393_vm2, %v15143_v56, 0  ;;  %v15150_v63 = vcombine.high %v2578_v57, %v2586_v58 }
 0x1c2   :  { %2456 = vmatpush1.bf16.msra.mxu0 %v17500_v0  ;;  %2538 = vmatpush1.bf16.msra.mxu1 %v17503_v1  ;;  %v15152_v0 = vcombine.high %v2579_v59, %v2587_v32  ;;  %v2594_v1 = vld [vmem:[%s25023_s5 + $0x80] sm:$0xff] }
 0x1c3   :  { %2457 = vmatprep.subr.bf16.mxu0 %v17508_v2  ;;  %2539 = vmatprep.subr.bf16.mxu1 %v17511_v3  ;;  %v2602_v2 = vld [vmem:[%s25023_s5 + $0xc0] sm:$0xff]  ;;  %v2595_v3 = vld [vmem:[%s25023_s5 + $0x88] sm:$0xff] }
 0x1c6   :  { %2458 = vmatpush1.bf16.msra.mxu0 %v17506_v4  ;;  %2540 = vmatpush1.bf16.msra.mxu1 %v17509_v5  ;;  %v2603_v4 = vld [vmem:[%s25023_s5 + $0xc8] sm:$0xff]  ;;  %v15149_v5 = vcombine.low %v2578_v57, %v2586_v58  ;;  %v2690_v57 = vld [vmem:[%s25023_s5 + $0x380] sm:$0xff] }
 0x1c7   :  { %2459 = vmatprep.subr.bf16.mxu0 %v17514_v6  ;;  %2541 = vmatprep.subr.bf16.mxu1 %v17517_v7  ;;  %v15151_v6 = vcombine.low %v2579_v59, %v2587_v32  ;;  %v1609_v7 = vpack.c.bf16 %v1605_v61, %v1605_v61  ;;  %v2698_v58 = vld [vmem:[%s25023_s5 + $0x3c0] sm:$0xff]  ;;  %v2691_v59 = vld [vmem:[%s25023_s5 + $0x388] sm:$0xff] }
 0x1c8   :  { %v2699_v32 = vld [vmem:[%s25023_s5 + $0x3c8] sm:$0xff] }
 0x1ca   :  { %2460 = vmatpush1.bf16.msra.mxu0 %v17512_v8  ;;  %2542 = vmatpush1.bf16.msra.mxu1 %v17515_v9  ;;  %v15166_v8 = vcombine.high %v2594_v1, %v2602_v2  ;;  %v15168_v9 = vcombine.high %v2595_v3, %v2603_v4 }
 0x1cb   :  { %2461 = vmatprep.subr.bf16.mxu0 %v17520_v10  ;;  %2543 = vmatprep.subr.bf16.mxu1 %v17523_v11  ;;  %v2610_v10 = vld [vmem:[%s25023_s5 + $0x100] sm:$0xff] }
 0x1cc   :  { %v2618_v11 = vld [vmem:[%s25023_s5 + $0x140] sm:$0xff] }
 0x1ce   :  { %2462 = vmatpush1.bf16.msra.mxu0 %v17518_v12  ;;  %2544 = vmatpush1.bf16.msra.mxu1 %v17521_v13  ;;  %v2611_v12 = vld [vmem:[%s25023_s5 + $0x108] sm:$0xff] }
 0x1cf   :  { %2463 = vmatprep.subr.bf16.mxu0 %v17526_v14  ;;  %2545 = vmatprep.subr.bf16.mxu1 %v17529_v15  ;;  %v2619_v13 = vld [vmem:[%s25023_s5 + $0x148] sm:$0xff]  ;;  %v15165_v14 = vcombine.low %v2594_v1, %v2602_v2  ;;  %v15167_v15 = vcombine.low %v2595_v3, %v2603_v4  ;;  %v2714_v1 = vld [vmem:[%s25023_s5 + $0x440] sm:$0xff]  ;;  %v15261_v4 = vcombine.low %v2690_v57, %v2698_v58 }
 0x1d0   :  { %v2707_v2 = vld [vmem:[%s25023_s5 + $0x408] sm:$0xff] }
 0x1d1   :  { %v2715_v3 = vld [vmem:[%s25023_s5 + $0x448] sm:$0xff] }
 0x1d2   :  { %2464 = vmatpush1.bf16.msra.mxu0 %v17524_v16  ;;  %2546 = vmatpush1.bf16.msra.mxu1 %v17527_v17  ;;  %v15182_v16 = vcombine.high %v2610_v10, %v2618_v11  ;;  %v15184_v17 = vcombine.high %v2611_v12, %v2619_v13 }
 0x1d3   :  { %2465 = vmatprep.subr.bf16.mxu0 %v17532_v19  ;;  %2547 = vmatprep.subr.bf16.mxu1 %v17535_v20  ;;  %v2626_v19 = vld [vmem:[%s25023_s5 + $0x180] sm:$0xff] }
 0x1d4   :  { %v2634_v20 = vld [vmem:[%s25023_s5 + $0x1c0] sm:$0xff] }
 0x1d6   :  { %2466 = vmatpush1.bf16.msra.mxu0 %v17530_v21  ;;  %2548 = vmatpush1.bf16.msra.mxu1 %v17533_v22  ;;  %v2627_v21 = vld [vmem:[%s25023_s5 + $0x188] sm:$0xff] }
 0x1d7   :  { %2467 = vmatprep.subr.bf16.mxu0 %v17538_v28  ;;  %2549 = vmatprep.subr.bf16.mxu1 %v17541_v29  ;;  %v2635_v22 = vld [vmem:[%s25023_s5 + $0x1c8] sm:$0xff]  ;;  %v15181_v28 = vcombine.low %v2610_v10, %v2618_v11  ;;  %v15183_v29 = vcombine.low %v2611_v12, %v2619_v13  ;;  %v15279_v13 = vcombine.low %v2707_v2, %v2715_v3 }
 0x1d8   :  { %v2723_v10 = vld [vmem:[%s25023_s5 + $0x488] sm:$0xff] }
 0x1d9   :  { %v2731_v11 = vld [vmem:[%s25023_s5 + $0x4c8] sm:$0xff] }
 0x1da   :  { %2468 = vmatpush1.bf16.msra.mxu0 %v17536_v30  ;;  %2550 = vmatpush1.bf16.msra.mxu1 %v17539_v31  ;;  %v15198_v30 = vcombine.high %v2626_v19, %v2634_v20  ;;  %v15200_v31 = vcombine.high %v2627_v21, %v2635_v22 }
 0x1db   :  { %2469 = vmatprep.subr.bf16.mxu0 %v17544_v33  ;;  %2551 = vmatprep.subr.bf16.mxu1 %v17547_v34  ;;  %v2642_v33 = vld [vmem:[%s25023_s5 + $0x200] sm:$0xff] }
 0x1dc   :  { %v2650_v34 = vld [vmem:[%s25023_s5 + $0x240] sm:$0xff] }
 0x1dd   :  { %v15213_v46 = vcombine.low %v2642_v33, %v2650_v34 }
 0x1de   :  { %2470 = vmatpush1.bf16.msra.mxu0 %v17542_v35  ;;  %2552 = vmatpush1.bf16.msra.mxu1 %v17545_v36  ;;  %v2643_v35 = vld [vmem:[%s25023_s5 + $0x208] sm:$0xff] }
 0x1df   :  { %2471 = vmatprep.subr.bf16.mxu0 %v17550_v37  ;;  %2553 = vmatprep.subr.bf16.mxu1 %v17553_v38  ;;  %v2651_v36 = vld [vmem:[%s25023_s5 + $0x248] sm:$0xff]  ;;  %v15197_v37 = vcombine.low %v2626_v19, %v2634_v20  ;;  %v15199_v38 = vcombine.low %v2627_v21, %v2635_v22  ;;  %v15295_v22 = vcombine.low %v2723_v10, %v2731_v11 }
 0x1e0   :  { %v2739_v19 = vld [vmem:[%s25023_s5 + $0x508] sm:$0xff] }
 0x1e1   :  { %v2747_v20 = vld [vmem:[%s25023_s5 + $0x548] sm:$0xff] }
 0x1e2   :  { %2472 = vmatpush1.bf16.msra.mxu0 %v17548_v39  ;;  %2554 = vmatpush1.bf16.msra.mxu1 %v17551_v40  ;;  %v15214_v39 = vcombine.high %v2642_v33, %v2650_v34  ;;  %v15216_v40 = vcombine.high %v2643_v35, %v2651_v36  ;;  %v2755_v33 = vld [vmem:[%s25023_s5 + $0x588] sm:$0xff] }
 0x1e3   :  { %2473 = vmatprep.subr.bf16.mxu0 %v17556_v42  ;;  %2555 = vmatprep.subr.bf16.mxu1 %v17559_v43  ;;  %v2658_v42 = vld [vmem:[%s25023_s5 + $0x280] sm:$0xff]  ;;  %v2763_v34 = vld [vmem:[%s25023_s5 + $0x5c8] sm:$0xff] }
 0x1e4   :  { %v2666_v43 = vld [vmem:[%s25023_s5 + $0x2c0] sm:$0xff] }
 0x1e5   :  { %v15229_v53 = vcombine.low %v2658_v42, %v2666_v43 }
 0x1e6   :  { %2474 = vmatpush1.bf16.msra.mxu0 %v17554_v44  ;;  %2556 = vmatpush1.bf16.msra.mxu1 %v17557_v45  ;;  %v2659_v44 = vld [vmem:[%s25023_s5 + $0x288] sm:$0xff] }
 0x1e7   :  { %2475 = vmatprep.subr.bf16.mxu0 %v17562_v47  ;;  %2557 = vmatprep.subr.bf16.mxu1 %v17565_v48  ;;  %v2667_v45 = vld [vmem:[%s25023_s5 + $0x2c8] sm:$0xff]  ;;  %v15215_v47 = vcombine.low %v2643_v35, %v2651_v36  ;;  %v15230_v48 = vcombine.high %v2658_v42, %v2666_v43  ;;  %v15311_v36 = vcombine.low %v2739_v19, %v2747_v20 }
 0x1e8   :  { %v15232_v49 = vcombine.high %v2659_v44, %v2667_v45  ;;  %v15231_v54 = vcombine.low %v2659_v44, %v2667_v45  ;;  %v2771_v42 = vld [vmem:[%s25023_s5 + $0x608] sm:$0xff]  ;;  %v15327_v45 = vcombine.low %v2755_v33, %v2763_v34 }
 0x1e9   :  { %v2779_v43 = vld [vmem:[%s25023_s5 + $0x648] sm:$0xff] }
 0x1ea   :  { %2476 = vmatpush1.bf16.msra.mxu0 %v17560_v25  ;;  %2558 = vmatpush1.bf16.msra.mxu1 %v17563_v51  ;;  %v2682_v25 = vld [vmem:[%s25023_s5 + $0x340] sm:$0xff]  ;;  %v2675_v51 = vld [vmem:[%s25023_s5 + $0x308] sm:$0xff] }
 0x1eb   :  { %15145 = vmatprep.subr.msk.bf16.mxu0 %vm2393_vm2, %v15142_v52  ;;  %15147 = vmatprep.subr.msk.bf16.mxu1 %vm2393_vm2, %v15144_v55  ;;  %v2683_v52 = vld [vmem:[%s25023_s5 + $0x348] sm:$0xff]  ;;  %v15246_v55 = vcombine.high %v2674_v50, %v2682_v25 }
 0x1ec   :  { %v15248_v56 = vcombine.high %v2675_v51, %v2683_v52  ;;  %v15247_v61 = vcombine.low %v2675_v51, %v2683_v52  ;;  %v15343_v52 = vcombine.low %v2771_v42, %v2779_v43 }
 0x1ee   :  { %2478 = vmatpush1.bf16.msra.mxu0 %v2395_v60  ;;  %2560 = vmatpush1.bf16.msra.mxu1 %v2401_v62  ;;  %v15245_v60 = vcombine.low %v2674_v50, %v2682_v25  ;;  %v15262_v62 = vcombine.high %v2690_v57, %v2698_v58  ;;  %v2787_v50 = vld [vmem:[%s25023_s5 + $0x688] sm:$0xff]  ;;  %v2802_v57 = vld [vmem:[%s25023_s5 + $0x700] sm:$0xff] }
 0x1ef   :  { %5737 = vmatprep.subr.bf16.mxu0 %v15150_v63  ;;  %5819 = vmatprep.subr.bf16.mxu1 %v15152_v0  ;;  %v15264_v63 = vcombine.high %v2691_v59, %v2699_v32  ;;  %v2706_v0 = vld [vmem:[%s25023_s5 + $0x400] sm:$0xff]  ;;  %v2795_v25 = vld [vmem:[%s25023_s5 + $0x6c8] sm:$0xff] }
 0x1f0   :  { %v15277_v12 = vcombine.low %v2706_v0, %v2714_v1  ;;  %v2810_v58 = vld [vmem:[%s25023_s5 + $0x740] sm:$0xff] }
 0x1f1   :  { %2480 = vmatmul.mubr.bf16.vlgmr.msra.gmra.mrb[4].mxu0 %v1609_v7  ;;  %2562 = vmatmul.mubr.bf16.vlgmr.msra.gmra.mrb[4].mxu1 %v1609_v7  ;;  %v15280_v7 = vcombine.high %v2707_v2, %v2715_v3  ;;  %v2819_v2 = vld [vmem:[%s25023_s5 + $0x788] sm:$0xff] }
 0x1f2   :  { %5738 = vmatpush1.bf16.msra.mxu0 %v15149_v5  ;;  %5820 = vmatpush1.bf16.msra.mxu1 %v15151_v6  ;;  %v15263_v5 = vcombine.low %v2691_v59, %v2699_v32  ;;  %v15278_v6 = vcombine.high %v2706_v0, %v2714_v1  ;;  %v2803_v59 = vld [vmem:[%s25023_s5 + $0x708] sm:$0xff]  ;;  %v15374_v32 = vcombine.high %v2802_v57, %v2810_v58  ;;  %v2818_v0 = vld [vmem:[%s25023_s5 + $0x780] sm:$0xff] }
 0x1f3   :  { %5739 = vmatprep.subr.bf16.mxu0 %v15166_v8  ;;  %5821 = vmatprep.subr.bf16.mxu1 %v15168_v9  ;;  %v2722_v8 = vld [vmem:[%s25023_s5 + $0x480] sm:$0xff] }
 0x1f4   :  { %v2730_v9 = vld [vmem:[%s25023_s5 + $0x4c0] sm:$0xff] }
 0x1f5   :  { %v15293_v21 = vcombine.low %v2722_v8, %v2730_v9  ;;  %v2826_v1 = vld [vmem:[%s25023_s5 + $0x7c0] sm:$0xff] }
 0x1f6   :  { %5740 = vmatpush1.bf16.msra.mxu0 %v15165_v14  ;;  %5822 = vmatpush1.bf16.msra.mxu1 %v15167_v15  ;;  %v15294_v14 = vcombine.high %v2722_v8, %v2730_v9  ;;  %v15296_v15 = vcombine.high %v2723_v10, %v2731_v11  ;;  %v15390_v3 = vcombine.high %v2818_v0, %v2826_v1  ;;  %v2834_v8 = vld [vmem:[%s25023_s5 + $0x800] sm:$0xff]  ;;  %v2835_v10 = vld [vmem:[%s25023_s5 + $0x808] sm:$0xff] }
 0x1f7   :  { %5741 = vmatprep.subr.bf16.mxu0 %v15182_v16  ;;  %5823 = vmatprep.subr.bf16.mxu1 %v15184_v17  ;;  %v2738_v16 = vld [vmem:[%s25023_s5 + $0x500] sm:$0xff] }
 0x1f8   :  { %v2746_v17 = vld [vmem:[%s25023_s5 + $0x540] sm:$0xff] }
 0x1f9   :  { %v15309_v35 = vcombine.low %v2738_v16, %v2746_v17  ;;  %v2842_v9 = vld [vmem:[%s25023_s5 + $0x840] sm:$0xff] }
 0x1fa   :  { %5742 = vmatpush1.bf16.msra.mxu0 %v15181_v28  ;;  %5824 = vmatpush1.bf16.msra.mxu1 %v15183_v29  ;;  %v15310_v28 = vcombine.high %v2738_v16, %v2746_v17  ;;  %v15312_v29 = vcombine.high %v2739_v19, %v2747_v20  ;;  %v15406_v11 = vcombine.high %v2834_v8, %v2842_v9  ;;  %v20327_v16 = vld [vmem:[%s25024_s4] sm:$0xf] }
 0x1fb   :  { %5743 = vmatprep.subr.bf16.mxu0 %v15198_v30  ;;  %5825 = vmatprep.subr.bf16.mxu1 %v15200_v31  ;;  %v2754_v30 = vld [vmem:[%s25023_s5 + $0x580] sm:$0xff]  ;;  %v1742_v17 = vrot.slane %v20327_v16, %v19907_v24  ;;  %v1746_v19 = vrot.slane %v20327_v16, %v19915_v26  ;;  %v1754_v20 = vrot.slane %v20327_v16, %v19918_v27 }
 0x1fc   :  { %v2762_v31 = vld [vmem:[%s25023_s5 + $0x5c0] sm:$0xff] }
 0x1fd   :  { %v15325_v44 = vcombine.low %v2754_v30, %v2762_v31 }
 0x1fe   :  { %5744 = vmatpush1.bf16.msra.mxu0 %v15197_v37  ;;  %5826 = vmatpush1.bf16.msra.mxu1 %v15199_v38  ;;  %v15326_v37 = vcombine.high %v2754_v30, %v2762_v31  ;;  %v15328_v38 = vcombine.high %v2755_v33, %v2763_v34 }
 0x1ff   :  { %5745 = vmatprep.subr.bf16.mxu0 %v15214_v39  ;;  %5827 = vmatprep.subr.bf16.mxu1 %v15216_v40  ;;  %v2770_v39 = vld [vmem:[%s25023_s5 + $0x600] sm:$0xff] }
 0x200   :  { %v2778_v40 = vld [vmem:[%s25023_s5 + $0x640] sm:$0xff] }
 0x201   :  { %v15341_v51 = vcombine.low %v2770_v39, %v2778_v40 }
 0x202   :  { %5746 = vmatpush1.bf16.msra.mxu0 %v15213_v46  ;;  %5828 = vmatpush1.bf16.msra.mxu1 %v15215_v47  ;;  %v15342_v46 = vcombine.high %v2770_v39, %v2778_v40  ;;  %v15344_v47 = vcombine.high %v2771_v42, %v2779_v43  ;;  %v2850_v40 = vld [vmem:[%s25023_s5 + $0x880] sm:$0xff] }
 0x203   :  { %5747 = vmatprep.subr.bf16.mxu0 %v15230_v48  ;;  %5829 = vmatprep.subr.bf16.mxu1 %v15232_v49  ;;  %v2786_v48 = vld [vmem:[%s25023_s5 + $0x680] sm:$0xff] }
 0x204   :  { %v2794_v49 = vld [vmem:[%s25023_s5 + $0x6c0] sm:$0xff] }
 0x205   :  { %v2858_v43 = vld [vmem:[%s25023_s5 + $0x8c0] sm:$0xff] }
 0x206   :  { %5748 = vmatpush1.bf16.msra.mxu0 %v15229_v53  ;;  %5830 = vmatpush1.bf16.msra.mxu1 %v15231_v54  ;;  %v15358_v53 = vcombine.high %v2786_v48, %v2794_v49  ;;  %v15360_v54 = vcombine.high %v2787_v50, %v2795_v25 }
 0x207   :  { %5749 = vmatprep.subr.bf16.mxu0 %v15246_v55  ;;  %5831 = vmatprep.subr.bf16.mxu1 %v15248_v56  ;;  %v15357_v55 = vcombine.low %v2786_v48, %v2794_v49  ;;  %v15359_v56 = vcombine.low %v2787_v50, %v2795_v25  ;;  %v2866_v48 = vld [vmem:[%s25023_s5 + $0x900] sm:$0xff]  ;;  %v15422_v49 = vcombine.high %v2850_v40, %v2858_v43 }
 0x208   :  { %v2874_v25 = vld [vmem:[%s25023_s5 + $0x940] sm:$0xff] }
 0x20a   :  { %5750 = vmatpush1.bf16.msra.mxu0 %v15245_v60  ;;  %5832 = vmatpush1.bf16.msra.mxu1 %v15247_v61  ;;  %v2811_v60 = vld [vmem:[%s25023_s5 + $0x748] sm:$0xff]  ;;  %v15373_v61 = vcombine.low %v2802_v57, %v2810_v58  ;;  %v2882_v58 = vld [vmem:[%s25023_s5 + $0x980] sm:$0xff] }
 0x20b   :  { %5751 = vmatprep.subr.bf16.mxu0 %v15262_v62  ;;  %5833 = vmatprep.subr.bf16.mxu1 %v15264_v63  ;;  %v15375_v62 = vcombine.low %v2803_v59, %v2811_v60  ;;  %v15376_v63 = vcombine.high %v2803_v59, %v2811_v60  ;;  %v2890_v59 = vld [vmem:[%s25023_s5 + $0x9c0] sm:$0xff]  ;;  %v2891_v60 = vld [vmem:[%s25023_s5 + $0x9c8] sm:$0xff] }
 0x20e   :  { %5752 = vmatpush1.bf16.msra.mxu0 %v15261_v4  ;;  %5834 = vmatpush1.bf16.msra.mxu1 %v15263_v5  ;;  %v2827_v4 = vld [vmem:[%s25023_s5 + $0x7c8] sm:$0xff]  ;;  %v15389_v5 = vcombine.low %v2818_v0, %v2826_v1  ;;  %v2898_v1 = vld [vmem:[%s25023_s5 + $0xa00] sm:$0xff] }
 0x20f   :  { %5753 = vmatprep.subr.bf16.mxu0 %v15278_v6  ;;  %5835 = vmatprep.subr.bf16.mxu1 %v15280_v7  ;;  %v15391_v6 = vcombine.low %v2819_v2, %v2827_v4  ;;  %v15392_v7 = vcombine.high %v2819_v2, %v2827_v4  ;;  %v2906_v2 = vld [vmem:[%s25023_s5 + $0xa40] sm:$0xff]  ;;  %v2907_v4 = vld [vmem:[%s25023_s5 + $0xa48] sm:$0xff] }
 0x212   :  { %5754 = vmatpush1.bf16.msra.mxu0 %v15277_v12  ;;  %5836 = vmatpush1.bf16.msra.mxu1 %v15279_v13  ;;  %v2843_v12 = vld [vmem:[%s25023_s5 + $0x848] sm:$0xff]  ;;  %v15405_v13 = vcombine.low %v2834_v8, %v2842_v9  ;;  %v2914_v9 = vld [vmem:[%s25023_s5 + $0xa80] sm:$0xff] }
 0x213   :  { %5755 = vmatprep.subr.bf16.mxu0 %v15294_v14  ;;  %5837 = vmatprep.subr.bf16.mxu1 %v15296_v15  ;;  %v15407_v14 = vcombine.low %v2835_v10, %v2843_v12  ;;  %v15408_v15 = vcombine.high %v2835_v10, %v2843_v12  ;;  %v2922_v10 = vld [vmem:[%s25023_s5 + $0xac0] sm:$0xff]  ;;  %v2923_v12 = vld [vmem:[%s25023_s5 + $0xac8] sm:$0xff] }
 0x216   :  { %5756 = vmatpush1.bf16.msra.mxu0 %v15293_v21  ;;  %5838 = vmatpush1.bf16.msra.mxu1 %v15295_v22 }
 0x217   :  { %5757 = vmatprep.subr.bf16.mxu0 %v15310_v28  ;;  %5839 = vmatprep.subr.bf16.mxu1 %v15312_v29 }
 0x21a   :  { %5758 = vmatpush1.bf16.msra.mxu0 %v15309_v35  ;;  %5840 = vmatpush1.bf16.msra.mxu1 %v15311_v36 }
 0x21b   :  { %5759 = vmatprep.subr.bf16.mxu0 %v15326_v37  ;;  %5841 = vmatprep.subr.bf16.mxu1 %v15328_v38 }
 0x21e   :  { %5760 = vmatpush1.bf16.msra.mxu0 %v15325_v44  ;;  %5842 = vmatpush1.bf16.msra.mxu1 %v15327_v45  ;;  %v2851_v44 = vld [vmem:[%s25023_s5 + $0x888] sm:$0xff] }
 0x21f   :  { %5761 = vmatprep.subr.bf16.mxu0 %v15342_v46  ;;  %5843 = vmatprep.subr.bf16.mxu1 %v15344_v47  ;;  %v2859_v45 = vld [vmem:[%s25023_s5 + $0x8c8] sm:$0xff] }
 0x220   :  { %v15424_v50 = vcombine.high %v2851_v44, %v2859_v45 }
 0x222   :  { %5762 = vmatpush1.bf16.msra.mxu0 %v15341_v51  ;;  %5844 = vmatpush1.bf16.msra.mxu1 %v15343_v52  ;;  %v2867_v51 = vld [vmem:[%s25023_s5 + $0x908] sm:$0xff] }
 0x223   :  { %5763 = vmatprep.subr.bf16.mxu0 %v15358_v53  ;;  %5845 = vmatprep.subr.bf16.mxu1 %v15360_v54  ;;  %v2875_v52 = vld [vmem:[%s25023_s5 + $0x948] sm:$0xff]  ;;  %v15421_v54 = vcombine.low %v2850_v40, %v2858_v43  ;;  %v2962_v43 = vld [vmem:[%s25023_s5 + $0xc00] sm:$0xff] }
 0x224   :  { %v15440_v57 = vcombine.high %v2867_v51, %v2875_v52 }
 0x226   :  { %5764 = vmatpush1.bf16.msra.mxu0 %v15357_v55  ;;  %5846 = vmatpush1.bf16.msra.mxu1 %v15359_v56  ;;  %v15423_v55 = vcombine.low %v2851_v44, %v2859_v45  ;;  %v15438_v56 = vcombine.high %v2866_v48, %v2874_v25  ;;  %v2970_v44 = vld [vmem:[%s25023_s5 + $0xc40] sm:$0xff]  ;;  %v2963_v45 = vld [vmem:[%s25023_s5 + $0xc08] sm:$0xff] }
 0x227   :  { %5765 = vmatprep.subr.bf16.mxu0 %v15374_v32  ;;  %5847 = vmatprep.subr.bf16.mxu1 %v15376_v63  ;;  %v2883_v32 = vld [vmem:[%s25023_s5 + $0x988] sm:$0xff]  ;;  %v15454_v63 = vcombine.high %v2882_v58, %v2890_v59 }
 0x228   :  { %v15456_v0 = vcombine.high %v2883_v32, %v2891_v60 }
 0x22a   :  { %5766 = vmatpush1.bf16.msra.mxu0 %v15373_v61  ;;  %5848 = vmatpush1.bf16.msra.mxu1 %v15375_v62  ;;  %v15437_v61 = vcombine.low %v2866_v48, %v2874_v25  ;;  %v15439_v62 = vcombine.low %v2867_v51, %v2875_v52  ;;  %v2971_v48 = vld [vmem:[%s25023_s5 + $0xc48] sm:$0xff]  ;;  %v15534_v25 = vcombine.high %v2962_v43, %v2970_v44  ;;  %v2978_v52 = vld [vmem:[%s25023_s5 + $0xc80] sm:$0xff] }
 0x22b   :  { %5767 = vmatprep.subr.bf16.mxu0 %v15390_v3  ;;  %5849 = vmatprep.subr.bf16.mxu1 %v15392_v7  ;;  %v2899_v3 = vld [vmem:[%s25023_s5 + $0xa08] sm:$0xff]  ;;  %v15470_v7 = vcombine.high %v2898_v1, %v2906_v2  ;;  %v15536_v51 = vcombine.high %v2963_v45, %v2971_v48 }
 0x22c   :  { %v15472_v8 = vcombine.high %v2899_v3, %v2907_v4 }
 0x22e   :  { %5768 = vmatpush1.bf16.msra.mxu0 %v15389_v5  ;;  %5850 = vmatpush1.bf16.msra.mxu1 %v15391_v6  ;;  %v15453_v5 = vcombine.low %v2882_v58, %v2890_v59  ;;  %v15455_v6 = vcombine.low %v2883_v32, %v2891_v60  ;;  %v15535_v58 = vcombine.low %v2963_v45, %v2971_v48  ;;  %v2994_v60 = vld [vmem:[%s25023_s5 + $0xd00] sm:$0xff] }
 0x22f   :  { %5778 = vmatprep.subr.bf16.mxu0 %v15406_v11  ;;  %5860 = vmatprep.subr.bf16.mxu1 %v15408_v15  ;;  %v2915_v11 = vld [vmem:[%s25023_s5 + $0xa88] sm:$0xff]  ;;  %v15486_v15 = vcombine.high %v2914_v9, %v2922_v10 }
 0x2c4   :  { %v2481_v21 = vpop.f32.mrb[4].mxu0  ;;  %v20335_v22 = vpop.f32.mrb[4].mxu1 }
 0x2c5   :  { %v16910_v28 = vadd.f32 %v2481_v21, %v1742_v17  ;;  %v2483_v29 = vpop.f32.mrb[5].mxu0  ;;  %v2565_v30 = vpop.f32.mrb[5].mxu1  ;;  %v15488_v17 = vcombine.high %v2915_v11, %v2923_v12  ;;  %v2931_v21 = vld [vmem:[%s25023_s5 + $0xb08] sm:$0xff] }
 0x2c6   :  { %v16911_v31 = vadd.f32 %v2483_v29, %v1746_v19  ;;  %v16913_v33 = vadd.f32 %v2565_v30, %v1754_v20  ;;  %v2485_v34 = vpop.f32.mrb[6].mxu0  ;;  %v2567_v35 = vpop.f32.mrb[6].mxu1  ;;  %v2930_v19 = vld [vmem:[%s25023_s5 + $0xb00] sm:$0xff]  ;;  %v15485_v29 = vcombine.low %v2914_v9, %v2922_v10  ;;  %v15487_v30 = vcombine.low %v2915_v11, %v2923_v12 }
 0x2c7   :  { %v2570_v36 = vmax.f32 %v16910_v28, 0.0  ;;  %v2486_v37 = vpop.f32.mrb[7].mxu0  ;;  %v2568_v38 = vpop.f32.mrb[7].mxu1  ;;  %v2938_v20 = vld [vmem:[%s25023_s5 + $0xb40] sm:$0xff]  ;;  %v2939_v28 = vld [vmem:[%s25023_s5 + $0xb48] sm:$0xff] }
 0x2c8   :  { %v2571_v39 = vmax.f32 %v16911_v31, 0.0  ;;  %v2573_v42 = vmax.f32 %v16913_v33, 0.0  ;;  %v15502_v31 = vcombine.high %v2930_v19, %v2938_v20  ;;  %v15504_v33 = vcombine.high %v2931_v21, %v2939_v28  ;;  %v2946_v34 = vld [vmem:[%s25023_s5 + $0xb80] sm:$0xff]  ;;  %v2955_v37 = vld [vmem:[%s25023_s5 + $0xbc8] sm:$0xff] }
 0x2c9   :  { %v20351_v47 = vpack.c.bf16 %v2570_v36, %v2570_v36  ;;  %v2954_v35 = vld [vmem:[%s25023_s5 + $0xbc0] sm:$0xff]  ;;  %v2947_v36 = vld [vmem:[%s25023_s5 + $0xb88] sm:$0xff]  ;;  %v15501_v38 = vcombine.low %v2930_v19, %v2938_v20 }
 0x2ca   :  { %v20349_v46 = vpack.c.bf16 %v2571_v39, %v2571_v39  ;;  %v20367_v53 = vpack.c.bf16 %v2573_v42, %v2573_v42  ;;  %v15503_v39 = vcombine.low %v2931_v21, %v2939_v28  ;;  %v15518_v40 = vcombine.high %v2946_v34, %v2954_v35  ;;  %v3026_v12 = vld [vmem:[%s25023_s5 + $0xe00] sm:$0xff] }
 0x2cb   :  { %v15520_v42 = vcombine.high %v2947_v36, %v2955_v37  ;;  %v3042_v28 = vld [vmem:[%s25023_s5 + $0xe80] sm:$0xff] }
 0x2cc   :  { %5769 = vmatprep.mubr.bf16.mxu0 %v20349_v46  ;;  %5851 = vmatprep.mubr.bf16.mxu1 %v20349_v46 }
 0x2cd   :  { %5770 = vmatmul.mubr.bf16.vlgmr.msra.gmra.mrb[8].mxu0 %v20351_v47  ;;  %5852 = vmatmul.mubr.bf16.vlgmr.msra.gmra.mrb[8].mxu1 %v20351_v47 }
 0x2ce   :  { %5779 = vmatpush1.bf16.msra.mxu0 %v15405_v13  ;;  %5861 = vmatpush1.bf16.msra.mxu1 %v15407_v14  ;;  %v15469_v13 = vcombine.low %v2898_v1, %v2906_v2  ;;  %v15471_v14 = vcombine.low %v2899_v3, %v2907_v4  ;;  %v3010_v4 = vld [vmem:[%s25023_s5 + $0xd80] sm:$0xff] }
 0x2cf   :  { %15662 = vmatprep.mubr.msk.bf16.mxu0 %vm2389_vm1, %v20367_v53  ;;  %15664 = vmatprep.mubr.msk.bf16.mxu1 %vm2389_vm1, %v20367_v53 }
 0x2d0   :  { %5780 = vmatprep.subr.bf16.mxu0 %v15422_v49  ;;  %5862 = vmatprep.subr.bf16.mxu1 %v15424_v50  ;;  %v15517_v49 = vcombine.low %v2946_v34, %v2954_v35  ;;  %v15519_v50 = vcombine.low %v2947_v36, %v2955_v37  ;;  %v3058_v37 = vld [vmem:[%s25023_s5 + $0xf00] sm:$0xff] }
 0x2d2   :  { %5781 = vmatpush1.bf16.msra.mxu0 %v15421_v54  ;;  %5863 = vmatpush1.bf16.msra.mxu1 %v15423_v55  ;;  %v2986_v54 = vld [vmem:[%s25023_s5 + $0xcc0] sm:$0xff]  ;;  %v2979_v55 = vld [vmem:[%s25023_s5 + $0xc88] sm:$0xff] }
 0x2d3   :  { %5782 = vmatprep.subr.bf16.mxu0 %v15438_v56  ;;  %5864 = vmatprep.subr.bf16.mxu1 %v15440_v57  ;;  %v2987_v56 = vld [vmem:[%s25023_s5 + $0xcc8] sm:$0xff]  ;;  %v15533_v57 = vcombine.low %v2962_v43, %v2970_v44  ;;  %v15550_v59 = vcombine.high %v2978_v52, %v2986_v54  ;;  %v1750_v44 = vrot.slane %v20327_v16, %v20081_v41 }
 0x2d4   :  { %v15552_v32 = vcombine.high %v2979_v55, %v2987_v56  ;;  %v15551_v1 = vcombine.low %v2979_v55, %v2987_v56 }
 0x2d5   :  { %v16912_v16 = vadd.f32 %v20335_v22, %v1750_v44  ;;  %v2589_v22 = vld [vmem:[%s25023_s5 + $0x58] sm:$0xff]  ;;  %v2668_v44 = vld [vmem:[%s25023_s5 + $0x2d0] sm:$0xff] }
 0x2d6   :  { %5783 = vmatpush1.bf16.msra.mxu0 %v15437_v61  ;;  %5865 = vmatpush1.bf16.msra.mxu1 %v15439_v62  ;;  %v3002_v61 = vld [vmem:[%s25023_s5 + $0xd40] sm:$0xff]  ;;  %v2995_v62 = vld [vmem:[%s25023_s5 + $0xd08] sm:$0xff] }
 0x2d7   :  { %5784 = vmatprep.subr.bf16.mxu0 %v15454_v63  ;;  %5866 = vmatprep.subr.bf16.mxu1 %v15456_v0  ;;  %v3003_v63 = vld [vmem:[%s25023_s5 + $0xd48] sm:$0xff]  ;;  %v15549_v0 = vcombine.low %v2978_v52, %v2986_v54  ;;  %v15566_v2 = vcombine.high %v2994_v60, %v3002_v61 }
 0x2d8   :  { %v15568_v3 = vcombine.high %v2995_v62, %v3003_v63  ;;  %v15567_v9 = vcombine.low %v2995_v62, %v3003_v63 }
 0x2da   :  { %5785 = vmatpush1.bf16.msra.mxu0 %v15453_v5  ;;  %5867 = vmatpush1.bf16.msra.mxu1 %v15455_v6  ;;  %v3018_v5 = vld [vmem:[%s25023_s5 + $0xdc0] sm:$0xff]  ;;  %v3011_v6 = vld [vmem:[%s25023_s5 + $0xd88] sm:$0xff] }
 0x2db   :  { %5786 = vmatprep.subr.bf16.mxu0 %v15470_v7  ;;  %5868 = vmatprep.subr.bf16.mxu1 %v15472_v8  ;;  %v3019_v7 = vld [vmem:[%s25023_s5 + $0xdc8] sm:$0xff]  ;;  %v15565_v8 = vcombine.low %v2994_v60, %v3002_v61  ;;  %v15582_v10 = vcombine.high %v3010_v4, %v3018_v5  ;;  %v2572_v60 = vmax.f32 %v16912_v16, 0.0  ;;  %v2677_v16 = vld [vmem:[%s25023_s5 + $0x318] sm:$0xff] }
 0x2dc   :  { %v15584_v11 = vcombine.high %v3011_v6, %v3019_v7  ;;  %v15583_v19 = vcombine.low %v3011_v6, %v3019_v7 }
 0x2de   :  { %5787 = vmatpush1.bf16.msra.mxu0 %v15469_v13  ;;  %5869 = vmatpush1.bf16.msra.mxu1 %v15471_v14  ;;  %v3034_v13 = vld [vmem:[%s25023_s5 + $0xe40] sm:$0xff]  ;;  %v3027_v14 = vld [vmem:[%s25023_s5 + $0xe08] sm:$0xff] }
 0x2df   :  { %5788 = vmatprep.subr.bf16.mxu0 %v15486_v15  ;;  %5870 = vmatprep.subr.bf16.mxu1 %v15488_v17  ;;  %v3035_v15 = vld [vmem:[%s25023_s5 + $0xe48] sm:$0xff]  ;;  %v15581_v17 = vcombine.low %v3010_v4, %v3018_v5  ;;  %v15598_v20 = vcombine.high %v3026_v12, %v3034_v13  ;;  %v20556_v5 = vpack.c.bf16 %v2572_v60, %v2572_v60  ;;  %v2693_v60 = vld [vmem:[%s25023_s5 + $0x398] sm:$0xff] }
 0x2e0   :  { %v15600_v21 = vcombine.high %v3027_v14, %v3035_v15  ;;  %v15599_v34 = vcombine.low %v3027_v14, %v3035_v15 }
 0x2e2   :  { %5789 = vmatpush1.bf16.msra.mxu0 %v15485_v29  ;;  %5871 = vmatpush1.bf16.msra.mxu1 %v15487_v30  ;;  %v3050_v29 = vld [vmem:[%s25023_s5 + $0xec0] sm:$0xff]  ;;  %v3043_v30 = vld [vmem:[%s25023_s5 + $0xe88] sm:$0xff] }
 0x2e3   :  { %5790 = vmatprep.subr.bf16.mxu0 %v15502_v31  ;;  %5872 = vmatprep.subr.bf16.mxu1 %v15504_v33  ;;  %v3051_v31 = vld [vmem:[%s25023_s5 + $0xec8] sm:$0xff]  ;;  %v15597_v33 = vcombine.low %v3026_v12, %v3034_v13  ;;  %v15614_v35 = vcombine.high %v3042_v28, %v3050_v29  ;;  %v2621_v12 = vld [vmem:[%s25023_s5 + $0x158] sm:$0xff] }
 0x2e4   :  { %v15616_v36 = vcombine.high %v3043_v30, %v3051_v31  ;;  %v15615_v43 = vcombine.low %v3043_v30, %v3051_v31 }
 0x2e6   :  { %5791 = vmatpush1.bf16.msra.mxu0 %v15501_v38  ;;  %5873 = vmatpush1.bf16.msra.mxu1 %v15503_v39  ;;  %v3066_v38 = vld [vmem:[%s25023_s5 + $0xf40] sm:$0xff]  ;;  %v3059_v39 = vld [vmem:[%s25023_s5 + $0xf08] sm:$0xff] }
 0x2e7   :  { %5792 = vmatprep.subr.bf16.mxu0 %v15518_v40  ;;  %5874 = vmatprep.subr.bf16.mxu1 %v15520_v42  ;;  %v3067_v40 = vld [vmem:[%s25023_s5 + $0xf48] sm:$0xff]  ;;  %v15613_v42 = vcombine.low %v3042_v28, %v3050_v29  ;;  %v15630_v45 = vcombine.high %v3058_v37, %v3066_v38  ;;  %v2637_v28 = vld [vmem:[%s25023_s5 + $0x1d8] sm:$0xff] }
 0x2e8   :  { %v15632_v48 = vcombine.high %v3059_v39, %v3067_v40 }
 0x2ea   :  { %5793 = vmatpush1.bf16.msra.mxu0 %v15517_v49  ;;  %5875 = vmatpush1.bf16.msra.mxu1 %v15519_v50  ;;  %v3074_v49 = vld [vmem:[%s25023_s5 + $0xf80] sm:$0x33]  ;;  %v3075_v50 = vld [vmem:[%s25023_s5 + $0xf88] sm:$0x33] }
 0x2eb   :  { %5794 = vmatprep.subr.bf16.mxu0 %v15534_v25  ;;  %5876 = vmatprep.subr.bf16.mxu1 %v15536_v51  ;;  %v15629_v25 = vcombine.low %v3058_v37, %v3066_v38  ;;  %v15631_v51 = vcombine.low %v3059_v39, %v3067_v40  ;;  %v15646_v52 = vcombine.high %v3074_v49, %v3074_v49  ;;  %v2653_v37 = vld [vmem:[%s25023_s5 + $0x258] sm:$0xff] }
 0x2ec   :  { %v15645_v54 = vcombine.low %v3074_v49, %v3074_v49  ;;  %v15648_v55 = vcombine.high %v3075_v50, %v3075_v50  ;;  %v15647_v56 = vcombine.low %v3075_v50, %v3075_v50 }
 0x2ee   :  { %5795 = vmatpush1.bf16.msra.mxu0 %v15533_v57  ;;  %5877 = vmatpush1.bf16.msra.mxu1 %v15535_v58  ;;  %v2580_v57 = vld [vmem:[%s25023_s5 + $0x10] sm:$0xff]  ;;  %v5696_v61 = vsel %vm2393_vm2, %v15647_v56, 0 }
 0x2ef   :  { %5796 = vmatprep.subr.bf16.mxu0 %v15550_v59  ;;  %5878 = vmatprep.subr.bf16.mxu1 %v15552_v32  ;;  %v2588_v58 = vld [vmem:[%s25023_s5 + $0x50] sm:$0xff]  ;;  %v2581_v59 = vld [vmem:[%s25023_s5 + $0x18] sm:$0xff]  ;;  %v5690_v32 = vsel %vm2393_vm2, %v15645_v54, 0 }
 0x2f0   :  { %v15154_v62 = vcombine.high %v2580_v57, %v2588_v58  ;;  %v15156_v63 = vcombine.high %v2581_v59, %v2589_v22  ;;  %v15153_v4 = vcombine.low %v2580_v57, %v2588_v58  ;;  %v15155_v6 = vcombine.low %v2581_v59, %v2589_v22  ;;  %v2684_v54 = vld [vmem:[%s25023_s5 + $0x350] sm:$0xff] }
 0x2f1   :  { %v2692_v22 = vld [vmem:[%s25023_s5 + $0x390] sm:$0xff] }
 0x2f2   :  { %5797 = vmatpush1.bf16.msra.mxu0 %v15549_v0  ;;  %5879 = vmatpush1.bf16.msra.mxu1 %v15551_v1  ;;  %v2596_v0 = vld [vmem:[%s25023_s5 + $0x90] sm:$0xff] }
 0x2f3   :  { %5798 = vmatprep.subr.bf16.mxu0 %v15566_v2  ;;  %5880 = vmatprep.subr.bf16.mxu1 %v15568_v3  ;;  %v2604_v1 = vld [vmem:[%s25023_s5 + $0xd0] sm:$0xff]  ;;  %v2597_v2 = vld [vmem:[%s25023_s5 + $0x98] sm:$0xff] }
 0x2f4   :  { %v2605_v3 = vld [vmem:[%s25023_s5 + $0xd8] sm:$0xff]  ;;  %v15170_v7 = vcombine.high %v2596_v0, %v2604_v1  ;;  %v15169_v13 = vcombine.low %v2596_v0, %v2604_v1 }
 0x2f5   :  { %v15171_v14 = vcombine.low %v2597_v2, %v2605_v3 }
 0x2f6   :  { %5799 = vmatpush1.bf16.msra.mxu0 %v15565_v8  ;;  %5881 = vmatpush1.bf16.msra.mxu1 %v15567_v9  ;;  %v15172_v8 = vcombine.high %v2597_v2, %v2605_v3  ;;  %v2612_v9 = vld [vmem:[%s25023_s5 + $0x110] sm:$0xff] }
 0x2f7   :  { %5800 = vmatprep.subr.bf16.mxu0 %v15582_v10  ;;  %5882 = vmatprep.subr.bf16.mxu1 %v15584_v11  ;;  %v2620_v10 = vld [vmem:[%s25023_s5 + $0x150] sm:$0xff]  ;;  %v2613_v11 = vld [vmem:[%s25023_s5 + $0x118] sm:$0xff] }
 0x2f8   :  { %v15186_v15 = vcombine.high %v2612_v9, %v2620_v10  ;;  %v15185_v29 = vcombine.low %v2612_v9, %v2620_v10  ;;  %v15187_v30 = vcombine.low %v2613_v11, %v2621_v12  ;;  %v2708_v2 = vld [vmem:[%s25023_s5 + $0x410] sm:$0xff] }
 0x2f9   :  { %v2716_v3 = vld [vmem:[%s25023_s5 + $0x450] sm:$0xff] }
 0x2fa   :  { %5801 = vmatpush1.bf16.msra.mxu0 %v15581_v17  ;;  %5883 = vmatpush1.bf16.msra.mxu1 %v15583_v19  ;;  %v15188_v17 = vcombine.high %v2613_v11, %v2621_v12  ;;  %v2628_v19 = vld [vmem:[%s25023_s5 + $0x190] sm:$0xff]  ;;  %v15282_v9 = vcombine.high %v2708_v2, %v2716_v3 }
 0x2fb   :  { %5802 = vmatprep.subr.bf16.mxu0 %v15598_v20  ;;  %5884 = vmatprep.subr.bf16.mxu1 %v15600_v21  ;;  %v2636_v20 = vld [vmem:[%s25023_s5 + $0x1d0] sm:$0xff]  ;;  %v2629_v21 = vld [vmem:[%s25023_s5 + $0x198] sm:$0xff] }
 0x2fc   :  { %v15202_v31 = vcombine.high %v2628_v19, %v2636_v20  ;;  %v15201_v38 = vcombine.low %v2628_v19, %v2636_v20  ;;  %v15203_v39 = vcombine.low %v2629_v21, %v2637_v28  ;;  %v2724_v11 = vld [vmem:[%s25023_s5 + $0x490] sm:$0xff] }
 0x2fd   :  { %v2732_v12 = vld [vmem:[%s25023_s5 + $0x4d0] sm:$0xff] }
 0x2fe   :  { %5803 = vmatpush1.bf16.msra.mxu0 %v15597_v33  ;;  %5885 = vmatpush1.bf16.msra.mxu1 %v15599_v34  ;;  %v15204_v33 = vcombine.high %v2629_v21, %v2637_v28  ;;  %v2644_v34 = vld [vmem:[%s25023_s5 + $0x210] sm:$0xff]  ;;  %v15298_v19 = vcombine.high %v2724_v11, %v2732_v12 }
 0x2ff   :  { %5804 = vmatprep.subr.bf16.mxu0 %v15614_v35  ;;  %5886 = vmatprep.subr.bf16.mxu1 %v15616_v36  ;;  %v2652_v35 = vld [vmem:[%s25023_s5 + $0x250] sm:$0xff]  ;;  %v2645_v36 = vld [vmem:[%s25023_s5 + $0x218] sm:$0xff] }
 0x300   :  { %v15218_v40 = vcombine.high %v2644_v34, %v2652_v35  ;;  %v15217_v49 = vcombine.low %v2644_v34, %v2652_v35  ;;  %v15219_v50 = vcombine.low %v2645_v36, %v2653_v37  ;;  %v2740_v21 = vld [vmem:[%s25023_s5 + $0x510] sm:$0xff] }
 0x301   :  { %v2748_v28 = vld [vmem:[%s25023_s5 + $0x550] sm:$0xff] }
 0x302   :  { %5805 = vmatpush1.bf16.msra.mxu0 %v15613_v42  ;;  %5887 = vmatpush1.bf16.msra.mxu1 %v15615_v43  ;;  %v15220_v42 = vcombine.high %v2645_v36, %v2653_v37  ;;  %v2660_v43 = vld [vmem:[%s25023_s5 + $0x290] sm:$0xff]  ;;  %v15314_v34 = vcombine.high %v2740_v21, %v2748_v28 }
 0x303   :  { %5806 = vmatprep.subr.bf16.mxu0 %v15630_v45  ;;  %5888 = vmatprep.subr.bf16.mxu1 %v15632_v48  ;;  %v2661_v45 = vld [vmem:[%s25023_s5 + $0x298] sm:$0xff]  ;;  %v15233_v56 = vcombine.low %v2660_v43, %v2668_v44  ;;  %v2756_v36 = vld [vmem:[%s25023_s5 + $0x590] sm:$0xff] }
 0x304   :  { %v2669_v48 = vld [vmem:[%s25023_s5 + $0x2d8] sm:$0xff]  ;;  %v2764_v37 = vld [vmem:[%s25023_s5 + $0x5d0] sm:$0xff] }
 0x305   :  { %v15235_v57 = vcombine.low %v2661_v45, %v2669_v48 }
 0x306   :  { %5807 = vmatpush1.bf16.msra.mxu0 %v15629_v25  ;;  %5889 = vmatpush1.bf16.msra.mxu1 %v15631_v51  ;;  %v15234_v25 = vcombine.high %v2660_v43, %v2668_v44  ;;  %v15236_v51 = vcombine.high %v2661_v45, %v2669_v48  ;;  %v15330_v43 = vcombine.high %v2756_v36, %v2764_v37  ;;  %v2772_v45 = vld [vmem:[%s25023_s5 + $0x610] sm:$0xff] }
 0x307   :  { %15661 = vmatprep.subr.msk.bf16.mxu0 %vm2393_vm2, %v15646_v52  ;;  %15663 = vmatprep.subr.msk.bf16.mxu1 %vm2393_vm2, %v15648_v55  ;;  %v2676_v52 = vld [vmem:[%s25023_s5 + $0x310] sm:$0xff]  ;;  %v2685_v55 = vld [vmem:[%s25023_s5 + $0x358] sm:$0xff] }
 0x308   :  { %v15250_v58 = vcombine.high %v2676_v52, %v2684_v54  ;;  %v15252_v59 = vcombine.high %v2677_v16, %v2685_v55  ;;  %v2780_v48 = vld [vmem:[%s25023_s5 + $0x650] sm:$0xff] }
 0x30a   :  { %5809 = vmatpush1.bf16.msra.mxu0 %v5690_v32  ;;  %5891 = vmatpush1.bf16.msra.mxu1 %v5696_v61  ;;  %v2700_v32 = vld [vmem:[%s25023_s5 + $0x3d0] sm:$0xff]  ;;  %v2701_v61 = vld [vmem:[%s25023_s5 + $0x3d8] sm:$0xff] }
 0x30b   :  { %5901 = vmatprep.subr.bf16.mxu0 %v15154_v62  ;;  %5983 = vmatprep.subr.bf16.mxu1 %v15156_v63  ;;  %v15249_v62 = vcombine.low %v2676_v52, %v2684_v54  ;;  %v15251_v63 = vcombine.low %v2677_v16, %v2685_v55  ;;  %v15266_v0 = vcombine.high %v2692_v22, %v2700_v32  ;;  %v2788_v16 = vld [vmem:[%s25023_s5 + $0x690] sm:$0xff] }
 0x30c   :  { %v15268_v1 = vcombine.high %v2693_v60, %v2701_v61  ;;  %v15346_v52 = vcombine.high %v2772_v45, %v2780_v48  ;;  %v2796_v55 = vld [vmem:[%s25023_s5 + $0x6d0] sm:$0xff] }
 0x30d   :  { %5811 = vmatmul.mubr.bf16.vlgmr.msra.gmra.mrb[8].mxu0 %v20556_v5  ;;  %5893 = vmatmul.mubr.bf16.vlgmr.msra.gmra.mrb[8].mxu1 %v20556_v5 }
 0x30e   :  { %5902 = vmatpush1.bf16.msra.mxu0 %v15153_v4  ;;  %5933 = vmatprep.mubr.bf16.mxu0 %v20349_v46  ;;  %v2709_v4 = vld [vmem:[%s25023_s5 + $0x418] sm:$0xff] }
 0x30f   :  { %5984 = vmatpush1.bf16.msra.mxu1 %v15155_v6  ;;  %6015 = vmatprep.mubr.bf16.mxu1 %v20349_v46  ;;  %v2717_v6 = vld [vmem:[%s25023_s5 + $0x458] sm:$0xff] }
 0x310   :  { %5903 = vmatprep.subr.bf16.mxu0 %v15170_v7  ;;  %5985 = vmatprep.subr.bf16.mxu1 %v15172_v8  ;;  %v15265_v7 = vcombine.low %v2692_v22, %v2700_v32  ;;  %v15267_v8 = vcombine.low %v2693_v60, %v2701_v61  ;;  %v15284_v10 = vcombine.high %v2709_v4, %v2717_v6  ;;  %v2804_v60 = vld [vmem:[%s25023_s5 + $0x710] sm:$0xff] }
 0x311   :  { %v15362_v22 = vcombine.high %v2788_v16, %v2796_v55  ;;  %v2812_v61 = vld [vmem:[%s25023_s5 + $0x750] sm:$0xff] }
 0x312   :  { %5904 = vmatpush1.bf16.msra.mxu0 %v15169_v13  ;;  %v2725_v13 = vld [vmem:[%s25023_s5 + $0x498] sm:$0xff] }
 0x313   :  { %5986 = vmatpush1.bf16.msra.mxu1 %v15171_v14  ;;  %5905 = vmatprep.subr.bf16.mxu0 %v15186_v15  ;;  %v2733_v14 = vld [vmem:[%s25023_s5 + $0x4d8] sm:$0xff]  ;;  %v15281_v15 = vcombine.low %v2708_v2, %v2716_v3  ;;  %v15378_v2 = vcombine.high %v2804_v60, %v2812_v61 }
 0x314   :  { %5987 = vmatprep.subr.bf16.mxu1 %v15188_v17  ;;  %v15283_v17 = vcombine.low %v2709_v4, %v2717_v6  ;;  %v15300_v20 = vcombine.high %v2725_v13, %v2733_v14  ;;  %v2820_v4 = vld [vmem:[%s25023_s5 + $0x790] sm:$0xff] }
 0x315   :  { %v2828_v6 = vld [vmem:[%s25023_s5 + $0x7d0] sm:$0xff] }
 0x316   :  { %5906 = vmatpush1.bf16.msra.mxu0 %v15185_v29  ;;  %v2741_v29 = vld [vmem:[%s25023_s5 + $0x518] sm:$0xff] }
 0x317   :  { %5988 = vmatpush1.bf16.msra.mxu1 %v15187_v30  ;;  %5907 = vmatprep.subr.bf16.mxu0 %v15202_v31  ;;  %v2749_v30 = vld [vmem:[%s25023_s5 + $0x558] sm:$0xff]  ;;  %v15297_v31 = vcombine.low %v2724_v11, %v2732_v12  ;;  %v15394_v11 = vcombine.high %v2820_v4, %v2828_v6 }
 0x318   :  { %5989 = vmatprep.subr.bf16.mxu1 %v15204_v33  ;;  %v15299_v33 = vcombine.low %v2725_v13, %v2733_v14  ;;  %v15316_v35 = vcombine.high %v2741_v29, %v2749_v30  ;;  %v2836_v13 = vld [vmem:[%s25023_s5 + $0x810] sm:$0xff] }
 0x319   :  { %v2844_v14 = vld [vmem:[%s25023_s5 + $0x850] sm:$0xff] }
 0x31a   :  { %5908 = vmatpush1.bf16.msra.mxu0 %v15201_v38  ;;  %v2757_v38 = vld [vmem:[%s25023_s5 + $0x598] sm:$0xff] }
 0x31b   :  { %5990 = vmatpush1.bf16.msra.mxu1 %v15203_v39  ;;  %5909 = vmatprep.subr.bf16.mxu0 %v15218_v40  ;;  %v2765_v39 = vld [vmem:[%s25023_s5 + $0x5d8] sm:$0xff]  ;;  %v15313_v40 = vcombine.low %v2740_v21, %v2748_v28  ;;  %v15410_v21 = vcombine.high %v2836_v13, %v2844_v14 }
 0x31c   :  { %5991 = vmatprep.subr.bf16.mxu1 %v15220_v42  ;;  %v15315_v42 = vcombine.low %v2741_v29, %v2749_v30  ;;  %v15332_v44 = vcombine.high %v2757_v38, %v2765_v39  ;;  %v2852_v29 = vld [vmem:[%s25023_s5 + $0x890] sm:$0xff] }
 0x31d   :  { %v2860_v30 = vld [vmem:[%s25023_s5 + $0x8d0] sm:$0xff] }
 0x31e   :  { %5910 = vmatpush1.bf16.msra.mxu0 %v15217_v49  ;;  %v2773_v49 = vld [vmem:[%s25023_s5 + $0x618] sm:$0xff] }
 0x31f   :  { %5992 = vmatpush1.bf16.msra.mxu1 %v15219_v50  ;;  %5911 = vmatprep.subr.bf16.mxu0 %v15234_v25  ;;  %v2781_v50 = vld [vmem:[%s25023_s5 + $0x658] sm:$0xff]  ;;  %v15329_v25 = vcombine.low %v2756_v36, %v2764_v37  ;;  %v15426_v36 = vcombine.high %v2852_v29, %v2860_v30  ;;  %v2868_v37 = vld [vmem:[%s25023_s5 + $0x910] sm:$0xff] }
 0x320   :  { %5993 = vmatprep.subr.bf16.mxu1 %v15236_v51  ;;  %v15331_v51 = vcombine.low %v2757_v38, %v2765_v39  ;;  %v15348_v54 = vcombine.high %v2773_v49, %v2781_v50  ;;  %v2876_v38 = vld [vmem:[%s25023_s5 + $0x950] sm:$0xff] }
 0x322   :  { %5912 = vmatpush1.bf16.msra.mxu0 %v15233_v56  ;;  %v2789_v56 = vld [vmem:[%s25023_s5 + $0x698] sm:$0xff] }
 0x323   :  { %5994 = vmatpush1.bf16.msra.mxu1 %v15235_v57  ;;  %5913 = vmatprep.subr.bf16.mxu0 %v15250_v58  ;;  %v2797_v57 = vld [vmem:[%s25023_s5 + $0x6d8] sm:$0xff]  ;;  %v15345_v58 = vcombine.low %v2772_v45, %v2780_v48  ;;  %v15442_v45 = vcombine.high %v2868_v37, %v2876_v38 }
 0x324   :  { %5995 = vmatprep.subr.bf16.mxu1 %v15252_v59  ;;  %v15347_v59 = vcombine.low %v2773_v49, %v2781_v50  ;;  %v15364_v32 = vcombine.high %v2789_v56, %v2797_v57  ;;  %v2884_v49 = vld [vmem:[%s25023_s5 + $0x990] sm:$0xff] }
 0x325   :  { %v2892_v50 = vld [vmem:[%s25023_s5 + $0x9d0] sm:$0xff] }
 0x326   :  { %5914 = vmatpush1.bf16.msra.mxu0 %v15249_v62  ;;  %v2805_v62 = vld [vmem:[%s25023_s5 + $0x718] sm:$0xff] }
 0x327   :  { %5996 = vmatpush1.bf16.msra.mxu1 %v15251_v63  ;;  %5915 = vmatprep.subr.bf16.mxu0 %v15266_v0  ;;  %v2813_v63 = vld [vmem:[%s25023_s5 + $0x758] sm:$0xff]  ;;  %v15361_v0 = vcombine.low %v2788_v16, %v2796_v55  ;;  %v15458_v16 = vcombine.high %v2884_v49, %v2892_v50 }
 0x328   :  { %5997 = vmatprep.subr.bf16.mxu1 %v15268_v1  ;;  %v15363_v1 = vcombine.low %v2789_v56, %v2797_v57  ;;  %v15380_v3 = vcombine.high %v2805_v62, %v2813_v63  ;;  %v2900_v56 = vld [vmem:[%s25023_s5 + $0xa10] sm:$0xff] }
 0x329   :  { %v2908_v57 = vld [vmem:[%s25023_s5 + $0xa50] sm:$0xff] }
 0x32a   :  { %5916 = vmatpush1.bf16.msra.mxu0 %v15265_v7  ;;  %v2821_v7 = vld [vmem:[%s25023_s5 + $0x798] sm:$0xff] }
 0x32b   :  { %5998 = vmatpush1.bf16.msra.mxu1 %v15267_v8  ;;  %5917 = vmatprep.subr.bf16.mxu0 %v15282_v9  ;;  %v2829_v8 = vld [vmem:[%s25023_s5 + $0x7d8] sm:$0xff]  ;;  %v15377_v9 = vcombine.low %v2804_v60, %v2812_v61  ;;  %v15474_v60 = vcombine.high %v2900_v56, %v2908_v57 }
 0x32c   :  { %5999 = vmatprep.subr.bf16.mxu1 %v15284_v10  ;;  %v15379_v10 = vcombine.low %v2805_v62, %v2813_v63  ;;  %v15396_v12 = vcombine.high %v2821_v7, %v2829_v8  ;;  %v2916_v62 = vld [vmem:[%s25023_s5 + $0xa90] sm:$0xff] }
 0x32d   :  { %v2924_v63 = vld [vmem:[%s25023_s5 + $0xad0] sm:$0xff] }
 0x32e   :  { %5918 = vmatpush1.bf16.msra.mxu0 %v15281_v15  ;;  %v2837_v15 = vld [vmem:[%s25023_s5 + $0x818] sm:$0xff] }
 0x32f   :  { %6000 = vmatpush1.bf16.msra.mxu1 %v15283_v17  ;;  %5919 = vmatprep.subr.bf16.mxu0 %v15298_v19  ;;  %v2845_v17 = vld [vmem:[%s25023_s5 + $0x858] sm:$0xff]  ;;  %v15393_v19 = vcombine.low %v2820_v4, %v2828_v6  ;;  %v15490_v4 = vcombine.high %v2916_v62, %v2924_v63 }
 0x330   :  { %6001 = vmatprep.subr.bf16.mxu1 %v15300_v20  ;;  %v15395_v20 = vcombine.low %v2821_v7, %v2829_v8  ;;  %v15412_v28 = vcombine.high %v2837_v15, %v2845_v17  ;;  %v2932_v7 = vld [vmem:[%s25023_s5 + $0xb10] sm:$0xff] }
 0x331   :  { %v2940_v8 = vld [vmem:[%s25023_s5 + $0xb50] sm:$0xff] }
 0x332   :  { %5920 = vmatpush1.bf16.msra.mxu0 %v15297_v31  ;;  %v15409_v31 = vcombine.low %v2836_v13, %v2844_v14  ;;  %v15506_v13 = vcombine.high %v2932_v7, %v2940_v8 }
 0x333   :  { %6002 = vmatpush1.bf16.msra.mxu1 %v15299_v33  ;;  %5921 = vmatprep.subr.bf16.mxu0 %v15314_v34  ;;  %v2853_v33 = vld [vmem:[%s25023_s5 + $0x898] sm:$0xff] }
 0x334   :  { %6003 = vmatprep.subr.bf16.mxu1 %v15316_v35  ;;  %v2861_v34 = vld [vmem:[%s25023_s5 + $0x8d8] sm:$0xff]  ;;  %v15411_v35 = vcombine.low %v2837_v15, %v2845_v17  ;;  %v2948_v15 = vld [vmem:[%s25023_s5 + $0xb90] sm:$0xff] }
 0x335   :  { %v15428_v39 = vcombine.high %v2853_v33, %v2861_v34  ;;  %v2956_v17 = vld [vmem:[%s25023_s5 + $0xbd0] sm:$0xff] }
 0x336   :  { %5922 = vmatpush1.bf16.msra.mxu0 %v15313_v40  ;;  %v2869_v40 = vld [vmem:[%s25023_s5 + $0x918] sm:$0xff] }
 0x337   :  { %6004 = vmatpush1.bf16.msra.mxu1 %v15315_v42  ;;  %5923 = vmatprep.subr.bf16.mxu0 %v15330_v43  ;;  %v2877_v42 = vld [vmem:[%s25023_s5 + $0x958] sm:$0xff]  ;;  %v15425_v43 = vcombine.low %v2852_v29, %v2860_v30  ;;  %v15522_v29 = vcombine.high %v2948_v15, %v2956_v17 }
 0x338   :  { %6005 = vmatprep.subr.bf16.mxu1 %v15332_v44  ;;  %v15427_v44 = vcombine.low %v2853_v33, %v2861_v34  ;;  %v15444_v48 = vcombine.high %v2869_v40, %v2877_v42  ;;  %v2972_v33 = vld [vmem:[%s25023_s5 + $0xc50] sm:$0xff]  ;;  %v2965_v34 = vld [vmem:[%s25023_s5 + $0xc18] sm:$0xff] }
 0x33a   :  { %5924 = vmatpush1.bf16.msra.mxu0 %v15329_v25  ;;  %v2885_v25 = vld [vmem:[%s25023_s5 + $0x998] sm:$0xff] }
 0x33b   :  { %6006 = vmatpush1.bf16.msra.mxu1 %v15331_v51  ;;  %5925 = vmatprep.subr.bf16.mxu0 %v15346_v52  ;;  %v2893_v51 = vld [vmem:[%s25023_s5 + $0x9d8] sm:$0xff]  ;;  %v15441_v52 = vcombine.low %v2868_v37, %v2876_v38 }
 0x33c   :  { %6007 = vmatprep.subr.bf16.mxu1 %v15348_v54  ;;  %v15443_v54 = vcombine.low %v2869_v40, %v2877_v42  ;;  %v15460_v55 = vcombine.high %v2885_v25, %v2893_v51  ;;  %v2980_v40 = vld [vmem:[%s25023_s5 + $0xc90] sm:$0xff] }
 0x33d   :  { %v2988_v42 = vld [vmem:[%s25023_s5 + $0xcd0] sm:$0xff] }
 0x33e   :  { %5926 = vmatpush1.bf16.msra.mxu0 %v15345_v58  ;;  %v2901_v58 = vld [vmem:[%s25023_s5 + $0xa18] sm:$0xff] }
 0x33f   :  { %6008 = vmatpush1.bf16.msra.mxu1 %v15347_v59  ;;  %5927 = vmatprep.subr.bf16.mxu0 %v15362_v22  ;;  %v2909_v59 = vld [vmem:[%s25023_s5 + $0xa58] sm:$0xff]  ;;  %v15457_v22 = vcombine.low %v2884_v49, %v2892_v50  ;;  %v15554_v49 = vcombine.high %v2980_v40, %v2988_v42 }
 0x340   :  { %6009 = vmatprep.subr.bf16.mxu1 %v15364_v32  ;;  %v15459_v32 = vcombine.low %v2885_v25, %v2893_v51  ;;  %v15476_v61 = vcombine.high %v2901_v58, %v2909_v59  ;;  %v2996_v25 = vld [vmem:[%s25023_s5 + $0xd10] sm:$0xff] }
 0x341   :  { %v3004_v51 = vld [vmem:[%s25023_s5 + $0xd50] sm:$0xff] }
 0x342   :  { %5928 = vmatpush1.bf16.msra.mxu0 %v15361_v0  ;;  %v2917_v0 = vld [vmem:[%s25023_s5 + $0xa98] sm:$0xff] }
 0x343   :  { %6010 = vmatpush1.bf16.msra.mxu1 %v15363_v1  ;;  %5929 = vmatprep.subr.bf16.mxu0 %v15378_v2  ;;  %v2925_v1 = vld [vmem:[%s25023_s5 + $0xad8] sm:$0xff]  ;;  %v15473_v2 = vcombine.low %v2900_v56, %v2908_v57  ;;  %v15570_v56 = vcombine.high %v2996_v25, %v3004_v51 }
 0x344   :  { %6011 = vmatprep.subr.bf16.mxu1 %v15380_v3  ;;  %v15475_v3 = vcombine.low %v2901_v58, %v2909_v59  ;;  %v15492_v6 = vcombine.high %v2917_v0, %v2925_v1  ;;  %v3012_v58 = vld [vmem:[%s25023_s5 + $0xd90] sm:$0xff] }
 0x345   :  { %v3020_v59 = vld [vmem:[%s25023_s5 + $0xdd0] sm:$0xff] }
 0x346   :  { %5930 = vmatpush1.bf16.msra.mxu0 %v15377_v9  ;;  %v2933_v9 = vld [vmem:[%s25023_s5 + $0xb18] sm:$0xff] }
 0x347   :  { %6012 = vmatpush1.bf16.msra.mxu1 %v15379_v10  ;;  %5931 = vmatprep.subr.bf16.mxu0 %v15394_v11  ;;  %v2941_v10 = vld [vmem:[%s25023_s5 + $0xb58] sm:$0xff]  ;;  %v15489_v11 = vcombine.low %v2916_v62, %v2924_v63  ;;  %v15586_v62 = vcombine.high %v3012_v58, %v3020_v59 }
 0x348   :  { %6013 = vmatprep.subr.bf16.mxu1 %v15396_v12  ;;  %v15491_v12 = vcombine.low %v2917_v0, %v2925_v1  ;;  %v15508_v14 = vcombine.high %v2933_v9, %v2941_v10  ;;  %v3028_v0 = vld [vmem:[%s25023_s5 + $0xe10] sm:$0xff] }
 0x349   :  { %v3036_v1 = vld [vmem:[%s25023_s5 + $0xe50] sm:$0xff] }
 0x34a   :  { %5932 = vmatpush1.bf16.msra.mxu0 %v15393_v19  ;;  %v2949_v19 = vld [vmem:[%s25023_s5 + $0xb98] sm:$0xff] }
 0x34b   :  { %6014 = vmatpush1.bf16.msra.mxu1 %v15395_v20  ;;  %5942 = vmatprep.subr.bf16.mxu0 %v15410_v21  ;;  %v2957_v20 = vld [vmem:[%s25023_s5 + $0xbd8] sm:$0xff]  ;;  %v15505_v21 = vcombine.low %v2932_v7, %v2940_v8  ;;  %v15602_v7 = vcombine.high %v3028_v0, %v3036_v1 }
 0x34c   :  { %6024 = vmatprep.subr.bf16.mxu1 %v15412_v28  ;;  %v15507_v28 = vcombine.low %v2933_v9, %v2941_v10  ;;  %v15524_v30 = vcombine.high %v2949_v19, %v2957_v20  ;;  %v15523_v37 = vcombine.low %v2949_v19, %v2957_v20  ;;  %v3044_v9 = vld [vmem:[%s25023_s5 + $0xe90] sm:$0xff] }
 0x34d   :  { %5934 = vmatmul.mubr.bf16.vlgmr.msra.gmra.mrb[12].mxu0 %v20351_v47  ;;  %v3052_v10 = vld [vmem:[%s25023_s5 + $0xed0] sm:$0xff] }
 0x34e   :  { %6016 = vmatmul.mubr.bf16.vlgmr.msra.gmra.mrb[12].mxu1 %v20351_v47  ;;  %5943 = vmatpush1.bf16.msra.mxu0 %v15409_v31  ;;  %v2964_v31 = vld [vmem:[%s25023_s5 + $0xc10] sm:$0xff] }
 0x34f   :  { %15666 = vmatprep.mubr.msk.bf16.mxu0 %vm2389_vm1, %v20367_v53  ;;  %6025 = vmatpush1.bf16.msra.mxu1 %v15411_v35  ;;  %v2973_v35 = vld [vmem:[%s25023_s5 + $0xc58] sm:$0xff]  ;;  %v15538_v38 = vcombine.high %v2964_v31, %v2972_v33  ;;  %v3060_v19 = vld [vmem:[%s25023_s5 + $0xf10] sm:$0xff] }
 0x350   :  { %15668 = vmatprep.mubr.msk.bf16.mxu1 %vm2389_vm1, %v20367_v53  ;;  %5944 = vmatprep.subr.bf16.mxu0 %v15426_v36  ;;  %v15521_v36 = vcombine.low %v2948_v15, %v2956_v17  ;;  %v15618_v15 = vcombine.high %v3044_v9, %v3052_v10  ;;  %v3068_v20 = vld [vmem:[%s25023_s5 + $0xf50] sm:$0xff] }
 0x351   :  { %6026 = vmatprep.subr.bf16.mxu1 %v15428_v39  ;;  %v15540_v39 = vcombine.high %v2965_v34, %v2973_v35 }
 0x352   :  { %5945 = vmatpush1.bf16.msra.mxu0 %v15425_v43  ;;  %v2981_v43 = vld [vmem:[%s25023_s5 + $0xc98] sm:$0xff] }
 0x353   :  { %6027 = vmatpush1.bf16.msra.mxu1 %v15427_v44  ;;  %5946 = vmatprep.subr.bf16.mxu0 %v15442_v45  ;;  %v2989_v44 = vld [vmem:[%s25023_s5 + $0xcd8] sm:$0xff]  ;;  %v15537_v45 = vcombine.low %v2964_v31, %v2972_v33  ;;  %v15634_v31 = vcombine.high %v3060_v19, %v3068_v20 }
 0x354   :  { %6028 = vmatprep.subr.bf16.mxu1 %v15444_v48  ;;  %v15539_v48 = vcombine.low %v2965_v34, %v2973_v35  ;;  %v15556_v50 = vcombine.high %v2981_v43, %v2989_v44  ;;  %v3076_v34 = vld [vmem:[%s25023_s5 + $0xf90] sm:$0x33]  ;;  %v3077_v35 = vld [vmem:[%s25023_s5 + $0xf98] sm:$0x33] }
 0x356   :  { %5947 = vmatpush1.bf16.msra.mxu0 %v15441_v52  ;;  %v2997_v52 = vld [vmem:[%s25023_s5 + $0xd18] sm:$0xff] }
 0x357   :  { %6029 = vmatpush1.bf16.msra.mxu1 %v15443_v54  ;;  %5948 = vmatprep.subr.bf16.mxu0 %v15458_v16  ;;  %v3005_v54 = vld [vmem:[%s25023_s5 + $0xd58] sm:$0xff]  ;;  %v15553_v16 = vcombine.low %v2980_v40, %v2988_v42  ;;  %v15652_v40 = vcombine.high %v3077_v35, %v3077_v35  ;;  %v15651_v42 = vcombine.low %v3077_v35, %v3077_v35 }
 0x358   :  { %6030 = vmatprep.subr.bf16.mxu1 %v15460_v55  ;;  %v15555_v55 = vcombine.low %v2981_v43, %v2989_v44  ;;  %v15572_v57 = vcombine.high %v2997_v52, %v3005_v54  ;;  %v2582_v43 = vld [vmem:[%s25023_s5 + $0x20] sm:$0xff] }
 0x359   :  { %v2590_v44 = vld [vmem:[%s25023_s5 + $0x60] sm:$0xff] }
 0x35a   :  { %5949 = vmatpush1.bf16.msra.mxu0 %v15457_v22  ;;  %v3013_v22 = vld [vmem:[%s25023_s5 + $0xd98] sm:$0xff] }
 0x35b   :  { %6031 = vmatpush1.bf16.msra.mxu1 %v15459_v32  ;;  %5950 = vmatprep.subr.bf16.mxu0 %v15474_v60  ;;  %v3021_v32 = vld [vmem:[%s25023_s5 + $0xdd8] sm:$0xff]  ;;  %v15569_v60 = vcombine.low %v2996_v25, %v3004_v51  ;;  %v5708_v25 = vsel %vm2393_vm2, %v15651_v42, 0 }
 0x35c   :  { %6032 = vmatprep.subr.bf16.mxu1 %v15476_v61  ;;  %v15571_v61 = vcombine.low %v2997_v52, %v3005_v54  ;;  %v15588_v63 = vcombine.high %v3013_v22, %v3021_v32  ;;  %v2598_v52 = vld [vmem:[%s25023_s5 + $0xa0] sm:$0xff] }
 0x35d   :  { %v2606_v54 = vld [vmem:[%s25023_s5 + $0xe0] sm:$0xff] }
 0x35e   :  { %5951 = vmatpush1.bf16.msra.mxu0 %v15473_v2  ;;  %v3029_v2 = vld [vmem:[%s25023_s5 + $0xe18] sm:$0xff] }
 0x35f   :  { %6033 = vmatpush1.bf16.msra.mxu1 %v15475_v3  ;;  %5952 = vmatprep.subr.bf16.mxu0 %v15490_v4  ;;  %v3037_v3 = vld [vmem:[%s25023_s5 + $0xe58] sm:$0xff]  ;;  %v15585_v4 = vcombine.low %v3012_v58, %v3020_v59  ;;  %v15174_v58 = vcombine.high %v2598_v52, %v2606_v54  ;;  %v2614_v59 = vld [vmem:[%s25023_s5 + $0x120] sm:$0xff] }
 0x360   :  { %6034 = vmatprep.subr.bf16.mxu1 %v15492_v6  ;;  %v15587_v6 = vcombine.low %v3013_v22, %v3021_v32  ;;  %v15604_v8 = vcombine.high %v3029_v2, %v3037_v3  ;;  %v2622_v22 = vld [vmem:[%s25023_s5 + $0x160] sm:$0xff] }
 0x362   :  { %5953 = vmatpush1.bf16.msra.mxu0 %v15489_v11  ;;  %v3045_v11 = vld [vmem:[%s25023_s5 + $0xe98] sm:$0xff] }
 0x363   :  { %6035 = vmatpush1.bf16.msra.mxu1 %v15491_v12  ;;  %5954 = vmatprep.subr.bf16.mxu0 %v15506_v13  ;;  %v3053_v12 = vld [vmem:[%s25023_s5 + $0xed8] sm:$0xff]  ;;  %v15601_v13 = vcombine.low %v3028_v0, %v3036_v1  ;;  %v15190_v0 = vcombine.high %v2614_v59, %v2622_v22 }
 0x364   :  { %6036 = vmatprep.subr.bf16.mxu1 %v15508_v14  ;;  %v15603_v14 = vcombine.low %v3029_v2, %v3037_v3  ;;  %v15620_v17 = vcombine.high %v3045_v11, %v3053_v12  ;;  %v2630_v2 = vld [vmem:[%s25023_s5 + $0x1a0] sm:$0xff] }
 0x365   :  { %v2638_v3 = vld [vmem:[%s25023_s5 + $0x1e0] sm:$0xff] }
 0x366   :  { %5955 = vmatpush1.bf16.msra.mxu0 %v15505_v21  ;;  %v3061_v21 = vld [vmem:[%s25023_s5 + $0xf18] sm:$0xff] }
 0x367   :  { %6037 = vmatpush1.bf16.msra.mxu1 %v15507_v28  ;;  %5956 = vmatprep.subr.bf16.mxu0 %v15522_v29  ;;  %v3069_v28 = vld [vmem:[%s25023_s5 + $0xf58] sm:$0xff]  ;;  %v15617_v29 = vcombine.low %v3044_v9, %v3052_v10  ;;  %v15206_v9 = vcombine.high %v2630_v2, %v2638_v3 }
 0x368   :  { %6038 = vmatprep.subr.bf16.mxu1 %v15524_v30  ;;  %v15619_v30 = vcombine.low %v3045_v11, %v3053_v12  ;;  %v15636_v33 = vcombine.high %v3061_v21, %v3069_v28  ;;  %v2646_v11 = vld [vmem:[%s25023_s5 + $0x220] sm:$0xff] }
 0x369   :  { %v2654_v12 = vld [vmem:[%s25023_s5 + $0x260] sm:$0xff] }
 0x36a   :  { %5957 = vmatpush1.bf16.msra.mxu0 %v15521_v36  ;;  %v15633_v36 = vcombine.low %v3060_v19, %v3068_v20  ;;  %v15222_v19 = vcombine.high %v2646_v11, %v2654_v12 }
 0x36b   :  { %6039 = vmatpush1.bf16.msra.mxu1 %v15523_v37  ;;  %5958 = vmatprep.subr.bf16.mxu0 %v15538_v38  ;;  %v15635_v37 = vcombine.low %v3061_v21, %v3069_v28  ;;  %v15650_v38 = vcombine.high %v3076_v34, %v3076_v34  ;;  %v2662_v21 = vld [vmem:[%s25023_s5 + $0x2a0] sm:$0xff] }
 0x36c   :  { %6040 = vmatprep.subr.bf16.mxu1 %v15540_v39  ;;  %v15649_v39 = vcombine.low %v3076_v34, %v3076_v34  ;;  %v2670_v28 = vld [vmem:[%s25023_s5 + $0x2e0] sm:$0xff] }
 0x36d   :  { %v15238_v34 = vcombine.high %v2662_v21, %v2670_v28 }
 0x36e   :  { %5959 = vmatpush1.bf16.msra.mxu0 %v15537_v45  ;;  %v2583_v45 = vld [vmem:[%s25023_s5 + $0x28] sm:$0xff] }
 0x36f   :  { %6041 = vmatpush1.bf16.msra.mxu1 %v15539_v48  ;;  %5960 = vmatprep.subr.bf16.mxu0 %v15554_v49  ;;  %v2591_v48 = vld [vmem:[%s25023_s5 + $0x68] sm:$0xff]  ;;  %v5702_v49 = vsel %vm2393_vm2, %v15649_v39, 0 }
 0x370   :  { %6042 = vmatprep.subr.bf16.mxu1 %v15556_v50  ;;  %v15158_v50 = vcombine.high %v2582_v43, %v2590_v44  ;;  %v15160_v51 = vcombine.high %v2583_v45, %v2591_v48  ;;  %v2687_v39 = vld [vmem:[%s25023_s5 + $0x368] sm:$0xff] }
 0x372   :  { %5961 = vmatpush1.bf16.msra.mxu0 %v15553_v16  ;;  %v15157_v16 = vcombine.low %v2582_v43, %v2590_v44 }
 0x373   :  { %6043 = vmatpush1.bf16.msra.mxu1 %v15555_v55  ;;  %5962 = vmatprep.subr.bf16.mxu0 %v15570_v56  ;;  %v2599_v55 = vld [vmem:[%s25023_s5 + $0xa8] sm:$0xff] }
 0x374   :  { %6044 = vmatprep.subr.bf16.mxu1 %v15572_v57  ;;  %v2607_v56 = vld [vmem:[%s25023_s5 + $0xe8] sm:$0xff]  ;;  %v15159_v57 = vcombine.low %v2583_v45, %v2591_v48  ;;  %v2694_v45 = vld [vmem:[%s25023_s5 + $0x3a0] sm:$0xff] }
 0x375   :  { %v15176_v32 = vcombine.high %v2599_v55, %v2607_v56  ;;  %v2702_v48 = vld [vmem:[%s25023_s5 + $0x3e0] sm:$0xff] }
 0x376   :  { %5963 = vmatpush1.bf16.msra.mxu0 %v15569_v60  ;;  %v2615_v60 = vld [vmem:[%s25023_s5 + $0x128] sm:$0xff] }
 0x377   :  { %6045 = vmatpush1.bf16.msra.mxu1 %v15571_v61  ;;  %5964 = vmatprep.subr.bf16.mxu0 %v15586_v62  ;;  %v2623_v61 = vld [vmem:[%s25023_s5 + $0x168] sm:$0xff]  ;;  %v15173_v62 = vcombine.low %v2598_v52, %v2606_v54  ;;  %v15270_v52 = vcombine.high %v2694_v45, %v2702_v48 }
 0x378   :  { %6046 = vmatprep.subr.bf16.mxu1 %v15588_v63  ;;  %v15175_v63 = vcombine.low %v2599_v55, %v2607_v56  ;;  %v15192_v1 = vcombine.high %v2615_v60, %v2623_v61  ;;  %v2718_v55 = vld [vmem:[%s25023_s5 + $0x460] sm:$0xff]  ;;  %v2711_v56 = vld [vmem:[%s25023_s5 + $0x428] sm:$0xff] }
 0x37a   :  { %5965 = vmatpush1.bf16.msra.mxu0 %v15585_v4  ;;  %v2631_v4 = vld [vmem:[%s25023_s5 + $0x1a8] sm:$0xff] }
 0x37b   :  { %6047 = vmatpush1.bf16.msra.mxu1 %v15587_v6  ;;  %5966 = vmatprep.subr.bf16.mxu0 %v15602_v7  ;;  %v2639_v6 = vld [vmem:[%s25023_s5 + $0x1e8] sm:$0xff]  ;;  %v15189_v7 = vcombine.low %v2614_v59, %v2622_v22 }
 0x37c   :  { %6048 = vmatprep.subr.bf16.mxu1 %v15604_v8  ;;  %v15191_v8 = vcombine.low %v2615_v60, %v2623_v61  ;;  %v15208_v10 = vcombine.high %v2631_v4, %v2639_v6  ;;  %v2726_v60 = vld [vmem:[%s25023_s5 + $0x4a0] sm:$0xff] }
 0x37d   :  { %v2734_v61 = vld [vmem:[%s25023_s5 + $0x4e0] sm:$0xff] }
 0x37e   :  { %5967 = vmatpush1.bf16.msra.mxu0 %v15601_v13  ;;  %v2647_v13 = vld [vmem:[%s25023_s5 + $0x228] sm:$0xff] }
 0x37f   :  { %6049 = vmatpush1.bf16.msra.mxu1 %v15603_v14  ;;  %5968 = vmatprep.subr.bf16.mxu0 %v15618_v15  ;;  %v2655_v14 = vld [vmem:[%s25023_s5 + $0x268] sm:$0xff]  ;;  %v15205_v15 = vcombine.low %v2630_v2, %v2638_v3  ;;  %v15302_v2 = vcombine.high %v2726_v60, %v2734_v61 }
 0x380   :  { %6050 = vmatprep.subr.bf16.mxu1 %v15620_v17  ;;  %v15207_v17 = vcombine.low %v2631_v4, %v2639_v6  ;;  %v15224_v20 = vcombine.high %v2647_v13, %v2655_v14  ;;  %v2742_v4 = vld [vmem:[%s25023_s5 + $0x520] sm:$0xff] }
 0x381   :  { %v2750_v6 = vld [vmem:[%s25023_s5 + $0x560] sm:$0xff] }
 0x382   :  { %5969 = vmatpush1.bf16.msra.mxu0 %v15617_v29  ;;  %v2663_v29 = vld [vmem:[%s25023_s5 + $0x2a8] sm:$0xff] }
 0x383   :  { %6051 = vmatpush1.bf16.msra.mxu1 %v15619_v30  ;;  %5970 = vmatprep.subr.bf16.mxu0 %v15634_v31  ;;  %v2671_v30 = vld [vmem:[%s25023_s5 + $0x2e8] sm:$0xff]  ;;  %v15221_v31 = vcombine.low %v2646_v11, %v2654_v12  ;;  %v15318_v11 = vcombine.high %v2742_v4, %v2750_v6 }
 0x384   :  { %6052 = vmatprep.subr.bf16.mxu1 %v15636_v33  ;;  %v15223_v33 = vcombine.low %v2647_v13, %v2655_v14  ;;  %v15240_v35 = vcombine.high %v2663_v29, %v2671_v30  ;;  %v15239_v42 = vcombine.low %v2663_v29, %v2671_v30  ;;  %v2758_v13 = vld [vmem:[%s25023_s5 + $0x5a0] sm:$0xff] }
 0x385   :  { %v2766_v14 = vld [vmem:[%s25023_s5 + $0x5e0] sm:$0xff] }
 0x386   :  { %5971 = vmatpush1.bf16.msra.mxu0 %v15633_v36  ;;  %v2678_v36 = vld [vmem:[%s25023_s5 + $0x320] sm:$0xff] }
 0x387   :  { %6053 = vmatpush1.bf16.msra.mxu1 %v15635_v37  ;;  %15665 = vmatprep.subr.msk.bf16.mxu0 %vm2393_vm2, %v15650_v38  ;;  %v2686_v37 = vld [vmem:[%s25023_s5 + $0x360] sm:$0xff]  ;;  %v2679_v38 = vld [vmem:[%s25023_s5 + $0x328] sm:$0xff] }
 0x388   :  { %15667 = vmatprep.subr.msk.bf16.mxu1 %vm2393_vm2, %v15652_v40  ;;  %v15237_v40 = vcombine.low %v2662_v21, %v2670_v28  ;;  %v15254_v43 = vcombine.high %v2678_v36, %v2686_v37  ;;  %v15256_v44 = vcombine.high %v2679_v38, %v2687_v39  ;;  %v15334_v21 = vcombine.high %v2758_v13, %v2766_v14  ;;  %v2774_v29 = vld [vmem:[%s25023_s5 + $0x620] sm:$0xff] }
 0x389   :  { %v2782_v30 = vld [vmem:[%s25023_s5 + $0x660] sm:$0xff] }
 0x38a   :  { %5973 = vmatpush1.bf16.msra.mxu0 %v5702_v49  ;;  %v2695_v49 = vld [vmem:[%s25023_s5 + $0x3a8] sm:$0xff] }
 0x38b   :  { %6055 = vmatpush1.bf16.msra.mxu1 %v5708_v25  ;;  %6065 = vmatprep.subr.bf16.mxu0 %v15158_v50  ;;  %v2703_v50 = vld [vmem:[%s25023_s5 + $0x3e8] sm:$0xff]  ;;  %v15253_v25 = vcombine.low %v2678_v36, %v2686_v37  ;;  %v15350_v36 = vcombine.high %v2774_v29, %v2782_v30 }
 0x38c   :  { %6147 = vmatprep.subr.bf16.mxu1 %v15160_v51  ;;  %v15255_v51 = vcombine.low %v2679_v38, %v2687_v39  ;;  %v15272_v54 = vcombine.high %v2695_v49, %v2703_v50  ;;  %v15271_v59 = vcombine.low %v2695_v49, %v2703_v50  ;;  %v2790_v38 = vld [vmem:[%s25023_s5 + $0x6a0] sm:$0xff] }
 0x38d   :  { %5975 = vmatmul.mubr.bf16.vlgmr.msra.gmra.mrb[12].mxu0 %v20556_v5  ;;  %v2798_v39 = vld [vmem:[%s25023_s5 + $0x6e0] sm:$0xff] }
 0x38e   :  { %6057 = vmatmul.mubr.bf16.vlgmr.msra.gmra.mrb[12].mxu1 %v20556_v5  ;;  %6066 = vmatpush1.bf16.msra.mxu0 %v15157_v16  ;;  %v2710_v16 = vld [vmem:[%s25023_s5 + $0x420] sm:$0xff] }
 0x38f   :  { %6097 = vmatprep.mubr.bf16.mxu0 %v20349_v46  ;;  %6148 = vmatpush1.bf16.msra.mxu1 %v15159_v57  ;;  %v2719_v57 = vld [vmem:[%s25023_s5 + $0x468] sm:$0xff]  ;;  %v15286_v22 = vcombine.high %v2710_v16, %v2718_v55  ;;  %v2806_v49 = vld [vmem:[%s25023_s5 + $0x720] sm:$0xff] }
 0x390   :  { %6179 = vmatprep.mubr.bf16.mxu1 %v20349_v46  ;;  %6067 = vmatprep.subr.bf16.mxu0 %v15174_v58  ;;  %v15269_v58 = vcombine.low %v2694_v45, %v2702_v48  ;;  %v15366_v45 = vcombine.high %v2790_v38, %v2798_v39  ;;  %v2814_v50 = vld [vmem:[%s25023_s5 + $0x760] sm:$0xff] }
 0x391   :  { %6149 = vmatprep.subr.bf16.mxu1 %v15176_v32  ;;  %v15288_v32 = vcombine.high %v2711_v56, %v2719_v57 }
 0x392   :  { %6068 = vmatpush1.bf16.msra.mxu0 %v15173_v62  ;;  %v2727_v62 = vld [vmem:[%s25023_s5 + $0x4a8] sm:$0xff] }
 0x393   :  { %6150 = vmatpush1.bf16.msra.mxu1 %v15175_v63  ;;  %6069 = vmatprep.subr.bf16.mxu0 %v15190_v0  ;;  %v2735_v63 = vld [vmem:[%s25023_s5 + $0x4e8] sm:$0xff]  ;;  %v15285_v0 = vcombine.low %v2710_v16, %v2718_v55  ;;  %v15382_v16 = vcombine.high %v2806_v49, %v2814_v50 }
 0x394   :  { %6151 = vmatprep.subr.bf16.mxu1 %v15192_v1  ;;  %v15287_v1 = vcombine.low %v2711_v56, %v2719_v57  ;;  %v15304_v3 = vcombine.high %v2727_v62, %v2735_v63  ;;  %v2822_v56 = vld [vmem:[%s25023_s5 + $0x7a0] sm:$0xff] }
 0x395   :  { %v2830_v57 = vld [vmem:[%s25023_s5 + $0x7e0] sm:$0xff] }
 0x396   :  { %6070 = vmatpush1.bf16.msra.mxu0 %v15189_v7  ;;  %v2743_v7 = vld [vmem:[%s25023_s5 + $0x528] sm:$0xff] }
 0x397   :  { %6152 = vmatpush1.bf16.msra.mxu1 %v15191_v8  ;;  %6071 = vmatprep.subr.bf16.mxu0 %v15206_v9  ;;  %v2751_v8 = vld [vmem:[%s25023_s5 + $0x568] sm:$0xff]  ;;  %v15301_v9 = vcombine.low %v2726_v60, %v2734_v61  ;;  %v15398_v60 = vcombine.high %v2822_v56, %v2830_v57 }
 0x398   :  { %6153 = vmatprep.subr.bf16.mxu1 %v15208_v10  ;;  %v15303_v10 = vcombine.low %v2727_v62, %v2735_v63  ;;  %v15320_v12 = vcombine.high %v2743_v7, %v2751_v8  ;;  %v2838_v62 = vld [vmem:[%s25023_s5 + $0x820] sm:$0xff] }
 0x399   :  { %v2846_v63 = vld [vmem:[%s25023_s5 + $0x860] sm:$0xff] }
 0x39a   :  { %6072 = vmatpush1.bf16.msra.mxu0 %v15205_v15  ;;  %v2759_v15 = vld [vmem:[%s25023_s5 + $0x5a8] sm:$0xff] }
 0x39b   :  { %6154 = vmatpush1.bf16.msra.mxu1 %v15207_v17  ;;  %6073 = vmatprep.subr.bf16.mxu0 %v15222_v19  ;;  %v2767_v17 = vld [vmem:[%s25023_s5 + $0x5e8] sm:$0xff]  ;;  %v15317_v19 = vcombine.low %v2742_v4, %v2750_v6  ;;  %v15414_v4 = vcombine.high %v2838_v62, %v2846_v63 }
 0x39c   :  { %6155 = vmatprep.subr.bf16.mxu1 %v15224_v20  ;;  %v15319_v20 = vcombine.low %v2743_v7, %v2751_v8  ;;  %v15336_v28 = vcombine.high %v2759_v15, %v2767_v17  ;;  %v2854_v7 = vld [vmem:[%s25023_s5 + $0x8a0] sm:$0xff] }
 0x39d   :  { %v2862_v8 = vld [vmem:[%s25023_s5 + $0x8e0] sm:$0xff] }
 0x39e   :  { %6074 = vmatpush1.bf16.msra.mxu0 %v15221_v31  ;;  %v2775_v31 = vld [vmem:[%s25023_s5 + $0x628] sm:$0xff] }
 0x39f   :  { %6156 = vmatpush1.bf16.msra.mxu1 %v15223_v33  ;;  %6075 = vmatprep.subr.bf16.mxu0 %v15238_v34  ;;  %v2783_v33 = vld [vmem:[%s25023_s5 + $0x668] sm:$0xff]  ;;  %v15333_v34 = vcombine.low %v2758_v13, %v2766_v14  ;;  %v15430_v13 = vcombine.high %v2854_v7, %v2862_v8  ;;  %v2870_v14 = vld [vmem:[%s25023_s5 + $0x920] sm:$0xff] }
 0x3a0   :  { %6157 = vmatprep.subr.bf16.mxu1 %v15240_v35  ;;  %v15335_v35 = vcombine.low %v2759_v15, %v2767_v17  ;;  %v15352_v37 = vcombine.high %v2775_v31, %v2783_v33  ;;  %v2878_v15 = vld [vmem:[%s25023_s5 + $0x960] sm:$0xff] }
 0x3a2   :  { %6076 = vmatpush1.bf16.msra.mxu0 %v15237_v40  ;;  %v2791_v40 = vld [vmem:[%s25023_s5 + $0x6a8] sm:$0xff] }
 0x3a3   :  { %6158 = vmatpush1.bf16.msra.mxu1 %v15239_v42  ;;  %6077 = vmatprep.subr.bf16.mxu0 %v15254_v43  ;;  %v2799_v42 = vld [vmem:[%s25023_s5 + $0x6e8] sm:$0xff]  ;;  %v15349_v43 = vcombine.low %v2774_v29, %v2782_v30  ;;  %v15446_v29 = vcombine.high %v2870_v14, %v2878_v15 }
 0x3a4   :  { %6159 = vmatprep.subr.bf16.mxu1 %v15256_v44  ;;  %v15351_v44 = vcombine.low %v2775_v31, %v2783_v33  ;;  %v15368_v48 = vcombine.high %v2791_v40, %v2799_v42  ;;  %v2886_v31 = vld [vmem:[%s25023_s5 + $0x9a0] sm:$0xff] }
 0x3a5   :  { %v2894_v33 = vld [vmem:[%s25023_s5 + $0x9e0] sm:$0xff] }
 0x3a6   :  { %6078 = vmatpush1.bf16.msra.mxu0 %v15253_v25  ;;  %v2807_v25 = vld [vmem:[%s25023_s5 + $0x728] sm:$0xff] }
 0x3a7   :  { %6160 = vmatpush1.bf16.msra.mxu1 %v15255_v51  ;;  %6079 = vmatprep.subr.bf16.mxu0 %v15270_v52  ;;  %v2815_v51 = vld [vmem:[%s25023_s5 + $0x768] sm:$0xff]  ;;  %v15365_v52 = vcombine.low %v2790_v38, %v2798_v39  ;;  %v15462_v38 = vcombine.high %v2886_v31, %v2894_v33 }
 0x3a8   :  { %6161 = vmatprep.subr.bf16.mxu1 %v15272_v54  ;;  %v15367_v54 = vcombine.low %v2791_v40, %v2799_v42  ;;  %v15384_v55 = vcombine.high %v2807_v25, %v2815_v51  ;;  %v2902_v40 = vld [vmem:[%s25023_s5 + $0xa20] sm:$0xff] }
 0x3a9   :  { %v2910_v42 = vld [vmem:[%s25023_s5 + $0xa60] sm:$0xff] }
 0x3aa   :  { %6080 = vmatpush1.bf16.msra.mxu0 %v15269_v58  ;;  %v2823_v58 = vld [vmem:[%s25023_s5 + $0x7a8] sm:$0xff] }
 0x3ab   :  { %6162 = vmatpush1.bf16.msra.mxu1 %v15271_v59  ;;  %6081 = vmatprep.subr.bf16.mxu0 %v15286_v22  ;;  %v2831_v59 = vld [vmem:[%s25023_s5 + $0x7e8] sm:$0xff]  ;;  %v15381_v22 = vcombine.low %v2806_v49, %v2814_v50  ;;  %v15478_v49 = vcombine.high %v2902_v40, %v2910_v42 }
 0x3ac   :  { %6163 = vmatprep.subr.bf16.mxu1 %v15288_v32  ;;  %v15383_v32 = vcombine.low %v2807_v25, %v2815_v51  ;;  %v15400_v61 = vcombine.high %v2823_v58, %v2831_v59  ;;  %v2918_v25 = vld [vmem:[%s25023_s5 + $0xaa0] sm:$0xff] }
 0x3ad   :  { %v2926_v51 = vld [vmem:[%s25023_s5 + $0xae0] sm:$0xff] }
 0x3ae   :  { %6082 = vmatpush1.bf16.msra.mxu0 %v15285_v0  ;;  %v2839_v0 = vld [vmem:[%s25023_s5 + $0x828] sm:$0xff] }
 0x3af   :  { %6164 = vmatpush1.bf16.msra.mxu1 %v15287_v1  ;;  %6083 = vmatprep.subr.bf16.mxu0 %v15302_v2  ;;  %v2847_v1 = vld [vmem:[%s25023_s5 + $0x868] sm:$0xff]  ;;  %v15397_v2 = vcombine.low %v2822_v56, %v2830_v57  ;;  %v15494_v56 = vcombine.high %v2918_v25, %v2926_v51 }
 0x3b0   :  { %6165 = vmatprep.subr.bf16.mxu1 %v15304_v3  ;;  %v15399_v3 = vcombine.low %v2823_v58, %v2831_v59  ;;  %v15416_v6 = vcombine.high %v2839_v0, %v2847_v1  ;;  %v2934_v58 = vld [vmem:[%s25023_s5 + $0xb20] sm:$0xff] }
 0x3b1   :  { %v2942_v59 = vld [vmem:[%s25023_s5 + $0xb60] sm:$0xff] }
 0x3b2   :  { %6084 = vmatpush1.bf16.msra.mxu0 %v15301_v9  ;;  %v15413_v9 = vcombine.low %v2838_v62, %v2846_v63  ;;  %v15510_v62 = vcombine.high %v2934_v58, %v2942_v59 }
 0x3b3   :  { %6166 = vmatpush1.bf16.msra.mxu1 %v15303_v10  ;;  %6085 = vmatprep.subr.bf16.mxu0 %v15318_v11  ;;  %v2855_v10 = vld [vmem:[%s25023_s5 + $0x8a8] sm:$0xff] }
 0x3b4   :  { %6167 = vmatprep.subr.bf16.mxu1 %v15320_v12  ;;  %v2863_v11 = vld [vmem:[%s25023_s5 + $0x8e8] sm:$0xff]  ;;  %v15415_v12 = vcombine.low %v2839_v0, %v2847_v1 }
 0x3b5   :  { %v15432_v17 = vcombine.high %v2855_v10, %v2863_v11 }
 0x3b6   :  { %6086 = vmatpush1.bf16.msra.mxu0 %v15317_v19  ;;  %v2871_v19 = vld [vmem:[%s25023_s5 + $0x928] sm:$0xff] }
 0x3b7   :  { %6168 = vmatpush1.bf16.msra.mxu1 %v15319_v20  ;;  %6087 = vmatprep.subr.bf16.mxu0 %v15334_v21  ;;  %v2879_v20 = vld [vmem:[%s25023_s5 + $0x968] sm:$0xff]  ;;  %v15429_v21 = vcombine.low %v2854_v7, %v2862_v8 }
 0x3b8   :  { %6169 = vmatprep.subr.bf16.mxu1 %v15336_v28  ;;  %v15431_v28 = vcombine.low %v2855_v10, %v2863_v11  ;;  %v15448_v30 = vcombine.high %v2871_v19, %v2879_v20  ;;  %v2951_v7 = vld [vmem:[%s25023_s5 + $0xba8] sm:$0xff]  ;;  %v15509_v11 = vcombine.low %v2934_v58, %v2942_v59 }
 0x3b9   :  { %v2959_v8 = vld [vmem:[%s25023_s5 + $0xbe8] sm:$0xff] }
 0x3ba   :  { %6088 = vmatpush1.bf16.msra.mxu0 %v15333_v34  ;;  %v2887_v34 = vld [vmem:[%s25023_s5 + $0x9a8] sm:$0xff] }
 0x3bb   :  { %6170 = vmatpush1.bf16.msra.mxu1 %v15335_v35  ;;  %6089 = vmatprep.subr.bf16.mxu0 %v15350_v36  ;;  %v2895_v35 = vld [vmem:[%s25023_s5 + $0x9e8] sm:$0xff]  ;;  %v15445_v36 = vcombine.low %v2870_v14, %v2878_v15 }
 0x3bc   :  { %6171 = vmatprep.subr.bf16.mxu1 %v15352_v37  ;;  %v15447_v37 = vcombine.low %v2871_v19, %v2879_v20  ;;  %v15464_v39 = vcombine.high %v2887_v34, %v2895_v35  ;;  %v2966_v19 = vld [vmem:[%s25023_s5 + $0xc20] sm:$0xff] }
 0x3bd   :  { %v2974_v20 = vld [vmem:[%s25023_s5 + $0xc60] sm:$0xff] }
 0x3be   :  { %6090 = vmatpush1.bf16.msra.mxu0 %v15349_v43  ;;  %v2903_v43 = vld [vmem:[%s25023_s5 + $0xa28] sm:$0xff] }
 0x3bf   :  { %6172 = vmatpush1.bf16.msra.mxu1 %v15351_v44  ;;  %6091 = vmatprep.subr.bf16.mxu0 %v15366_v45  ;;  %v2911_v44 = vld [vmem:[%s25023_s5 + $0xa68] sm:$0xff]  ;;  %v15461_v45 = vcombine.low %v2886_v31, %v2894_v33  ;;  %v15542_v31 = vcombine.high %v2966_v19, %v2974_v20 }
 0x3c0   :  { %6173 = vmatprep.subr.bf16.mxu1 %v15368_v48  ;;  %v15463_v48 = vcombine.low %v2887_v34, %v2895_v35  ;;  %v15480_v50 = vcombine.high %v2903_v43, %v2911_v44  ;;  %v2982_v34 = vld [vmem:[%s25023_s5 + $0xca0] sm:$0xff] }
 0x3c1   :  { %v2990_v35 = vld [vmem:[%s25023_s5 + $0xce0] sm:$0xff] }
 0x3c2   :  { %6092 = vmatpush1.bf16.msra.mxu0 %v15365_v52  ;;  %v2919_v52 = vld [vmem:[%s25023_s5 + $0xaa8] sm:$0xff] }
 0x3c3   :  { %6174 = vmatpush1.bf16.msra.mxu1 %v15367_v54  ;;  %6093 = vmatprep.subr.bf16.mxu0 %v15382_v16  ;;  %v2927_v54 = vld [vmem:[%s25023_s5 + $0xae8] sm:$0xff]  ;;  %v15477_v16 = vcombine.low %v2902_v40, %v2910_v42  ;;  %v15558_v40 = vcombine.high %v2982_v34, %v2990_v35 }
 0x3c4   :  { %6175 = vmatprep.subr.bf16.mxu1 %v15384_v55  ;;  %v15479_v55 = vcombine.low %v2903_v43, %v2911_v44  ;;  %v15496_v57 = vcombine.high %v2919_v52, %v2927_v54  ;;  %v2998_v43 = vld [vmem:[%s25023_s5 + $0xd20] sm:$0xff] }
 0x3c5   :  { %v3006_v44 = vld [vmem:[%s25023_s5 + $0xd60] sm:$0xff] }
 0x3c6   :  { %6094 = vmatpush1.bf16.msra.mxu0 %v15381_v22  ;;  %v2935_v22 = vld [vmem:[%s25023_s5 + $0xb28] sm:$0xff] }
 0x3c7   :  { %6176 = vmatpush1.bf16.msra.mxu1 %v15383_v32  ;;  %6095 = vmatprep.subr.bf16.mxu0 %v15398_v60  ;;  %v2943_v32 = vld [vmem:[%s25023_s5 + $0xb68] sm:$0xff]  ;;  %v15493_v60 = vcombine.low %v2918_v25, %v2926_v51  ;;  %v15574_v25 = vcombine.high %v2998_v43, %v3006_v44 }
 0x3c8   :  { %6177 = vmatprep.subr.bf16.mxu1 %v15400_v61  ;;  %v15495_v61 = vcombine.low %v2919_v52, %v2927_v54  ;;  %v15512_v1 = vcombine.high %v2935_v22, %v2943_v32  ;;  %v15511_v14 = vcombine.low %v2935_v22, %v2943_v32  ;;  %v3014_v52 = vld [vmem:[%s25023_s5 + $0xda0] sm:$0xff] }
 0x3c9   :  { %v3022_v54 = vld [vmem:[%s25023_s5 + $0xde0] sm:$0xff] }
 0x3ca   :  { %6096 = vmatpush1.bf16.msra.mxu0 %v15397_v2  ;;  %v2950_v2 = vld [vmem:[%s25023_s5 + $0xba0] sm:$0xff]  ;;  %v15590_v58 = vcombine.high %v3014_v52, %v3022_v54 }
 0x3cb   :  { %6178 = vmatpush1.bf16.msra.mxu1 %v15399_v3  ;;  %6106 = vmatprep.subr.bf16.mxu0 %v15414_v4  ;;  %v2958_v3 = vld [vmem:[%s25023_s5 + $0xbe0] sm:$0xff] }
 0x3cc   :  { %6188 = vmatprep.subr.bf16.mxu1 %v15416_v6  ;;  %v15526_v15 = vcombine.high %v2950_v2, %v2958_v3  ;;  %v3030_v22 = vld [vmem:[%s25023_s5 + $0xe20] sm:$0xff] }
 0x3cd   :  { %6098 = vmatmul.mubr.bf16.vlgmr.msra.gmra.mrb[16].mxu0 %v20351_v47  ;;  %v3038_v32 = vld [vmem:[%s25023_s5 + $0xe60] sm:$0xff] }
 0x3ce   :  { %6180 = vmatmul.mubr.bf16.vlgmr.msra.gmra.mrb[16].mxu1 %v20351_v47  ;;  %6107 = vmatpush1.bf16.msra.mxu0 %v15413_v9 }
 0x3cf   :  { %15670 = vmatprep.mubr.msk.bf16.mxu0 %vm2389_vm1, %v20367_v53  ;;  %6189 = vmatpush1.bf16.msra.mxu1 %v15415_v12 }
 0x3d0   :  { %15672 = vmatprep.mubr.msk.bf16.mxu1 %vm2389_vm1, %v20367_v53  ;;  %6108 = vmatprep.subr.bf16.mxu0 %v15430_v13 }
 0x3d1   :  { %6190 = vmatprep.subr.bf16.mxu1 %v15432_v17  ;;  %v15528_v17 = vcombine.high %v2951_v7, %v2959_v8 }
 0x3d2   :  { %6109 = vmatpush1.bf16.msra.mxu0 %v15429_v21  ;;  %v2967_v21 = vld [vmem:[%s25023_s5 + $0xc28] sm:$0xff] }
 0x3d3   :  { %6191 = vmatpush1.bf16.msra.mxu1 %v15431_v28  ;;  %6110 = vmatprep.subr.bf16.mxu0 %v15446_v29  ;;  %v2975_v28 = vld [vmem:[%s25023_s5 + $0xc68] sm:$0xff]  ;;  %v15525_v29 = vcombine.low %v2950_v2, %v2958_v3  ;;  %v15606_v2 = vcombine.high %v3030_v22, %v3038_v32 }
 0x3d4   :  { %6192 = vmatprep.subr.bf16.mxu1 %v15448_v30  ;;  %v15527_v30 = vcombine.low %v2951_v7, %v2959_v8  ;;  %v15544_v33 = vcombine.high %v2967_v21, %v2975_v28  ;;  %v3046_v7 = vld [vmem:[%s25023_s5 + $0xea0] sm:$0xff] }
 0x3d5   :  { %v3054_v8 = vld [vmem:[%s25023_s5 + $0xee0] sm:$0xff] }
 0x3d6   :  { %6111 = vmatpush1.bf16.msra.mxu0 %v15445_v36  ;;  %v2983_v36 = vld [vmem:[%s25023_s5 + $0xca8] sm:$0xff] }
 0x3d7   :  { %6193 = vmatpush1.bf16.msra.mxu1 %v15447_v37  ;;  %6112 = vmatprep.subr.bf16.mxu0 %v15462_v38  ;;  %v2991_v37 = vld [vmem:[%s25023_s5 + $0xce8] sm:$0xff]  ;;  %v15541_v38 = vcombine.low %v2966_v19, %v2974_v20 }
 0x3d8   :  { %6194 = vmatprep.subr.bf16.mxu1 %v15464_v39  ;;  %v15543_v39 = vcombine.low %v2967_v21, %v2975_v28  ;;  %v15560_v42 = vcombine.high %v2983_v36, %v2991_v37  ;;  %v3063_v19 = vld [vmem:[%s25023_s5 + $0xf28] sm:$0xff]  ;;  %v15621_v21 = vcombine.low %v3046_v7, %v3054_v8 }
 0x3d9   :  { %v3071_v20 = vld [vmem:[%s25023_s5 + $0xf68] sm:$0xff] }
 0x3da   :  { %6113 = vmatpush1.bf16.msra.mxu0 %v15461_v45  ;;  %v2999_v45 = vld [vmem:[%s25023_s5 + $0xd28] sm:$0xff] }
 0x3db   :  { %6195 = vmatpush1.bf16.msra.mxu1 %v15463_v48  ;;  %6114 = vmatprep.subr.bf16.mxu0 %v15478_v49  ;;  %v3007_v48 = vld [vmem:[%s25023_s5 + $0xd68] sm:$0xff]  ;;  %v15557_v49 = vcombine.low %v2982_v34, %v2990_v35  ;;  %v15639_v35 = vcombine.low %v3063_v19, %v3071_v20 }
 0x3dc   :  { %6196 = vmatprep.subr.bf16.mxu1 %v15480_v50  ;;  %v15559_v50 = vcombine.low %v2983_v36, %v2991_v37  ;;  %v15576_v51 = vcombine.high %v2999_v45, %v3007_v48 }
 0x3de   :  { %6115 = vmatpush1.bf16.msra.mxu0 %v15477_v16  ;;  %v3015_v16 = vld [vmem:[%s25023_s5 + $0xda8] sm:$0xff] }
 0x3df   :  { %6197 = vmatpush1.bf16.msra.mxu1 %v15479_v55  ;;  %6116 = vmatprep.subr.bf16.mxu0 %v15494_v56  ;;  %v3023_v55 = vld [vmem:[%s25023_s5 + $0xde8] sm:$0xff]  ;;  %v15573_v56 = vcombine.low %v2998_v43, %v3006_v44  ;;  %v2585_v43 = vld [vmem:[%s25023_s5 + $0x38] sm:$0xff] }
 0x3e0   :  { %v21212_v63 = vpop.f32.mrb[8].mxu0  ;;  %v21214_v0 = vpop.f32.mrb[8].mxu1  ;;  %6198 = vmatprep.subr.bf16.mxu1 %v15496_v57  ;;  %v15575_v57 = vcombine.low %v2999_v45, %v3007_v48  ;;  %v15592_v59 = vcombine.high %v3015_v16, %v3023_v55  ;;  %v2593_v44 = vld [vmem:[%s25023_s5 + $0x78] sm:$0xff] }
 0x3e1   :  { %v21222_v4 = vpop.f32.mrb[9].mxu0  ;;  %v21224_v6 = vpop.f32.mrb[9].mxu1 }
 0x3e2   :  { %v5816_v9 = vpop.f32.mrb[10].mxu0  ;;  %v5898_v10 = vpop.f32.mrb[10].mxu1  ;;  %6117 = vmatpush1.bf16.msra.mxu0 %v15493_v60  ;;  %v3031_v60 = vld [vmem:[%s25023_s5 + $0xe28] sm:$0xff] }
 0x3e3   :  { %6199 = vmatpush1.bf16.msra.mxu1 %v15495_v61  ;;  %v5817_v12 = vpop.f32.mrb[11].mxu0  ;;  %v5899_v13 = vpop.f32.mrb[11].mxu1  ;;  %6118 = vmatprep.subr.bf16.mxu0 %v15510_v62  ;;  %v3039_v61 = vld [vmem:[%s25023_s5 + $0xe68] sm:$0xff]  ;;  %v15589_v62 = vcombine.low %v3014_v52, %v3022_v54  ;;  %v2601_v54 = vld [vmem:[%s25023_s5 + $0xb8] sm:$0xff] }
 0x3e4   :  { %6200 = vmatprep.subr.bf16.mxu1 %v15512_v1  ;;  %v15591_v1 = vcombine.low %v3015_v16, %v3023_v55  ;;  %v15608_v3 = vcombine.high %v3031_v60, %v3039_v61  ;;  %v3047_v9 = vld [vmem:[%s25023_s5 + $0xea8] sm:$0xff]  ;;  %v15607_v12 = vcombine.low %v3031_v60, %v3039_v61  ;;  %v15622_v13 = vcombine.high %v3046_v7, %v3054_v8  ;;  %v2609_v16 = vld [vmem:[%s25023_s5 + $0xf8] sm:$0xff]  ;;  %v2632_v61 = vld [vmem:[%s25023_s5 + $0x1b0] sm:$0xff] }
 0x3e5   :  { %v3055_v10 = vld [vmem:[%s25023_s5 + $0xee8] sm:$0xff]  ;;  %v15163_v55 = vcombine.low %v2585_v43, %v2593_v44  ;;  %v2633_v7 = vld [vmem:[%s25023_s5 + $0x1b8] sm:$0xff] }
 0x3e6   :  { %6119 = vmatpush1.bf16.msra.mxu0 %v15509_v11  ;;  %v15605_v11 = vcombine.low %v3030_v22, %v3038_v32  ;;  %v15623_v28 = vcombine.low %v3047_v9, %v3055_v10  ;;  %v15180_v22 = vcombine.high %v2601_v54, %v2609_v16  ;;  %v2625_v32 = vld [vmem:[%s25023_s5 + $0x178] sm:$0xff] }
 0x3e7   :  { %6201 = vmatpush1.bf16.msra.mxu1 %v15511_v14  ;;  %6120 = vmatprep.subr.bf16.mxu0 %v15526_v15  ;;  %v15624_v14 = vcombine.high %v3047_v9, %v3055_v10  ;;  %v3062_v15 = vld [vmem:[%s25023_s5 + $0xf20] sm:$0xff]  ;;  %v2641_v8 = vld [vmem:[%s25023_s5 + $0x1f8] sm:$0xff]  ;;  %v2648_v10 = vld [vmem:[%s25023_s5 + $0x230] sm:$0xff] }
 0x3e8   :  { %6202 = vmatprep.subr.bf16.mxu1 %v15528_v17  ;;  %v3070_v17 = vld [vmem:[%s25023_s5 + $0xf60] sm:$0xff] }
 0x3e9   :  { %v15637_v34 = vcombine.low %v3062_v15, %v3070_v17 }
 0x3ea   :  { %6121 = vmatpush1.bf16.msra.mxu0 %v15525_v29  ;;  %v15638_v29 = vcombine.high %v3062_v15, %v3070_v17  ;;  %v2657_v15 = vld [vmem:[%s25023_s5 + $0x278] sm:$0xff] }
 0x3eb   :  { %6203 = vmatpush1.bf16.msra.mxu1 %v15527_v30  ;;  %6122 = vmatprep.subr.bf16.mxu0 %v15542_v31  ;;  %v15640_v30 = vcombine.high %v3063_v19, %v3071_v20  ;;  %v3078_v31 = vld [vmem:[%s25023_s5 + $0xfa0] sm:$0x33]  ;;  %v2664_v19 = vld [vmem:[%s25023_s5 + $0x2b0] sm:$0xff]  ;;  %v15211_v20 = vcombine.low %v2633_v7, %v2641_v8 }
 0x3ec   :  { %6204 = vmatprep.subr.bf16.mxu1 %v15544_v33  ;;  %v3079_v33 = vld [vmem:[%s25023_s5 + $0xfa8] sm:$0x33]  ;;  %v15654_v36 = vcombine.high %v3078_v31, %v3078_v31  ;;  %v15653_v37 = vcombine.low %v3078_v31, %v3078_v31  ;;  %v2673_v31 = vld [vmem:[%s25023_s5 + $0x2f8] sm:$0xff] }
 0x3ee   :  { %6123 = vmatpush1.bf16.msra.mxu0 %v15541_v38  ;;  %v15656_v38 = vcombine.high %v3079_v33, %v3079_v33  ;;  %v5714_v45 = vsel %vm2393_vm2, %v15653_v37, 0  ;;  %v2688_v37 = vld [vmem:[%s25023_s5 + $0x370] sm:$0xff] }
 0x3ef   :  { %6205 = vmatpush1.bf16.msra.mxu1 %v15543_v39  ;;  %6124 = vmatprep.subr.bf16.mxu0 %v15558_v40  ;;  %v15655_v39 = vcombine.low %v3079_v33, %v3079_v33  ;;  %v2584_v40 = vld [vmem:[%s25023_s5 + $0x30] sm:$0xff] }
 0x3f0   :  { %6206 = vmatprep.subr.bf16.mxu1 %v15560_v42  ;;  %v2592_v42 = vld [vmem:[%s25023_s5 + $0x70] sm:$0xff] }
 0x3f1   :  { %v15162_v48 = vcombine.high %v2584_v40, %v2592_v42  ;;  %v15161_v52 = vcombine.low %v2584_v40, %v2592_v42  ;;  %v2689_v40 = vld [vmem:[%s25023_s5 + $0x378] sm:$0xff] }
 0x3f2   :  { %6125 = vmatpush1.bf16.msra.mxu0 %v15557_v49  ;;  %v5720_v49 = vsel %vm2393_vm2, %v15655_v39, 0  ;;  %v2681_v39 = vld [vmem:[%s25023_s5 + $0x338] sm:$0xff] }
 0x3f3   :  { %6207 = vmatpush1.bf16.msra.mxu1 %v15559_v50  ;;  %6126 = vmatprep.subr.bf16.mxu0 %v15574_v25  ;;  %v15164_v50 = vcombine.high %v2585_v43, %v2593_v44  ;;  %v2600_v25 = vld [vmem:[%s25023_s5 + $0xb0] sm:$0xff] }
 0x3f4   :  { %6208 = vmatprep.subr.bf16.mxu1 %v15576_v51  ;;  %v2608_v51 = vld [vmem:[%s25023_s5 + $0xf0] sm:$0xff] }
 0x3f5   :  { %v15177_v60 = vcombine.low %v2600_v25, %v2608_v51  ;;  %v2696_v43 = vld [vmem:[%s25023_s5 + $0x3b0] sm:$0xff] }
 0x3f6   :  { %6127 = vmatpush1.bf16.msra.mxu0 %v15573_v56  ;;  %v15178_v56 = vcombine.high %v2600_v25, %v2608_v51  ;;  %v2705_v25 = vld [vmem:[%s25023_s5 + $0x3f8] sm:$0xff] }
 0x3f7   :  { %6209 = vmatpush1.bf16.msra.mxu1 %v15575_v57  ;;  %6128 = vmatprep.subr.bf16.mxu0 %v15590_v58  ;;  %v2616_v57 = vld [vmem:[%s25023_s5 + $0x130] sm:$0xff] }
 0x3f8   :  { %6210 = vmatprep.subr.bf16.mxu1 %v15592_v59  ;;  %v2624_v58 = vld [vmem:[%s25023_s5 + $0x170] sm:$0xff]  ;;  %v2617_v59 = vld [vmem:[%s25023_s5 + $0x138] sm:$0xff] }
 0x3f9   :  { %v15193_v9 = vcombine.low %v2616_v57, %v2624_v58 }
 0x3fa   :  { %6129 = vmatpush1.bf16.msra.mxu0 %v15589_v62  ;;  %v15179_v62 = vcombine.low %v2601_v54, %v2609_v16  ;;  %v15259_v54 = vcombine.low %v2681_v39, %v2689_v40 }
 0x3fb   :  { %6211 = vmatpush1.bf16.msra.mxu1 %v15591_v1  ;;  %6130 = vmatprep.subr.bf16.mxu0 %v15606_v2  ;;  %v15194_v1 = vcombine.high %v2616_v57, %v2624_v58  ;;  %v2640_v2 = vld [vmem:[%s25023_s5 + $0x1f0] sm:$0xff]  ;;  %v2713_v57 = vld [vmem:[%s25023_s5 + $0x438] sm:$0xff] }
 0x3fc   :  { %6212 = vmatprep.subr.bf16.mxu1 %v15608_v3  ;;  %v15196_v3 = vcombine.high %v2617_v59, %v2625_v32  ;;  %v15209_v17 = vcombine.low %v2632_v61, %v2640_v2  ;;  %v2721_v58 = vld [vmem:[%s25023_s5 + $0x478] sm:$0xff] }
 0x3fe   :  { %6131 = vmatpush1.bf16.msra.mxu0 %v15605_v11  ;;  %v15210_v11 = vcombine.high %v2632_v61, %v2640_v2  ;;  %v2736_v61 = vld [vmem:[%s25023_s5 + $0x4f0] sm:$0xff]  ;;  %v2737_v2 = vld [vmem:[%s25023_s5 + $0x4f8] sm:$0xff] }
 0x3ff   :  { %6213 = vmatpush1.bf16.msra.mxu1 %v15607_v12  ;;  %6132 = vmatprep.subr.bf16.mxu0 %v15622_v13  ;;  %v2656_v12 = vld [vmem:[%s25023_s5 + $0x270] sm:$0xff]  ;;  %v15212_v13 = vcombine.high %v2633_v7, %v2641_v8  ;;  %v15291_v8 = vcombine.low %v2713_v57, %v2721_v58 }
 0x400   :  { %6214 = vmatprep.subr.bf16.mxu1 %v15624_v14  ;;  %v2649_v14 = vld [vmem:[%s25023_s5 + $0x238] sm:$0xff]  ;;  %v15225_v33 = vcombine.low %v2648_v10, %v2656_v12  ;;  %v2744_v7 = vld [vmem:[%s25023_s5 + $0x530] sm:$0xff] }
 0x402   :  { %6133 = vmatpush1.bf16.msra.mxu0 %v15621_v21  ;;  %v15226_v21 = vcombine.high %v2648_v10, %v2656_v12  ;;  %v2752_v10 = vld [vmem:[%s25023_s5 + $0x570] sm:$0xff]  ;;  %v2753_v12 = vld [vmem:[%s25023_s5 + $0x578] sm:$0xff] }
 0x403   :  { %6215 = vmatpush1.bf16.msra.mxu1 %v15623_v28  ;;  %6134 = vmatprep.subr.bf16.mxu0 %v15638_v29  ;;  %v2672_v28 = vld [vmem:[%s25023_s5 + $0x2f0] sm:$0xff]  ;;  %v15228_v29 = vcombine.high %v2649_v14, %v2657_v15 }
 0x404   :  { %6216 = vmatprep.subr.bf16.mxu1 %v15640_v30  ;;  %v2665_v30 = vld [vmem:[%s25023_s5 + $0x2b8] sm:$0xff]  ;;  %v15241_v42 = vcombine.low %v2664_v19, %v2672_v28 }
 0x405   :  { %v15243_v44 = vcombine.low %v2665_v30, %v2673_v31 }
 0x406   :  { %6135 = vmatpush1.bf16.msra.mxu0 %v15637_v34  ;;  %v2680_v34 = vld [vmem:[%s25023_s5 + $0x330] sm:$0xff] }
 0x407   :  { %6217 = vmatpush1.bf16.msra.mxu1 %v15639_v35  ;;  %15669 = vmatprep.subr.msk.bf16.mxu0 %vm2393_vm2, %v15654_v36  ;;  %v15227_v35 = vcombine.low %v2649_v14, %v2657_v15  ;;  %v15242_v36 = vcombine.high %v2664_v19, %v2672_v28  ;;  %v15257_v51 = vcombine.low %v2680_v34, %v2688_v37  ;;  %v2760_v14 = vld [vmem:[%s25023_s5 + $0x5b0] sm:$0xff]  ;;  %v2769_v28 = vld [vmem:[%s25023_s5 + $0x5f8] sm:$0xff] }
 0x408   :  { %15671 = vmatprep.subr.msk.bf16.mxu1 %vm2393_vm2, %v15656_v38  ;;  %v15244_v38 = vcombine.high %v2665_v30, %v2673_v31  ;;  %v2768_v15 = vld [vmem:[%s25023_s5 + $0x5f0] sm:$0xff]  ;;  %v15322_v19 = vcombine.high %v2744_v7, %v2752_v10 }
 0x409   :  { %v2776_v30 = vld [vmem:[%s25023_s5 + $0x630] sm:$0xff] }
 0x40a   :  { %6137 = vmatpush1.bf16.msra.mxu0 %v5714_v45  ;;  %v15258_v45 = vcombine.high %v2680_v34, %v2688_v37  ;;  %v2784_v31 = vld [vmem:[%s25023_s5 + $0x670] sm:$0xff]  ;;  %v15338_v34 = vcombine.high %v2760_v14, %v2768_v15  ;;  %v2785_v37 = vld [vmem:[%s25023_s5 + $0x678] sm:$0xff] }
 0x40b   :  { %6219 = vmatpush1.bf16.msra.mxu1 %v5720_v49  ;;  %6229 = vmatprep.subr.bf16.mxu0 %v15162_v48  ;;  %v2704_v48 = vld [vmem:[%s25023_s5 + $0x3f0] sm:$0xff]  ;;  %v15260_v49 = vcombine.high %v2681_v39, %v2689_v40 }
 0x40c   :  { %6311 = vmatprep.subr.bf16.mxu1 %v15164_v50  ;;  %v2697_v50 = vld [vmem:[%s25023_s5 + $0x3b8] sm:$0xff]  ;;  %v15274_v16 = vcombine.high %v2696_v43, %v2704_v48  ;;  %v2792_v39 = vld [vmem:[%s25023_s5 + $0x6b0] sm:$0xff] }
 0x40d   :  { %6139 = vmatmul.mubr.bf16.vlgmr.msra.gmra.mrb[16].mxu0 %v20556_v5  ;;  %v2800_v40 = vld [vmem:[%s25023_s5 + $0x6f0] sm:$0xff] }
 0x40e   :  { %6221 = vmatmul.mubr.bf16.vlgmr.msra.gmra.mrb[16].mxu1 %v20556_v5  ;;  %6230 = vmatpush1.bf16.msra.mxu0 %v15161_v52  ;;  %v2712_v52 = vld [vmem:[%s25023_s5 + $0x430] sm:$0xff] }
 0x40f   :  { %6261 = vmatprep.mubr.bf16.mxu0 %v20349_v46  ;;  %6312 = vmatpush1.bf16.msra.mxu1 %v15163_v55  ;;  %v2720_v55 = vld [vmem:[%s25023_s5 + $0x470] sm:$0xff] }
 0x410   :  { %6343 = vmatprep.mubr.bf16.mxu1 %v20349_v46  ;;  %6231 = vmatprep.subr.bf16.mxu0 %v15178_v56  ;;  %v15195_v46 = vcombine.low %v2617_v59, %v2625_v32  ;;  %v15276_v56 = vcombine.high %v2697_v50, %v2705_v25  ;;  %v15273_v59 = vcombine.low %v2696_v43, %v2704_v48  ;;  %v2801_v48 = vld [vmem:[%s25023_s5 + $0x6f8] sm:$0xff] }
 0x411   :  { %6313 = vmatprep.subr.bf16.mxu1 %v15180_v22  ;;  %v2728_v22 = vld [vmem:[%s25023_s5 + $0x4b0] sm:$0xff]  ;;  %v15275_v32 = vcombine.low %v2697_v50, %v2705_v25  ;;  %v15354_v43 = vcombine.high %v2776_v30, %v2784_v31 }
 0x412   :  { %6232 = vmatpush1.bf16.msra.mxu0 %v15177_v60  ;;  %v15290_v60 = vcombine.high %v2712_v52, %v2720_v55  ;;  %v2808_v50 = vld [vmem:[%s25023_s5 + $0x730] sm:$0xff] }
 0x413   :  { %6314 = vmatpush1.bf16.msra.mxu1 %v15179_v62  ;;  %6233 = vmatprep.subr.bf16.mxu0 %v15194_v1  ;;  %v15292_v62 = vcombine.high %v2713_v57, %v2721_v58  ;;  %v2729_v1 = vld [vmem:[%s25023_s5 + $0x4b8] sm:$0xff]  ;;  %v2816_v25 = vld [vmem:[%s25023_s5 + $0x770] sm:$0xff] }
 0x414   :  { %6315 = vmatprep.subr.bf16.mxu1 %v15196_v3  ;;  %v15289_v3 = vcombine.low %v2712_v52, %v2720_v55  ;;  %v15370_v52 = vcombine.high %v2792_v39, %v2800_v40  ;;  %v2817_v55 = vld [vmem:[%s25023_s5 + $0x778] sm:$0xff]  ;;  %v2824_v57 = vld [vmem:[%s25023_s5 + $0x7b0] sm:$0xff] }
 0x415   :  { %v2832_v58 = vld [vmem:[%s25023_s5 + $0x7f0] sm:$0xff] }
 0x416   :  { %6234 = vmatpush1.bf16.msra.mxu0 %v15193_v9  ;;  %v15306_v9 = vcombine.high %v2728_v22, %v2736_v61 }
 0x417   :  { %6316 = vmatpush1.bf16.msra.mxu1 %v15195_v46  ;;  %6235 = vmatprep.subr.bf16.mxu0 %v15210_v11  ;;  %v15308_v46 = vcombine.high %v2729_v1, %v2737_v2  ;;  %v2745_v11 = vld [vmem:[%s25023_s5 + $0x538] sm:$0xff] }
 0x418   :  { %6317 = vmatprep.subr.bf16.mxu1 %v15212_v13  ;;  %v15305_v13 = vcombine.low %v2728_v22, %v2736_v61  ;;  %v15386_v22 = vcombine.high %v2808_v50, %v2816_v25  ;;  %v2833_v61 = vld [vmem:[%s25023_s5 + $0x7f8] sm:$0xff] }
 0x41a   :  { %6236 = vmatpush1.bf16.msra.mxu0 %v15209_v17  ;;  %v15307_v17 = vcombine.low %v2729_v1, %v2737_v2  ;;  %v2840_v1 = vld [vmem:[%s25023_s5 + $0x830] sm:$0xff] }
 0x41b   :  { %6318 = vmatpush1.bf16.msra.mxu1 %v15211_v20  ;;  %6237 = vmatprep.subr.bf16.mxu0 %v15226_v21  ;;  %v2761_v20 = vld [vmem:[%s25023_s5 + $0x5b8] sm:$0xff]  ;;  %v15324_v21 = vcombine.high %v2745_v11, %v2753_v12  ;;  %v2848_v2 = vld [vmem:[%s25023_s5 + $0x870] sm:$0xff] }
 0x41c   :  { %6319 = vmatprep.subr.bf16.mxu1 %v15228_v29  ;;  %v15321_v29 = vcombine.low %v2744_v7, %v2752_v10  ;;  %v15402_v7 = vcombine.high %v2824_v57, %v2832_v58  ;;  %v2849_v10 = vld [vmem:[%s25023_s5 + $0x878] sm:$0xff] }
 0x41e   :  { %6238 = vmatpush1.bf16.msra.mxu0 %v15225_v33  ;;  %v15323_v33 = vcombine.low %v2745_v11, %v2753_v12  ;;  %v15418_v12 = vcombine.high %v2840_v1, %v2848_v2 }
 0x41f   :  { %6320 = vmatpush1.bf16.msra.mxu1 %v15227_v35  ;;  %6239 = vmatprep.subr.bf16.mxu0 %v15242_v36  ;;  %v2777_v35 = vld [vmem:[%s25023_s5 + $0x638] sm:$0xff]  ;;  %v15340_v36 = vcombine.high %v2761_v20, %v2769_v28 }
 0x420   :  { %6321 = vmatprep.subr.bf16.mxu1 %v15244_v38  ;;  %v15337_v38 = vcombine.low %v2760_v14, %v2768_v15  ;;  %v2864_v14 = vld [vmem:[%s25023_s5 + $0x8f0] sm:$0xff] }
 0x422   :  { %6240 = vmatpush1.bf16.msra.mxu0 %v15241_v42  ;;  %v15339_v42 = vcombine.low %v2761_v20, %v2769_v28  ;;  %v15417_v20 = vcombine.low %v2840_v1, %v2848_v2  ;;  %v2880_v28 = vld [vmem:[%s25023_s5 + $0x970] sm:$0xff]  ;;  %v2937_v1 = vld [vmem:[%s25023_s5 + $0xb38] sm:$0xff] }
 0x423   :  { %6322 = vmatpush1.bf16.msra.mxu1 %v15243_v44  ;;  %6241 = vmatprep.subr.bf16.mxu0 %v15258_v45  ;;  %v2793_v44 = vld [vmem:[%s25023_s5 + $0x6b8] sm:$0xff]  ;;  %v15356_v45 = vcombine.high %v2777_v35, %v2785_v37 }
 0x424   :  { %6323 = vmatprep.subr.bf16.mxu1 %v15260_v49  ;;  %v15353_v49 = vcombine.low %v2776_v30, %v2784_v31  ;;  %v2945_v2 = vld [vmem:[%s25023_s5 + $0xb78] sm:$0xff] }
 0x426   :  { %6242 = vmatpush1.bf16.msra.mxu0 %v15257_v51  ;;  %v15355_v51 = vcombine.low %v2777_v35, %v2785_v37 }
 0x427   :  { %6324 = vmatpush1.bf16.msra.mxu1 %v15259_v54  ;;  %6243 = vmatprep.subr.bf16.mxu0 %v15274_v16  ;;  %v2809_v54 = vld [vmem:[%s25023_s5 + $0x738] sm:$0xff]  ;;  %v15372_v16 = vcombine.high %v2793_v44, %v2801_v48 }
 0x428   :  { %6325 = vmatprep.subr.bf16.mxu1 %v15276_v56  ;;  %v15369_v56 = vcombine.low %v2792_v39, %v2800_v40  ;;  %v2896_v39 = vld [vmem:[%s25023_s5 + $0x9f0] sm:$0xff]  ;;  %v2889_v40 = vld [vmem:[%s25023_s5 + $0x9b8] sm:$0xff] }
 0x42a   :  { %6244 = vmatpush1.bf16.msra.mxu0 %v15273_v59  ;;  %v15371_v59 = vcombine.low %v2793_v44, %v2801_v48  ;;  %v2904_v44 = vld [vmem:[%s25023_s5 + $0xa30] sm:$0xff] }
 0x42b   :  { %6326 = vmatpush1.bf16.msra.mxu1 %v15275_v32  ;;  %6245 = vmatprep.subr.bf16.mxu0 %v15290_v60  ;;  %v2825_v32 = vld [vmem:[%s25023_s5 + $0x7b8] sm:$0xff]  ;;  %v15388_v60 = vcombine.high %v2809_v54, %v2817_v55  ;;  %v2912_v48 = vld [vmem:[%s25023_s5 + $0xa70] sm:$0xff] }
 0x42c   :  { %6327 = vmatprep.subr.bf16.mxu1 %v15292_v62  ;;  %v15385_v62 = vcombine.low %v2808_v50, %v2816_v25  ;;  %v15403_v11 = vcombine.low %v2825_v32, %v2833_v61  ;;  %v2905_v50 = vld [vmem:[%s25023_s5 + $0xa38] sm:$0xff] }
 0x42d   :  { %v2913_v25 = vld [vmem:[%s25023_s5 + $0xa78] sm:$0xff] }
 0x42e   :  { %6246 = vmatpush1.bf16.msra.mxu0 %v15289_v3  ;;  %v15387_v3 = vcombine.low %v2809_v54, %v2817_v55  ;;  %v2928_v55 = vld [vmem:[%s25023_s5 + $0xaf0] sm:$0xff] }
 0x42f   :  { %6328 = vmatpush1.bf16.msra.mxu1 %v15291_v8  ;;  %6247 = vmatprep.subr.bf16.mxu0 %v15306_v9  ;;  %v2841_v8 = vld [vmem:[%s25023_s5 + $0x838] sm:$0xff]  ;;  %v15404_v9 = vcombine.high %v2825_v32, %v2833_v61  ;;  %v15483_v32 = vcombine.low %v2905_v50, %v2913_v25  ;;  %v2944_v61 = vld [vmem:[%s25023_s5 + $0xb70] sm:$0xff] }
 0x430   :  { %6329 = vmatprep.subr.bf16.mxu1 %v15308_v46  ;;  %v15401_v46 = vcombine.low %v2824_v57, %v2832_v58  ;;  %v15420_v15 = vcombine.high %v2841_v8, %v2849_v10  ;;  %v2921_v57 = vld [vmem:[%s25023_s5 + $0xab8] sm:$0xff] }
 0x431   :  { %v2929_v58 = vld [vmem:[%s25023_s5 + $0xaf8] sm:$0xff] }
 0x432   :  { %6248 = vmatpush1.bf16.msra.mxu0 %v15305_v13  ;;  %v2856_v13 = vld [vmem:[%s25023_s5 + $0x8b0] sm:$0xff] }
 0x433   :  { %6330 = vmatpush1.bf16.msra.mxu1 %v15307_v17  ;;  %6249 = vmatprep.subr.bf16.mxu0 %v15322_v19  ;;  %v2857_v17 = vld [vmem:[%s25023_s5 + $0x8b8] sm:$0xff]  ;;  %v15434_v30 = vcombine.high %v2856_v13, %v2864_v14  ;;  %v15433_v35 = vcombine.low %v2856_v13, %v2864_v14 }
 0x434   :  { %6331 = vmatprep.subr.bf16.mxu1 %v15324_v21  ;;  %v2865_v19 = vld [vmem:[%s25023_s5 + $0x8f8] sm:$0xff]  ;;  %v2872_v21 = vld [vmem:[%s25023_s5 + $0x930] sm:$0xff] }
 0x435   :  { %v15436_v31 = vcombine.high %v2857_v17, %v2865_v19  ;;  %v15435_v37 = vcombine.low %v2857_v17, %v2865_v19  ;;  %v2953_v14 = vld [vmem:[%s25023_s5 + $0xbb8] sm:$0xff] }
 0x436   :  { %6250 = vmatpush1.bf16.msra.mxu0 %v15321_v29  ;;  %v15419_v29 = vcombine.low %v2841_v8, %v2849_v10 }
 0x437   :  { %6332 = vmatpush1.bf16.msra.mxu1 %v15323_v33  ;;  %6251 = vmatprep.subr.bf16.mxu0 %v15338_v34  ;;  %v2873_v33 = vld [vmem:[%s25023_s5 + $0x938] sm:$0xff] }
 0x438   :  { %6333 = vmatprep.subr.bf16.mxu1 %v15340_v36  ;;  %v2881_v34 = vld [vmem:[%s25023_s5 + $0x978] sm:$0xff]  ;;  %v2888_v36 = vld [vmem:[%s25023_s5 + $0x9b0] sm:$0xff] }
 0x43a   :  { %6252 = vmatpush1.bf16.msra.mxu0 %v15337_v38  ;;  %v15450_v38 = vcombine.high %v2872_v21, %v2880_v28 }
 0x43b   :  { %6334 = vmatpush1.bf16.msra.mxu1 %v15339_v42  ;;  %6253 = vmatprep.subr.bf16.mxu0 %v15354_v43  ;;  %v2897_v42 = vld [vmem:[%s25023_s5 + $0x9f8] sm:$0xff]  ;;  %v15449_v43 = vcombine.low %v2872_v21, %v2880_v28 }
 0x43c   :  { %6335 = vmatprep.subr.bf16.mxu1 %v15356_v45  ;;  %v15466_v45 = vcombine.high %v2888_v36, %v2896_v39  ;;  %v15467_v54 = vcombine.low %v2889_v40, %v2897_v42 }
 0x43e   :  { %6254 = vmatpush1.bf16.msra.mxu0 %v15353_v49  ;;  %v15468_v49 = vcombine.high %v2889_v40, %v2897_v42 }
 0x43f   :  { %6336 = vmatpush1.bf16.msra.mxu1 %v15355_v51  ;;  %6255 = vmatprep.subr.bf16.mxu0 %v15370_v52  ;;  %v15465_v51 = vcombine.low %v2888_v36, %v2896_v39  ;;  %v2920_v52 = vld [vmem:[%s25023_s5 + $0xab0] sm:$0xff]  ;;  %v2969_v36 = vld [vmem:[%s25023_s5 + $0xc38] sm:$0xff] }
 0x440   :  { %6337 = vmatprep.subr.bf16.mxu1 %v15372_v16  ;;  %v15482_v16 = vcombine.high %v2904_v44, %v2912_v48  ;;  %v2984_v39 = vld [vmem:[%s25023_s5 + $0xcb0] sm:$0xff] }
 0x442   :  { %6256 = vmatpush1.bf16.msra.mxu0 %v15369_v56  ;;  %v15484_v56 = vcombine.high %v2905_v50, %v2913_v25 }
 0x443   :  { %6338 = vmatpush1.bf16.msra.mxu1 %v15371_v59  ;;  %6257 = vmatprep.subr.bf16.mxu0 %v15386_v22  ;;  %v15481_v59 = vcombine.low %v2904_v44, %v2912_v48  ;;  %v2936_v22 = vld [vmem:[%s25023_s5 + $0xb30] sm:$0xff]  ;;  %v2985_v44 = vld [vmem:[%s25023_s5 + $0xcb8] sm:$0xff] }
 0x444   :  { %6339 = vmatprep.subr.bf16.mxu1 %v15388_v60  ;;  %v15498_v60 = vcombine.high %v2920_v52, %v2928_v55  ;;  %v15514_v8 = vcombine.high %v2936_v22, %v2944_v61  ;;  %v3000_v48 = vld [vmem:[%s25023_s5 + $0xd30] sm:$0xff] }
 0x446   :  { %6258 = vmatpush1.bf16.msra.mxu0 %v15385_v62  ;;  %v15500_v62 = vcombine.high %v2921_v57, %v2929_v58 }
 0x447   :  { %6340 = vmatpush1.bf16.msra.mxu1 %v15387_v3  ;;  %6259 = vmatprep.subr.bf16.mxu0 %v15402_v7  ;;  %v15497_v3 = vcombine.low %v2920_v52, %v2928_v55  ;;  %v15499_v7 = vcombine.low %v2921_v57, %v2929_v58  ;;  %v3016_v55 = vld [vmem:[%s25023_s5 + $0xdb0] sm:$0xff] }
 0x448   :  { %6341 = vmatprep.subr.bf16.mxu1 %v15404_v9  ;;  %v2952_v9 = vld [vmem:[%s25023_s5 + $0xbb0] sm:$0xff] }
 0x44a   :  { %6260 = vmatpush1.bf16.msra.mxu0 %v15401_v46  ;;  %v15516_v46 = vcombine.high %v2937_v1, %v2945_v2 }
 0x44b   :  { %6342 = vmatpush1.bf16.msra.mxu1 %v15403_v11  ;;  %6270 = vmatprep.subr.bf16.mxu0 %v15418_v12  ;;  %v2960_v11 = vld [vmem:[%s25023_s5 + $0xbf0] sm:$0xff] }
 0x44c   :  { %6352 = vmatprep.subr.bf16.mxu1 %v15420_v15  ;;  %v2961_v15 = vld [vmem:[%s25023_s5 + $0xbf8] sm:$0xff] }
 0x44d   :  { %6262 = vmatmul.mubr.bf16.vlgmr.msra.gmra.mrb[20].mxu0 %v20351_v47  ;;  %v15531_v40 = vcombine.low %v2953_v14, %v2961_v15 }
 0x44e   :  { %6344 = vmatmul.mubr.bf16.vlgmr.msra.gmra.mrb[20].mxu1 %v20351_v47  ;;  %6271 = vmatpush1.bf16.msra.mxu0 %v15417_v20  ;;  %v15452_v47 = vcombine.high %v2873_v33, %v2881_v34  ;;  %v15513_v20 = vcombine.low %v2936_v22, %v2944_v61  ;;  %v3032_v61 = vld [vmem:[%s25023_s5 + $0xe30] sm:$0xff] }
 0x44f   :  { %15674 = vmatprep.mubr.msk.bf16.mxu0 %vm2389_vm1, %v20367_v53  ;;  %6353 = vmatpush1.bf16.msra.mxu1 %v15419_v29  ;;  %v15515_v29 = vcombine.low %v2937_v1, %v2945_v2 }
 0x450   :  { %15676 = vmatprep.mubr.msk.bf16.mxu1 %vm2389_vm1, %v20367_v53  ;;  %6272 = vmatprep.subr.bf16.mxu0 %v15434_v30  ;;  %v15451_v53 = vcombine.low %v2873_v33, %v2881_v34  ;;  %v15530_v30 = vcombine.high %v2952_v9, %v2960_v11  ;;  %v15532_v33 = vcombine.high %v2953_v14, %v2961_v15  ;;  %v2968_v34 = vld [vmem:[%s25023_s5 + $0xc30] sm:$0xff] }
 0x451   :  { %6354 = vmatprep.subr.bf16.mxu1 %v15436_v31 }
 0x452   :  { %6273 = vmatpush1.bf16.msra.mxu0 %v15433_v35  ;;  %v2976_v35 = vld [vmem:[%s25023_s5 + $0xc70] sm:$0xff] }
 0x453   :  { %6355 = vmatpush1.bf16.msra.mxu1 %v15435_v37  ;;  %6274 = vmatprep.subr.bf16.mxu0 %v15450_v38  ;;  %v2977_v37 = vld [vmem:[%s25023_s5 + $0xc78] sm:$0xff]  ;;  %v15529_v38 = vcombine.low %v2952_v9, %v2960_v11  ;;  %v15546_v42 = vcombine.high %v2968_v34, %v2976_v35  ;;  %v3056_v11 = vld [vmem:[%s25023_s5 + $0xef0] sm:$0xff] }
 0x454   :  { %6356 = vmatprep.subr.bf16.mxu1 %v15452_v47  ;;  %v2992_v47 = vld [vmem:[%s25023_s5 + $0xcf0] sm:$0xff]  ;;  %v15547_v50 = vcombine.low %v2969_v36, %v2977_v37 }
 0x455   :  { %v15562_v25 = vcombine.high %v2984_v39, %v2992_v47 }
 0x456   :  { %6275 = vmatpush1.bf16.msra.mxu0 %v15449_v43  ;;  %v15548_v43 = vcombine.high %v2969_v36, %v2977_v37  ;;  %v21719_v36 = vsub.s32 5, %v19904_v23 }
 0x457   :  { %6357 = vmatpush1.bf16.msra.mxu1 %v15451_v53  ;;  %6276 = vmatprep.subr.bf16.mxu0 %v15466_v45  ;;  %v2993_v53 = vld [vmem:[%s25023_s5 + $0xcf8] sm:$0xff]  ;;  %v15545_v45 = vcombine.low %v2968_v34, %v2976_v35  ;;  %v21716_v35 = vld [vmem:[%s25026_s6] sm:$0xff] }
 0x458   :  { %6358 = vmatprep.subr.bf16.mxu1 %v15468_v49  ;;  %v3008_v49 = vld [vmem:[%s25023_s5 + $0xd70] sm:$0xff]  ;;  %v15564_v52 = vcombine.high %v2985_v44, %v2993_v53  ;;  %v15563_v57 = vcombine.low %v2985_v44, %v2993_v53  ;;  %v3065_v34 = vld [vmem:[%s25023_s5 + $0xf38] sm:$0xff]  ;;  %v3093_v44 = vrot.slane %v21716_v35, %v19915_v26 }
 0x459   :  { %v15578_v58 = vcombine.high %v3000_v48, %v3008_v49  ;;  %v3081_v53 = vld [vmem:[%s25023_s5 + $0xfb8] sm:$0x33] }
 0x45a   :  { %6277 = vmatpush1.bf16.msra.mxu0 %v15465_v51  ;;  %v3001_v51 = vld [vmem:[%s25023_s5 + $0xd38] sm:$0xff] }
 0x45b   :  { %6359 = vmatpush1.bf16.msra.mxu1 %v15467_v54  ;;  %6278 = vmatprep.subr.bf16.mxu0 %v15482_v16  ;;  %v3009_v54 = vld [vmem:[%s25023_s5 + $0xd78] sm:$0xff]  ;;  %v15561_v16 = vcombine.low %v2984_v39, %v2992_v47 }
 0x45c   :  { %6360 = vmatprep.subr.bf16.mxu1 %v15484_v56  ;;  %v3024_v56 = vld [vmem:[%s25023_s5 + $0xdf0] sm:$0xff]  ;;  %v15580_v22 = vcombine.high %v3001_v51, %v3009_v54  ;;  %v15579_v1 = vcombine.low %v3001_v51, %v3009_v54  ;;  %v15660_v51 = vcombine.high %v3081_v53, %v3081_v53  ;;  %v16915_v54 = vadd.f32 %v21222_v4, %v3093_v44  ;;  %v17586_v4 = vld [vmem:[%s25025_s7 + $0x40] sm:$0xff]   ;;  %v17615_v44 = vld [vmem:[%s25025_s7 + $0x178] sm:$0xff]  }
 0x45d   :  { %v15594_v2 = vcombine.high %v3016_v55, %v3024_v56  ;;  %v15593_v9 = vcombine.low %v3016_v55, %v3024_v56  ;;  %v17587_v56 = vld [vmem:[%s25025_s7 + $0x140] sm:$0xff]  }
 0x45e   :  { %6279 = vmatpush1.bf16.msra.mxu0 %v15481_v59  ;;  %v3017_v59 = vld [vmem:[%s25023_s5 + $0xdb8] sm:$0xff] }
 0x45f   :  { %6361 = vmatpush1.bf16.msra.mxu1 %v15483_v32  ;;  %6280 = vmatprep.subr.bf16.mxu0 %v15498_v60  ;;  %v3025_v32 = vld [vmem:[%s25023_s5 + $0xdf8] sm:$0xff]  ;;  %v15577_v60 = vcombine.low %v3000_v48, %v3008_v49 }
 0x460   :  { %v21615_v10 = vpop.f32.mrb[12].mxu0  ;;  %6362 = vmatprep.subr.bf16.mxu1 %v15500_v62  ;;  %v3040_v62 = vld [vmem:[%s25023_s5 + $0xe70] sm:$0xff]  ;;  %v15595_v14 = vcombine.low %v3017_v59, %v3025_v32 }
 0x461   :  { %v21620_v12 = vpop.f32.mrb[12].mxu1  ;;  %v21622_v13 = vpop.f32.mrb[13].mxu0  ;;  %v15610_v15 = vcombine.high %v3032_v61, %v3040_v62 }
 0x462   :  { %v21630_v17 = vpop.f32.mrb[13].mxu1  ;;  %v5980_v19 = vpop.f32.mrb[14].mxu0  ;;  %6281 = vmatpush1.bf16.msra.mxu0 %v15497_v3  ;;  %v3033_v3 = vld [vmem:[%s25023_s5 + $0xe38] sm:$0xff] }
 0x463   :  { %v6062_v21 = vpop.f32.mrb[14].mxu1  ;;  %6363 = vmatpush1.bf16.msra.mxu1 %v15499_v7  ;;  %v5981_v28 = vpop.f32.mrb[15].mxu0  ;;  %6282 = vmatprep.subr.bf16.mxu0 %v15514_v8  ;;  %v15596_v7 = vcombine.high %v3017_v59, %v3025_v32  ;;  %v3041_v8 = vld [vmem:[%s25023_s5 + $0xe78] sm:$0xff]  ;;  %v17589_v59 = vld [vmem:[%s25025_s7 + $0x100] sm:$0xff]   ;;  %v17590_v32 = vld [vmem:[%s25025_s7 + $0x48] sm:$0xff]  }
 0x464   :  { %v6063_v31 = vpop.f32.mrb[15].mxu1  ;;  %6364 = vmatprep.subr.bf16.mxu1 %v15516_v46  ;;  %v3048_v46 = vld [vmem:[%s25023_s5 + $0xeb0] sm:$0xff]  ;;  %v3049_v19 = vld [vmem:[%s25023_s5 + $0xeb8] sm:$0xff]  ;;  %v15609_v28 = vcombine.low %v3032_v61, %v3040_v62  ;;  %v17591_v61 = vld [vmem:[%s25025_s7 + $0x148] sm:$0xff]  }
 0x465   :  { %v3057_v21 = vld [vmem:[%s25023_s5 + $0xef8] sm:$0xff]  ;;  %v15611_v31 = vcombine.low %v3033_v3, %v3041_v8  ;;  %v15625_v39 = vcombine.low %v3048_v46, %v3056_v11 }
 0x466   :  { %6283 = vmatpush1.bf16.msra.mxu0 %v15513_v20  ;;  %v15612_v20 = vcombine.high %v3033_v3, %v3041_v8  ;;  %v15628_v37 = vcombine.high %v3049_v19, %v3057_v21  ;;  %v15627_v47 = vcombine.low %v3049_v19, %v3057_v21  ;;  %v17595_v3 = vld [vmem:[%s25025_s7 + $0x150] sm:$0xff]   ;;  %v17602_v19 = vld [vmem:[%s25025_s7 + $0x60] sm:$0xff]   ;;  %v21800_v21 = vsub.s32 4, %v19904_v23 }
 0x467   :  { %6365 = vmatpush1.bf16.msra.mxu1 %v15515_v29  ;;  %6284 = vmatprep.subr.bf16.mxu0 %v15530_v30  ;;  %v3064_v29 = vld [vmem:[%s25023_s5 + $0xf30] sm:$0xff] }
 0x468   :  { %6366 = vmatprep.subr.bf16.mxu1 %v15532_v33  ;;  %v3072_v30 = vld [vmem:[%s25023_s5 + $0xf70] sm:$0xff]  ;;  %v15626_v33 = vcombine.high %v3048_v46, %v3056_v11  ;;  %v17598_v46 = vld [vmem:[%s25025_s7 + $0x58] sm:$0xff]  }
 0x469   :  { %v15641_v48 = vcombine.low %v3064_v29, %v3072_v30  ;;  %v17596_v8 = vld [vmem:[%s25025_s7 + $0x10] sm:$0xff]   ;;  %v17601_v11 = vld [vmem:[%s25025_s7 + $0x118] sm:$0xff]  }
 0x46a   :  { %6285 = vmatpush1.bf16.msra.mxu0 %v15529_v38  ;;  %v3073_v38 = vld [vmem:[%s25023_s5 + $0xf78] sm:$0xff] }
 0x46b   :  { %6367 = vmatpush1.bf16.msra.mxu1 %v15531_v40  ;;  %6286 = vmatprep.subr.bf16.mxu0 %v15546_v42  ;;  %v15642_v40 = vcombine.high %v3064_v29, %v3072_v30  ;;  %v15644_v42 = vcombine.high %v3065_v34, %v3073_v38  ;;  %v15643_v49 = vcombine.low %v3065_v34, %v3073_v38  ;;  %v17607_v29 = vld [vmem:[%s25025_s7 + $0x168] sm:$0xff]  }
 0x46c   :  { %6368 = vmatprep.subr.bf16.mxu1 %v15548_v43  ;;  %v3080_v43 = vld [vmem:[%s25023_s5 + $0xfb0] sm:$0x33]  ;;  %v17606_v30 = vld [vmem:[%s25025_s7 + $0x68] sm:$0xff]   ;;  %v3089_v38 = vrot.slane %v21716_v35, %v19907_v24 }
 0x46d   :  { %v17608_v34 = vld [vmem:[%s25025_s7 + $0x28] sm:$0xff]  }
 0x46e   :  { %6287 = vmatpush1.bf16.msra.mxu0 %v15545_v45  ;;  %v3109_v45 = vrot.slane %v21716_v35, %v21719_v36 }
 0x46f   :  { %6369 = vmatpush1.bf16.msra.mxu1 %v15547_v50  ;;  %6288 = vmatprep.subr.bf16.mxu0 %v15562_v25  ;;  %v15658_v50 = vcombine.high %v3080_v43, %v3080_v43  ;;  %v15657_v25 = vcombine.low %v3080_v43, %v3080_v43  ;;  %v17612_v43 = vld [vmem:[%s25025_s7 + $0x30] sm:$0xff]  }
 0x470   :  { %6370 = vmatprep.subr.bf16.mxu1 %v15564_v52  ;;  %v15659_v52 = vcombine.low %v3081_v53, %v3081_v53  ;;  %v16914_v53 = vadd.f32 %v21212_v63, %v3089_v38  ;;  %v17633_v63 = vld [vmem:[%s25025_s7 + $0x240] sm:$0xff]  }
 0x471   :  { %v5726_v55 = vsel %vm2393_vm2, %v15657_v25, 0 }
 0x472   :  { %6289 = vmatpush1.bf16.msra.mxu0 %v15561_v16  ;;  %v16919_v16 = vadd.f32 %v21622_v13, %v3109_v45  ;;  %v17614_v45 = vld [vmem:[%s25025_s7 + $0x78] sm:$0xff]   ;;  %v6393_v25 = vmax.f32 %v16914_v53, 0.0  ;;  %v17640_v53 = vld [vmem:[%s25025_s7 + $0x1c8] sm:$0xff]  }
 0x473   :  { %6371 = vmatpush1.bf16.msra.mxu1 %v15563_v57  ;;  %6290 = vmatprep.subr.bf16.mxu0 %v15578_v58  ;;  %v5732_v57 = vsel %vm2393_vm2, %v15659_v52, 0  ;;  %v6394_v58 = vmax.f32 %v16915_v54, 0.0  ;;  %v17635_v52 = vld [vmem:[%s25025_s7 + $0x200] sm:$0xff]  }
 0x474   :  { %6372 = vmatprep.subr.bf16.mxu1 %v15580_v22  ;;  %v6398_v13 = vmax.f32 %v16919_v16, 0.0  ;;  %v17588_v22 = vld [vmem:[%s25025_s7] sm:$0xff]  }
 0x475   :  { %v17619_v16 = vld [vmem:[%s25025_s7 + $0x80] sm:$0xff]  }
 0x476   :  { %6291 = vmatpush1.bf16.msra.mxu0 %v15577_v60  ;;  %v6410_v60 = vpack.c.bf16 %v6394_v58, %v6394_v58  ;;  %v6414_v62 = vpack.c.bf16 %v6398_v13, %v6398_v13  ;;  %v17639_v58 = vld [vmem:[%s25025_s7 + $0x208] sm:$0xff]  }
 0x477   :  { %6373 = vmatpush1.bf16.msra.mxu1 %v15579_v1  ;;  %6292 = vmatprep.subr.bf16.mxu0 %v15594_v2  ;;  %v17593_v1 = vld [vmem:[%s25025_s7 + $0x108] sm:$0xff]  }
 0x478   :  { %6374 = vmatprep.subr.bf16.mxu1 %v15596_v7  ;;  %v17592_v2 = vld [vmem:[%s25025_s7 + $0x8] sm:$0xff]   ;;  %v17597_v7 = vld [vmem:[%s25025_s7 + $0x110] sm:$0xff]  }
 0x479   :  { %v17621_v13 = vld [vmem:[%s25025_s7 + $0x88] sm:$0xff]  }
 0x47a   :  { %6293 = vmatpush1.bf16.msra.mxu0 %v15593_v9  ;;  %v17599_v9 = vld [vmem:[%s25025_s7 + $0x158] sm:$0xff]  }
 0x47b   :  { %6375 = vmatpush1.bf16.msra.mxu1 %v15595_v14  ;;  %6294 = vmatprep.subr.bf16.mxu0 %v15610_v15  ;;  %v17600_v14 = vld [vmem:[%s25025_s7 + $0x18] sm:$0xff]   ;;  %v17603_v15 = vld [vmem:[%s25025_s7 + $0x160] sm:$0xff]  }
 0x47c   :  { %6376 = vmatprep.subr.bf16.mxu1 %v15612_v20  ;;  %v17605_v20 = vld [vmem:[%s25025_s7 + $0x120] sm:$0xff]  }
 0x47e   :  { %6295 = vmatpush1.bf16.msra.mxu0 %v15609_v28  ;;  %v17604_v28 = vld [vmem:[%s25025_s7 + $0x20] sm:$0xff]  }
 0x47f   :  { %6377 = vmatpush1.bf16.msra.mxu1 %v15611_v31  ;;  %6296 = vmatprep.subr.bf16.mxu0 %v15626_v33  ;;  %v17609_v31 = vld [vmem:[%s25025_s7 + $0x128] sm:$0xff]   ;;  %v3105_v33 = vrot.slane %v21716_v35, %v21800_v21 }
 0x480   :  { %6378 = vmatprep.subr.bf16.mxu1 %v15628_v37  ;;  %v17611_v37 = vld [vmem:[%s25025_s7 + $0x170] sm:$0xff]  }
 0x482   :  { %6297 = vmatpush1.bf16.msra.mxu0 %v15625_v39  ;;  %v17610_v39 = vld [vmem:[%s25025_s7 + $0x70] sm:$0xff]  }
 0x483   :  { %6379 = vmatpush1.bf16.msra.mxu1 %v15627_v47  ;;  %6298 = vmatprep.subr.bf16.mxu0 %v15642_v40  ;;  %v3101_v47 = vrot.slane %v21716_v35, %v19918_v27  ;;  %v17613_v40 = vld [vmem:[%s25025_s7 + $0x130] sm:$0xff]  }
 0x484   :  { %6380 = vmatprep.subr.bf16.mxu1 %v15644_v42  ;;  %v16918_v42 = vadd.f32 %v21615_v10, %v3105_v33  ;;  %v17617_v10 = vld [vmem:[%s25025_s7 + $0x138] sm:$0xff]  }
 0x485   :  { %v17661_v33 = vld [vmem:[%s25025_s7 + $0x278] sm:$0xff]  }
 0x486   :  { %6299 = vmatpush1.bf16.msra.mxu0 %v15641_v48  ;;  %v16917_v48 = vadd.f32 %v21224_v6, %v3101_v47  ;;  %v17618_v6 = vld [vmem:[%s25025_s7 + $0xc0] sm:$0xff]   ;;  %v17634_v47 = vld [vmem:[%s25025_s7 + $0xb8] sm:$0xff]  }
 0x487   :  { %6381 = vmatpush1.bf16.msra.mxu1 %v15643_v49  ;;  %15673 = vmatprep.subr.msk.bf16.mxu0 %vm2393_vm2, %v15658_v50  ;;  %v6397_v49 = vmax.f32 %v16918_v42, 0.0  ;;  %v17616_v50 = vld [vmem:[%s25025_s7 + $0x38] sm:$0xff]  }
 0x488   :  { %15675 = vmatprep.subr.msk.bf16.mxu1 %vm2393_vm2, %v15660_v51  ;;  %v6396_v51 = vmax.f32 %v16917_v48, 0.0  ;;  %v17642_v48 = vld [vmem:[%s25025_s7 + $0x188] sm:$0xff]  }
 0x489   :  { %v6413_v54 = vpack.c.bf16 %v6397_v49, %v6397_v49  ;;  %v17646_v49 = vld [vmem:[%s25025_s7 + $0x190] sm:$0xff]  }
 0x48a   :  { %6301 = vmatpush1.bf16.msra.mxu0 %v5726_v55  ;;  %v6409_v55 = vpack.c.bf16 %v6393_v25, %v6393_v25  ;;  %v17652_v25 = vld [vmem:[%s25025_s7 + $0x1e0] sm:$0xff]  }
 0x48b   :  { %6383 = vmatpush1.bf16.msra.mxu1 %v5732_v57  ;;  %16752 = vmatprep.subr.bf16.mxu0 %v17587_v56  ;;  %v17620_v56 = vld [vmem:[%s25025_s7 + $0xc8] sm:$0xff]  }
 0x48c   :  { %16708 = vmatprep.subr.bf16.mxu1 %v17586_v4  ;;  %v17637_v57 = vld [vmem:[%s25025_s7 + $0x248] sm:$0xff]   ;;  %v6412_v4 = vpack.c.bf16 %v6396_v51, %v6396_v51  ;;  %v17654_v51 = vld [vmem:[%s25025_s7 + $0x1a0] sm:$0xff]  }
 0x48d   :  { %6303 = vmatmul.mubr.bf16.vlgmr.msra.gmra.mrb[20].mxu0 %v20556_v5 }
 0x48e   :  { %6385 = vmatmul.mubr.bf16.vlgmr.msra.gmra.mrb[20].mxu1 %v20556_v5  ;;  %16753 = vmatpush3.bf16.msra.mxu0 %v17589_v59  ;;  %v17594_v5 = vld [vmem:[%s25025_s7 + $0x50] sm:$0xff]  }
 0x48f   :  { %16709 = vmatpush3.bf16.msra.mxu1 %v17588_v22  ;;  %7468 = vmatprep.mubr.bf16.mxu1 %v6410_v60  ;;  %v17641_v59 = vld [vmem:[%s25025_s7 + $0x250] sm:$0xff]  }
 0x490   :  { %7548 = vmatprep.mubr.bf16.mxu0 %v6414_v62  ;;  %16710 = vmatprep.subr.bf16.mxu1 %v17590_v32  ;;  %v17622_v22 = vld [vmem:[%s25025_s7 + $0xd0] sm:$0xff]   ;;  %v17624_v62 = vld [vmem:[%s25025_s7 + $0xd8] sm:$0xff]  }
 0x491   :  { %16754 = vmatprep.subr.bf16.mxu0 %v17591_v61  ;;  %v17643_v32 = vld [vmem:[%s25025_s7 + $0x210] sm:$0xff]   ;;  %v17645_v61 = vld [vmem:[%s25025_s7 + $0x258] sm:$0xff]  }
 0x492   :  { %16755 = vmatpush3.bf16.msra.mxu0 %v17593_v1  ;;  %v17623_v60 = vld [vmem:[%s25025_s7 + $0x90] sm:$0xff]   ;;  %v17647_v1 = vld [vmem:[%s25025_s7 + $0x218] sm:$0xff]  }
 0x493   :  { %16711 = vmatpush3.bf16.msra.mxu1 %v17592_v2  ;;  %16756 = vmatprep.subr.bf16.mxu0 %v17595_v3  ;;  %v17625_v2 = vld [vmem:[%s25025_s7 + $0x98] sm:$0xff]   ;;  %v17649_v3 = vld [vmem:[%s25025_s7 + $0x260] sm:$0xff]  }
 0x494   :  { %16712 = vmatprep.subr.bf16.mxu1 %v17594_v5  ;;  %v17626_v5 = vld [vmem:[%s25025_s7 + $0xe0] sm:$0xff]  }
 0x496   :  { %16757 = vmatpush3.bf16.msra.mxu0 %v17597_v7  ;;  %v17651_v7 = vld [vmem:[%s25025_s7 + $0x220] sm:$0xff]  }
 0x497   :  { %16713 = vmatpush3.bf16.msra.mxu1 %v17596_v8  ;;  %16758 = vmatprep.subr.bf16.mxu0 %v17599_v9  ;;  %v17627_v8 = vld [vmem:[%s25025_s7 + $0xa0] sm:$0xff]   ;;  %v17653_v9 = vld [vmem:[%s25025_s7 + $0x268] sm:$0xff]  }
 0x498   :  { %16714 = vmatprep.subr.bf16.mxu1 %v17598_v46  ;;  %v17628_v46 = vld [vmem:[%s25025_s7 + $0xe8] sm:$0xff]  }
 0x49a   :  { %16759 = vmatpush3.bf16.msra.mxu0 %v17601_v11  ;;  %v21917_v11 = vsub.s32 7, %v19904_v23 }
 0x49b   :  { %16715 = vmatpush3.bf16.msra.mxu1 %v17600_v14  ;;  %16760 = vmatprep.subr.bf16.mxu0 %v17603_v15  ;;  %v17655_v14 = vld [vmem:[%s25025_s7 + $0x228] sm:$0xff]  }
 0x49c   :  { %16716 = vmatprep.subr.bf16.mxu1 %v17602_v19  ;;  %v17629_v15 = vld [vmem:[%s25025_s7 + $0xa8] sm:$0xff]   ;;  %v17657_v19 = vld [vmem:[%s25025_s7 + $0x270] sm:$0xff]  }
 0x49e   :  { %16761 = vmatpush3.bf16.msra.mxu0 %v17605_v20  ;;  %v3097_v20 = vrot.slane %v21716_v35, %v20081_v41 }
 0x49f   :  { %16717 = vmatpush3.bf16.msra.mxu1 %v17604_v28  ;;  %16762 = vmatprep.subr.bf16.mxu0 %v17607_v29  ;;  %v17630_v28 = vld [vmem:[%s25025_s7 + $0xf0] sm:$0xff]   ;;  %v3117_v29 = vrot.slane %v21716_v35, %v21917_v11 }
 0x4a0   :  { %16718 = vmatprep.subr.bf16.mxu1 %v17606_v30  ;;  %v17659_v30 = vld [vmem:[%s25025_s7 + $0x230] sm:$0xff]  }
 0x4a1   :  { %v16921_v38 = vadd.f32 %v21630_v17, %v3117_v29  ;;  %v17636_v17 = vld [vmem:[%s25025_s7 + $0x1c0] sm:$0xff]  }
 0x4a2   :  { %16763 = vmatpush3.bf16.msra.mxu0 %v17609_v31  ;;  %v17631_v31 = vld [vmem:[%s25025_s7 + $0xb0] sm:$0xff]  }
 0x4a3   :  { %16719 = vmatpush3.bf16.msra.mxu1 %v17608_v34  ;;  %16764 = vmatprep.subr.bf16.mxu0 %v17611_v37  ;;  %v16916_v34 = vadd.f32 %v21214_v0, %v3097_v20  ;;  %v17632_v37 = vld [vmem:[%s25025_s7 + $0xf8] sm:$0xff]   ;;  %v17687_v0 = vld [vmem:[%s25025_s7 + $0x340] sm:$0xff]   ;;  %v6400_v42 = vmax.f32 %v16921_v38, 0.0 }
 0x4a4   :  { %16720 = vmatprep.subr.bf16.mxu1 %v17610_v39  ;;  %v17663_v39 = vld [vmem:[%s25025_s7 + $0x238] sm:$0xff]  }
 0x4a6   :  { %16765 = vmatpush3.bf16.msra.mxu0 %v17613_v40  ;;  %v6395_v40 = vmax.f32 %v16916_v34, 0.0  ;;  %v17668_v34 = vld [vmem:[%s25025_s7 + $0x2c8] sm:$0xff]  }
 0x4a7   :  { %16721 = vmatpush3.bf16.msra.mxu1 %v17612_v43  ;;  %16766 = vmatprep.subr.bf16.mxu0 %v17615_v44  ;;  %v17638_v43 = vld [vmem:[%s25025_s7 + $0x180] sm:$0xff]  }
 0x4a8   :  { %16722 = vmatprep.subr.bf16.mxu1 %v17614_v45  ;;  %v6411_v44 = vpack.c.bf16 %v6395_v40, %v6395_v40  ;;  %v6416_v45 = vpack.c.bf16 %v6400_v42, %v6400_v42  ;;  %v17670_v40 = vld [vmem:[%s25025_s7 + $0x2d0] sm:$0xff]  }
 0x4a9   :  { %v17671_v42 = vld [vmem:[%s25025_s7 + $0x290] sm:$0xff]  }
 0x4aa   :  { %16767 = vmatpush3.bf16.msra.mxu0 %v17617_v10  ;;  %v17644_v10 = vld [vmem:[%s25025_s7 + $0x1d0] sm:$0xff]  }
 0x4ab   :  { %16723 = vmatpush3.bf16.msra.mxu1 %v17616_v50  ;;  %16796 = vmatprep.subr.bf16.mxu0 %v17633_v63  ;;  %v17648_v50 = vld [vmem:[%s25025_s7 + $0x1d8] sm:$0xff]  }
 0x4ac   :  { %16730 = vmatprep.subr.bf16.mxu1 %v17618_v6  ;;  %v17650_v63 = vld [vmem:[%s25025_s7 + $0x198] sm:$0xff]   ;;  %v21988_v6 = vld [vmem:[%s25026_s6 + $0x8] sm:$0xff] }
 0x4ad   :  { %7549 = vmatmul.mubr.bf16.vlgmr.msra.gmra.mrb[24].mxu0 %v6413_v54  ;;  %v17656_v54 = vld [vmem:[%s25025_s7 + $0x1e8] sm:$0xff]  }
 0x4ae   :  { %7469 = vmatmul.mubr.bf16.vlgmr.msra.gmra.mrb[24].mxu1 %v6409_v55  ;;  %16797 = vmatpush3.bf16.msra.mxu0 %v17635_v52  ;;  %v21994_v52 = vsub.s32 6, %v19904_v23  ;;  %v3125_v55 = vrot.slane %v21988_v6, %v19915_v26 }
 0x4af   :  { %16731 = vmatpush3.bf16.msra.mxu1 %v17619_v16  ;;  %7508 = vmatprep.mubr.bf16.mxu1 %v6412_v4  ;;  %v3121_v16 = vrot.slane %v21988_v6, %v19907_v24  ;;  %v17660_v4 = vld [vmem:[%s25025_s7 + $0x1f0] sm:$0xff]  }
 0x4b0   :  { %16732 = vmatprep.subr.bf16.mxu1 %v17620_v56  ;;  %16798 = vmatprep.subr.bf16.mxu0 %v17637_v57  ;;  %v17658_v56 = vld [vmem:[%s25025_s7 + $0x1a8] sm:$0xff]   ;;  %v3113_v23 = vrot.slane %v21716_v35, %v21994_v52 }
 0x4b2   :  { %16799 = vmatpush3.bf16.msra.mxu0 %v17639_v58 }
 0x4b3   :  { %16733 = vmatpush3.bf16.msra.mxu1 %v17621_v13  ;;  %16800 = vmatprep.subr.bf16.mxu0 %v17641_v59 }
 0x4b4   :  { %16734 = vmatprep.subr.bf16.mxu1 %v17622_v22  ;;  %v3133_v22 = vrot.slane %v21988_v6, %v19918_v27 }
 0x4b6   :  { %16801 = vmatpush3.bf16.msra.mxu0 %v17643_v32 }
 0x4b7   :  { %16735 = vmatpush3.bf16.msra.mxu1 %v17623_v60  ;;  %16802 = vmatprep.subr.bf16.mxu0 %v17645_v61 }
 0x4b8   :  { %16736 = vmatprep.subr.bf16.mxu1 %v17624_v62 }
 0x4ba   :  { %16803 = vmatpush3.bf16.msra.mxu0 %v17647_v1 }
 0x4bb   :  { %16737 = vmatpush3.bf16.msra.mxu1 %v17625_v2  ;;  %16804 = vmatprep.subr.bf16.mxu0 %v17649_v3  ;;  %v17662_v2 = vld [vmem:[%s25025_s7 + $0x1b0] sm:$0xff]   ;;  %v16920_v3 = vadd.f32 %v21620_v12, %v3113_v23  ;;  %v17690_v12 = vld [vmem:[%s25025_s7 + $0x348] sm:$0xff]   ;;  %v17709_v23 = vld [vmem:[%s25025_s7 + $0x338] sm:$0xff]  }
 0x4bc   :  { %16738 = vmatprep.subr.bf16.mxu1 %v17626_v5 }
 0x4bd   :  { %v6399_v20 = vmax.f32 %v16920_v3, 0.0  ;;  %v17695_v3 = vld [vmem:[%s25025_s7 + $0x3b8] sm:$0xff]  }
 0x4be   :  { %16805 = vmatpush3.bf16.msra.mxu0 %v17651_v7 }
 0x4bf   :  { %16739 = vmatpush3.bf16.msra.mxu1 %v17627_v8  ;;  %16806 = vmatprep.subr.bf16.mxu0 %v17653_v9  ;;  %v17664_v8 = vld [vmem:[%s25025_s7 + $0x1f8] sm:$0xff]  }
 0x4c0   :  { %16740 = vmatprep.subr.bf16.mxu1 %v17628_v46 }
 0x4c2   :  { %16807 = vmatpush3.bf16.msra.mxu0 %v17655_v14  ;;  %v17688_v14 = vld [vmem:[%s25025_s7 + $0x300] sm:$0xff]  }
 0x4c3   :  { %16741 = vmatpush3.bf16.msra.mxu1 %v17629_v15  ;;  %16808 = vmatprep.subr.bf16.mxu0 %v17657_v19  ;;  %v17665_v19 = vld [vmem:[%s25025_s7 + $0x1b8] sm:$0xff]  }
 0x4c4   :  { %16742 = vmatprep.subr.bf16.mxu1 %v17630_v28  ;;  %v17666_v28 = vld [vmem:[%s25025_s7 + $0x2c0] sm:$0xff]  }
 0x4c6   :  { %16809 = vmatpush3.bf16.msra.mxu0 %v17659_v30  ;;  %v17691_v30 = vld [vmem:[%s25025_s7 + $0x308] sm:$0xff]  }
 0x4c7   :  { %16743 = vmatpush3.bf16.msra.mxu1 %v17631_v31  ;;  %16810 = vmatprep.subr.bf16.mxu0 %v17661_v33  ;;  %v17667_v31 = vld [vmem:[%s25025_s7 + $0x280] sm:$0xff]   ;;  %v6415_v33 = vpack.c.bf16 %v6399_v20, %v6399_v20 }
 0x4c8   :  { %16744 = vmatprep.subr.bf16.mxu1 %v17632_v37  ;;  %v17693_v37 = vld [vmem:[%s25025_s7 + $0x350] sm:$0xff]  }
 0x4ca   :  { %16811 = vmatpush3.bf16.msra.mxu0 %v17663_v39  ;;  %v17694_v39 = vld [vmem:[%s25025_s7 + $0x310] sm:$0xff]  }
 0x4cb   :  { %16745 = vmatpush3.bf16.msra.mxu1 %v17634_v47  ;;  %16840 = vmatprep.subr.bf16.mxu0 %v17687_v0  ;;  %v17669_v47 = vld [vmem:[%s25025_s7 + $0x288] sm:$0xff]   ;;  %v17696_v0 = vld [vmem:[%s25025_s7 + $0x358] sm:$0xff]  }
 0x4cc   :  { %16774 = vmatprep.subr.bf16.mxu1 %v17636_v17  ;;  %v17697_v17 = vld [vmem:[%s25025_s7 + $0x318] sm:$0xff]  }
 0x4ce   :  { %7509 = vmatmul.mubr.bf16.vlgmr.msra.gmra.mrb[28].mxu1 %v6411_v44  ;;  %v17672_v44 = vld [vmem:[%s25025_s7 + $0x2d8] sm:$0xff]  }
 0x4cf   :  { %16775 = vmatpush3.bf16.msra.mxu1 %v17638_v43  ;;  %7588 = vmatprep.mubr.bf16.mxu1 %v6416_v45  ;;  %v17699_v43 = vld [vmem:[%s25025_s7 + $0x360] sm:$0xff]   ;;  %v17673_v45 = vld [vmem:[%s25025_s7 + $0x298] sm:$0xff]  }
 0x4d0   :  { %16776 = vmatprep.subr.bf16.mxu1 %v17640_v53  ;;  %v17700_v53 = vld [vmem:[%s25025_s7 + $0x320] sm:$0xff]  }
 0x4d3   :  { %16777 = vmatpush3.bf16.msra.mxu1 %v17642_v48  ;;  %v17702_v48 = vld [vmem:[%s25025_s7 + $0x368] sm:$0xff]  }
 0x4d4   :  { %16778 = vmatprep.subr.bf16.mxu1 %v17644_v10  ;;  %v17674_v10 = vld [vmem:[%s25025_s7 + $0x2e0] sm:$0xff]  }
 0x4d7   :  { %16779 = vmatpush3.bf16.msra.mxu1 %v17646_v49  ;;  %v17703_v49 = vld [vmem:[%s25025_s7 + $0x328] sm:$0xff]  }
 0x4d8   :  { %16780 = vmatprep.subr.bf16.mxu1 %v17648_v50  ;;  %v17675_v50 = vld [vmem:[%s25025_s7 + $0x2a0] sm:$0xff]  }
 0x4db   :  { %16781 = vmatpush3.bf16.msra.mxu1 %v17650_v63  ;;  %v17705_v63 = vld [vmem:[%s25025_s7 + $0x370] sm:$0xff]  }
 0x4dc   :  { %16782 = vmatprep.subr.bf16.mxu1 %v17652_v25  ;;  %v17676_v25 = vld [vmem:[%s25025_s7 + $0x2e8] sm:$0xff]  }
 0x4df   :  { %16783 = vmatpush3.bf16.msra.mxu1 %v17654_v51  ;;  %v17706_v51 = vld [vmem:[%s25025_s7 + $0x330] sm:$0xff]  }
 0x4e0   :  { %v6140_v57 = vpop.f32.mrb[16].mxu0  ;;  %16784 = vmatprep.subr.bf16.mxu1 %v17656_v54  ;;  %v17677_v54 = vld [vmem:[%s25025_s7 + $0x2a8] sm:$0xff]  }
 0x4e1   :  { %v16922_v58 = vadd.f32 %v6140_v57, %v3121_v16  ;;  %v22011_v13 = vpop.f32.mrb[16].mxu1  ;;  %v6142_v59 = vpop.f32.mrb[17].mxu0  ;;  %v17708_v16 = vld [vmem:[%s25025_s7 + $0x378] sm:$0xff]   ;;  %v17679_v57 = vld [vmem:[%s25025_s7 + $0x2b0] sm:$0xff]  }
 0x4e2   :  { %v16923_v32 = vadd.f32 %v6142_v59, %v3125_v55  ;;  %v6224_v60 = vpop.f32.mrb[17].mxu1  ;;  %v6144_v61 = vpop.f32.mrb[18].mxu0  ;;  %v3129_v55 = vrot.slane %v21988_v6, %v20081_v41  ;;  %v17681_v59 = vld [vmem:[%s25025_s7 + $0x2b8] sm:$0xff]  }
 0x4e3   :  { %v6401_v62 = vmax.f32 %v16922_v58, 0.0  ;;  %v6226_v1 = vpop.f32.mrb[18].mxu1  ;;  %16785 = vmatpush3.bf16.msra.mxu1 %v17658_v56  ;;  %v6145_v35 = vpop.f32.mrb[19].mxu0  ;;  %v16925_v9 = vadd.f32 %v6224_v60, %v3133_v22  ;;  %v17678_v56 = vld [vmem:[%s25025_s7 + $0x2f0] sm:$0xff]   ;;  %v17680_v58 = vld [vmem:[%s25025_s7 + $0x2f8] sm:$0xff]  }
 0x4e4   :  { %v6402_v5 = vmax.f32 %v16923_v32, 0.0  ;;  %v6227_v7 = vpop.f32.mrb[19].mxu1  ;;  %16786 = vmatprep.subr.bf16.mxu1 %v17660_v4  ;;  %v16924_v4 = vadd.f32 %v22011_v13, %v3129_v55  ;;  %v17682_v32 = vld [vmem:[%s25025_s7 + $0x380] sm:$0xff]   ;;  %v17683_v13 = vld [vmem:[%s25025_s7 + $0x388] sm:$0xff]   ;;  %v17684_v61 = vld [vmem:[%s25025_s7 + $0x390] sm:$0xff]  }
 0x4e5   :  { %v6417_v15 = vpack.c.bf16 %v6401_v62, %v6401_v62  ;;  %v6404_v29 = vmax.f32 %v16925_v9, 0.0  ;;  %v17685_v62 = vld [vmem:[%s25025_s7 + $0x398] sm:$0xff]   ;;  %v17686_v1 = vld [vmem:[%s25025_s7 + $0x3a0] sm:$0xff]   ;;  %v17689_v35 = vld [vmem:[%s25025_s7 + $0x3a8] sm:$0xff]  }
 0x4e6   :  { %v6418_v46 = vpack.c.bf16 %v6402_v5, %v6402_v5  ;;  %v6403_v22 = vmax.f32 %v16924_v4, 0.0  ;;  %v17698_v5 = vld [vmem:[%s25025_s7 + $0x3c0] sm:$0xff]   ;;  %v17701_v7 = vld [vmem:[%s25025_s7 + $0x3c8] sm:$0xff]   ;;  %v17707_v9 = vld [vmem:[%s25025_s7 + $0x3d8] sm:$0xff]  }
 0x4e7   :  { %16787 = vmatpush3.bf16.msra.mxu1 %v17662_v2  ;;  %v6420_v38 = vpack.c.bf16 %v6404_v29, %v6404_v29  ;;  %v17692_v2 = vld [vmem:[%s25025_s7 + $0x3b0] sm:$0xff]  }
 0x4e8   :  { %7628 = vmatprep.mubr.bf16.mxu0 %v6418_v46  ;;  %16788 = vmatprep.subr.bf16.mxu1 %v17664_v8  ;;  %v6419_v60 = vpack.c.bf16 %v6403_v22, %v6403_v22  ;;  %v17704_v8 = vld [vmem:[%s25025_s7 + $0x3d0] sm:$0xff]   ;;  %v17710_v46 = vld [vmem:[%s25025_s7 + $0x3e0] sm:$0xff]  }
 0x4e9   :  { %7629 = vmatmul.mubr.bf16.vlgmr.msra.gmra.mrb[28].mxu0 %v6417_v15  ;;  %v3145_v15 = vrot.slane %v21988_v6, %v21994_v52 }
 0x4ea   :  { %16841 = vmatpush3.bf16.msra.mxu0 %v17688_v14  ;;  %v3137_v14 = vrot.slane %v21988_v6, %v21800_v21 }
 0x4eb   :  { %16789 = vmatpush3.bf16.msra.mxu1 %v17665_v19  ;;  %16842 = vmatprep.subr.bf16.mxu0 %v17690_v12  ;;  %v3141_v19 = vrot.slane %v21988_v6, %v21719_v36  ;;  %v3149_v12 = vrot.slane %v21988_v6, %v21917_v11 }
 0x4ec   :  { %16818 = vmatprep.subr.bf16.mxu1 %v17666_v28 }
 0x4ee   :  { %7589 = vmatmul.mubr.bf16.vlgmr.msra.gmra.mrb[32].mxu1 %v6415_v33  ;;  %16843 = vmatpush3.bf16.msra.mxu0 %v17691_v30 }
 0x4ef   :  { %16819 = vmatpush3.bf16.msra.mxu1 %v17667_v31  ;;  %7668 = vmatprep.mubr.bf16.mxu1 %v6420_v38 }
 0x4f0   :  { %16820 = vmatprep.subr.bf16.mxu1 %v17668_v34  ;;  %16844 = vmatprep.subr.bf16.mxu0 %v17693_v37 }
 0x4f2   :  { %16845 = vmatpush3.bf16.msra.mxu0 %v17694_v39 }
 0x4f3   :  { %16821 = vmatpush3.bf16.msra.mxu1 %v17669_v47  ;;  %16846 = vmatprep.subr.bf16.mxu0 %v17696_v0 }
 0x4f4   :  { %16822 = vmatprep.subr.bf16.mxu1 %v17670_v40 }
 0x4f6   :  { %16847 = vmatpush3.bf16.msra.mxu0 %v17697_v17 }
 0x4f7   :  { %16823 = vmatpush3.bf16.msra.mxu1 %v17671_v42  ;;  %16848 = vmatprep.subr.bf16.mxu0 %v17699_v43 }
 0x4f8   :  { %16824 = vmatprep.subr.bf16.mxu1 %v17672_v44 }
 0x4fa   :  { %16849 = vmatpush3.bf16.msra.mxu0 %v17700_v53 }
 0x4fb   :  { %16825 = vmatpush3.bf16.msra.mxu1 %v17673_v45  ;;  %16850 = vmatprep.subr.bf16.mxu0 %v17702_v48 }
 0x4fc   :  { %16826 = vmatprep.subr.bf16.mxu1 %v17674_v10 }
 0x4fe   :  { %16851 = vmatpush3.bf16.msra.mxu0 %v17703_v49 }
 0x4ff   :  { %16827 = vmatpush3.bf16.msra.mxu1 %v17675_v50  ;;  %16852 = vmatprep.subr.bf16.mxu0 %v17705_v63 }
 0x500   :  { %16828 = vmatprep.subr.bf16.mxu1 %v17676_v25 }
 0x502   :  { %16853 = vmatpush3.bf16.msra.mxu0 %v17706_v51 }
 0x503   :  { %16829 = vmatpush3.bf16.msra.mxu1 %v17677_v54  ;;  %16854 = vmatprep.subr.bf16.mxu0 %v17708_v16 }
 0x504   :  { %16830 = vmatprep.subr.bf16.mxu1 %v17678_v56  ;;  %v15677_v56 = vld [vmem:[%s25027_s8] ss:$0 sm:$0xff] }
 0x506   :  { %16855 = vmatpush3.bf16.msra.mxu0 %v17709_v23 }
 0x507   :  { %16831 = vmatpush3.bf16.msra.mxu1 %v17679_v57 }
 0x508   :  { %16832 = vmatprep.subr.bf16.mxu1 %v17680_v58 }
 0x50b   :  { %16833 = vmatpush3.bf16.msra.mxu1 %v17681_v59 }
 0x50c   :  { %7716 = vmatprep.subr.bf16.mxu1 %v18997_v18 }
 0x50e   :  { %7669 = vmatmul.mubr.bf16.vlgmr.msra.gmra.mrb[36].mxu1 %v6419_v60 }
 0x50f   :  { %7717 = vmatpush1.bf16.msra.mxu1 %v17682_v32 }
 0x510   :  { %7718 = vmatprep.subr.bf16.mxu1 %v18997_v18 }
 0x513   :  { %7719 = vmatpush1.bf16.msra.mxu1 %v17683_v13 }
 0x514   :  { %7720 = vmatprep.subr.bf16.mxu1 %v18997_v18 }
 0x517   :  { %7721 = vmatpush1.bf16.msra.mxu1 %v17684_v61 }
 0x518   :  { %7722 = vmatprep.subr.bf16.mxu1 %v18997_v18 }
 0x51b   :  { %7723 = vmatpush1.bf16.msra.mxu1 %v17685_v62 }
 0x51c   :  { %7724 = vmatprep.subr.bf16.mxu1 %v18997_v18 }
 0x51f   :  { %7725 = vmatpush1.bf16.msra.mxu1 %v17686_v1 }
 0x520   :  { %7726 = vmatprep.subr.bf16.mxu1 %v18997_v18 }
 0x523   :  { %7727 = vmatpush1.bf16.msra.mxu1 %v17689_v35 }
 0x524   :  { %7728 = vmatprep.subr.bf16.mxu1 %v18997_v18 }
 0x527   :  { %7729 = vmatpush1.bf16.msra.mxu1 %v17692_v2 }
 0x528   :  { %7730 = vmatprep.subr.bf16.mxu1 %v18997_v18 }
 0x52b   :  { %7731 = vmatpush1.bf16.msra.mxu1 %v17695_v3  ;;  %v7759_v3 = vld [vmem:[%s25028_s9] sm:$0xff] }
 0x52c   :  { %7732 = vmatprep.subr.bf16.mxu1 %v18997_v18 }
 0x52f   :  { %7733 = vmatpush1.bf16.msra.mxu1 %v17698_v5  ;;  %v7767_v5 = vld [vmem:[%s25028_s9 + $0x40] sm:$0x11] }
 0x530   :  { %7734 = vmatprep.subr.bf16.mxu1 %v18997_v18 }
 0x533   :  { %7735 = vmatpush1.bf16.msra.mxu1 %v17701_v7  ;;  %v7762_v7 = vld [vmem:[%s25028_s9 + $0x18] sm:$0xff] }
 0x534   :  { %7736 = vmatprep.subr.bf16.mxu1 %v18997_v18 }
 0x537   :  { %7737 = vmatpush1.bf16.msra.mxu1 %v17704_v8 }
 0x538   :  { %7738 = vmatprep.subr.bf16.mxu1 %v18997_v18 }
 0x53b   :  { %7739 = vmatpush1.bf16.msra.mxu1 %v17707_v9  ;;  %v15805_v9 = vcombine.high %v7759_v3, %v7767_v5 }
 0x53c   :  { %7740 = vmatprep.subr.bf16.mxu1 %v18997_v18 }
 0x53d   :  { %15820 = vmatprep.subr.msk.bf16.mxu0 %vm7926_vm4, %v15805_v9  ;;  %v7773_v9 = vld [vmem:[%s25028_s9 + $0x70] sm:$0x11] }
 0x53f   :  { %7741 = vmatpush1.bf16.msra.mxu1 %v17710_v46  ;;  %v15804_v46 = vcombine.low %v7759_v3, %v7767_v5 }
 0x560   :  { %v6304_v20 = vpop.f32.mrb[20].mxu0 }
 0x561   :  { %v16926_v28 = vadd.f32 %v6304_v20, %v3137_v14  ;;  %v6386_v29 = vpop.f32.mrb[20].mxu1  ;;  %v6306_v30 = vpop.f32.mrb[21].mxu0  ;;  %v7770_v14 = vld [vmem:[%s25028_s9 + $0x58] sm:$0x11] }
 0x562   :  { %v16928_v31 = vadd.f32 %v6386_v29, %v3145_v15  ;;  %v16927_v33 = vadd.f32 %v6306_v30, %v3141_v19  ;;  %v6388_v34 = vpop.f32.mrb[21].mxu1  ;;  %v6308_v37 = vpop.f32.mrb[22].mxu0  ;;  %v15810_v20 = vcombine.low %v7762_v7, %v7770_v14  ;;  %v7928_v29 = vsel %vm7926_vm4, %v15804_v46, 0 }
 0x563   :  { %v6405_v38 = vmax.f32 %v16926_v28, 0.0  ;;  %v16929_v39 = vadd.f32 %v6388_v34, %v3149_v12  ;;  %v6390_v47 = vpop.f32.mrb[22].mxu1  ;;  %v6309_v0 = vpop.f32.mrb[23].mxu0  ;;  %v15811_v12 = vcombine.high %v7762_v7, %v7770_v14  ;;  %v7768_v34 = vld [vmem:[%s25028_s9 + $0x48] sm:$0x11] }
 0x564   :  { %v6407_v40 = vmax.f32 %v16928_v31, 0.0  ;;  %v6406_v17 = vmax.f32 %v16927_v33, 0.0  ;;  %v6391_v42 = vpop.f32.mrb[23].mxu1  ;;  %v7946_v31 = vsel %vm7926_vm4, %v15810_v20, 0  ;;  %v7760_v33 = vld [vmem:[%s25028_s9 + $0x8] sm:$0xff] }
 0x565   :  { %v6408_v43 = vmax.f32 %v16929_v39, 0.0  ;;  %v6421_v53 = vpack.c.bf16 %v6405_v38, %v6405_v38  ;;  %15826 = vmatprep.subr.msk.bf16.mxu1 %vm7926_vm4, %v15811_v12  ;;  %v7764_v37 = vld [vmem:[%s25028_s9 + $0x28] sm:$0xff]  ;;  %v15807_v39 = vcombine.high %v7760_v33, %v7768_v34  ;;  %v15806_v0 = vcombine.low %v7760_v33, %v7768_v34 }
 0x566   :  { %v6422_v44 = vpack.c.bf16 %v6406_v17, %v6406_v17  ;;  %v6423_v45 = vpack.c.bf16 %v6407_v40, %v6407_v40  ;;  %v7772_v47 = vld [vmem:[%s25028_s9 + $0x68] sm:$0x11] }
 0x567   :  { %v6424_v6 = vpack.c.bf16 %v6408_v43, %v6408_v43  ;;  %v15815_v40 = vcombine.high %v7764_v37, %v7772_v47  ;;  %v15814_v17 = vcombine.low %v7764_v37, %v7772_v47  ;;  %v17714_v14 = vld [vmem:[%s25029_s11 + $0x8] ss:$16 sps:$4 sm:$0xff]   ;;  %v17734_v33 = vld [vmem:[%s25029_s11 + $0x6c] ss:$16 sps:$4 sm:$0xff]   ;;  %v17719_v47 = vld [vmem:[%s25029_s11 + $0x24] ss:$16 sps:$4 sm:$0xff]  }
 0x568   :  { %7708 = vmatprep.mubr.bf16.mxu0 %v6422_v44  ;;  %v17720_v20 = vld [vmem:[%s25029_s11 + $0x28] ss:$16 sps:$4 sm:$0xff]  }
 0x569   :  { %15803 = vmatprep.mubr.msk.bf16.mxu1 %vm7432_vm3, %v6424_v6  ;;  %7709 = vmatmul.mubr.bf16.vlgmr.msra.gmra.mrb[32].mxu0 %v6421_v53  ;;  %v17732_v37 = vld [vmem:[%s25029_s11 + $0x68] ss:$16 sps:$4 sm:$0xff]  }
 0x56a   :  { %7749 = vmatmul.mubr.bf16.vlgmr.msra.gmra.mrb[40].mxu1 %v6423_v45  ;;  %8007 = vmatprep.mubr.bf16.mxu0 %v18997_v18 }
 0x56b   :  { %8130 = vmatprep.mubr.bf16.mxu1 %v18997_v18  ;;  %7976 = vmatpush1.bf16.msra.mxu0 %v7928_v29 }
 0x56c   :  { %8099 = vmatpush1.bf16.msra.mxu1 %v7946_v31  ;;  %15822 = vmatprep.subr.msk.bf16.mxu0 %vm7926_vm4, %v15807_v39  ;;  %v17726_v31 = vld [vmem:[%s25029_s11 + $0x48] ss:$16 sps:$4 sm:$0xff]   ;;  %v17711_v39 = vld [vmem:[%s25029_s11] ss:$16 sps:$4 sm:$0xff]  }
 0x56d   :  { %15830 = vmatprep.subr.msk.bf16.mxu1 %vm7926_vm4, %v15815_v40  ;;  %v17717_v40 = vld [vmem:[%s25029_s11 + $0x20] ss:$16 sps:$4 sm:$0xff]  }
 0x580   :  { %v16768_v48 = vpop.f32.mrb[24].mxu0 }
 0x581   :  { %v16724_v10 = vpop.f32.mrb[24].mxu1  ;;  %v16769_v49 = vpop.f32.mrb[25].mxu0 }
 0x582   :  { %v16725_v50 = vpop.f32.mrb[25].mxu1  ;;  %v16770_v63 = vadd.f32 %v16769_v49, %v16768_v48  ;;  %v16771_v25 = vpop.f32.mrb[26].mxu0 }
 0x583   :  { %v16726_v51 = vadd.f32 %v16725_v50, %v16724_v10  ;;  %v16727_v54 = vpop.f32.mrb[26].mxu1  ;;  %v16772_v16 = vpop.f32.mrb[27].mxu0 }
 0x584   :  { %v16728_v55 = vpop.f32.mrb[27].mxu1 }
 0x585   :  { %v7471_v4 = vadd.f32 %v16726_v51, %v15677_v56  ;;  %v7761_v56 = vld [vmem:[%s25028_s9 + $0x10] sm:$0xff] }
 0x5a1   :  { %v16746_v23 = vpop.f32.mrb[28].mxu1 }
 0x5a2   :  { %v16747_v57 = vpop.f32.mrb[29].mxu1 }
 0x5a3   :  { %v16748_v58 = vadd.f32 %v16747_v57, %v16746_v23  ;;  %v16749_v59 = vpop.f32.mrb[30].mxu1  ;;  %v7769_v23 = vld [vmem:[%s25028_s9 + $0x50] sm:$0x11]  ;;  %v7766_v57 = vld [vmem:[%s25028_s9 + $0x38] sm:$0xff] }
 0x5a4   :  { %v16750_v22 = vpop.f32.mrb[31].mxu1 }
 0x5a5   :  { %v7511_v32 = vadd.f32 %v16748_v58, %v7471_v4  ;;  %v7774_v4 = vld [vmem:[%s25028_s9 + $0x78] sm:$0x11]  ;;  %v7934_v22 = vsel %vm7926_vm4, %v15806_v0, 0 }
 0x5a6   :  { %v17738_v0 = vld [vmem:[%s25029_s11 + $0x88] ss:$16 sps:$4 sm:$0xff]  }
 0x5a7   :  { %v7551_v60 = vadd.f32 %v16770_v63, %v7511_v32  ;;  %v7958_v32 = vsel %vm7926_vm4, %v15814_v17, 0  ;;  %v17725_v17 = vld [vmem:[%s25029_s11 + $0x44] ss:$16 sps:$4 sm:$0xff]  }
 0x5bc   :  { %v16812_v13 = vpop.f32.mrb[28].mxu0 }
 0x5bd   :  { %v16813_v61 = vpop.f32.mrb[29].mxu0 }
 0x5be   :  { %v16814_v62 = vadd.f32 %v16813_v61, %v16812_v13  ;;  %v16815_v1 = vpop.f32.mrb[30].mxu0  ;;  %v15819_v13 = vcombine.high %v7766_v57, %v7774_v4  ;;  %v15808_v61 = vcombine.low %v7761_v56, %v7769_v23 }
 0x5bf   :  { %v16816_v35 = vpop.f32.mrb[31].mxu0  ;;  %v7763_v1 = vld [vmem:[%s25028_s9 + $0x20] sm:$0xff] }
 0x5c0   :  { %v7771_v35 = vld [vmem:[%s25028_s9 + $0x60] sm:$0x11]  ;;  %v7940_v3 = vsel %vm7926_vm4, %v15808_v61, 0 }
 0x5c1   :  { %v16790_v2 = vpop.f32.mrb[32].mxu1  ;;  %v15813_v7 = vcombine.high %v7763_v1, %v7771_v35  ;;  %v15812_v46 = vcombine.low %v7763_v1, %v7771_v35  ;;  %v17759_v61 = vld [vmem:[%s25029_s11 + $0x100] ss:$16 sps:$4 sm:$0xff]   ;;  %v17786_v1 = vld [vmem:[%s25029_s11 + $0x188] ss:$16 sps:$4 sm:$0xff]  }
 0x5c2   :  { %v16791_v8 = vpop.f32.mrb[33].mxu1  ;;  %v17794_v35 = vld [vmem:[%s25029_s11 + $0x1ac] ss:$16 sps:$4 sm:$0xff]  }
 0x5c3   :  { %v16792_v15 = vadd.f32 %v16791_v8, %v16790_v2  ;;  %v16793_v19 = vpop.f32.mrb[34].mxu1  ;;  %v17716_v2 = vld [vmem:[%s25029_s11 + $0xc] ss:$16 sps:$4 sm:$0xff]   ;;  %v7765_v8 = vld [vmem:[%s25028_s9 + $0x30] sm:$0xff] }
 0x5c4   :  { %v16794_v28 = vpop.f32.mrb[35].mxu1  ;;  %v7952_v19 = vsel %vm7926_vm4, %v15812_v46, 0  ;;  %v15817_v12 = vcombine.high %v7765_v8, %v7773_v9  ;;  %v15816_v29 = vcombine.low %v7765_v8, %v7773_v9  ;;  %v17779_v8 = vld [vmem:[%s25029_s11 + $0x164] ss:$16 sps:$4 sm:$0xff]   ;;  %v17777_v9 = vld [vmem:[%s25029_s11 + $0x160] ss:$16 sps:$4 sm:$0xff]  }
 0x5c5   :  { %v7591_v30 = vadd.f32 %v16792_v15, %v7551_v60  ;;  %v15809_v60 = vcombine.high %v7761_v56, %v7769_v23  ;;  %v17722_v15 = vld [vmem:[%s25029_s11 + $0x2c] ss:$16 sps:$4 sm:$0xff]   ;;  %v17768_v56 = vld [vmem:[%s25029_s11 + $0x128] ss:$16 sps:$4 sm:$0xff]   ;;  %v17785_v46 = vld [vmem:[%s25029_s11 + $0x184] ss:$16 sps:$4 sm:$0xff]  }
 0x5c6   :  { %v17728_v28 = vld [vmem:[%s25029_s11 + $0x4c] ss:$16 sps:$4 sm:$0xff]   ;;  %v7964_v34 = vsel %vm7926_vm4, %v15816_v29, 0  ;;  %v17798_v29 = vld [vmem:[%s25029_s11 + $0x1c8] ss:$16 sps:$4 sm:$0xff]  }
 0x5c7   :  { %v7631_v38 = vadd.f32 %v16814_v62, %v7591_v30  ;;  %v15818_v62 = vcombine.low %v7766_v57, %v7774_v4  ;;  %v17713_v30 = vld [vmem:[%s25029_s11 + $0x4] ss:$16 sps:$4 sm:$0xff]   ;;  %v17776_v23 = vld [vmem:[%s25029_s11 + $0x14c] ss:$16 sps:$4 sm:$0xff]   ;;  %v17747_v57 = vld [vmem:[%s25029_s11 + $0xc0] ss:$16 sps:$4 sm:$0xff]  }
 0x5c8   :  { %v17755_v4 = vld [vmem:[%s25029_s11 + $0xe4] ss:$16 sps:$4 sm:$0xff]  }
 0x5c9   :  { %v7970_v5 = vsel %vm7926_vm4, %v15818_v62, 0  ;;  %v17767_v62 = vld [vmem:[%s25029_s11 + $0x124] ss:$16 sps:$4 sm:$0xff]  }
 0x5e1   :  { %v16834_v42 = vpop.f32.mrb[36].mxu1 }
 0x5e2   :  { %v16835_v43 = vpop.f32.mrb[37].mxu1 }
 0x5e3   :  { %v16836_v44 = vadd.f32 %v16835_v43, %v16834_v42  ;;  %v16837_v53 = vpop.f32.mrb[38].mxu1  ;;  %v17744_v42 = vld [vmem:[%s25029_s11 + $0xa8] ss:$16 sps:$4 sm:$0xff]   ;;  %v17752_v43 = vld [vmem:[%s25029_s11 + $0xcc] ss:$16 sps:$4 sm:$0xff]  }
 0x5e4   :  { %v16838_v6 = vpop.f32.mrb[39].mxu1  ;;  %v17731_v53 = vld [vmem:[%s25029_s11 + $0x64] ss:$16 sps:$4 sm:$0xff]  }
 0x5e5   :  { %v7671_v45 = vadd.f32 %v16836_v44, %v7631_v38  ;;  %v17740_v38 = vld [vmem:[%s25029_s11 + $0x8c] ss:$16 sps:$4 sm:$0xff]   ;;  %v17723_v44 = vld [vmem:[%s25029_s11 + $0x40] ss:$16 sps:$4 sm:$0xff]   ;;  %v17750_v6 = vld [vmem:[%s25029_s11 + $0xc8] ss:$16 sps:$4 sm:$0xff]  }
 0x63c   :  { %v16856_v48 = vpop.f32.mrb[32].mxu0 }
 0x63d   :  { %v7750_v10 = vpop.f32.mrb[40].mxu1  ;;  %v16857_v49 = vpop.f32.mrb[33].mxu0 }
 0x63e   :  { %v16858_v50 = vadd.f32 %v16857_v49, %v16856_v48  ;;  %v7752_v63 = vpop.f32.mrb[41].mxu1  ;;  %v16859_v25 = vpop.f32.mrb[34].mxu0  ;;  %v17729_v48 = vld [vmem:[%s25029_s11 + $0x60] ss:$16 sps:$4 sm:$0xff]   ;;  %v17756_v49 = vld [vmem:[%s25029_s11 + $0xe8] ss:$16 sps:$4 sm:$0xff]  }
 0x63f   :  { %v7753_v51 = vpop.f32.mrb[42].mxu1  ;;  %v16860_v54 = vpop.f32.mrb[35].mxu0  ;;  %v17735_v63 = vld [vmem:[%s25029_s11 + $0x80] ss:$16 sps:$4 sm:$0xff]   ;;  %v17743_v25 = vld [vmem:[%s25029_s11 + $0xa4] ss:$16 sps:$4 sm:$0xff]  }
 0x640   :  { %v7711_v16 = vadd.f32 %v16858_v50, %v7671_v45  ;;  %v7754_v55 = vpop.f32.mrb[43].mxu1  ;;  %v17758_v45 = vld [vmem:[%s25029_s11 + $0xec] ss:$16 sps:$4 sm:$0xff]   ;;  %v17762_v51 = vld [vmem:[%s25029_s11 + $0x108] ss:$16 sps:$4 sm:$0xff]  }
 0x641   :  { %v17764_v50 = vld [vmem:[%s25029_s11 + $0x10c] ss:$16 sps:$4 sm:$0xff]   ;;  %v17749_v55 = vld [vmem:[%s25029_s11 + $0xc4] ss:$16 sps:$4 sm:$0xff]  }
 0x642   :  { %v7751_v58 = vadd.f32 %v7750_v10, %v7711_v16  ;;  %v17737_v10 = vld [vmem:[%s25029_s11 + $0x84] ss:$16 sps:$4 sm:$0xff]   ;;  %v17770_v54 = vld [vmem:[%s25029_s11 + $0x12c] ss:$16 sps:$4 sm:$0xff]   ;;  %v17741_v16 = vld [vmem:[%s25029_s11 + $0xa0] ss:$16 sps:$4 sm:$0xff]  }
 0x644   :  { %7757 = vst.msk [vmem:[%s25030_s18] sm:$0xff] %vm7756_vm5, %v7751_v58  ;;  %v22233_v59 = vpack.c.bf16 %v7751_v58, %v7751_v58  ;;  %v17774_v58 = vld [vmem:[%s25029_s11 + $0x148] ss:$16 sps:$4 sm:$0xff]  }
 0x646   :  { %15821 = vmatmul.mubr.msk.bf16.vlgmr.msra.gmra.mrb[36].mxu0 %vm7756_vm5, %v22233_v59  ;;  %15827 = vmatmul.mubr.msk.bf16.vlgmr.msra.gmra.mrb[44].mxu1 %vm7756_vm5, %v22233_v59 }
 0x647   :  { %8017 = vmatpush1.bf16.msra.mxu0 %v7934_v22  ;;  %8181 = vmatpush1.bf16.msra.mxu1 %v7958_v32  ;;  %v17753_v22 = vld [vmem:[%s25029_s11 + $0xe0] ss:$16 sps:$4 sm:$0xff]   ;;  %v17761_v32 = vld [vmem:[%s25029_s11 + $0x104] ss:$16 sps:$4 sm:$0xff]  }
 0x648   :  { %8048 = vmatprep.mubr.bf16.mxu0 %v18997_v18  ;;  %8212 = vmatprep.mubr.bf16.mxu1 %v18997_v18 }
 0x649   :  { %15824 = vmatprep.subr.msk.bf16.mxu0 %vm7926_vm4, %v15809_v60  ;;  %15834 = vmatprep.subr.msk.bf16.mxu1 %vm7926_vm4, %v15819_v13  ;;  %v17780_v60 = vld [vmem:[%s25029_s11 + $0x168] ss:$16 sps:$4 sm:$0xff]   ;;  %v17788_v13 = vld [vmem:[%s25029_s11 + $0x18c] ss:$16 sps:$4 sm:$0xff]  }
 0x64e   :  { %15823 = vmatmul.mubr.msk.bf16.vlgmr.msra.gmra.mrb[40].mxu0 %vm7756_vm5, %v22233_v59  ;;  %15831 = vmatmul.mubr.msk.bf16.vlgmr.msra.gmra.mrb[48].mxu1 %vm7756_vm5, %v22233_v59 }
 0x64f   :  { %8058 = vmatpush1.bf16.msra.mxu0 %v7940_v3  ;;  %8263 = vmatpush1.bf16.msra.mxu1 %v7970_v5  ;;  %v17773_v3 = vld [vmem:[%s25029_s11 + $0x144] ss:$16 sps:$4 sm:$0xff]   ;;  %v17792_v5 = vld [vmem:[%s25029_s11 + $0x1a8] ss:$16 sps:$4 sm:$0xff]  }
 0x650   :  { %8089 = vmatprep.mubr.bf16.mxu0 %v18997_v18  ;;  %8294 = vmatprep.mubr.bf16.mxu1 %v18997_v18 }
 0x651   :  { %15828 = vmatprep.subr.msk.bf16.mxu0 %vm7926_vm4, %v15813_v7  ;;  %11688 = vmatprep.subr.bf16.mxu1 %v17716_v2  ;;  %v17765_v2 = vld [vmem:[%s25029_s11 + $0x120] ss:$16 sps:$4 sm:$0xff]  }
 0x652   :  { %v17771_v7 = vld [vmem:[%s25029_s11 + $0x140] ss:$16 sps:$4 sm:$0xff]  }
 0x656   :  { %15825 = vmatmul.mubr.msk.bf16.vlgmr.msra.gmra.mrb[44].mxu0 %vm7756_vm5, %v22233_v59  ;;  %15835 = vmatmul.mubr.msk.bf16.vlgmr.msra.gmra.mrb[52].mxu1 %vm7756_vm5, %v22233_v59 }
 0x657   :  { %8140 = vmatpush1.bf16.msra.mxu0 %v7952_v19  ;;  %8171 = vmatprep.mubr.bf16.mxu0 %v18997_v18  ;;  %v17789_v19 = vld [vmem:[%s25029_s11 + $0x1a0] ss:$16 sps:$4 sm:$0xff]  }
 0x658   :  { %15832 = vmatprep.subr.msk.bf16.mxu0 %vm7926_vm4, %v15817_v12  ;;  %11689 = vmatpush1.bf16.msra.mxu1 %v17714_v14  ;;  %v17783_v14 = vld [vmem:[%s25029_s11 + $0x180] ss:$16 sps:$4 sm:$0xff]   ;;  %v17797_v12 = vld [vmem:[%s25029_s11 + $0x1c4] ss:$16 sps:$4 sm:$0xff]  }
 0x659   :  { %11690 = vmatprep.subr.bf16.mxu1 %v17722_v15  ;;  %v17791_v15 = vld [vmem:[%s25029_s11 + $0x1a4] ss:$16 sps:$4 sm:$0xff]  }
 0x65c   :  { %11691 = vmatpush1.bf16.msra.mxu1 %v17720_v20  ;;  %v17800_v20 = vld [vmem:[%s25029_s11 + $0x1cc] ss:$16 sps:$4 sm:$0xff]  }
 0x65d   :  { %11692 = vmatprep.subr.bf16.mxu1 %v17728_v28  ;;  %v17795_v28 = vld [vmem:[%s25029_s11 + $0x1c0] ss:$16 sps:$4 sm:$0xff]  }
 0x65e   :  { %15829 = vmatmul.mubr.msk.bf16.vlgmr.msra.gmra.mrb[48].mxu0 %vm7756_vm5, %v22233_v59 }
 0x65f   :  { %8222 = vmatpush1.bf16.msra.mxu0 %v7964_v34  ;;  %8253 = vmatprep.mubr.bf16.mxu0 %v18997_v18  ;;  %v17746_v18 = vld [vmem:[%s25029_s11 + $0xac] ss:$16 sps:$4 sm:$0xff]   ;;  %v17804_v34 = vld [vmem:[%s25029_s11 + $0x1e8] ss:$16 sps:$4 sm:$0xff]  }
 0x660   :  { %11360 = vmatprep.subr.bf16.mxu0 %v17713_v30  ;;  %11693 = vmatpush1.bf16.msra.mxu1 %v17726_v31  ;;  %v17803_v30 = vld [vmem:[%s25029_s11 + $0x1e4] ss:$16 sps:$4 sm:$0xff]   ;;  %v17806_v31 = vld [vmem:[%s25029_s11 + $0x1ec] ss:$16 sps:$4 sm:$0xff]  }
 0x661   :  { %11694 = vmatprep.subr.bf16.mxu1 %v17734_v33  ;;  %v17801_v33 = vld [vmem:[%s25029_s11 + $0x1e0] ss:$16 sps:$4 sm:$0xff]  }
 0x664   :  { %11695 = vmatpush1.bf16.msra.mxu1 %v17732_v37  ;;  %v17809_v37 = vld [vmem:[%s25029_s11 + $0x204] ss:$16 sps:$4 sm:$0xff]  }
 0x665   :  { %11696 = vmatprep.subr.bf16.mxu1 %v17740_v38  ;;  %v17812_v38 = vld [vmem:[%s25029_s11 + $0x20c] ss:$16 sps:$4 sm:$0xff]  }
 0x666   :  { %15833 = vmatmul.mubr.msk.bf16.vlgmr.msra.gmra.mrb[52].mxu0 %vm7756_vm5, %v22233_v59  ;;  %v17782_v59 = vld [vmem:[%s25029_s11 + $0x16c] ss:$16 sps:$4 sm:$0xff]  }
 0x667   :  { %11361 = vmatpush1.bf16.msra.mxu0 %v17711_v39  ;;  %v22480_v39 = vld [vmem:[%s25031_s10] sm:$0xff] }
 0x668   :  { %11362 = vmatprep.subr.bf16.mxu0 %v17719_v47  ;;  %11697 = vmatpush1.bf16.msra.mxu1 %v17738_v0  ;;  %v7782_v47 = vrot.slane %v22480_v39, %v19907_v24  ;;  %v7786_v0 = vrot.slane %v22480_v39, %v19915_v26 }
 0x669   :  { %11698 = vmatprep.subr.bf16.mxu1 %v17746_v18 }
 0x66b   :  { %11363 = vmatpush1.bf16.msra.mxu0 %v17717_v40 }
 0x66c   :  { %11364 = vmatprep.subr.bf16.mxu0 %v17725_v17  ;;  %11699 = vmatpush1.bf16.msra.mxu1 %v17744_v42 }
 0x66d   :  { %11700 = vmatprep.subr.bf16.mxu1 %v17752_v43 }
 0x66f   :  { %11365 = vmatpush1.bf16.msra.mxu0 %v17723_v44 }
 0x670   :  { %11366 = vmatprep.subr.bf16.mxu0 %v17731_v53  ;;  %11701 = vmatpush1.bf16.msra.mxu1 %v17750_v6 }
 0x671   :  { %11702 = vmatprep.subr.bf16.mxu1 %v17758_v45  ;;  %v22493_v45 = vld [vmem:[%s25031_s10 + $0x8] sm:$0xff] }
 0x673   :  { %11367 = vmatpush1.bf16.msra.mxu0 %v17729_v48 }
 0x674   :  { %11368 = vmatprep.subr.bf16.mxu0 %v17737_v10  ;;  %11703 = vmatpush1.bf16.msra.mxu1 %v17756_v49 }
 0x675   :  { %11704 = vmatprep.subr.bf16.mxu1 %v17764_v50 }
 0x677   :  { %11369 = vmatpush1.bf16.msra.mxu0 %v17735_v63  ;;  %v7822_v63 = vrot.slane %v22493_v45, %v20081_v41 }
 0x678   :  { %11370 = vmatprep.subr.bf16.mxu0 %v17743_v25  ;;  %11705 = vmatpush1.bf16.msra.mxu1 %v17762_v51  ;;  %v17807_v51 = vld [vmem:[%s25029_s11 + $0x200] ss:$16 sps:$4 sm:$0xff]  }
 0x679   :  { %11706 = vmatprep.subr.bf16.mxu1 %v17770_v54  ;;  %v17810_v54 = vld [vmem:[%s25029_s11 + $0x208] ss:$16 sps:$4 sm:$0xff]  }
 0x67b   :  { %11371 = vmatpush1.bf16.msra.mxu0 %v17741_v16  ;;  %v7794_v16 = vrot.slane %v22480_v39, %v19918_v27 }
 0x67c   :  { %11372 = vmatprep.subr.bf16.mxu0 %v17749_v55  ;;  %11707 = vmatpush1.bf16.msra.mxu1 %v17768_v56  ;;  %v7826_v55 = vrot.slane %v22493_v45, %v19918_v27 }
 0x67d   :  { %11708 = vmatprep.subr.bf16.mxu1 %v17776_v23  ;;  %v17815_v23 = vld [vmem:[%s25029_s11 + $0x224] ss:$16 sps:$4 sm:$0xff]  }
 0x67f   :  { %11373 = vmatpush1.bf16.msra.mxu0 %v17747_v57  ;;  %v17818_v57 = vld [vmem:[%s25029_s11 + $0x22c] ss:$16 sps:$4 sm:$0xff]  }
 0x680   :  { %11374 = vmatprep.subr.bf16.mxu0 %v17755_v4  ;;  %11709 = vmatpush1.bf16.msra.mxu1 %v17774_v58 }
 0x681   :  { %11710 = vmatprep.subr.bf16.mxu1 %v17782_v59 }
 0x683   :  { %11375 = vmatpush1.bf16.msra.mxu0 %v17753_v22 }
 0x684   :  { %11376 = vmatprep.subr.bf16.mxu0 %v17761_v32  ;;  %11711 = vmatpush1.bf16.msra.mxu1 %v17780_v60 }
 0x685   :  { %11712 = vmatprep.subr.bf16.mxu1 %v17788_v13 }
 0x687   :  { %11377 = vmatpush1.bf16.msra.mxu0 %v17759_v61 }
 0x688   :  { %11378 = vmatprep.subr.bf16.mxu0 %v17767_v62  ;;  %11713 = vmatpush1.bf16.msra.mxu1 %v17786_v1  ;;  %v17813_v1 = vld [vmem:[%s25029_s11 + $0x220] ss:$16 sps:$4 sm:$0xff]  }
 0x689   :  { %11714 = vmatprep.subr.bf16.mxu1 %v17794_v35  ;;  %v17816_v35 = vld [vmem:[%s25029_s11 + $0x228] ss:$16 sps:$4 sm:$0xff]  }
 0x68b   :  { %11379 = vmatpush1.bf16.msra.mxu0 %v17765_v2 }
 0x68c   :  { %11380 = vmatprep.subr.bf16.mxu0 %v17773_v3  ;;  %11715 = vmatpush1.bf16.msra.mxu1 %v17792_v5  ;;  %v17821_v5 = vld [vmem:[%s25029_s11 + $0x244] ss:$16 sps:$4 sm:$0xff]  }
 0x68d   :  { %11716 = vmatprep.subr.bf16.mxu1 %v17800_v20  ;;  %v17830_v20 = vld [vmem:[%s25029_s11 + $0x26c] ss:$16 sps:$4 sm:$0xff]  }
 0x68f   :  { %11381 = vmatpush1.bf16.msra.mxu0 %v17771_v7  ;;  %v17824_v7 = vld [vmem:[%s25029_s11 + $0x24c] ss:$16 sps:$4 sm:$0xff]  }
 0x690   :  { %11382 = vmatprep.subr.bf16.mxu0 %v17779_v8  ;;  %11717 = vmatpush1.bf16.msra.mxu1 %v17798_v29 }
 0x691   :  { %11718 = vmatprep.subr.bf16.mxu1 %v17806_v31 }
 0x693   :  { %11383 = vmatpush1.bf16.msra.mxu0 %v17777_v9  ;;  %v7838_v9 = vrot.slane %v22493_v45, %v21994_v52 }
 0x694   :  { %11384 = vmatprep.subr.bf16.mxu0 %v17785_v46  ;;  %11719 = vmatpush1.bf16.msra.mxu1 %v17804_v34 }
 0x695   :  { %11729 = vmatprep.subr.bf16.mxu1 %v17812_v38 }
 0x697   :  { %11385 = vmatpush1.bf16.msra.mxu0 %v17783_v14  ;;  %v17819_v14 = vld [vmem:[%s25029_s11 + $0x240] ss:$16 sps:$4 sm:$0xff]  }
 0x698   :  { %11386 = vmatprep.subr.bf16.mxu0 %v17791_v15  ;;  %v17822_v15 = vld [vmem:[%s25029_s11 + $0x248] ss:$16 sps:$4 sm:$0xff]  }
 0x69b   :  { %11387 = vmatpush1.bf16.msra.mxu0 %v17789_v19  ;;  %v7842_v19 = vrot.slane %v22493_v45, %v21917_v11 }
 0x69c   :  { %11388 = vmatprep.subr.bf16.mxu0 %v17797_v12  ;;  %v17827_v12 = vld [vmem:[%s25029_s11 + $0x264] ss:$16 sps:$4 sm:$0xff]  }
 0x69f   :  { %11389 = vmatpush1.bf16.msra.mxu0 %v17795_v28 }
 0x6a0   :  { %11390 = vmatprep.subr.bf16.mxu0 %v17803_v30 }
 0x6a3   :  { %11391 = vmatpush1.bf16.msra.mxu0 %v17801_v33 }
 0x6a4   :  { %11401 = vmatprep.subr.bf16.mxu0 %v17809_v37 }
 0x719   :  { %v8009_v18 = vpop.f32.mrb[36].mxu0  ;;  %v22486_v40 = vpop.f32.mrb[44].mxu1 }
 0x71a   :  { %v8010_v17 = vadd.f32 %v8009_v18, %v7782_v47  ;;  %v8011_v42 = vpop.f32.mrb[37].mxu0  ;;  %v22488_v43 = vpop.f32.mrb[45].mxu1  ;;  %v17825_v47 = vld [vmem:[%s25029_s11 + $0x260] ss:$16 sps:$4 sm:$0xff]  }
 0x71b   :  { %v8012_v44 = vadd.f32 %v8011_v42, %v7786_v0  ;;  %v8013_v53 = vpop.f32.mrb[38].mxu0  ;;  %v8136_v6 = vpop.f32.mrb[46].mxu1  ;;  %v17828_v0 = vld [vmem:[%s25029_s11 + $0x268] ss:$16 sps:$4 sm:$0xff]   ;;  %v17833_v42 = vld [vmem:[%s25029_s11 + $0x284] ss:$16 sps:$4 sm:$0xff]  }
 0x71c   :  { %v8303_v48 = vmax.f32 %v8010_v17, 0.0  ;;  %v8014_v10 = vpop.f32.mrb[39].mxu0  ;;  %v8137_v49 = vpop.f32.mrb[47].mxu1  ;;  %v17831_v53 = vld [vmem:[%s25029_s11 + $0x280] ss:$16 sps:$4 sm:$0xff]  }
 0x71d   :  { %v8304_v50 = vmax.f32 %v8012_v44, 0.0  ;;  %v17836_v44 = vld [vmem:[%s25029_s11 + $0x28c] ss:$16 sps:$4 sm:$0xff]   ;;  %v17834_v6 = vld [vmem:[%s25029_s11 + $0x288] ss:$16 sps:$4 sm:$0xff]  }
 0x71e   :  { %v8319_v56 = vpack.c.bf16 %v8303_v48, %v8303_v48  ;;  %v17839_v48 = vld [vmem:[%s25029_s11 + $0x2a4] ss:$16 sps:$4 sm:$0xff]   ;;  %v17842_v10 = vld [vmem:[%s25029_s11 + $0x2ac] ss:$16 sps:$4 sm:$0xff]  }
 0x71f   :  { %v8320_v25 = vpack.c.bf16 %v8304_v50, %v8304_v50 }
 0x721   :  { %v22513_v4 = vpop.f32.mrb[40].mxu0  ;;  %v8214_v58 = vpop.f32.mrb[48].mxu1  ;;  %11392 = vmatprep.mubr.bf16.mxu0 %v8320_v25  ;;  %11720 = vmatprep.mubr.bf16.mxu1 %v8320_v25  ;;  %v17837_v25 = vld [vmem:[%s25029_s11 + $0x2a0] ss:$16 sps:$4 sm:$0xff]  }
 0x722   :  { %v22515_v59 = vadd.f32 %v8214_v58, %v7822_v63  ;;  %v8052_v22 = vpop.f32.mrb[41].mxu0  ;;  %v8216_v32 = vpop.f32.mrb[49].mxu1  ;;  %11393 = vmatmul.mubr.bf16.vlgmr.msra.gmra.mrb[56].mxu0 %v8319_v56  ;;  %11721 = vmatmul.mubr.bf16.vlgmr.msra.gmra.mrb[56].mxu1 %v8319_v56  ;;  %v7830_v56 = vrot.slane %v22493_v45, %v21800_v21  ;;  %v7834_v58 = vrot.slane %v22493_v45, %v21719_v36 }
 0x723   :  { %v8053_v60 = vadd.f32 %v8052_v22, %v7794_v16  ;;  %v22517_v13 = vadd.f32 %v8216_v32, %v7826_v55  ;;  %11402 = vmatpush1.bf16.msra.mxu0 %v17807_v51  ;;  %11730 = vmatpush1.bf16.msra.mxu1 %v17810_v54  ;;  %v8054_v61 = vpop.f32.mrb[42].mxu0  ;;  %v8218_v62 = vpop.f32.mrb[50].mxu1  ;;  %v17840_v51 = vld [vmem:[%s25029_s11 + $0x2a8] ss:$16 sps:$4 sm:$0xff]   ;;  %v17845_v16 = vld [vmem:[%s25029_s11 + $0x2c4] ss:$16 sps:$4 sm:$0xff]  }
 0x724   :  { %v8055_v2 = vpop.f32.mrb[43].mxu0  ;;  %v8219_v3 = vpop.f32.mrb[51].mxu1  ;;  %11403 = vmatprep.subr.bf16.mxu0 %v17815_v23  ;;  %11731 = vmatprep.subr.bf16.mxu1 %v17818_v57  ;;  %v17848_v55 = vld [vmem:[%s25029_s11 + $0x2cc] ss:$16 sps:$4 sm:$0xff]   ;;  %v17843_v23 = vld [vmem:[%s25029_s11 + $0x2c0] ss:$16 sps:$4 sm:$0xff]  }
 0x725   :  { %v8306_v8 = vmax.f32 %v8053_v60, 0.0  ;;  %v17846_v57 = vld [vmem:[%s25029_s11 + $0x2c8] ss:$16 sps:$4 sm:$0xff]   ;;  %v17851_v22 = vld [vmem:[%s25029_s11 + $0x2e4] ss:$16 sps:$4 sm:$0xff]  }
 0x726   :  { %v17854_v32 = vld [vmem:[%s25029_s11 + $0x2ec] ss:$16 sps:$4 sm:$0xff]   ;;  %v17849_v2 = vld [vmem:[%s25029_s11 + $0x2e0] ss:$16 sps:$4 sm:$0xff]   ;;  %v17852_v3 = vld [vmem:[%s25029_s11 + $0x2e8] ss:$16 sps:$4 sm:$0xff]  }
 0x727   :  { %v8322_v46 = vpack.c.bf16 %v8306_v8, %v8306_v8  ;;  %11404 = vmatpush1.bf16.msra.mxu0 %v17813_v1  ;;  %11732 = vmatpush1.bf16.msra.mxu1 %v17816_v35  ;;  %v17860_v8 = vld [vmem:[%s25029_s11 + $0x30c] ss:$16 sps:$4 sm:$0xff]  }
 0x728   :  { %11405 = vmatprep.subr.bf16.mxu0 %v17821_v5  ;;  %11733 = vmatprep.subr.bf16.mxu1 %v17824_v7  ;;  %v17857_v7 = vld [vmem:[%s25029_s11 + $0x304] ss:$16 sps:$4 sm:$0xff]  }
 0x729   :  { %v22547_v28 = vpop.f32.mrb[44].mxu0  ;;  %v8296_v29 = vpop.f32.mrb[52].mxu1  ;;  %11433 = vmatprep.mubr.bf16.mxu0 %v8322_v46  ;;  %11761 = vmatprep.mubr.bf16.mxu1 %v8322_v46  ;;  %v17858_v46 = vld [vmem:[%s25029_s11 + $0x308] ss:$16 sps:$4 sm:$0xff]  }
 0x72a   :  { %v22549_v30 = vadd.f32 %v8296_v29, %v7838_v9  ;;  %v22551_v31 = vpop.f32.mrb[45].mxu0  ;;  %v8298_v33 = vpop.f32.mrb[53].mxu1  ;;  %v17855_v9 = vld [vmem:[%s25029_s11 + $0x300] ss:$16 sps:$4 sm:$0xff]   ;;  %v17872_v29 = vld [vmem:[%s25029_s11 + $0x34c] ss:$16 sps:$4 sm:$0xff]  }
 0x72b   :  { %v22553_v34 = vadd.f32 %v8298_v33, %v7842_v19  ;;  %11406 = vmatpush1.bf16.msra.mxu0 %v17819_v14  ;;  %11734 = vmatpush1.bf16.msra.mxu1 %v17822_v15  ;;  %v8095_v37 = vpop.f32.mrb[46].mxu0  ;;  %v8300_v38 = vpop.f32.mrb[54].mxu1  ;;  %v17863_v14 = vld [vmem:[%s25029_s11 + $0x324] ss:$16 sps:$4 sm:$0xff]   ;;  %v17866_v15 = vld [vmem:[%s25029_s11 + $0x32c] ss:$16 sps:$4 sm:$0xff]  }
 0x72c   :  { %v8096_v18 = vpop.f32.mrb[47].mxu0  ;;  %v8301_v17 = vpop.f32.mrb[55].mxu1  ;;  %11407 = vmatprep.subr.bf16.mxu0 %v17827_v12  ;;  %11735 = vmatprep.subr.bf16.mxu1 %v17830_v20  ;;  %v17861_v19 = vld [vmem:[%s25029_s11 + $0x320] ss:$16 sps:$4 sm:$0xff]   ;;  %v17864_v12 = vld [vmem:[%s25029_s11 + $0x328] ss:$16 sps:$4 sm:$0xff]  }
 0x72d   :  { %v17869_v20 = vld [vmem:[%s25029_s11 + $0x344] ss:$16 sps:$4 sm:$0xff]   ;;  %v17867_v33 = vld [vmem:[%s25029_s11 + $0x340] ss:$16 sps:$4 sm:$0xff]   ;;  %v17870_v37 = vld [vmem:[%s25029_s11 + $0x348] ss:$16 sps:$4 sm:$0xff]  }
 0x72e   :  { %v17875_v38 = vld [vmem:[%s25029_s11 + $0x364] ss:$16 sps:$4 sm:$0xff]   ;;  %v17876_v18 = vld [vmem:[%s25029_s11 + $0x368] ss:$16 sps:$4 sm:$0xff]  }
 0x72f   :  { %11408 = vmatpush1.bf16.msra.mxu0 %v17825_v47  ;;  %11736 = vmatpush1.bf16.msra.mxu1 %v17828_v0  ;;  %v17878_v47 = vld [vmem:[%s25029_s11 + $0x36c] ss:$16 sps:$4 sm:$0xff]   ;;  %v17873_v0 = vld [vmem:[%s25029_s11 + $0x360] ss:$16 sps:$4 sm:$0xff]   ;;  %v17881_v17 = vld [vmem:[%s25029_s11 + $0x384] ss:$16 sps:$4 sm:$0xff]  }
 0x730   :  { %11409 = vmatprep.subr.bf16.mxu0 %v17833_v42  ;;  %11737 = vmatprep.subr.bf16.mxu1 %v17836_v44  ;;  %v17884_v42 = vld [vmem:[%s25029_s11 + $0x38c] ss:$16 sps:$4 sm:$0xff]   ;;  %v17879_v44 = vld [vmem:[%s25029_s11 + $0x380] ss:$16 sps:$4 sm:$0xff]  }
 0x731   :  { %v22579_v49 = vpop.f32.mrb[48].mxu0 }
 0x732   :  { %v22581_v50 = vpop.f32.mrb[49].mxu0 }
 0x733   :  { %11410 = vmatpush1.bf16.msra.mxu0 %v17831_v53  ;;  %11738 = vmatpush1.bf16.msra.mxu1 %v17834_v6  ;;  %v8177_v63 = vpop.f32.mrb[50].mxu0  ;;  %v17882_v53 = vld [vmem:[%s25029_s11 + $0x388] ss:$16 sps:$4 sm:$0xff]   ;;  %v17887_v6 = vld [vmem:[%s25029_s11 + $0x3a4] ss:$16 sps:$4 sm:$0xff]  }
 0x734   :  { %v8178_v54 = vpop.f32.mrb[51].mxu0  ;;  %11411 = vmatprep.subr.bf16.mxu0 %v17839_v48  ;;  %11739 = vmatprep.subr.bf16.mxu1 %v17842_v10  ;;  %v17890_v48 = vld [vmem:[%s25029_s11 + $0x3ac] ss:$16 sps:$4 sm:$0xff]   ;;  %v17885_v10 = vld [vmem:[%s25029_s11 + $0x3a0] ss:$16 sps:$4 sm:$0xff]  }
 0x735   :  { %v17888_v63 = vld [vmem:[%s25029_s11 + $0x3a8] ss:$16 sps:$4 sm:$0xff]   ;;  %v17896_v54 = vld [vmem:[%s25029_s11 + $0x3cc] ss:$16 sps:$4 sm:$0xff]  }
 0x737   :  { %11412 = vmatpush1.bf16.msra.mxu0 %v17837_v25  ;;  %11740 = vmatpush1.bf16.msra.mxu1 %v17840_v51  ;;  %v7790_v25 = vrot.slane %v22480_v39, %v20081_v41  ;;  %v17893_v51 = vld [vmem:[%s25029_s11 + $0x3c4] ss:$16 sps:$4 sm:$0xff]  }
 0x738   :  { %11413 = vmatprep.subr.bf16.mxu0 %v17845_v16  ;;  %11741 = vmatprep.subr.bf16.mxu1 %v17848_v55  ;;  %v7802_v16 = vrot.slane %v22480_v39, %v21719_v36  ;;  %v17891_v55 = vld [vmem:[%s25029_s11 + $0x3c0] ss:$16 sps:$4 sm:$0xff]  }
 0x739   :  { %v8255_v60 = vpop.f32.mrb[52].mxu0 }
 0x73a   :  { %v22611_v61 = vadd.f32 %v8255_v60, %v7830_v56  ;;  %v8257_v62 = vpop.f32.mrb[53].mxu0  ;;  %v17894_v56 = vld [vmem:[%s25029_s11 + $0x3c8] ss:$16 sps:$4 sm:$0xff]  }
 0x73b   :  { %v22613_v1 = vadd.f32 %v8257_v62, %v7834_v58  ;;  %11414 = vmatpush1.bf16.msra.mxu0 %v17843_v23  ;;  %11742 = vmatpush1.bf16.msra.mxu1 %v17846_v57  ;;  %v8259_v35 = vpop.f32.mrb[54].mxu0  ;;  %v8051_v23 = vadd.f32 %v22513_v4, %v7790_v25  ;;  %v17899_v57 = vld [vmem:[%s25029_s11 + $0x3e4] ss:$16 sps:$4 sm:$0xff]   ;;  %v17902_v58 = vld [vmem:[%s25029_s11 + $0x3ec] ss:$16 sps:$4 sm:$0xff]  }
 0x73c   :  { %v8260_v5 = vpop.f32.mrb[55].mxu0  ;;  %11415 = vmatprep.subr.bf16.mxu0 %v17851_v22  ;;  %11743 = vmatprep.subr.bf16.mxu1 %v17854_v32  ;;  %v8094_v22 = vadd.f32 %v22551_v31, %v7802_v16  ;;  %v17897_v32 = vld [vmem:[%s25029_s11 + $0x3e0] ss:$16 sps:$4 sm:$0xff]   ;;  %v17900_v4 = vld [vmem:[%s25029_s11 + $0x3e8] ss:$16 sps:$4 sm:$0xff]  }
 0x73d   :  { %v8305_v60 = vmax.f32 %v8051_v23, 0.0  ;;  %v17905_v62 = vld [vmem:[%s25029_s11 + $0x404] ss:$16 sps:$4 sm:$0xff]   ;;  %v17908_v31 = vld [vmem:[%s25029_s11 + $0x40c] ss:$16 sps:$4 sm:$0xff]  }
 0x73e   :  { %v8308_v35 = vmax.f32 %v8094_v22, 0.0  ;;  %v17906_v5 = vld [vmem:[%s25029_s11 + $0x408] ss:$16 sps:$4 sm:$0xff]   ;;  %v17945_v16 = vld [vmem:[%s25029_s11 + $0x4e0] ss:$16 sps:$4 sm:$0xff]  }
 0x73f   :  { %11416 = vmatpush1.bf16.msra.mxu0 %v17849_v2  ;;  %11744 = vmatpush1.bf16.msra.mxu1 %v17852_v3  ;;  %v17903_v2 = vld [vmem:[%s25029_s11 + $0x400] ss:$16 sps:$4 sm:$0xff]   ;;  %v8321_v3 = vpack.c.bf16 %v8305_v60, %v8305_v60  ;;  %v17942_v25 = vld [vmem:[%s25029_s11 + $0x4c8] ss:$16 sps:$4 sm:$0xff]   ;;  %v17956_v23 = vld [vmem:[%s25029_s11 + $0x50c] ss:$16 sps:$4 sm:$0xff]  }
 0x740   :  { %11417 = vmatprep.subr.bf16.mxu0 %v17857_v7  ;;  %11745 = vmatprep.subr.bf16.mxu1 %v17860_v8  ;;  %v8324_v7 = vpack.c.bf16 %v8308_v35, %v8308_v35  ;;  %v17911_v8 = vld [vmem:[%s25029_s11 + $0x424] ss:$16 sps:$4 sm:$0xff]   ;;  %v17960_v60 = vld [vmem:[%s25029_s11 + $0x528] ss:$16 sps:$4 sm:$0xff]   ;;  %v17963_v35 = vld [vmem:[%s25029_s11 + $0x540] ss:$16 sps:$4 sm:$0xff]  }
 0x741   :  { %v17959_v22 = vld [vmem:[%s25029_s11 + $0x524] ss:$16 sps:$4 sm:$0xff]  }
 0x743   :  { %11418 = vmatpush1.bf16.msra.mxu0 %v17855_v9  ;;  %11746 = vmatpush1.bf16.msra.mxu1 %v17858_v46  ;;  %v17914_v9 = vld [vmem:[%s25029_s11 + $0x42c] ss:$16 sps:$4 sm:$0xff]   ;;  %v17909_v46 = vld [vmem:[%s25029_s11 + $0x420] ss:$16 sps:$4 sm:$0xff]  }
 0x744   :  { %11419 = vmatprep.subr.bf16.mxu0 %v17863_v14  ;;  %11747 = vmatprep.subr.bf16.mxu1 %v17866_v15  ;;  %v17912_v14 = vld [vmem:[%s25029_s11 + $0x428] ss:$16 sps:$4 sm:$0xff]   ;;  %v17917_v15 = vld [vmem:[%s25029_s11 + $0x444] ss:$16 sps:$4 sm:$0xff]  }
 0x747   :  { %11420 = vmatpush1.bf16.msra.mxu0 %v17861_v19  ;;  %11748 = vmatpush1.bf16.msra.mxu1 %v17864_v12  ;;  %v17920_v19 = vld [vmem:[%s25029_s11 + $0x44c] ss:$16 sps:$4 sm:$0xff]   ;;  %v17915_v12 = vld [vmem:[%s25029_s11 + $0x440] ss:$16 sps:$4 sm:$0xff]  }
 0x748   :  { %11421 = vmatprep.subr.bf16.mxu0 %v17869_v20  ;;  %11749 = vmatprep.subr.bf16.mxu1 %v17872_v29  ;;  %v17918_v20 = vld [vmem:[%s25029_s11 + $0x448] ss:$16 sps:$4 sm:$0xff]   ;;  %v17923_v29 = vld [vmem:[%s25029_s11 + $0x464] ss:$16 sps:$4 sm:$0xff]  }
 0x74b   :  { %11422 = vmatpush1.bf16.msra.mxu0 %v17867_v33  ;;  %11750 = vmatpush1.bf16.msra.mxu1 %v17870_v37  ;;  %v17926_v33 = vld [vmem:[%s25029_s11 + $0x46c] ss:$16 sps:$4 sm:$0xff]   ;;  %v17921_v37 = vld [vmem:[%s25029_s11 + $0x460] ss:$16 sps:$4 sm:$0xff]  }
 0x74c   :  { %11423 = vmatprep.subr.bf16.mxu0 %v17875_v38  ;;  %11751 = vmatprep.subr.bf16.mxu1 %v17878_v47  ;;  %v17924_v38 = vld [vmem:[%s25029_s11 + $0x468] ss:$16 sps:$4 sm:$0xff]   ;;  %v17929_v47 = vld [vmem:[%s25029_s11 + $0x484] ss:$16 sps:$4 sm:$0xff]  }
 0x74f   :  { %11424 = vmatpush1.bf16.msra.mxu0 %v17873_v0  ;;  %11752 = vmatpush1.bf16.msra.mxu1 %v17876_v18  ;;  %v17932_v0 = vld [vmem:[%s25029_s11 + $0x48c] ss:$16 sps:$4 sm:$0xff]   ;;  %v17927_v18 = vld [vmem:[%s25029_s11 + $0x480] ss:$16 sps:$4 sm:$0xff]  }
 0x750   :  { %11425 = vmatprep.subr.bf16.mxu0 %v17881_v17  ;;  %11753 = vmatprep.subr.bf16.mxu1 %v17884_v42  ;;  %v17930_v17 = vld [vmem:[%s25029_s11 + $0x488] ss:$16 sps:$4 sm:$0xff]   ;;  %v17935_v42 = vld [vmem:[%s25029_s11 + $0x4a4] ss:$16 sps:$4 sm:$0xff]  }
 0x753   :  { %11426 = vmatpush1.bf16.msra.mxu0 %v17879_v44  ;;  %11754 = vmatpush1.bf16.msra.mxu1 %v17882_v53  ;;  %v17938_v44 = vld [vmem:[%s25029_s11 + $0x4ac] ss:$16 sps:$4 sm:$0xff]   ;;  %v17933_v53 = vld [vmem:[%s25029_s11 + $0x4a0] ss:$16 sps:$4 sm:$0xff]  }
 0x754   :  { %11427 = vmatprep.subr.bf16.mxu0 %v17887_v6  ;;  %11755 = vmatprep.subr.bf16.mxu1 %v17890_v48  ;;  %v17936_v6 = vld [vmem:[%s25029_s11 + $0x4a8] ss:$16 sps:$4 sm:$0xff]   ;;  %v17941_v48 = vld [vmem:[%s25029_s11 + $0x4c4] ss:$16 sps:$4 sm:$0xff]  }
 0x757   :  { %11428 = vmatpush1.bf16.msra.mxu0 %v17885_v10  ;;  %11756 = vmatpush1.bf16.msra.mxu1 %v17888_v63  ;;  %v17944_v10 = vld [vmem:[%s25029_s11 + $0x4cc] ss:$16 sps:$4 sm:$0xff]   ;;  %v17939_v63 = vld [vmem:[%s25029_s11 + $0x4c0] ss:$16 sps:$4 sm:$0xff]  }
 0x758   :  { %11429 = vmatprep.subr.bf16.mxu0 %v17893_v51  ;;  %11757 = vmatprep.subr.bf16.mxu1 %v17896_v54  ;;  %v17947_v51 = vld [vmem:[%s25029_s11 + $0x4e4] ss:$16 sps:$4 sm:$0xff]   ;;  %v17950_v54 = vld [vmem:[%s25029_s11 + $0x4ec] ss:$16 sps:$4 sm:$0xff]  }
 0x75b   :  { %11430 = vmatpush1.bf16.msra.mxu0 %v17891_v55  ;;  %11758 = vmatpush1.bf16.msra.mxu1 %v17894_v56  ;;  %v17948_v55 = vld [vmem:[%s25029_s11 + $0x4e8] ss:$16 sps:$4 sm:$0xff]   ;;  %v17953_v56 = vld [vmem:[%s25029_s11 + $0x504] ss:$16 sps:$4 sm:$0xff]  }
 0x75c   :  { %11431 = vmatprep.subr.bf16.mxu0 %v17899_v57  ;;  %11759 = vmatprep.subr.bf16.mxu1 %v17902_v58  ;;  %v17951_v57 = vld [vmem:[%s25029_s11 + $0x500] ss:$16 sps:$4 sm:$0xff]   ;;  %v17954_v58 = vld [vmem:[%s25029_s11 + $0x508] ss:$16 sps:$4 sm:$0xff]  }
 0x75f   :  { %11432 = vmatpush1.bf16.msra.mxu0 %v17897_v32  ;;  %11760 = vmatpush1.bf16.msra.mxu1 %v17900_v4  ;;  %v17962_v32 = vld [vmem:[%s25029_s11 + $0x52c] ss:$16 sps:$4 sm:$0xff]   ;;  %v17957_v4 = vld [vmem:[%s25029_s11 + $0x520] ss:$16 sps:$4 sm:$0xff]  }
 0x760   :  { %11442 = vmatprep.subr.bf16.mxu0 %v17905_v62  ;;  %11770 = vmatprep.subr.bf16.mxu1 %v17908_v31  ;;  %v17965_v62 = vld [vmem:[%s25029_s11 + $0x544] ss:$16 sps:$4 sm:$0xff]   ;;  %v17968_v31 = vld [vmem:[%s25029_s11 + $0x54c] ss:$16 sps:$4 sm:$0xff]  }
 0x762   :  { %11434 = vmatmul.mubr.bf16.vlgmr.msra.gmra.mrb[56].mxu0 %v8321_v3  ;;  %11762 = vmatmul.mubr.bf16.vlgmr.msra.gmra.mrb[56].mxu1 %v8321_v3  ;;  %v17971_v3 = vld [vmem:[%s25029_s11 + $0x564] ss:$16 sps:$4 sm:$0xff]  }
 0x763   :  { %11443 = vmatpush1.bf16.msra.mxu0 %v17903_v2  ;;  %11474 = vmatprep.mubr.bf16.mxu0 %v8324_v7  ;;  %v17966_v2 = vld [vmem:[%s25029_s11 + $0x548] ss:$16 sps:$4 sm:$0xff]  }
 0x764   :  { %11771 = vmatpush1.bf16.msra.mxu1 %v17906_v5  ;;  %11802 = vmatprep.mubr.bf16.mxu1 %v8324_v7  ;;  %v17974_v5 = vld [vmem:[%s25029_s11 + $0x56c] ss:$16 sps:$4 sm:$0xff]   ;;  %v17969_v7 = vld [vmem:[%s25029_s11 + $0x560] ss:$16 sps:$4 sm:$0xff]  }
 0x765   :  { %11444 = vmatprep.subr.bf16.mxu0 %v17911_v8  ;;  %11772 = vmatprep.subr.bf16.mxu1 %v17914_v9  ;;  %v17972_v8 = vld [vmem:[%s25029_s11 + $0x568] ss:$16 sps:$4 sm:$0xff]   ;;  %v17977_v9 = vld [vmem:[%s25029_s11 + $0x584] ss:$16 sps:$4 sm:$0xff]  }
 0x767   :  { %11445 = vmatpush1.bf16.msra.mxu0 %v17909_v46  ;;  %v17980_v46 = vld [vmem:[%s25029_s11 + $0x58c] ss:$16 sps:$4 sm:$0xff]  }
 0x768   :  { %11773 = vmatpush1.bf16.msra.mxu1 %v17912_v14  ;;  %11446 = vmatprep.subr.bf16.mxu0 %v17917_v15  ;;  %v17975_v14 = vld [vmem:[%s25029_s11 + $0x580] ss:$16 sps:$4 sm:$0xff]   ;;  %v17978_v15 = vld [vmem:[%s25029_s11 + $0x588] ss:$16 sps:$4 sm:$0xff]  }
 0x769   :  { %11774 = vmatprep.subr.bf16.mxu1 %v17920_v19  ;;  %v17983_v19 = vld [vmem:[%s25029_s11 + $0x5a4] ss:$16 sps:$4 sm:$0xff]  }
 0x76b   :  { %11447 = vmatpush1.bf16.msra.mxu0 %v17915_v12  ;;  %v17986_v12 = vld [vmem:[%s25029_s11 + $0x5ac] ss:$16 sps:$4 sm:$0xff]  }
 0x76c   :  { %11775 = vmatpush1.bf16.msra.mxu1 %v17918_v20  ;;  %11448 = vmatprep.subr.bf16.mxu0 %v17923_v29  ;;  %v17981_v20 = vld [vmem:[%s25029_s11 + $0x5a0] ss:$16 sps:$4 sm:$0xff]   ;;  %v7798_v29 = vrot.slane %v22480_v39, %v21800_v21 }
 0x76d   :  { %11776 = vmatprep.subr.bf16.mxu1 %v17926_v33  ;;  %v17984_v33 = vld [vmem:[%s25029_s11 + $0x5a8] ss:$16 sps:$4 sm:$0xff]  }
 0x76f   :  { %11449 = vmatpush1.bf16.msra.mxu0 %v17921_v37  ;;  %v17989_v37 = vld [vmem:[%s25029_s11 + $0x5c4] ss:$16 sps:$4 sm:$0xff]  }
 0x770   :  { %11777 = vmatpush1.bf16.msra.mxu1 %v17924_v38  ;;  %11450 = vmatprep.subr.bf16.mxu0 %v17929_v47  ;;  %v17992_v38 = vld [vmem:[%s25029_s11 + $0x5cc] ss:$16 sps:$4 sm:$0xff]   ;;  %v7810_v47 = vrot.slane %v22480_v39, %v21917_v11 }
 0x771   :  { %11778 = vmatprep.subr.bf16.mxu1 %v17932_v0  ;;  %v17987_v0 = vld [vmem:[%s25029_s11 + $0x5c0] ss:$16 sps:$4 sm:$0xff]   ;;  %v17998_v11 = vld [vmem:[%s25029_s11 + $0x5ec] ss:$16 sps:$4 sm:$0xff]  }
 0x773   :  { %11451 = vmatpush1.bf16.msra.mxu0 %v17927_v18  ;;  %v8092_v18 = vadd.f32 %v22547_v28, %v7798_v29  ;;  %v17993_v28 = vld [vmem:[%s25029_s11 + $0x5e0] ss:$16 sps:$4 sm:$0xff]   ;;  %v18046_v29 = vld [vmem:[%s25029_s11 + $0x6ec] ss:$16 sps:$4 sm:$0xff]  }
 0x774   :  { %11779 = vmatpush1.bf16.msra.mxu1 %v17930_v17  ;;  %11452 = vmatprep.subr.bf16.mxu0 %v17935_v42  ;;  %v17990_v17 = vld [vmem:[%s25029_s11 + $0x5c8] ss:$16 sps:$4 sm:$0xff]   ;;  %v17995_v42 = vld [vmem:[%s25029_s11 + $0x5e4] ss:$16 sps:$4 sm:$0xff]  }
 0x775   :  { %11780 = vmatprep.subr.bf16.mxu1 %v17938_v44  ;;  %v8135_v44 = vadd.f32 %v22488_v43, %v7810_v47  ;;  %v18004_v43 = vld [vmem:[%s25029_s11 + $0x60c] ss:$16 sps:$4 sm:$0xff]  }
 0x776   :  { %v18052_v47 = vld [vmem:[%s25029_s11 + $0x70c] ss:$16 sps:$4 sm:$0xff]  }
 0x777   :  { %11453 = vmatpush1.bf16.msra.mxu0 %v17933_v53  ;;  %v8307_v53 = vmax.f32 %v8092_v18, 0.0  ;;  %v18050_v18 = vld [vmem:[%s25029_s11 + $0x708] ss:$16 sps:$4 sm:$0xff]  }
 0x778   :  { %11781 = vmatpush1.bf16.msra.mxu1 %v17936_v6  ;;  %11454 = vmatprep.subr.bf16.mxu0 %v17941_v48  ;;  %v17996_v6 = vld [vmem:[%s25029_s11 + $0x5e8] ss:$16 sps:$4 sm:$0xff]   ;;  %v18001_v48 = vld [vmem:[%s25029_s11 + $0x604] ss:$16 sps:$4 sm:$0xff]  }
 0x779   :  { %11782 = vmatprep.subr.bf16.mxu1 %v17944_v10  ;;  %v8310_v10 = vmax.f32 %v8135_v44, 0.0  ;;  %v18056_v44 = vld [vmem:[%s25029_s11 + $0x728] ss:$16 sps:$4 sm:$0xff]  }
 0x77b   :  { %11455 = vmatpush1.bf16.msra.mxu0 %v17939_v63  ;;  %v17999_v63 = vld [vmem:[%s25029_s11 + $0x600] ss:$16 sps:$4 sm:$0xff]  }
 0x77c   :  { %11783 = vmatpush1.bf16.msra.mxu1 %v17942_v25  ;;  %11456 = vmatprep.subr.bf16.mxu0 %v17947_v51  ;;  %v8323_v25 = vpack.c.bf16 %v8307_v53, %v8307_v53  ;;  %v18002_v51 = vld [vmem:[%s25029_s11 + $0x608] ss:$16 sps:$4 sm:$0xff]   ;;  %v18064_v53 = vld [vmem:[%s25029_s11 + $0x74c] ss:$16 sps:$4 sm:$0xff]  }
 0x77d   :  { %11784 = vmatprep.subr.bf16.mxu1 %v17950_v54  ;;  %v18007_v54 = vld [vmem:[%s25029_s11 + $0x624] ss:$16 sps:$4 sm:$0xff]  }
 0x77f   :  { %11457 = vmatpush1.bf16.msra.mxu0 %v17945_v16  ;;  %v8326_v16 = vpack.c.bf16 %v8310_v10, %v8310_v10  ;;  %v18070_v10 = vld [vmem:[%s25029_s11 + $0x76c] ss:$16 sps:$4 sm:$0xff]  }
 0x780   :  { %11785 = vmatpush1.bf16.msra.mxu1 %v17948_v55  ;;  %11458 = vmatprep.subr.bf16.mxu0 %v17953_v56  ;;  %v18010_v55 = vld [vmem:[%s25029_s11 + $0x62c] ss:$16 sps:$4 sm:$0xff]   ;;  %v18005_v56 = vld [vmem:[%s25029_s11 + $0x620] ss:$16 sps:$4 sm:$0xff]  }
 0x781   :  { %11786 = vmatprep.subr.bf16.mxu1 %v17956_v23  ;;  %v18008_v23 = vld [vmem:[%s25029_s11 + $0x628] ss:$16 sps:$4 sm:$0xff]  }
 0x783   :  { %11459 = vmatpush1.bf16.msra.mxu0 %v17951_v57  ;;  %v18013_v57 = vld [vmem:[%s25029_s11 + $0x644] ss:$16 sps:$4 sm:$0xff]  }
 0x784   :  { %11787 = vmatpush1.bf16.msra.mxu1 %v17954_v58  ;;  %11460 = vmatprep.subr.bf16.mxu0 %v17959_v22  ;;  %v18016_v58 = vld [vmem:[%s25029_s11 + $0x64c] ss:$16 sps:$4 sm:$0xff]   ;;  %v18011_v22 = vld [vmem:[%s25029_s11 + $0x640] ss:$16 sps:$4 sm:$0xff]  }
 0x785   :  { %11788 = vmatprep.subr.bf16.mxu1 %v17962_v32  ;;  %v18014_v32 = vld [vmem:[%s25029_s11 + $0x648] ss:$16 sps:$4 sm:$0xff]  }
 0x787   :  { %11461 = vmatpush1.bf16.msra.mxu0 %v17957_v4  ;;  %v18019_v4 = vld [vmem:[%s25029_s11 + $0x664] ss:$16 sps:$4 sm:$0xff]  }
 0x788   :  { %11789 = vmatpush1.bf16.msra.mxu1 %v17960_v60  ;;  %11462 = vmatprep.subr.bf16.mxu0 %v17965_v62  ;;  %v18022_v60 = vld [vmem:[%s25029_s11 + $0x66c] ss:$16 sps:$4 sm:$0xff]   ;;  %v18017_v62 = vld [vmem:[%s25029_s11 + $0x660] ss:$16 sps:$4 sm:$0xff]  }
 0x789   :  { %11790 = vmatprep.subr.bf16.mxu1 %v17968_v31  ;;  %v18020_v31 = vld [vmem:[%s25029_s11 + $0x668] ss:$16 sps:$4 sm:$0xff]  }
 0x78b   :  { %11463 = vmatpush1.bf16.msra.mxu0 %v17963_v35  ;;  %v18025_v35 = vld [vmem:[%s25029_s11 + $0x684] ss:$16 sps:$4 sm:$0xff]  }
 0x78c   :  { %11791 = vmatpush1.bf16.msra.mxu1 %v17966_v2  ;;  %11464 = vmatprep.subr.bf16.mxu0 %v17971_v3  ;;  %v18028_v2 = vld [vmem:[%s25029_s11 + $0x68c] ss:$16 sps:$4 sm:$0xff]   ;;  %v18023_v3 = vld [vmem:[%s25029_s11 + $0x680] ss:$16 sps:$4 sm:$0xff]  }
 0x78d   :  { %11792 = vmatprep.subr.bf16.mxu1 %v17974_v5  ;;  %v18026_v5 = vld [vmem:[%s25029_s11 + $0x688] ss:$16 sps:$4 sm:$0xff]  }
 0x78f   :  { %11465 = vmatpush1.bf16.msra.mxu0 %v17969_v7  ;;  %v18031_v7 = vld [vmem:[%s25029_s11 + $0x6a4] ss:$16 sps:$4 sm:$0xff]  }
 0x790   :  { %11793 = vmatpush1.bf16.msra.mxu1 %v17972_v8  ;;  %11466 = vmatprep.subr.bf16.mxu0 %v17977_v9  ;;  %v18034_v8 = vld [vmem:[%s25029_s11 + $0x6ac] ss:$16 sps:$4 sm:$0xff]   ;;  %v18029_v9 = vld [vmem:[%s25029_s11 + $0x6a0] ss:$16 sps:$4 sm:$0xff]  }
 0x791   :  { %11794 = vmatprep.subr.bf16.mxu1 %v17980_v46  ;;  %v18032_v46 = vld [vmem:[%s25029_s11 + $0x6a8] ss:$16 sps:$4 sm:$0xff]  }
 0x793   :  { %11467 = vmatpush1.bf16.msra.mxu0 %v17975_v14  ;;  %v18037_v14 = vld [vmem:[%s25029_s11 + $0x6c4] ss:$16 sps:$4 sm:$0xff]  }
 0x794   :  { %11795 = vmatpush1.bf16.msra.mxu1 %v17978_v15  ;;  %11468 = vmatprep.subr.bf16.mxu0 %v17983_v19  ;;  %v18040_v15 = vld [vmem:[%s25029_s11 + $0x6cc] ss:$16 sps:$4 sm:$0xff]   ;;  %v18035_v19 = vld [vmem:[%s25029_s11 + $0x6c0] ss:$16 sps:$4 sm:$0xff]  }
 0x795   :  { %11796 = vmatprep.subr.bf16.mxu1 %v17986_v12  ;;  %v18038_v12 = vld [vmem:[%s25029_s11 + $0x6c8] ss:$16 sps:$4 sm:$0xff]  }
 0x797   :  { %11469 = vmatpush1.bf16.msra.mxu0 %v17981_v20  ;;  %v18043_v20 = vld [vmem:[%s25029_s11 + $0x6e4] ss:$16 sps:$4 sm:$0xff]  }
 0x798   :  { %11797 = vmatpush1.bf16.msra.mxu1 %v17984_v33  ;;  %11470 = vmatprep.subr.bf16.mxu0 %v17989_v37  ;;  %v18041_v33 = vld [vmem:[%s25029_s11 + $0x6e0] ss:$16 sps:$4 sm:$0xff]   ;;  %v18044_v37 = vld [vmem:[%s25029_s11 + $0x6e8] ss:$16 sps:$4 sm:$0xff]  }
 0x799   :  { %11798 = vmatprep.subr.bf16.mxu1 %v17992_v38  ;;  %v18049_v38 = vld [vmem:[%s25029_s11 + $0x704] ss:$16 sps:$4 sm:$0xff]  }
 0x79b   :  { %11471 = vmatpush1.bf16.msra.mxu0 %v17987_v0  ;;  %v18047_v0 = vld [vmem:[%s25029_s11 + $0x700] ss:$16 sps:$4 sm:$0xff]  }
 0x79c   :  { %11799 = vmatpush1.bf16.msra.mxu1 %v17990_v17  ;;  %11472 = vmatprep.subr.bf16.mxu0 %v17995_v42  ;;  %v18055_v17 = vld [vmem:[%s25029_s11 + $0x724] ss:$16 sps:$4 sm:$0xff]   ;;  %v18058_v42 = vld [vmem:[%s25029_s11 + $0x72c] ss:$16 sps:$4 sm:$0xff]  }
 0x79d   :  { %11800 = vmatprep.subr.bf16.mxu1 %v17998_v11  ;;  %v18053_v11 = vld [vmem:[%s25029_s11 + $0x720] ss:$16 sps:$4 sm:$0xff]  }
 0x79f   :  { %11473 = vmatpush1.bf16.msra.mxu0 %v17993_v28  ;;  %v18061_v28 = vld [vmem:[%s25029_s11 + $0x744] ss:$16 sps:$4 sm:$0xff]  }
 0x7a0   :  { %11801 = vmatpush1.bf16.msra.mxu1 %v17996_v6  ;;  %11483 = vmatprep.subr.bf16.mxu0 %v18001_v48  ;;  %v18059_v6 = vld [vmem:[%s25029_s11 + $0x740] ss:$16 sps:$4 sm:$0xff]   ;;  %v18062_v48 = vld [vmem:[%s25029_s11 + $0x748] ss:$16 sps:$4 sm:$0xff]  }
 0x7a1   :  { %11811 = vmatprep.subr.bf16.mxu1 %v18004_v43  ;;  %v18067_v43 = vld [vmem:[%s25029_s11 + $0x764] ss:$16 sps:$4 sm:$0xff]  }
 0x7a2   :  { %11475 = vmatmul.mubr.bf16.vlgmr.msra.gmra.mrb[56].mxu0 %v8323_v25 }
 0x7a3   :  { %11803 = vmatmul.mubr.bf16.vlgmr.msra.gmra.mrb[56].mxu1 %v8323_v25  ;;  %11484 = vmatpush1.bf16.msra.mxu0 %v17999_v63  ;;  %v18065_v63 = vld [vmem:[%s25029_s11 + $0x760] ss:$16 sps:$4 sm:$0xff]   ;;  %v18068_v25 = vld [vmem:[%s25029_s11 + $0x768] ss:$16 sps:$4 sm:$0xff]  }
 0x7a4   :  { %11515 = vmatprep.mubr.bf16.mxu0 %v8326_v16  ;;  %11812 = vmatpush1.bf16.msra.mxu1 %v18002_v51  ;;  %v18073_v51 = vld [vmem:[%s25029_s11 + $0x784] ss:$16 sps:$4 sm:$0xff]  }
 0x7a5   :  { %11843 = vmatprep.mubr.bf16.mxu1 %v8326_v16  ;;  %11485 = vmatprep.subr.bf16.mxu0 %v18007_v54  ;;  %v18076_v54 = vld [vmem:[%s25029_s11 + $0x78c] ss:$16 sps:$4 sm:$0xff]   ;;  %v18071_v16 = vld [vmem:[%s25029_s11 + $0x780] ss:$16 sps:$4 sm:$0xff]  }
 0x7a6   :  { %11813 = vmatprep.subr.bf16.mxu1 %v18010_v55  ;;  %v18074_v55 = vld [vmem:[%s25029_s11 + $0x788] ss:$16 sps:$4 sm:$0xff]  }
 0x7a7   :  { %11486 = vmatpush1.bf16.msra.mxu0 %v18005_v56  ;;  %v18079_v56 = vld [vmem:[%s25029_s11 + $0x7a4] ss:$16 sps:$4 sm:$0xff]  }
 0x7a8   :  { %11814 = vmatpush1.bf16.msra.mxu1 %v18008_v23  ;;  %11487 = vmatprep.subr.bf16.mxu0 %v18013_v57  ;;  %v18082_v23 = vld [vmem:[%s25029_s11 + $0x7ac] ss:$16 sps:$4 sm:$0xff]   ;;  %v18077_v57 = vld [vmem:[%s25029_s11 + $0x7a0] ss:$16 sps:$4 sm:$0xff]  }
 0x7a9   :  { %11815 = vmatprep.subr.bf16.mxu1 %v18016_v58  ;;  %v7806_v58 = vrot.slane %v22480_v39, %v21994_v52  ;;  %v18083_v39 = vld [vmem:[%s25029_s11 + $0x7c0] ss:$16 sps:$4 sm:$0xff]  }
 0x7ab   :  { %11488 = vmatpush1.bf16.msra.mxu0 %v18011_v22  ;;  %v18080_v22 = vld [vmem:[%s25029_s11 + $0x7a8] ss:$16 sps:$4 sm:$0xff]  }
 0x7ac   :  { %11816 = vmatpush1.bf16.msra.mxu1 %v18014_v32  ;;  %11489 = vmatprep.subr.bf16.mxu0 %v18019_v4  ;;  %v18085_v32 = vld [vmem:[%s25029_s11 + $0x7c4] ss:$16 sps:$4 sm:$0xff]   ;;  %v18088_v4 = vld [vmem:[%s25029_s11 + $0x7cc] ss:$16 sps:$4 sm:$0xff]  }
 0x7ad   :  { %11817 = vmatprep.subr.bf16.mxu1 %v18022_v60  ;;  %v7818_v60 = vrot.slane %v22493_v45, %v19915_v26  ;;  %v18094_v45 = vld [vmem:[%s25029_s11 + $0x7ec] ss:$16 sps:$4 sm:$0xff]  }
 0x7af   :  { %11490 = vmatpush1.bf16.msra.mxu0 %v18017_v62  ;;  %v8133_v62 = vadd.f32 %v22486_v40, %v7806_v58  ;;  %v18089_v40 = vld [vmem:[%s25029_s11 + $0x7e0] ss:$16 sps:$4 sm:$0xff]   ;;  %v18148_v58 = vld [vmem:[%s25029_s11 + $0x90c] ss:$16 sps:$4 sm:$0xff]  }
 0x7b0   :  { %11818 = vmatpush1.bf16.msra.mxu1 %v18020_v31  ;;  %11491 = vmatprep.subr.bf16.mxu0 %v18025_v35  ;;  %v18086_v31 = vld [vmem:[%s25029_s11 + $0x7c8] ss:$16 sps:$4 sm:$0xff]   ;;  %v18091_v35 = vld [vmem:[%s25029_s11 + $0x7e4] ss:$16 sps:$4 sm:$0xff]  }
 0x7b1   :  { %11819 = vmatprep.subr.bf16.mxu1 %v18028_v2  ;;  %v8176_v2 = vadd.f32 %v22581_v50, %v7818_v60  ;;  %v18100_v50 = vld [vmem:[%s25029_s11 + $0x80c] ss:$16 sps:$4 sm:$0xff]  }
 0x7b2   :  { %v18154_v60 = vld [vmem:[%s25029_s11 + $0x92c] ss:$16 sps:$4 sm:$0xff]  }
 0x7b3   :  { %11492 = vmatpush1.bf16.msra.mxu0 %v18023_v3  ;;  %v8309_v3 = vmax.f32 %v8133_v62, 0.0  ;;  %v18152_v62 = vld [vmem:[%s25029_s11 + $0x928] ss:$16 sps:$4 sm:$0xff]  }
 0x7b4   :  { %11820 = vmatpush1.bf16.msra.mxu1 %v18026_v5  ;;  %11493 = vmatprep.subr.bf16.mxu0 %v18031_v7  ;;  %v18092_v5 = vld [vmem:[%s25029_s11 + $0x7e8] ss:$16 sps:$4 sm:$0xff]   ;;  %v18097_v7 = vld [vmem:[%s25029_s11 + $0x804] ss:$16 sps:$4 sm:$0xff]  }
 0x7b5   :  { %11821 = vmatprep.subr.bf16.mxu1 %v18034_v8  ;;  %v8312_v8 = vmax.f32 %v8176_v2, 0.0  ;;  %v18158_v2 = vld [vmem:[%s25029_s11 + $0x948] ss:$16 sps:$4 sm:$0xff]  }
 0x7b7   :  { %11494 = vmatpush1.bf16.msra.mxu0 %v18029_v9  ;;  %v18095_v9 = vld [vmem:[%s25029_s11 + $0x800] ss:$16 sps:$4 sm:$0xff]  }
 0x7b8   :  { %11822 = vmatpush1.bf16.msra.mxu1 %v18032_v46  ;;  %11495 = vmatprep.subr.bf16.mxu0 %v18037_v14  ;;  %v8325_v46 = vpack.c.bf16 %v8309_v3, %v8309_v3  ;;  %v18098_v14 = vld [vmem:[%s25029_s11 + $0x808] ss:$16 sps:$4 sm:$0xff]   ;;  %v18166_v3 = vld [vmem:[%s25029_s11 + $0x96c] ss:$16 sps:$4 sm:$0xff]  }
 0x7b9   :  { %11823 = vmatprep.subr.bf16.mxu1 %v18040_v15  ;;  %v18103_v15 = vld [vmem:[%s25029_s11 + $0x824] ss:$16 sps:$4 sm:$0xff]  }
 0x7bb   :  { %11496 = vmatpush1.bf16.msra.mxu0 %v18035_v19  ;;  %v8328_v19 = vpack.c.bf16 %v8312_v8, %v8312_v8  ;;  %v18172_v8 = vld [vmem:[%s25029_s11 + $0x98c] ss:$16 sps:$4 sm:$0xff]  }
 0x7bc   :  { %11824 = vmatpush1.bf16.msra.mxu1 %v18038_v12  ;;  %11497 = vmatprep.subr.bf16.mxu0 %v18043_v20  ;;  %v18106_v12 = vld [vmem:[%s25029_s11 + $0x82c] ss:$16 sps:$4 sm:$0xff]   ;;  %v18101_v20 = vld [vmem:[%s25029_s11 + $0x820] ss:$16 sps:$4 sm:$0xff]  }
 0x7bd   :  { %11825 = vmatprep.subr.bf16.mxu1 %v18046_v29  ;;  %v18104_v29 = vld [vmem:[%s25029_s11 + $0x828] ss:$16 sps:$4 sm:$0xff]  }
 0x7bf   :  { %11498 = vmatpush1.bf16.msra.mxu0 %v18041_v33  ;;  %v18109_v33 = vld [vmem:[%s25029_s11 + $0x844] ss:$16 sps:$4 sm:$0xff]  }
 0x7c0   :  { %11826 = vmatpush1.bf16.msra.mxu1 %v18044_v37  ;;  %11499 = vmatprep.subr.bf16.mxu0 %v18049_v38  ;;  %v18112_v37 = vld [vmem:[%s25029_s11 + $0x84c] ss:$16 sps:$4 sm:$0xff]   ;;  %v18107_v38 = vld [vmem:[%s25029_s11 + $0x840] ss:$16 sps:$4 sm:$0xff]  }
 0x7c1   :  { %11827 = vmatprep.subr.bf16.mxu1 %v18052_v47  ;;  %v18110_v47 = vld [vmem:[%s25029_s11 + $0x848] ss:$16 sps:$4 sm:$0xff]  }
 0x7c3   :  { %11500 = vmatpush1.bf16.msra.mxu0 %v18047_v0  ;;  %v18115_v0 = vld [vmem:[%s25029_s11 + $0x864] ss:$16 sps:$4 sm:$0xff]  }
 0x7c4   :  { %11828 = vmatpush1.bf16.msra.mxu1 %v18050_v18  ;;  %11501 = vmatprep.subr.bf16.mxu0 %v18055_v17  ;;  %v18118_v18 = vld [vmem:[%s25029_s11 + $0x86c] ss:$16 sps:$4 sm:$0xff]   ;;  %v18113_v17 = vld [vmem:[%s25029_s11 + $0x860] ss:$16 sps:$4 sm:$0xff]  }
 0x7c5   :  { %11829 = vmatprep.subr.bf16.mxu1 %v18058_v42  ;;  %v18116_v42 = vld [vmem:[%s25029_s11 + $0x868] ss:$16 sps:$4 sm:$0xff]  }
 0x7c7   :  { %11502 = vmatpush1.bf16.msra.mxu0 %v18053_v11  ;;  %v18121_v11 = vld [vmem:[%s25029_s11 + $0x884] ss:$16 sps:$4 sm:$0xff]  }
 0x7c8   :  { %11830 = vmatpush1.bf16.msra.mxu1 %v18056_v44  ;;  %11503 = vmatprep.subr.bf16.mxu0 %v18061_v28  ;;  %v18124_v44 = vld [vmem:[%s25029_s11 + $0x88c] ss:$16 sps:$4 sm:$0xff]   ;;  %v18119_v28 = vld [vmem:[%s25029_s11 + $0x880] ss:$16 sps:$4 sm:$0xff]  }
 0x7c9   :  { %11831 = vmatprep.subr.bf16.mxu1 %v18064_v53  ;;  %v18122_v53 = vld [vmem:[%s25029_s11 + $0x888] ss:$16 sps:$4 sm:$0xff]  }
 0x7cb   :  { %11504 = vmatpush1.bf16.msra.mxu0 %v18059_v6  ;;  %v18127_v6 = vld [vmem:[%s25029_s11 + $0x8a4] ss:$16 sps:$4 sm:$0xff]  }
 0x7cc   :  { %11832 = vmatpush1.bf16.msra.mxu1 %v18062_v48  ;;  %11505 = vmatprep.subr.bf16.mxu0 %v18067_v43  ;;  %v18130_v48 = vld [vmem:[%s25029_s11 + $0x8ac] ss:$16 sps:$4 sm:$0xff]   ;;  %v18125_v43 = vld [vmem:[%s25029_s11 + $0x8a0] ss:$16 sps:$4 sm:$0xff]  }
 0x7cd   :  { %11833 = vmatprep.subr.bf16.mxu1 %v18070_v10  ;;  %v18128_v10 = vld [vmem:[%s25029_s11 + $0x8a8] ss:$16 sps:$4 sm:$0xff]  }
 0x7cf   :  { %11506 = vmatpush1.bf16.msra.mxu0 %v18065_v63  ;;  %v18133_v63 = vld [vmem:[%s25029_s11 + $0x8c4] ss:$16 sps:$4 sm:$0xff]  }
 0x7d0   :  { %11834 = vmatpush1.bf16.msra.mxu1 %v18068_v25  ;;  %11507 = vmatprep.subr.bf16.mxu0 %v18073_v51  ;;  %v18136_v25 = vld [vmem:[%s25029_s11 + $0x8cc] ss:$16 sps:$4 sm:$0xff]   ;;  %v18131_v51 = vld [vmem:[%s25029_s11 + $0x8c0] ss:$16 sps:$4 sm:$0xff]  }
 0x7d1   :  { %11835 = vmatprep.subr.bf16.mxu1 %v18076_v54  ;;  %v18134_v54 = vld [vmem:[%s25029_s11 + $0x8c8] ss:$16 sps:$4 sm:$0xff]  }
 0x7d3   :  { %11508 = vmatpush1.bf16.msra.mxu0 %v18071_v16  ;;  %v18139_v16 = vld [vmem:[%s25029_s11 + $0x8e4] ss:$16 sps:$4 sm:$0xff]  }
 0x7d4   :  { %11836 = vmatpush1.bf16.msra.mxu1 %v18074_v55  ;;  %11509 = vmatprep.subr.bf16.mxu0 %v18079_v56  ;;  %v18142_v55 = vld [vmem:[%s25029_s11 + $0x8ec] ss:$16 sps:$4 sm:$0xff]   ;;  %v18137_v56 = vld [vmem:[%s25029_s11 + $0x8e0] ss:$16 sps:$4 sm:$0xff]  }
 0x7d5   :  { %11837 = vmatprep.subr.bf16.mxu1 %v18082_v23  ;;  %v18140_v23 = vld [vmem:[%s25029_s11 + $0x8e8] ss:$16 sps:$4 sm:$0xff]  }
 0x7d7   :  { %11510 = vmatpush1.bf16.msra.mxu0 %v18077_v57  ;;  %v18145_v57 = vld [vmem:[%s25029_s11 + $0x904] ss:$16 sps:$4 sm:$0xff]  }
 0x7d8   :  { %11838 = vmatpush1.bf16.msra.mxu1 %v18080_v22  ;;  %11511 = vmatprep.subr.bf16.mxu0 %v18085_v32  ;;  %v18143_v22 = vld [vmem:[%s25029_s11 + $0x900] ss:$16 sps:$4 sm:$0xff]   ;;  %v18146_v32 = vld [vmem:[%s25029_s11 + $0x908] ss:$16 sps:$4 sm:$0xff]  }
 0x7d9   :  { %11839 = vmatprep.subr.bf16.mxu1 %v18088_v4  ;;  %v18151_v4 = vld [vmem:[%s25029_s11 + $0x924] ss:$16 sps:$4 sm:$0xff]  }
 0x7db   :  { %11512 = vmatpush1.bf16.msra.mxu0 %v18083_v39  ;;  %v18149_v39 = vld [vmem:[%s25029_s11 + $0x920] ss:$16 sps:$4 sm:$0xff]  }
 0x7dc   :  { %11840 = vmatpush1.bf16.msra.mxu1 %v18086_v31  ;;  %11513 = vmatprep.subr.bf16.mxu0 %v18091_v35  ;;  %v18157_v31 = vld [vmem:[%s25029_s11 + $0x944] ss:$16 sps:$4 sm:$0xff]   ;;  %v18160_v35 = vld [vmem:[%s25029_s11 + $0x94c] ss:$16 sps:$4 sm:$0xff]  }
 0x7dd   :  { %11841 = vmatprep.subr.bf16.mxu1 %v18094_v45  ;;  %v18155_v45 = vld [vmem:[%s25029_s11 + $0x940] ss:$16 sps:$4 sm:$0xff]  }
 0x7df   :  { %11514 = vmatpush1.bf16.msra.mxu0 %v18089_v40  ;;  %v18163_v40 = vld [vmem:[%s25029_s11 + $0x964] ss:$16 sps:$4 sm:$0xff]  }
 0x7e0   :  { %11842 = vmatpush1.bf16.msra.mxu1 %v18092_v5  ;;  %11524 = vmatprep.subr.bf16.mxu0 %v18097_v7  ;;  %v18161_v5 = vld [vmem:[%s25029_s11 + $0x960] ss:$16 sps:$4 sm:$0xff]   ;;  %v18164_v7 = vld [vmem:[%s25029_s11 + $0x968] ss:$16 sps:$4 sm:$0xff]  }
 0x7e1   :  { %11852 = vmatprep.subr.bf16.mxu1 %v18100_v50  ;;  %v18169_v50 = vld [vmem:[%s25029_s11 + $0x984] ss:$16 sps:$4 sm:$0xff]  }
 0x7e2   :  { %11516 = vmatmul.mubr.bf16.vlgmr.msra.gmra.mrb[56].mxu0 %v8325_v46 }
 0x7e3   :  { %11844 = vmatmul.mubr.bf16.vlgmr.msra.gmra.mrb[56].mxu1 %v8325_v46  ;;  %11525 = vmatpush1.bf16.msra.mxu0 %v18095_v9  ;;  %v18167_v9 = vld [vmem:[%s25029_s11 + $0x980] ss:$16 sps:$4 sm:$0xff]   ;;  %v18170_v46 = vld [vmem:[%s25029_s11 + $0x988] ss:$16 sps:$4 sm:$0xff]  }
 0x7e4   :  { %11556 = vmatprep.mubr.bf16.mxu0 %v8328_v19  ;;  %11853 = vmatpush1.bf16.msra.mxu1 %v18098_v14  ;;  %v18175_v14 = vld [vmem:[%s25029_s11 + $0x9a4] ss:$16 sps:$4 sm:$0xff]  }
 0x7e5   :  { %11884 = vmatprep.mubr.bf16.mxu1 %v8328_v19  ;;  %11526 = vmatprep.subr.bf16.mxu0 %v18103_v15  ;;  %v18178_v15 = vld [vmem:[%s25029_s11 + $0x9ac] ss:$16 sps:$4 sm:$0xff]   ;;  %v18173_v19 = vld [vmem:[%s25029_s11 + $0x9a0] ss:$16 sps:$4 sm:$0xff]  }
 0x7e6   :  { %11854 = vmatprep.subr.bf16.mxu1 %v18106_v12  ;;  %v18996_v12 = vld [vmem:[%s25031_s10 + $0x8] sm:$0xff] }
 0x7e7   :  { %11527 = vmatpush1.bf16.msra.mxu0 %v18101_v20  ;;  %v7814_v20 = vrot.slane %v18996_v12, %v19907_v24  ;;  %v18247_v12 = vld [vmem:[%s25029_s11 + $0xb24] ss:$16 sps:$4 sm:$0xff]  }
 0x7e8   :  { %11855 = vmatpush1.bf16.msra.mxu1 %v18104_v29  ;;  %11528 = vmatprep.subr.bf16.mxu0 %v18109_v33  ;;  %v18176_v29 = vld [vmem:[%s25029_s11 + $0x9a8] ss:$16 sps:$4 sm:$0xff]   ;;  %v18181_v33 = vld [vmem:[%s25029_s11 + $0x9c4] ss:$16 sps:$4 sm:$0xff]  }
 0x7e9   :  { %11856 = vmatprep.subr.bf16.mxu1 %v18112_v37  ;;  %v18184_v37 = vld [vmem:[%s25029_s11 + $0x9cc] ss:$16 sps:$4 sm:$0xff]  }
 0x7eb   :  { %11529 = vmatpush1.bf16.msra.mxu0 %v18107_v38  ;;  %v18179_v38 = vld [vmem:[%s25029_s11 + $0x9c0] ss:$16 sps:$4 sm:$0xff]  }
 0x7ec   :  { %11857 = vmatpush1.bf16.msra.mxu1 %v18110_v47  ;;  %11530 = vmatprep.subr.bf16.mxu0 %v18115_v0  ;;  %v8174_v47 = vadd.f32 %v22579_v49, %v7814_v20  ;;  %v18182_v0 = vld [vmem:[%s25029_s11 + $0x9c8] ss:$16 sps:$4 sm:$0xff]   ;;  %v18185_v49 = vld [vmem:[%s25029_s11 + $0x9e0] ss:$16 sps:$4 sm:$0xff]   ;;  %v18250_v20 = vld [vmem:[%s25029_s11 + $0xb2c] ss:$16 sps:$4 sm:$0xff]  }
 0x7ed   :  { %11858 = vmatprep.subr.bf16.mxu1 %v18118_v18  ;;  %v18187_v18 = vld [vmem:[%s25029_s11 + $0x9e4] ss:$16 sps:$4 sm:$0xff]  }
 0x7ef   :  { %11531 = vmatpush1.bf16.msra.mxu0 %v18113_v17  ;;  %v18190_v17 = vld [vmem:[%s25029_s11 + $0x9ec] ss:$16 sps:$4 sm:$0xff]  }
 0x7f0   :  { %11859 = vmatpush1.bf16.msra.mxu1 %v18116_v42  ;;  %11532 = vmatprep.subr.bf16.mxu0 %v18121_v11  ;;  %v8311_v42 = vmax.f32 %v8174_v47, 0.0  ;;  %v18188_v11 = vld [vmem:[%s25029_s11 + $0x9e8] ss:$16 sps:$4 sm:$0xff]   ;;  %v18251_v47 = vld [vmem:[%s25029_s11 + $0xb40] ss:$16 sps:$4 sm:$0xff]  }
 0x7f1   :  { %11860 = vmatprep.subr.bf16.mxu1 %v18124_v44  ;;  %v18193_v44 = vld [vmem:[%s25029_s11 + $0xa04] ss:$16 sps:$4 sm:$0xff]  }
 0x7f3   :  { %11533 = vmatpush1.bf16.msra.mxu0 %v18119_v28  ;;  %v18196_v28 = vld [vmem:[%s25029_s11 + $0xa0c] ss:$16 sps:$4 sm:$0xff]  }
 0x7f4   :  { %11861 = vmatpush1.bf16.msra.mxu1 %v18122_v53  ;;  %11534 = vmatprep.subr.bf16.mxu0 %v18127_v6  ;;  %v8314_v53 = vmax.f32 %v22517_v13, 0.0  ;;  %v18191_v6 = vld [vmem:[%s25029_s11 + $0xa00] ss:$16 sps:$4 sm:$0xff]   ;;  %v18202_v13 = vld [vmem:[%s25029_s11 + $0xa2c] ss:$16 sps:$4 sm:$0xff]  }
 0x7f5   :  { %11862 = vmatprep.subr.bf16.mxu1 %v18130_v48  ;;  %v8327_v48 = vpack.c.bf16 %v8311_v42, %v8311_v42  ;;  %v18260_v42 = vld [vmem:[%s25029_s11 + $0xb68] ss:$16 sps:$4 sm:$0xff]  }
 0x7f7   :  { %11535 = vmatpush1.bf16.msra.mxu0 %v18125_v43  ;;  %v18194_v43 = vld [vmem:[%s25029_s11 + $0xa08] ss:$16 sps:$4 sm:$0xff]  }
 0x7f8   :  { %11863 = vmatpush1.bf16.msra.mxu1 %v18128_v10  ;;  %11536 = vmatprep.subr.bf16.mxu0 %v18133_v63  ;;  %v18199_v10 = vld [vmem:[%s25029_s11 + $0xa24] ss:$16 sps:$4 sm:$0xff]   ;;  %v8330_v63 = vpack.c.bf16 %v8314_v53, %v8314_v53  ;;  %v18266_v53 = vld [vmem:[%s25029_s11 + $0xb88] ss:$16 sps:$4 sm:$0xff]  }
 0x7f9   :  { %11864 = vmatprep.subr.bf16.mxu1 %v18136_v25  ;;  %v18197_v25 = vld [vmem:[%s25029_s11 + $0xa20] ss:$16 sps:$4 sm:$0xff]  }
 0x7fb   :  { %11537 = vmatpush1.bf16.msra.mxu0 %v18131_v51  ;;  %v18200_v51 = vld [vmem:[%s25029_s11 + $0xa28] ss:$16 sps:$4 sm:$0xff]  }
 0x7fc   :  { %11865 = vmatpush1.bf16.msra.mxu1 %v18134_v54  ;;  %11538 = vmatprep.subr.bf16.mxu0 %v18139_v16  ;;  %v18205_v54 = vld [vmem:[%s25029_s11 + $0xa44] ss:$16 sps:$4 sm:$0xff]   ;;  %v18208_v16 = vld [vmem:[%s25029_s11 + $0xa4c] ss:$16 sps:$4 sm:$0xff]  }
 0x7fd   :  { %11866 = vmatprep.subr.bf16.mxu1 %v18142_v55  ;;  %v18203_v55 = vld [vmem:[%s25029_s11 + $0xa40] ss:$16 sps:$4 sm:$0xff]  }
 0x7ff   :  { %11539 = vmatpush1.bf16.msra.mxu0 %v18137_v56  ;;  %v18206_v56 = vld [vmem:[%s25029_s11 + $0xa48] ss:$16 sps:$4 sm:$0xff]  }
 0x800   :  { %11867 = vmatpush1.bf16.msra.mxu1 %v18140_v23  ;;  %11540 = vmatprep.subr.bf16.mxu0 %v18145_v57  ;;  %v18211_v23 = vld [vmem:[%s25029_s11 + $0xa64] ss:$16 sps:$4 sm:$0xff]   ;;  %v18214_v57 = vld [vmem:[%s25029_s11 + $0xa6c] ss:$16 sps:$4 sm:$0xff]  }
 0x801   :  { %11868 = vmatprep.subr.bf16.mxu1 %v18148_v58  ;;  %v18209_v58 = vld [vmem:[%s25029_s11 + $0xa60] ss:$16 sps:$4 sm:$0xff]  }
 0x803   :  { %11541 = vmatpush1.bf16.msra.mxu0 %v18143_v22  ;;  %v18212_v22 = vld [vmem:[%s25029_s11 + $0xa68] ss:$16 sps:$4 sm:$0xff]  }
 0x804   :  { %11869 = vmatpush1.bf16.msra.mxu1 %v18146_v32  ;;  %11542 = vmatprep.subr.bf16.mxu0 %v18151_v4  ;;  %v18217_v32 = vld [vmem:[%s25029_s11 + $0xa84] ss:$16 sps:$4 sm:$0xff]   ;;  %v18220_v4 = vld [vmem:[%s25029_s11 + $0xa8c] ss:$16 sps:$4 sm:$0xff]  }
 0x805   :  { %11870 = vmatprep.subr.bf16.mxu1 %v18154_v60  ;;  %v18215_v60 = vld [vmem:[%s25029_s11 + $0xa80] ss:$16 sps:$4 sm:$0xff]  }
 0x807   :  { %11543 = vmatpush1.bf16.msra.mxu0 %v18149_v39  ;;  %v18218_v39 = vld [vmem:[%s25029_s11 + $0xa88] ss:$16 sps:$4 sm:$0xff]  }
 0x808   :  { %11871 = vmatpush1.bf16.msra.mxu1 %v18152_v62  ;;  %11544 = vmatprep.subr.bf16.mxu0 %v18157_v31  ;;  %v18223_v62 = vld [vmem:[%s25029_s11 + $0xaa4] ss:$16 sps:$4 sm:$0xff]   ;;  %v18226_v31 = vld [vmem:[%s25029_s11 + $0xaac] ss:$16 sps:$4 sm:$0xff]  }
 0x809   :  { %11872 = vmatprep.subr.bf16.mxu1 %v18160_v35  ;;  %v18221_v35 = vld [vmem:[%s25029_s11 + $0xaa0] ss:$16 sps:$4 sm:$0xff]  }
 0x80b   :  { %11545 = vmatpush1.bf16.msra.mxu0 %v18155_v45  ;;  %v18224_v45 = vld [vmem:[%s25029_s11 + $0xaa8] ss:$16 sps:$4 sm:$0xff]  }
 0x80c   :  { %11873 = vmatpush1.bf16.msra.mxu1 %v18158_v2  ;;  %11546 = vmatprep.subr.bf16.mxu0 %v18163_v40  ;;  %v18229_v2 = vld [vmem:[%s25029_s11 + $0xac4] ss:$16 sps:$4 sm:$0xff]   ;;  %v18232_v40 = vld [vmem:[%s25029_s11 + $0xacc] ss:$16 sps:$4 sm:$0xff]  }
 0x80d   :  { %11874 = vmatprep.subr.bf16.mxu1 %v18166_v3  ;;  %v18227_v3 = vld [vmem:[%s25029_s11 + $0xac0] ss:$16 sps:$4 sm:$0xff]  }
 0x80f   :  { %11547 = vmatpush1.bf16.msra.mxu0 %v18161_v5  ;;  %v18230_v5 = vld [vmem:[%s25029_s11 + $0xac8] ss:$16 sps:$4 sm:$0xff]  }
 0x810   :  { %11875 = vmatpush1.bf16.msra.mxu1 %v18164_v7  ;;  %11548 = vmatprep.subr.bf16.mxu0 %v18169_v50  ;;  %v18235_v7 = vld [vmem:[%s25029_s11 + $0xae4] ss:$16 sps:$4 sm:$0xff]   ;;  %v18238_v50 = vld [vmem:[%s25029_s11 + $0xaec] ss:$16 sps:$4 sm:$0xff]  }
 0x811   :  { %11876 = vmatprep.subr.bf16.mxu1 %v18172_v8  ;;  %v18233_v8 = vld [vmem:[%s25029_s11 + $0xae0] ss:$16 sps:$4 sm:$0xff]  }
 0x813   :  { %11549 = vmatpush1.bf16.msra.mxu0 %v18167_v9  ;;  %v18236_v9 = vld [vmem:[%s25029_s11 + $0xae8] ss:$16 sps:$4 sm:$0xff]  }
 0x814   :  { %11877 = vmatpush1.bf16.msra.mxu1 %v18170_v46  ;;  %11550 = vmatprep.subr.bf16.mxu0 %v18175_v14  ;;  %v18241_v46 = vld [vmem:[%s25029_s11 + $0xb04] ss:$16 sps:$4 sm:$0xff]   ;;  %v18244_v14 = vld [vmem:[%s25029_s11 + $0xb0c] ss:$16 sps:$4 sm:$0xff]  }
 0x815   :  { %11878 = vmatprep.subr.bf16.mxu1 %v18178_v15  ;;  %v18239_v15 = vld [vmem:[%s25029_s11 + $0xb00] ss:$16 sps:$4 sm:$0xff]  }
 0x817   :  { %11551 = vmatpush1.bf16.msra.mxu0 %v18173_v19  ;;  %v18242_v19 = vld [vmem:[%s25029_s11 + $0xb08] ss:$16 sps:$4 sm:$0xff]  }
 0x818   :  { %11879 = vmatpush1.bf16.msra.mxu1 %v18176_v29  ;;  %11552 = vmatprep.subr.bf16.mxu0 %v18181_v33  ;;  %v18245_v29 = vld [vmem:[%s25029_s11 + $0xb20] ss:$16 sps:$4 sm:$0xff]   ;;  %v18248_v33 = vld [vmem:[%s25029_s11 + $0xb28] ss:$16 sps:$4 sm:$0xff]  }
 0x819   :  { %11880 = vmatprep.subr.bf16.mxu1 %v18184_v37  ;;  %v18253_v37 = vld [vmem:[%s25029_s11 + $0xb44] ss:$16 sps:$4 sm:$0xff]  }
 0x81b   :  { %11553 = vmatpush1.bf16.msra.mxu0 %v18179_v38  ;;  %v18256_v38 = vld [vmem:[%s25029_s11 + $0xb4c] ss:$16 sps:$4 sm:$0xff]  }
 0x81c   :  { %11881 = vmatpush1.bf16.msra.mxu1 %v18182_v0  ;;  %11554 = vmatprep.subr.bf16.mxu0 %v18187_v18  ;;  %v18254_v0 = vld [vmem:[%s25029_s11 + $0xb48] ss:$16 sps:$4 sm:$0xff]   ;;  %v18259_v18 = vld [vmem:[%s25029_s11 + $0xb64] ss:$16 sps:$4 sm:$0xff]  }
 0x81d   :  { %11882 = vmatprep.subr.bf16.mxu1 %v18190_v17  ;;  %v18262_v17 = vld [vmem:[%s25029_s11 + $0xb6c] ss:$16 sps:$4 sm:$0xff]  }
 0x81f   :  { %11555 = vmatpush1.bf16.msra.mxu0 %v18185_v49  ;;  %v18257_v49 = vld [vmem:[%s25029_s11 + $0xb60] ss:$16 sps:$4 sm:$0xff]  }
 0x820   :  { %11883 = vmatpush1.bf16.msra.mxu1 %v18188_v11  ;;  %11565 = vmatprep.subr.bf16.mxu0 %v18193_v44  ;;  %v18265_v11 = vld [vmem:[%s25029_s11 + $0xb84] ss:$16 sps:$4 sm:$0xff]   ;;  %v18268_v44 = vld [vmem:[%s25029_s11 + $0xb8c] ss:$16 sps:$4 sm:$0xff]  }
 0x821   :  { %11893 = vmatprep.subr.bf16.mxu1 %v18196_v28  ;;  %v18263_v28 = vld [vmem:[%s25029_s11 + $0xb80] ss:$16 sps:$4 sm:$0xff]  }
 0x822   :  { %11557 = vmatmul.mubr.bf16.vlgmr.msra.gmra.mrb[56].mxu0 %v8327_v48 }
 0x823   :  { %11885 = vmatmul.mubr.bf16.vlgmr.msra.gmra.mrb[56].mxu1 %v8327_v48  ;;  %11566 = vmatpush1.bf16.msra.mxu0 %v18191_v6  ;;  %v18271_v6 = vld [vmem:[%s25029_s11 + $0xba4] ss:$16 sps:$4 sm:$0xff]   ;;  %v18274_v48 = vld [vmem:[%s25029_s11 + $0xbac] ss:$16 sps:$4 sm:$0xff]  }
 0x824   :  { %11597 = vmatprep.mubr.bf16.mxu0 %v8330_v63  ;;  %11894 = vmatpush1.bf16.msra.mxu1 %v18194_v43  ;;  %v18269_v43 = vld [vmem:[%s25029_s11 + $0xba0] ss:$16 sps:$4 sm:$0xff]  }
 0x825   :  { %11925 = vmatprep.mubr.bf16.mxu1 %v8330_v63  ;;  %11567 = vmatprep.subr.bf16.mxu0 %v18199_v10  ;;  %v18272_v10 = vld [vmem:[%s25029_s11 + $0xba8] ss:$16 sps:$4 sm:$0xff]   ;;  %v18277_v63 = vld [vmem:[%s25029_s11 + $0xbc4] ss:$16 sps:$4 sm:$0xff]  }
 0x826   :  { %11895 = vmatprep.subr.bf16.mxu1 %v18202_v13  ;;  %v18280_v13 = vld [vmem:[%s25029_s11 + $0xbcc] ss:$16 sps:$4 sm:$0xff]  }
 0x827   :  { %11568 = vmatpush1.bf16.msra.mxu0 %v18197_v25  ;;  %v18275_v25 = vld [vmem:[%s25029_s11 + $0xbc0] ss:$16 sps:$4 sm:$0xff]  }
 0x828   :  { %11896 = vmatpush1.bf16.msra.mxu1 %v18200_v51  ;;  %11569 = vmatprep.subr.bf16.mxu0 %v18205_v54  ;;  %v18278_v51 = vld [vmem:[%s25029_s11 + $0xbc8] ss:$16 sps:$4 sm:$0xff]   ;;  %v18283_v54 = vld [vmem:[%s25029_s11 + $0xbe4] ss:$16 sps:$4 sm:$0xff]  }
 0x829   :  { %11897 = vmatprep.subr.bf16.mxu1 %v18208_v16  ;;  %v18286_v16 = vld [vmem:[%s25029_s11 + $0xbec] ss:$16 sps:$4 sm:$0xff]  }
 0x82b   :  { %11570 = vmatpush1.bf16.msra.mxu0 %v18203_v55  ;;  %v18281_v55 = vld [vmem:[%s25029_s11 + $0xbe0] ss:$16 sps:$4 sm:$0xff]  }
 0x82c   :  { %11898 = vmatpush1.bf16.msra.mxu1 %v18206_v56  ;;  %11571 = vmatprep.subr.bf16.mxu0 %v18211_v23  ;;  %v18284_v56 = vld [vmem:[%s25029_s11 + $0xbe8] ss:$16 sps:$4 sm:$0xff]   ;;  %v8313_v23 = vmax.f32 %v22515_v59, 0.0 }
 0x82d   :  { %11899 = vmatprep.subr.bf16.mxu1 %v18214_v57  ;;  %v18289_v57 = vld [vmem:[%s25029_s11 + $0xc04] ss:$16 sps:$4 sm:$0xff]   ;;  %v18290_v59 = vld [vmem:[%s25029_s11 + $0xc08] ss:$16 sps:$4 sm:$0xff]  }
 0x82f   :  { %11572 = vmatpush1.bf16.msra.mxu0 %v18209_v58  ;;  %v18292_v58 = vld [vmem:[%s25029_s11 + $0xc0c] ss:$16 sps:$4 sm:$0xff]  }
 0x830   :  { %11900 = vmatpush1.bf16.msra.mxu1 %v18212_v22  ;;  %11573 = vmatprep.subr.bf16.mxu0 %v18217_v32  ;;  %v8316_v22 = vmax.f32 %v22613_v1, 0.0  ;;  %v18287_v32 = vld [vmem:[%s25029_s11 + $0xc00] ss:$16 sps:$4 sm:$0xff]  }
 0x831   :  { %11901 = vmatprep.subr.bf16.mxu1 %v18220_v4  ;;  %v8329_v4 = vpack.c.bf16 %v8313_v23, %v8313_v23  ;;  %v18293_v1 = vld [vmem:[%s25029_s11 + $0xc20] ss:$16 sps:$4 sm:$0xff]   ;;  %v18364_v23 = vld [vmem:[%s25029_s11 + $0xd8c] ss:$16 sps:$4 sm:$0xff]  }
 0x833   :  { %11574 = vmatpush1.bf16.msra.mxu0 %v18215_v60  ;;  %v18295_v60 = vld [vmem:[%s25029_s11 + $0xc24] ss:$16 sps:$4 sm:$0xff]  }
 0x834   :  { %11902 = vmatpush1.bf16.msra.mxu1 %v18218_v39  ;;  %11575 = vmatprep.subr.bf16.mxu0 %v18223_v62  ;;  %v8332_v39 = vpack.c.bf16 %v8316_v22, %v8316_v22  ;;  %v18298_v62 = vld [vmem:[%s25029_s11 + $0xc2c] ss:$16 sps:$4 sm:$0xff]  }
 0x835   :  { %11903 = vmatprep.subr.bf16.mxu1 %v18226_v31  ;;  %v18296_v31 = vld [vmem:[%s25029_s11 + $0xc28] ss:$16 sps:$4 sm:$0xff]   ;;  %v18370_v22 = vld [vmem:[%s25029_s11 + $0xdac] ss:$16 sps:$4 sm:$0xff]  }
 0x837   :  { %11576 = vmatpush1.bf16.msra.mxu0 %v18221_v35  ;;  %v18301_v35 = vld [vmem:[%s25029_s11 + $0xc44] ss:$16 sps:$4 sm:$0xff]  }
 0x838   :  { %11904 = vmatpush1.bf16.msra.mxu1 %v18224_v45  ;;  %11577 = vmatprep.subr.bf16.mxu0 %v18229_v2  ;;  %v18299_v45 = vld [vmem:[%s25029_s11 + $0xc40] ss:$16 sps:$4 sm:$0xff]   ;;  %v18304_v2 = vld [vmem:[%s25029_s11 + $0xc4c] ss:$16 sps:$4 sm:$0xff]  }
 0x839   :  { %11905 = vmatprep.subr.bf16.mxu1 %v18232_v40  ;;  %v18302_v40 = vld [vmem:[%s25029_s11 + $0xc48] ss:$16 sps:$4 sm:$0xff]  }
 0x83b   :  { %11578 = vmatpush1.bf16.msra.mxu0 %v18227_v3  ;;  %v18307_v3 = vld [vmem:[%s25029_s11 + $0xc64] ss:$16 sps:$4 sm:$0xff]  }
 0x83c   :  { %11906 = vmatpush1.bf16.msra.mxu1 %v18230_v5  ;;  %11579 = vmatprep.subr.bf16.mxu0 %v18235_v7  ;;  %v18305_v5 = vld [vmem:[%s25029_s11 + $0xc60] ss:$16 sps:$4 sm:$0xff]   ;;  %v18310_v7 = vld [vmem:[%s25029_s11 + $0xc6c] ss:$16 sps:$4 sm:$0xff]  }
 0x83d   :  { %11907 = vmatprep.subr.bf16.mxu1 %v18238_v50  ;;  %v18308_v50 = vld [vmem:[%s25029_s11 + $0xc68] ss:$16 sps:$4 sm:$0xff]  }
 0x83f   :  { %11580 = vmatpush1.bf16.msra.mxu0 %v18233_v8  ;;  %v18313_v8 = vld [vmem:[%s25029_s11 + $0xc84] ss:$16 sps:$4 sm:$0xff]  }
 0x840   :  { %11908 = vmatpush1.bf16.msra.mxu1 %v18236_v9  ;;  %11581 = vmatprep.subr.bf16.mxu0 %v18241_v46  ;;  %v18311_v9 = vld [vmem:[%s25029_s11 + $0xc80] ss:$16 sps:$4 sm:$0xff]   ;;  %v18316_v46 = vld [vmem:[%s25029_s11 + $0xc8c] ss:$16 sps:$4 sm:$0xff]  }
 0x841   :  { %11909 = vmatprep.subr.bf16.mxu1 %v18244_v14  ;;  %v18314_v14 = vld [vmem:[%s25029_s11 + $0xc88] ss:$16 sps:$4 sm:$0xff]  }
 0x843   :  { %11582 = vmatpush1.bf16.msra.mxu0 %v18239_v15  ;;  %v18319_v15 = vld [vmem:[%s25029_s11 + $0xca4] ss:$16 sps:$4 sm:$0xff]  }
 0x844   :  { %11910 = vmatpush1.bf16.msra.mxu1 %v18242_v19  ;;  %11583 = vmatprep.subr.bf16.mxu0 %v18247_v12  ;;  %v18317_v19 = vld [vmem:[%s25029_s11 + $0xca0] ss:$16 sps:$4 sm:$0xff]   ;;  %v18322_v12 = vld [vmem:[%s25029_s11 + $0xcac] ss:$16 sps:$4 sm:$0xff]  }
 0x845   :  { %11911 = vmatprep.subr.bf16.mxu1 %v18250_v20  ;;  %v18320_v20 = vld [vmem:[%s25029_s11 + $0xca8] ss:$16 sps:$4 sm:$0xff]  }
 0x847   :  { %11584 = vmatpush1.bf16.msra.mxu0 %v18245_v29  ;;  %v18325_v29 = vld [vmem:[%s25029_s11 + $0xcc4] ss:$16 sps:$4 sm:$0xff]  }
 0x848   :  { %11912 = vmatpush1.bf16.msra.mxu1 %v18248_v33  ;;  %11585 = vmatprep.subr.bf16.mxu0 %v18253_v37  ;;  %v18323_v33 = vld [vmem:[%s25029_s11 + $0xcc0] ss:$16 sps:$4 sm:$0xff]   ;;  %v18328_v37 = vld [vmem:[%s25029_s11 + $0xccc] ss:$16 sps:$4 sm:$0xff]  }
 0x849   :  { %11913 = vmatprep.subr.bf16.mxu1 %v18256_v38  ;;  %v18326_v38 = vld [vmem:[%s25029_s11 + $0xcc8] ss:$16 sps:$4 sm:$0xff]  }
 0x84b   :  { %11586 = vmatpush1.bf16.msra.mxu0 %v18251_v47  ;;  %v18331_v47 = vld [vmem:[%s25029_s11 + $0xce4] ss:$16 sps:$4 sm:$0xff]  }
 0x84c   :  { %11914 = vmatpush1.bf16.msra.mxu1 %v18254_v0  ;;  %11587 = vmatprep.subr.bf16.mxu0 %v18259_v18  ;;  %v18329_v0 = vld [vmem:[%s25029_s11 + $0xce0] ss:$16 sps:$4 sm:$0xff]   ;;  %v18334_v18 = vld [vmem:[%s25029_s11 + $0xcec] ss:$16 sps:$4 sm:$0xff]  }
 0x84d   :  { %11915 = vmatprep.subr.bf16.mxu1 %v18262_v17  ;;  %v18332_v17 = vld [vmem:[%s25029_s11 + $0xce8] ss:$16 sps:$4 sm:$0xff]  }
 0x84f   :  { %11588 = vmatpush1.bf16.msra.mxu0 %v18257_v49  ;;  %v18337_v49 = vld [vmem:[%s25029_s11 + $0xd04] ss:$16 sps:$4 sm:$0xff]  }
 0x850   :  { %11916 = vmatpush1.bf16.msra.mxu1 %v18260_v42  ;;  %11589 = vmatprep.subr.bf16.mxu0 %v18265_v11  ;;  %v18335_v42 = vld [vmem:[%s25029_s11 + $0xd00] ss:$16 sps:$4 sm:$0xff]   ;;  %v18340_v11 = vld [vmem:[%s25029_s11 + $0xd0c] ss:$16 sps:$4 sm:$0xff]  }
 0x851   :  { %11917 = vmatprep.subr.bf16.mxu1 %v18268_v44  ;;  %v18338_v44 = vld [vmem:[%s25029_s11 + $0xd08] ss:$16 sps:$4 sm:$0xff]  }
 0x853   :  { %11590 = vmatpush1.bf16.msra.mxu0 %v18263_v28  ;;  %v18343_v28 = vld [vmem:[%s25029_s11 + $0xd24] ss:$16 sps:$4 sm:$0xff]  }
 0x854   :  { %11918 = vmatpush1.bf16.msra.mxu1 %v18266_v53  ;;  %11591 = vmatprep.subr.bf16.mxu0 %v18271_v6  ;;  %v18341_v53 = vld [vmem:[%s25029_s11 + $0xd20] ss:$16 sps:$4 sm:$0xff]   ;;  %v18346_v6 = vld [vmem:[%s25029_s11 + $0xd2c] ss:$16 sps:$4 sm:$0xff]  }
 0x855   :  { %11919 = vmatprep.subr.bf16.mxu1 %v18274_v48  ;;  %v18344_v48 = vld [vmem:[%s25029_s11 + $0xd28] ss:$16 sps:$4 sm:$0xff]  }
 0x857   :  { %11592 = vmatpush1.bf16.msra.mxu0 %v18269_v43  ;;  %v18349_v43 = vld [vmem:[%s25029_s11 + $0xd44] ss:$16 sps:$4 sm:$0xff]  }
 0x858   :  { %11920 = vmatpush1.bf16.msra.mxu1 %v18272_v10  ;;  %11593 = vmatprep.subr.bf16.mxu0 %v18277_v63  ;;  %v18347_v10 = vld [vmem:[%s25029_s11 + $0xd40] ss:$16 sps:$4 sm:$0xff]   ;;  %v18352_v63 = vld [vmem:[%s25029_s11 + $0xd4c] ss:$16 sps:$4 sm:$0xff]  }
 0x859   :  { %11921 = vmatprep.subr.bf16.mxu1 %v18280_v13  ;;  %v18350_v13 = vld [vmem:[%s25029_s11 + $0xd48] ss:$16 sps:$4 sm:$0xff]  }
 0x85b   :  { %11594 = vmatpush1.bf16.msra.mxu0 %v18275_v25  ;;  %v18355_v25 = vld [vmem:[%s25029_s11 + $0xd64] ss:$16 sps:$4 sm:$0xff]  }
 0x85c   :  { %11922 = vmatpush1.bf16.msra.mxu1 %v18278_v51  ;;  %11595 = vmatprep.subr.bf16.mxu0 %v18283_v54  ;;  %v18353_v51 = vld [vmem:[%s25029_s11 + $0xd60] ss:$16 sps:$4 sm:$0xff]   ;;  %v18358_v54 = vld [vmem:[%s25029_s11 + $0xd6c] ss:$16 sps:$4 sm:$0xff]  }
 0x85d   :  { %11923 = vmatprep.subr.bf16.mxu1 %v18286_v16  ;;  %v18356_v16 = vld [vmem:[%s25029_s11 + $0xd68] ss:$16 sps:$4 sm:$0xff]  }
 0x85f   :  { %11596 = vmatpush1.bf16.msra.mxu0 %v18281_v55  ;;  %v18361_v55 = vld [vmem:[%s25029_s11 + $0xd84] ss:$16 sps:$4 sm:$0xff]  }
 0x860   :  { %11924 = vmatpush1.bf16.msra.mxu1 %v18284_v56  ;;  %11606 = vmatprep.subr.bf16.mxu0 %v18289_v57  ;;  %v18359_v56 = vld [vmem:[%s25029_s11 + $0xd80] ss:$16 sps:$4 sm:$0xff]   ;;  %v18362_v57 = vld [vmem:[%s25029_s11 + $0xd88] ss:$16 sps:$4 sm:$0xff]  }
 0x861   :  { %11934 = vmatprep.subr.bf16.mxu1 %v18292_v58  ;;  %v18367_v58 = vld [vmem:[%s25029_s11 + $0xda4] ss:$16 sps:$4 sm:$0xff]  }
 0x862   :  { %11598 = vmatmul.mubr.bf16.vlgmr.msra.gmra.mrb[56].mxu0 %v8329_v4 }
 0x863   :  { %11926 = vmatmul.mubr.bf16.vlgmr.msra.gmra.mrb[56].mxu1 %v8329_v4  ;;  %11607 = vmatpush1.bf16.msra.mxu0 %v18287_v32  ;;  %v18365_v32 = vld [vmem:[%s25029_s11 + $0xda0] ss:$16 sps:$4 sm:$0xff]   ;;  %v18368_v4 = vld [vmem:[%s25029_s11 + $0xda8] ss:$16 sps:$4 sm:$0xff]  }
 0x864   :  { %11638 = vmatprep.mubr.bf16.mxu0 %v8332_v39  ;;  %11935 = vmatpush1.bf16.msra.mxu1 %v18290_v59  ;;  %v18373_v59 = vld [vmem:[%s25029_s11 + $0xdc4] ss:$16 sps:$4 sm:$0xff]  }
 0x865   :  { %11966 = vmatprep.mubr.bf16.mxu1 %v8332_v39  ;;  %11608 = vmatprep.subr.bf16.mxu0 %v18295_v60  ;;  %v18376_v60 = vld [vmem:[%s25029_s11 + $0xdcc] ss:$16 sps:$4 sm:$0xff]   ;;  %v18371_v39 = vld [vmem:[%s25029_s11 + $0xdc0] ss:$16 sps:$4 sm:$0xff]  }
 0x866   :  { %11936 = vmatprep.subr.bf16.mxu1 %v18298_v62  ;;  %v18379_v62 = vld [vmem:[%s25029_s11 + $0xde4] ss:$16 sps:$4 sm:$0xff]  }
 0x867   :  { %11609 = vmatpush1.bf16.msra.mxu0 %v18293_v1  ;;  %v18374_v1 = vld [vmem:[%s25029_s11 + $0xdc8] ss:$16 sps:$4 sm:$0xff]  }
 0x868   :  { %11937 = vmatpush1.bf16.msra.mxu1 %v18296_v31  ;;  %11610 = vmatprep.subr.bf16.mxu0 %v18301_v35  ;;  %v18382_v31 = vld [vmem:[%s25029_s11 + $0xdec] ss:$16 sps:$4 sm:$0xff]   ;;  %v18377_v35 = vld [vmem:[%s25029_s11 + $0xde0] ss:$16 sps:$4 sm:$0xff]  }
 0x869   :  { %11938 = vmatprep.subr.bf16.mxu1 %v18304_v2  ;;  %v18380_v2 = vld [vmem:[%s25029_s11 + $0xde8] ss:$16 sps:$4 sm:$0xff]  }
 0x86b   :  { %11611 = vmatpush1.bf16.msra.mxu0 %v18299_v45  ;;  %v8315_v45 = vmax.f32 %v22611_v61, 0.0  ;;  %v18383_v61 = vld [vmem:[%s25029_s11 + $0xe00] ss:$16 sps:$4 sm:$0xff]  }
 0x86c   :  { %11939 = vmatpush1.bf16.msra.mxu1 %v18302_v40  ;;  %11612 = vmatprep.subr.bf16.mxu0 %v18307_v3  ;;  %v18385_v40 = vld [vmem:[%s25029_s11 + $0xe04] ss:$16 sps:$4 sm:$0xff]   ;;  %v18388_v3 = vld [vmem:[%s25029_s11 + $0xe0c] ss:$16 sps:$4 sm:$0xff]  }
 0x86d   :  { %11940 = vmatprep.subr.bf16.mxu1 %v18310_v7  ;;  %v8331_v7 = vpack.c.bf16 %v8315_v45, %v8315_v45  ;;  %v8317_v45 = vmax.f32 %v22549_v30, 0.0  ;;  %v18461_v30 = vld [vmem:[%s25032_s13] ss:$16 sps:$4 sm:$0xff]  }
 0x86f   :  { %11613 = vmatpush1.bf16.msra.mxu0 %v18305_v5  ;;  %v8318_v5 = vmax.f32 %v22553_v34, 0.0  ;;  %v18394_v34 = vld [vmem:[%s25029_s11 + $0xe2c] ss:$16 sps:$4 sm:$0xff]  }
 0x870   :  { %11941 = vmatpush1.bf16.msra.mxu1 %v18308_v50  ;;  %11614 = vmatprep.subr.bf16.mxu0 %v18313_v8  ;;  %v18386_v50 = vld [vmem:[%s25029_s11 + $0xe08] ss:$16 sps:$4 sm:$0xff]   ;;  %v18391_v8 = vld [vmem:[%s25029_s11 + $0xe24] ss:$16 sps:$4 sm:$0xff]  }
 0x871   :  { %11942 = vmatprep.subr.bf16.mxu1 %v18316_v46  ;;  %v18389_v46 = vld [vmem:[%s25029_s11 + $0xe20] ss:$16 sps:$4 sm:$0xff]  }
 0x873   :  { %11615 = vmatpush1.bf16.msra.mxu0 %v18311_v9  ;;  %v8334_v9 = vpack.c.bf16 %v8318_v5, %v8318_v5  ;;  %v8333_v5 = vpack.c.bf16 %v8317_v45, %v8317_v45  ;;  %v18539_v45 = vld [vmem:[%s25032_s13 + $0x1a0] ss:$16 sps:$4 sm:$0xff]  }
 0x874   :  { %11943 = vmatpush1.bf16.msra.mxu1 %v18314_v14  ;;  %11616 = vmatprep.subr.bf16.mxu0 %v18319_v15  ;;  %v18392_v14 = vld [vmem:[%s25029_s11 + $0xe28] ss:$16 sps:$4 sm:$0xff]   ;;  %v18397_v15 = vld [vmem:[%s25029_s11 + $0xe44] ss:$16 sps:$4 sm:$0xff]  }
 0x875   :  { %11944 = vmatprep.subr.bf16.mxu1 %v18322_v12  ;;  %v18395_v12 = vld [vmem:[%s25029_s11 + $0xe40] ss:$16 sps:$4 sm:$0xff]  }
 0x877   :  { %11617 = vmatpush1.bf16.msra.mxu0 %v18317_v19  ;;  %v18400_v19 = vld [vmem:[%s25029_s11 + $0xe4c] ss:$16 sps:$4 sm:$0xff]  }
 0x878   :  { %11945 = vmatpush1.bf16.msra.mxu1 %v18320_v20  ;;  %11618 = vmatprep.subr.bf16.mxu0 %v18325_v29  ;;  %v18398_v20 = vld [vmem:[%s25029_s11 + $0xe48] ss:$16 sps:$4 sm:$0xff]   ;;  %v18403_v29 = vld [vmem:[%s25029_s11 + $0xe64] ss:$16 sps:$4 sm:$0xff]  }
 0x879   :  { %11946 = vmatprep.subr.bf16.mxu1 %v18328_v37  ;;  %v18401_v37 = vld [vmem:[%s25029_s11 + $0xe60] ss:$16 sps:$4 sm:$0xff]  }
 0x87b   :  { %11619 = vmatpush1.bf16.msra.mxu0 %v18323_v33  ;;  %v18406_v33 = vld [vmem:[%s25029_s11 + $0xe6c] ss:$16 sps:$4 sm:$0xff]  }
 0x87c   :  { %11947 = vmatpush1.bf16.msra.mxu1 %v18326_v38  ;;  %11620 = vmatprep.subr.bf16.mxu0 %v18331_v47  ;;  %v18404_v38 = vld [vmem:[%s25029_s11 + $0xe68] ss:$16 sps:$4 sm:$0xff]   ;;  %v18409_v47 = vld [vmem:[%s25029_s11 + $0xe84] ss:$16 sps:$4 sm:$0xff]  }
 0x87d   :  { %11948 = vmatprep.subr.bf16.mxu1 %v18334_v18  ;;  %v18407_v18 = vld [vmem:[%s25029_s11 + $0xe80] ss:$16 sps:$4 sm:$0xff]  }
 0x87f   :  { %11621 = vmatpush1.bf16.msra.mxu0 %v18329_v0  ;;  %v18412_v0 = vld [vmem:[%s25029_s11 + $0xe8c] ss:$16 sps:$4 sm:$0xff]  }
 0x880   :  { %11949 = vmatpush1.bf16.msra.mxu1 %v18332_v17  ;;  %11622 = vmatprep.subr.bf16.mxu0 %v18337_v49  ;;  %v18410_v17 = vld [vmem:[%s25029_s11 + $0xe88] ss:$16 sps:$4 sm:$0xff]   ;;  %v18415_v49 = vld [vmem:[%s25029_s11 + $0xea4] ss:$16 sps:$4 sm:$0xff]  }
 0x881   :  { %11950 = vmatprep.subr.bf16.mxu1 %v18340_v11  ;;  %v18413_v11 = vld [vmem:[%s25029_s11 + $0xea0] ss:$16 sps:$4 sm:$0xff]  }
 0x883   :  { %11623 = vmatpush1.bf16.msra.mxu0 %v18335_v42  ;;  %v18418_v42 = vld [vmem:[%s25029_s11 + $0xeac] ss:$16 sps:$4 sm:$0xff]  }
 0x884   :  { %11951 = vmatpush1.bf16.msra.mxu1 %v18338_v44  ;;  %11624 = vmatprep.subr.bf16.mxu0 %v18343_v28  ;;  %v18416_v44 = vld [vmem:[%s25029_s11 + $0xea8] ss:$16 sps:$4 sm:$0xff]   ;;  %v18421_v28 = vld [vmem:[%s25029_s11 + $0xec4] ss:$16 sps:$4 sm:$0xff]  }
 0x885   :  { %11952 = vmatprep.subr.bf16.mxu1 %v18346_v6  ;;  %v18419_v6 = vld [vmem:[%s25029_s11 + $0xec0] ss:$16 sps:$4 sm:$0xff]  }
 0x887   :  { %11625 = vmatpush1.bf16.msra.mxu0 %v18341_v53  ;;  %v18424_v53 = vld [vmem:[%s25029_s11 + $0xecc] ss:$16 sps:$4 sm:$0xff]  }
 0x888   :  { %11953 = vmatpush1.bf16.msra.mxu1 %v18344_v48  ;;  %11626 = vmatprep.subr.bf16.mxu0 %v18349_v43  ;;  %v18422_v48 = vld [vmem:[%s25029_s11 + $0xec8] ss:$16 sps:$4 sm:$0xff]   ;;  %v18427_v43 = vld [vmem:[%s25029_s11 + $0xee4] ss:$16 sps:$4 sm:$0xff]  }
 0x889   :  { %11954 = vmatprep.subr.bf16.mxu1 %v18352_v63  ;;  %v18425_v63 = vld [vmem:[%s25029_s11 + $0xee0] ss:$16 sps:$4 sm:$0xff]  }
 0x88b   :  { %11627 = vmatpush1.bf16.msra.mxu0 %v18347_v10  ;;  %v18430_v10 = vld [vmem:[%s25029_s11 + $0xeec] ss:$16 sps:$4 sm:$0xff]  }
 0x88c   :  { %11955 = vmatpush1.bf16.msra.mxu1 %v18350_v13  ;;  %11628 = vmatprep.subr.bf16.mxu0 %v18355_v25  ;;  %v18428_v13 = vld [vmem:[%s25029_s11 + $0xee8] ss:$16 sps:$4 sm:$0xff]   ;;  %v18433_v25 = vld [vmem:[%s25029_s11 + $0xf04] ss:$16 sps:$4 sm:$0xff]  }
 0x88d   :  { %11956 = vmatprep.subr.bf16.mxu1 %v18358_v54  ;;  %v18431_v54 = vld [vmem:[%s25029_s11 + $0xf00] ss:$16 sps:$4 sm:$0xff]  }
 0x88f   :  { %11629 = vmatpush1.bf16.msra.mxu0 %v18353_v51  ;;  %v18436_v51 = vld [vmem:[%s25029_s11 + $0xf0c] ss:$16 sps:$4 sm:$0xff]  }
 0x890   :  { %11957 = vmatpush1.bf16.msra.mxu1 %v18356_v16  ;;  %11630 = vmatprep.subr.bf16.mxu0 %v18361_v55  ;;  %v18434_v16 = vld [vmem:[%s25029_s11 + $0xf08] ss:$16 sps:$4 sm:$0xff]   ;;  %v18439_v55 = vld [vmem:[%s25029_s11 + $0xf24] ss:$16 sps:$4 sm:$0xff]  }
 0x891   :  { %11958 = vmatprep.subr.bf16.mxu1 %v18364_v23  ;;  %v18437_v23 = vld [vmem:[%s25029_s11 + $0xf20] ss:$16 sps:$4 sm:$0xff]  }
 0x893   :  { %11631 = vmatpush1.bf16.msra.mxu0 %v18359_v56  ;;  %v18442_v56 = vld [vmem:[%s25029_s11 + $0xf2c] ss:$16 sps:$4 sm:$0xff]  }
 0x894   :  { %11959 = vmatpush1.bf16.msra.mxu1 %v18362_v57  ;;  %11632 = vmatprep.subr.bf16.mxu0 %v18367_v58  ;;  %v18440_v57 = vld [vmem:[%s25029_s11 + $0xf28] ss:$16 sps:$4 sm:$0xff]   ;;  %v18445_v58 = vld [vmem:[%s25029_s11 + $0xf44] ss:$16 sps:$4 sm:$0xff]  }
 0x895   :  { %11960 = vmatprep.subr.bf16.mxu1 %v18370_v22  ;;  %v18448_v22 = vld [vmem:[%s25029_s11 + $0xf4c] ss:$16 sps:$4 sm:$0xff]  }
 0x897   :  { %11633 = vmatpush1.bf16.msra.mxu0 %v18365_v32  ;;  %v18443_v32 = vld [vmem:[%s25029_s11 + $0xf40] ss:$16 sps:$4 sm:$0xff]  }
 0x898   :  { %11961 = vmatpush1.bf16.msra.mxu1 %v18368_v4  ;;  %11634 = vmatprep.subr.bf16.mxu0 %v18373_v59  ;;  %v18446_v4 = vld [vmem:[%s25029_s11 + $0xf48] ss:$16 sps:$4 sm:$0xff]   ;;  %v18451_v59 = vld [vmem:[%s25029_s11 + $0xf64] ss:$16 sps:$4 sm:$0xff]  }
 0x899   :  { %11962 = vmatprep.subr.bf16.mxu1 %v18376_v60  ;;  %v18454_v60 = vld [vmem:[%s25029_s11 + $0xf6c] ss:$16 sps:$4 sm:$0xff]  }
 0x89b   :  { %11635 = vmatpush1.bf16.msra.mxu0 %v18371_v39  ;;  %v18449_v39 = vld [vmem:[%s25029_s11 + $0xf60] ss:$16 sps:$4 sm:$0xff]  }
 0x89c   :  { %11963 = vmatpush1.bf16.msra.mxu1 %v18374_v1  ;;  %11636 = vmatprep.subr.bf16.mxu0 %v18379_v62  ;;  %v18452_v1 = vld [vmem:[%s25029_s11 + $0xf68] ss:$16 sps:$4 sm:$0xff]   ;;  %v18457_v62 = vld [vmem:[%s25029_s11 + $0xf84] ss:$16 sps:$4 sm:$0xff]  }
 0x89d   :  { %11964 = vmatprep.subr.bf16.mxu1 %v18382_v31  ;;  %v18460_v31 = vld [vmem:[%s25029_s11 + $0xf8c] ss:$16 sps:$4 sm:$0xff]  }
 0x89f   :  { %11637 = vmatpush1.bf16.msra.mxu0 %v18377_v35  ;;  %v18455_v35 = vld [vmem:[%s25029_s11 + $0xf80] ss:$16 sps:$4 sm:$0xff]  }
 0x8a0   :  { %11965 = vmatpush1.bf16.msra.mxu1 %v18380_v2  ;;  %11647 = vmatprep.subr.bf16.mxu0 %v18385_v40  ;;  %v18458_v2 = vld [vmem:[%s25029_s11 + $0xf88] ss:$16 sps:$4 sm:$0xff]   ;;  %v18463_v40 = vld [vmem:[%s25032_s13 + $0x4] ss:$16 sps:$4 sm:$0xff]  }
 0x8a1   :  { %11975 = vmatprep.subr.bf16.mxu1 %v18388_v3  ;;  %v18466_v3 = vld [vmem:[%s25032_s13 + $0xc] ss:$16 sps:$4 sm:$0xff]  }
 0x8a2   :  { %11639 = vmatmul.mubr.bf16.vlgmr.msra.gmra.mrb[56].mxu0 %v8331_v7 }
 0x8a3   :  { %11967 = vmatmul.mubr.bf16.vlgmr.msra.gmra.mrb[56].mxu1 %v8331_v7  ;;  %11648 = vmatpush1.bf16.msra.mxu0 %v18383_v61  ;;  %v18464_v61 = vld [vmem:[%s25032_s13 + $0x8] ss:$16 sps:$4 sm:$0xff]   ;;  %v18469_v7 = vld [vmem:[%s25032_s13 + $0x24] ss:$16 sps:$4 sm:$0xff]  }
 0x8a4   :  { %16336 = vmatprep.mubr.msk.bf16.mxu0 %vm7432_vm3, %v8334_v9  ;;  %11976 = vmatpush1.bf16.msra.mxu1 %v18386_v50  ;;  %v18472_v50 = vld [vmem:[%s25032_s13 + $0x2c] ss:$16 sps:$4 sm:$0xff]  }
 0x8a5   :  { %16337 = vmatprep.mubr.msk.bf16.mxu1 %vm7432_vm3, %v8334_v9  ;;  %11649 = vmatprep.subr.bf16.mxu0 %v18391_v8  ;;  %v18467_v8 = vld [vmem:[%s25032_s13 + $0x20] ss:$16 sps:$4 sm:$0xff]   ;;  %v18470_v9 = vld [vmem:[%s25032_s13 + $0x28] ss:$16 sps:$4 sm:$0xff]  }
 0x8a6   :  { %11977 = vmatprep.subr.bf16.mxu1 %v18394_v34  ;;  %v18475_v34 = vld [vmem:[%s25032_s13 + $0x44] ss:$16 sps:$4 sm:$0xff]  }
 0x8a7   :  { %11650 = vmatpush1.bf16.msra.mxu0 %v18389_v46  ;;  %v18478_v46 = vld [vmem:[%s25032_s13 + $0x4c] ss:$16 sps:$4 sm:$0xff]  }
 0x8a8   :  { %11978 = vmatpush1.bf16.msra.mxu1 %v18392_v14  ;;  %11651 = vmatprep.subr.bf16.mxu0 %v18397_v15  ;;  %v18473_v14 = vld [vmem:[%s25032_s13 + $0x40] ss:$16 sps:$4 sm:$0xff]   ;;  %v18476_v15 = vld [vmem:[%s25032_s13 + $0x48] ss:$16 sps:$4 sm:$0xff]  }
 0x8a9   :  { %11979 = vmatprep.subr.bf16.mxu1 %v18400_v19  ;;  %v18481_v19 = vld [vmem:[%s25032_s13 + $0x64] ss:$16 sps:$4 sm:$0xff]  }
 0x8ab   :  { %11652 = vmatpush1.bf16.msra.mxu0 %v18395_v12  ;;  %v18484_v12 = vld [vmem:[%s25032_s13 + $0x6c] ss:$16 sps:$4 sm:$0xff]  }
 0x8ac   :  { %11980 = vmatpush1.bf16.msra.mxu1 %v18398_v20  ;;  %11653 = vmatprep.subr.bf16.mxu0 %v18403_v29  ;;  %v18479_v20 = vld [vmem:[%s25032_s13 + $0x60] ss:$16 sps:$4 sm:$0xff]   ;;  %v18482_v29 = vld [vmem:[%s25032_s13 + $0x68] ss:$16 sps:$4 sm:$0xff]  }
 0x8ad   :  { %11981 = vmatprep.subr.bf16.mxu1 %v18406_v33  ;;  %v18487_v33 = vld [vmem:[%s25032_s13 + $0x84] ss:$16 sps:$4 sm:$0xff]  }
 0x8af   :  { %11654 = vmatpush1.bf16.msra.mxu0 %v18401_v37  ;;  %v18490_v37 = vld [vmem:[%s25032_s13 + $0x8c] ss:$16 sps:$4 sm:$0xff]  }
 0x8b0   :  { %11982 = vmatpush1.bf16.msra.mxu1 %v18404_v38  ;;  %11655 = vmatprep.subr.bf16.mxu0 %v18409_v47  ;;  %v18485_v38 = vld [vmem:[%s25032_s13 + $0x80] ss:$16 sps:$4 sm:$0xff]   ;;  %v18488_v47 = vld [vmem:[%s25032_s13 + $0x88] ss:$16 sps:$4 sm:$0xff]  }
 0x8b1   :  { %11983 = vmatprep.subr.bf16.mxu1 %v18412_v0  ;;  %v18493_v0 = vld [vmem:[%s25032_s13 + $0xa4] ss:$16 sps:$4 sm:$0xff]  }
 0x8b3   :  { %11656 = vmatpush1.bf16.msra.mxu0 %v18407_v18  ;;  %v18496_v18 = vld [vmem:[%s25032_s13 + $0xac] ss:$16 sps:$4 sm:$0xff]  }
 0x8b4   :  { %11984 = vmatpush1.bf16.msra.mxu1 %v18410_v17  ;;  %11657 = vmatprep.subr.bf16.mxu0 %v18415_v49  ;;  %v18491_v17 = vld [vmem:[%s25032_s13 + $0xa0] ss:$16 sps:$4 sm:$0xff]   ;;  %v18494_v49 = vld [vmem:[%s25032_s13 + $0xa8] ss:$16 sps:$4 sm:$0xff]  }
 0x8b5   :  { %11985 = vmatprep.subr.bf16.mxu1 %v18418_v42  ;;  %v18499_v42 = vld [vmem:[%s25032_s13 + $0xc4] ss:$16 sps:$4 sm:$0xff]  }
 0x8b7   :  { %11658 = vmatpush1.bf16.msra.mxu0 %v18413_v11  ;;  %v18502_v11 = vld [vmem:[%s25032_s13 + $0xcc] ss:$16 sps:$4 sm:$0xff]  }
 0x8b8   :  { %11986 = vmatpush1.bf16.msra.mxu1 %v18416_v44  ;;  %11659 = vmatprep.subr.bf16.mxu0 %v18421_v28  ;;  %v18497_v44 = vld [vmem:[%s25032_s13 + $0xc0] ss:$16 sps:$4 sm:$0xff]   ;;  %v18500_v28 = vld [vmem:[%s25032_s13 + $0xc8] ss:$16 sps:$4 sm:$0xff]  }
 0x8b9   :  { %11987 = vmatprep.subr.bf16.mxu1 %v18424_v53  ;;  %v18505_v53 = vld [vmem:[%s25032_s13 + $0xe4] ss:$16 sps:$4 sm:$0xff]  }
 0x8bb   :  { %11660 = vmatpush1.bf16.msra.mxu0 %v18419_v6  ;;  %v18508_v6 = vld [vmem:[%s25032_s13 + $0xec] ss:$16 sps:$4 sm:$0xff]  }
 0x8bc   :  { %11988 = vmatpush1.bf16.msra.mxu1 %v18422_v48  ;;  %11661 = vmatprep.subr.bf16.mxu0 %v18427_v43  ;;  %v18503_v48 = vld [vmem:[%s25032_s13 + $0xe0] ss:$16 sps:$4 sm:$0xff]   ;;  %v18506_v43 = vld [vmem:[%s25032_s13 + $0xe8] ss:$16 sps:$4 sm:$0xff]  }
 0x8bd   :  { %11989 = vmatprep.subr.bf16.mxu1 %v18430_v10  ;;  %v18511_v10 = vld [vmem:[%s25032_s13 + $0x104] ss:$16 sps:$4 sm:$0xff]  }
 0x8bf   :  { %11662 = vmatpush1.bf16.msra.mxu0 %v18425_v63  ;;  %v18514_v63 = vld [vmem:[%s25032_s13 + $0x10c] ss:$16 sps:$4 sm:$0xff]  }
 0x8c0   :  { %11990 = vmatpush1.bf16.msra.mxu1 %v18428_v13  ;;  %11663 = vmatprep.subr.bf16.mxu0 %v18433_v25  ;;  %v18509_v13 = vld [vmem:[%s25032_s13 + $0x100] ss:$16 sps:$4 sm:$0xff]   ;;  %v18512_v25 = vld [vmem:[%s25032_s13 + $0x108] ss:$16 sps:$4 sm:$0xff]  }
 0x8c1   :  { %11991 = vmatprep.subr.bf16.mxu1 %v18436_v51  ;;  %v18517_v51 = vld [vmem:[%s25032_s13 + $0x124] ss:$16 sps:$4 sm:$0xff]  }
 0x8c3   :  { %11664 = vmatpush1.bf16.msra.mxu0 %v18431_v54  ;;  %v18520_v54 = vld [vmem:[%s25032_s13 + $0x12c] ss:$16 sps:$4 sm:$0xff]  }
 0x8c4   :  { %11992 = vmatpush1.bf16.msra.mxu1 %v18434_v16  ;;  %11665 = vmatprep.subr.bf16.mxu0 %v18439_v55  ;;  %v18515_v16 = vld [vmem:[%s25032_s13 + $0x120] ss:$16 sps:$4 sm:$0xff]   ;;  %v18518_v55 = vld [vmem:[%s25032_s13 + $0x128] ss:$16 sps:$4 sm:$0xff]  }
 0x8c5   :  { %11993 = vmatprep.subr.bf16.mxu1 %v18442_v56  ;;  %v18523_v56 = vld [vmem:[%s25032_s13 + $0x144] ss:$16 sps:$4 sm:$0xff]  }
 0x8c7   :  { %11666 = vmatpush1.bf16.msra.mxu0 %v18437_v23  ;;  %v18526_v23 = vld [vmem:[%s25032_s13 + $0x14c] ss:$16 sps:$4 sm:$0xff]  }
 0x8c8   :  { %11994 = vmatpush1.bf16.msra.mxu1 %v18440_v57  ;;  %11667 = vmatprep.subr.bf16.mxu0 %v18445_v58  ;;  %v18521_v57 = vld [vmem:[%s25032_s13 + $0x140] ss:$16 sps:$4 sm:$0xff]   ;;  %v18524_v58 = vld [vmem:[%s25032_s13 + $0x148] ss:$16 sps:$4 sm:$0xff]  }
 0x8c9   :  { %11995 = vmatprep.subr.bf16.mxu1 %v18448_v22  ;;  %v18529_v22 = vld [vmem:[%s25032_s13 + $0x164] ss:$16 sps:$4 sm:$0xff]  }
 0x8cb   :  { %11668 = vmatpush1.bf16.msra.mxu0 %v18443_v32  ;;  %v18532_v32 = vld [vmem:[%s25032_s13 + $0x16c] ss:$16 sps:$4 sm:$0xff]  }
 0x8cc   :  { %11996 = vmatpush1.bf16.msra.mxu1 %v18446_v4  ;;  %11669 = vmatprep.subr.bf16.mxu0 %v18451_v59  ;;  %v18527_v4 = vld [vmem:[%s25032_s13 + $0x160] ss:$16 sps:$4 sm:$0xff]   ;;  %v18530_v59 = vld [vmem:[%s25032_s13 + $0x168] ss:$16 sps:$4 sm:$0xff]  }
 0x8cd   :  { %11997 = vmatprep.subr.bf16.mxu1 %v18454_v60  ;;  %v18535_v60 = vld [vmem:[%s25032_s13 + $0x184] ss:$16 sps:$4 sm:$0xff]  }
 0x8cf   :  { %11670 = vmatpush1.bf16.msra.mxu0 %v18449_v39  ;;  %v18538_v39 = vld [vmem:[%s25032_s13 + $0x18c] ss:$16 sps:$4 sm:$0xff]  }
 0x8d0   :  { %11998 = vmatpush1.bf16.msra.mxu1 %v18452_v1  ;;  %11671 = vmatprep.subr.bf16.mxu0 %v18457_v62  ;;  %v18533_v1 = vld [vmem:[%s25032_s13 + $0x180] ss:$16 sps:$4 sm:$0xff]   ;;  %v18536_v62 = vld [vmem:[%s25032_s13 + $0x188] ss:$16 sps:$4 sm:$0xff]  }
 0x8d1   :  { %11999 = vmatprep.subr.bf16.mxu1 %v18460_v31  ;;  %v18541_v31 = vld [vmem:[%s25032_s13 + $0x1a4] ss:$16 sps:$4 sm:$0xff]  }
 0x8d3   :  { %11672 = vmatpush1.bf16.msra.mxu0 %v18455_v35  ;;  %v18544_v35 = vld [vmem:[%s25032_s13 + $0x1ac] ss:$16 sps:$4 sm:$0xff]  }
 0x8d4   :  { %12000 = vmatpush1.bf16.msra.mxu1 %v18458_v2  ;;  %12817 = vmatprep.subr.bf16.mxu0 %v18463_v40  ;;  %v18542_v2 = vld [vmem:[%s25032_s13 + $0x1a8] ss:$16 sps:$4 sm:$0xff]   ;;  %v18547_v40 = vld [vmem:[%s25032_s13 + $0x1c4] ss:$16 sps:$4 sm:$0xff]  }
 0x8d5   :  { %12899 = vmatprep.subr.bf16.mxu1 %v18466_v3  ;;  %v18550_v3 = vld [vmem:[%s25032_s13 + $0x1cc] ss:$16 sps:$4 sm:$0xff]  }
 0x8d6   :  { %11680 = vmatmul.mubr.bf16.vlgmr.msra.gmra.mrb[56].mxu0 %v8333_v5 }
 0x8d7   :  { %12008 = vmatmul.mubr.bf16.vlgmr.msra.gmra.mrb[56].mxu1 %v8333_v5  ;;  %12818 = vmatpush1.bf16.msra.mxu0 %v18461_v30  ;;  %v18545_v30 = vld [vmem:[%s25032_s13 + $0x1c0] ss:$16 sps:$4 sm:$0xff]   ;;  %v18548_v5 = vld [vmem:[%s25032_s13 + $0x1c8] ss:$16 sps:$4 sm:$0xff]  }
 0x8d8   :  { %12900 = vmatpush1.bf16.msra.mxu1 %v18464_v61  ;;  %12819 = vmatprep.subr.bf16.mxu0 %v18469_v7  ;;  %v18553_v61 = vld [vmem:[%s25032_s13 + $0x1e4] ss:$16 sps:$4 sm:$0xff]   ;;  %v18556_v7 = vld [vmem:[%s25032_s13 + $0x1ec] ss:$16 sps:$4 sm:$0xff]  }
 0x8d9   :  { %12901 = vmatprep.subr.bf16.mxu1 %v18472_v50  ;;  %v18551_v50 = vld [vmem:[%s25032_s13 + $0x1e0] ss:$16 sps:$4 sm:$0xff]  }
 0x8db   :  { %12820 = vmatpush1.bf16.msra.mxu0 %v18467_v8  ;;  %v18554_v8 = vld [vmem:[%s25032_s13 + $0x1e8] ss:$16 sps:$4 sm:$0xff]  }
 0x8dc   :  { %12902 = vmatpush1.bf16.msra.mxu1 %v18470_v9  ;;  %12821 = vmatprep.subr.bf16.mxu0 %v18475_v34  ;;  %v18559_v9 = vld [vmem:[%s25032_s13 + $0x204] ss:$16 sps:$4 sm:$0xff]   ;;  %v18562_v34 = vld [vmem:[%s25032_s13 + $0x20c] ss:$16 sps:$4 sm:$0xff]  }
 0x8dd   :  { %12903 = vmatprep.subr.bf16.mxu1 %v18478_v46  ;;  %v24065_v46 = vld [vmem:[%s25034_s12] sm:$0xf] }
 0x8df   :  { %12822 = vmatpush1.bf16.msra.mxu0 %v18473_v14  ;;  %v8840_v14 = vrot.slane %v24065_v46, %v19907_v24 }
 0x8e0   :  { %12904 = vmatpush1.bf16.msra.mxu1 %v18476_v15  ;;  %12823 = vmatprep.subr.bf16.mxu0 %v18481_v19  ;;  %v8844_v15 = vrot.slane %v24065_v46, %v19915_v26  ;;  %v8852_v19 = vrot.slane %v24065_v46, %v19918_v27 }
 0x8e1   :  { %12905 = vmatprep.subr.bf16.mxu1 %v18484_v12 }
 0x8e3   :  { %12824 = vmatpush1.bf16.msra.mxu0 %v18479_v20 }
 0x8e4   :  { %12906 = vmatpush1.bf16.msra.mxu1 %v18482_v29  ;;  %12825 = vmatprep.subr.bf16.mxu0 %v18487_v33 }
 0x8e5   :  { %12907 = vmatprep.subr.bf16.mxu1 %v18490_v37 }
 0x8e7   :  { %12826 = vmatpush1.bf16.msra.mxu0 %v18485_v38 }
 0x8e8   :  { %12908 = vmatpush1.bf16.msra.mxu1 %v18488_v47  ;;  %12827 = vmatprep.subr.bf16.mxu0 %v18493_v0 }
 0x8e9   :  { %12909 = vmatprep.subr.bf16.mxu1 %v18496_v18 }
 0x8eb   :  { %12828 = vmatpush1.bf16.msra.mxu0 %v18491_v17 }
 0x8ec   :  { %12910 = vmatpush1.bf16.msra.mxu1 %v18494_v49  ;;  %12829 = vmatprep.subr.bf16.mxu0 %v18499_v42 }
 0x8ed   :  { %12911 = vmatprep.subr.bf16.mxu1 %v18502_v11 }
 0x8ef   :  { %12830 = vmatpush1.bf16.msra.mxu0 %v18497_v44  ;;  %v18557_v44 = vld [vmem:[%s25032_s13 + $0x200] ss:$16 sps:$4 sm:$0xff]  }
 0x8f0   :  { %12912 = vmatpush1.bf16.msra.mxu1 %v18500_v28  ;;  %12831 = vmatprep.subr.bf16.mxu0 %v18505_v53  ;;  %v18560_v28 = vld [vmem:[%s25032_s13 + $0x208] ss:$16 sps:$4 sm:$0xff]  }
 0x8f1   :  { %12913 = vmatprep.subr.bf16.mxu1 %v18508_v6 }
 0x8f3   :  { %12832 = vmatpush1.bf16.msra.mxu0 %v18503_v48  ;;  %v18565_v48 = vld [vmem:[%s25032_s13 + $0x224] ss:$16 sps:$4 sm:$0xff]  }
 0x8f4   :  { %12914 = vmatpush1.bf16.msra.mxu1 %v18506_v43  ;;  %12833 = vmatprep.subr.bf16.mxu0 %v18511_v10  ;;  %v18568_v43 = vld [vmem:[%s25032_s13 + $0x22c] ss:$16 sps:$4 sm:$0xff]  }
 0x8f5   :  { %12915 = vmatprep.subr.bf16.mxu1 %v18514_v63  ;;  %v18563_v63 = vld [vmem:[%s25032_s13 + $0x220] ss:$16 sps:$4 sm:$0xff]  }
 0x8f7   :  { %12834 = vmatpush1.bf16.msra.mxu0 %v18509_v13  ;;  %v18566_v13 = vld [vmem:[%s25032_s13 + $0x228] ss:$16 sps:$4 sm:$0xff]  }
 0x8f8   :  { %12916 = vmatpush1.bf16.msra.mxu1 %v18512_v25  ;;  %12835 = vmatprep.subr.bf16.mxu0 %v18517_v51  ;;  %v18571_v51 = vld [vmem:[%s25032_s13 + $0x244] ss:$16 sps:$4 sm:$0xff]  }
 0x8f9   :  { %12917 = vmatprep.subr.bf16.mxu1 %v18520_v54  ;;  %v18574_v54 = vld [vmem:[%s25032_s13 + $0x24c] ss:$16 sps:$4 sm:$0xff]  }
 0x8fb   :  { %12836 = vmatpush1.bf16.msra.mxu0 %v18515_v16  ;;  %v18569_v16 = vld [vmem:[%s25032_s13 + $0x240] ss:$16 sps:$4 sm:$0xff]  }
 0x8fc   :  { %12918 = vmatpush1.bf16.msra.mxu1 %v18518_v55  ;;  %12837 = vmatprep.subr.bf16.mxu0 %v18523_v56  ;;  %v18572_v55 = vld [vmem:[%s25032_s13 + $0x248] ss:$16 sps:$4 sm:$0xff]   ;;  %v18577_v56 = vld [vmem:[%s25032_s13 + $0x264] ss:$16 sps:$4 sm:$0xff]  }
 0x8fd   :  { %12919 = vmatprep.subr.bf16.mxu1 %v18526_v23  ;;  %v18580_v23 = vld [vmem:[%s25032_s13 + $0x26c] ss:$16 sps:$4 sm:$0xff]  }
 0x8ff   :  { %12838 = vmatpush1.bf16.msra.mxu0 %v18521_v57  ;;  %v18575_v57 = vld [vmem:[%s25032_s13 + $0x260] ss:$16 sps:$4 sm:$0xff]  }
 0x900   :  { %12920 = vmatpush1.bf16.msra.mxu1 %v18524_v58  ;;  %12839 = vmatprep.subr.bf16.mxu0 %v18529_v22  ;;  %v18578_v58 = vld [vmem:[%s25032_s13 + $0x268] ss:$16 sps:$4 sm:$0xff]   ;;  %v18583_v22 = vld [vmem:[%s25032_s13 + $0x284] ss:$16 sps:$4 sm:$0xff]  }
 0x901   :  { %12921 = vmatprep.subr.bf16.mxu1 %v18532_v32  ;;  %v18586_v32 = vld [vmem:[%s25032_s13 + $0x28c] ss:$16 sps:$4 sm:$0xff]  }
 0x903   :  { %12840 = vmatpush1.bf16.msra.mxu0 %v18527_v4  ;;  %v18581_v4 = vld [vmem:[%s25032_s13 + $0x280] ss:$16 sps:$4 sm:$0xff]  }
 0x904   :  { %12922 = vmatpush1.bf16.msra.mxu1 %v18530_v59  ;;  %12841 = vmatprep.subr.bf16.mxu0 %v18535_v60  ;;  %v18584_v59 = vld [vmem:[%s25032_s13 + $0x288] ss:$16 sps:$4 sm:$0xff]   ;;  %v18589_v60 = vld [vmem:[%s25032_s13 + $0x2a4] ss:$16 sps:$4 sm:$0xff]  }
 0x905   :  { %12923 = vmatprep.subr.bf16.mxu1 %v18538_v39  ;;  %v18592_v39 = vld [vmem:[%s25032_s13 + $0x2ac] ss:$16 sps:$4 sm:$0xff]  }
 0x907   :  { %12842 = vmatpush1.bf16.msra.mxu0 %v18533_v1  ;;  %v18587_v1 = vld [vmem:[%s25032_s13 + $0x2a0] ss:$16 sps:$4 sm:$0xff]  }
 0x908   :  { %12924 = vmatpush1.bf16.msra.mxu1 %v18536_v62  ;;  %12843 = vmatprep.subr.bf16.mxu0 %v18541_v31  ;;  %v18590_v62 = vld [vmem:[%s25032_s13 + $0x2a8] ss:$16 sps:$4 sm:$0xff]   ;;  %v18595_v31 = vld [vmem:[%s25032_s13 + $0x2c4] ss:$16 sps:$4 sm:$0xff]  }
 0x909   :  { %12925 = vmatprep.subr.bf16.mxu1 %v18544_v35  ;;  %v18598_v35 = vld [vmem:[%s25032_s13 + $0x2cc] ss:$16 sps:$4 sm:$0xff]  }
 0x90b   :  { %12844 = vmatpush1.bf16.msra.mxu0 %v18539_v45  ;;  %v18593_v45 = vld [vmem:[%s25032_s13 + $0x2c0] ss:$16 sps:$4 sm:$0xff]  }
 0x90c   :  { %12926 = vmatpush1.bf16.msra.mxu1 %v18542_v2  ;;  %12845 = vmatprep.subr.bf16.mxu0 %v18547_v40  ;;  %v18596_v2 = vld [vmem:[%s25032_s13 + $0x2c8] ss:$16 sps:$4 sm:$0xff]   ;;  %v18601_v40 = vld [vmem:[%s25032_s13 + $0x2e4] ss:$16 sps:$4 sm:$0xff]  }
 0x90d   :  { %12927 = vmatprep.subr.bf16.mxu1 %v18550_v3  ;;  %v18604_v3 = vld [vmem:[%s25032_s13 + $0x2ec] ss:$16 sps:$4 sm:$0xff]  }
 0x90f   :  { %12846 = vmatpush1.bf16.msra.mxu0 %v18545_v30  ;;  %v18599_v30 = vld [vmem:[%s25032_s13 + $0x2e0] ss:$16 sps:$4 sm:$0xff]  }
 0x910   :  { %12928 = vmatpush1.bf16.msra.mxu1 %v18548_v5  ;;  %12847 = vmatprep.subr.bf16.mxu0 %v18553_v61  ;;  %v18602_v5 = vld [vmem:[%s25032_s13 + $0x2e8] ss:$16 sps:$4 sm:$0xff]   ;;  %v18607_v61 = vld [vmem:[%s25032_s13 + $0x304] ss:$16 sps:$4 sm:$0xff]  }
 0x911   :  { %12929 = vmatprep.subr.bf16.mxu1 %v18556_v7  ;;  %v18610_v7 = vld [vmem:[%s25032_s13 + $0x30c] ss:$16 sps:$4 sm:$0xff]  }
 0x913   :  { %12848 = vmatpush1.bf16.msra.mxu0 %v18551_v50  ;;  %v18605_v50 = vld [vmem:[%s25032_s13 + $0x300] ss:$16 sps:$4 sm:$0xff]  }
 0x914   :  { %12930 = vmatpush1.bf16.msra.mxu1 %v18554_v8  ;;  %12858 = vmatprep.subr.bf16.mxu0 %v18559_v9  ;;  %v18608_v8 = vld [vmem:[%s25032_s13 + $0x308] ss:$16 sps:$4 sm:$0xff]   ;;  %v18613_v9 = vld [vmem:[%s25032_s13 + $0x324] ss:$16 sps:$4 sm:$0xff]  }
 0x915   :  { %12940 = vmatprep.subr.bf16.mxu1 %v18562_v34  ;;  %v18616_v34 = vld [vmem:[%s25032_s13 + $0x32c] ss:$16 sps:$4 sm:$0xff]  }
 0x9a9   :  { %v11681_v12 = vpop.f32.mrb[56].mxu0 }
 0x9aa   :  { %v16930_v20 = vadd.f32 %v11681_v12, %v8840_v14  ;;  %v24073_v29 = vpop.f32.mrb[56].mxu1  ;;  %v11683_v33 = vpop.f32.mrb[57].mxu0  ;;  %v18611_v14 = vld [vmem:[%s25032_s13 + $0x320] ss:$16 sps:$4 sm:$0xff]   ;;  %v18622_v12 = vld [vmem:[%s25032_s13 + $0x34c] ss:$16 sps:$4 sm:$0xff]  }
 0x9ab   :  { %v16931_v37 = vadd.f32 %v11683_v33, %v8844_v15  ;;  %v12011_v38 = vpop.f32.mrb[57].mxu1  ;;  %v11685_v47 = vpop.f32.mrb[58].mxu0  ;;  %v18614_v15 = vld [vmem:[%s25032_s13 + $0x328] ss:$16 sps:$4 sm:$0xff]  }
 0x9ac   :  { %v12016_v0 = vmax.f32 %v16930_v20, 0.0  ;;  %v16933_v18 = vadd.f32 %v12011_v38, %v8852_v19  ;;  %v12013_v17 = vpop.f32.mrb[58].mxu1  ;;  %v11686_v49 = vpop.f32.mrb[59].mxu0  ;;  %v18619_v19 = vld [vmem:[%s25032_s13 + $0x344] ss:$16 sps:$4 sm:$0xff]  }
 0x9ad   :  { %v12017_v42 = vmax.f32 %v16931_v37, 0.0  ;;  %v12014_v11 = vpop.f32.mrb[59].mxu1  ;;  %v18617_v20 = vld [vmem:[%s25032_s13 + $0x340] ss:$16 sps:$4 sm:$0xff]   ;;  %v18620_v33 = vld [vmem:[%s25032_s13 + $0x348] ss:$16 sps:$4 sm:$0xff]  }
 0x9ae   :  { %v12019_v53 = vmax.f32 %v16933_v18, 0.0  ;;  %v12020_v10 = vpack.c.bf16 %v12016_v0, %v12016_v0  ;;  %v18625_v37 = vld [vmem:[%s25032_s13 + $0x364] ss:$16 sps:$4 sm:$0xff]   ;;  %v18628_v38 = vld [vmem:[%s25032_s13 + $0x36c] ss:$16 sps:$4 sm:$0xff]  }
 0x9af   :  { %v12021_v6 = vpack.c.bf16 %v12017_v42, %v12017_v42  ;;  %v18623_v47 = vld [vmem:[%s25032_s13 + $0x360] ss:$16 sps:$4 sm:$0xff]   ;;  %v18626_v0 = vld [vmem:[%s25032_s13 + $0x368] ss:$16 sps:$4 sm:$0xff]   ;;  %v18631_v18 = vld [vmem:[%s25032_s13 + $0x384] ss:$16 sps:$4 sm:$0xff]  }
 0x9b0   :  { %v12023_v25 = vpack.c.bf16 %v12019_v53, %v12019_v53  ;;  %v18634_v17 = vld [vmem:[%s25032_s13 + $0x38c] ss:$16 sps:$4 sm:$0xff]   ;;  %v18629_v49 = vld [vmem:[%s25032_s13 + $0x380] ss:$16 sps:$4 sm:$0xff]   ;;  %v18632_v42 = vld [vmem:[%s25032_s13 + $0x388] ss:$16 sps:$4 sm:$0xff]  }
 0x9b1   :  { %12849 = vmatprep.mubr.bf16.mxu0 %v12021_v6  ;;  %12931 = vmatprep.mubr.bf16.mxu1 %v12021_v6  ;;  %v18637_v11 = vld [vmem:[%s25032_s13 + $0x3a4] ss:$16 sps:$4 sm:$0xff]   ;;  %v18638_v53 = vld [vmem:[%s25032_s13 + $0x3a8] ss:$16 sps:$4 sm:$0xff]   ;;  %v8848_v6 = vrot.slane %v24065_v46, %v20081_v41  ;;  %v18641_v46 = vld [vmem:[%s25032_s13 + $0x3c0] ss:$16 sps:$4 sm:$0xff]  }
 0x9b2   :  { %12850 = vmatmul.mubr.bf16.vlgmr.msra.gmra.mrb[60].mxu0 %v12020_v10  ;;  %12932 = vmatmul.mubr.bf16.vlgmr.msra.gmra.mrb[60].mxu1 %v12020_v10  ;;  %v12148_v10 = vld [vmem:[%s25032_s13 + $0x3e0] sm:$0x33] }
 0x9b3   :  { %12859 = vmatpush1.bf16.msra.mxu0 %v18557_v44  ;;  %12941 = vmatpush1.bf16.msra.mxu1 %v18560_v28  ;;  %v18640_v44 = vld [vmem:[%s25032_s13 + $0x3ac] ss:$16 sps:$4 sm:$0xff]   ;;  %v18635_v28 = vld [vmem:[%s25032_s13 + $0x3a0] ss:$16 sps:$4 sm:$0xff]  }
 0x9b4   :  { %16467 = vmatprep.mubr.msk.bf16.mxu0 %vm2389_vm1, %v12023_v25  ;;  %16469 = vmatprep.mubr.msk.bf16.mxu1 %vm2389_vm1, %v12023_v25  ;;  %v16463_v25 = vcombine.high %v12148_v10, %v12148_v10 }
 0x9b5   :  { %12860 = vmatprep.subr.bf16.mxu0 %v18565_v48  ;;  %12942 = vmatprep.subr.bf16.mxu1 %v18568_v43  ;;  %v18643_v48 = vld [vmem:[%s25032_s13 + $0x3c4] ss:$16 sps:$4 sm:$0xff]   ;;  %v18646_v43 = vld [vmem:[%s25032_s13 + $0x3cc] ss:$16 sps:$4 sm:$0xff]  }
 0x9b7   :  { %12861 = vmatpush1.bf16.msra.mxu0 %v18563_v63  ;;  %12943 = vmatpush1.bf16.msra.mxu1 %v18566_v13  ;;  %v12149_v63 = vld [vmem:[%s25032_s13 + $0x3e8] sm:$0x33] }
 0x9b8   :  { %12862 = vmatprep.subr.bf16.mxu0 %v18571_v51  ;;  %12944 = vmatprep.subr.bf16.mxu1 %v18574_v54  ;;  %v18644_v13 = vld [vmem:[%s25032_s13 + $0x3c8] ss:$16 sps:$4 sm:$0xff]   ;;  %v16462_v51 = vcombine.low %v12148_v10, %v12148_v10  ;;  %v16932_v54 = vadd.f32 %v24073_v29, %v8848_v6 }
 0x9b9   :  { %v18656_v29 = vld [vmem:[%s25033_s15 + $0xc] ss:$28 sps:$4 sm:$0xff]   ;;  %v18716_v6 = vld [vmem:[%s25033_s15 + $0x23c] ss:$28 sps:$4 sm:$0xff]  }
 0x9ba   :  { %v18719_v10 = vld [vmem:[%s25033_s15 + $0x26c] ss:$28 sps:$4 sm:$0xff]  }
 0x9bb   :  { %12863 = vmatpush1.bf16.msra.mxu0 %v18569_v16  ;;  %12945 = vmatpush1.bf16.msra.mxu1 %v18572_v55  ;;  %v16465_v16 = vcombine.high %v12149_v63, %v12149_v63  ;;  %v16464_v55 = vcombine.low %v12149_v63, %v12149_v63  ;;  %v18722_v63 = vld [vmem:[%s25033_s15 + $0x274] ss:$28 sps:$4 sm:$0xff]  }
 0x9bc   :  { %12864 = vmatprep.subr.bf16.mxu0 %v18577_v56  ;;  %12946 = vmatprep.subr.bf16.mxu1 %v18580_v23  ;;  %v12806_v56 = vsel %vm2393_vm2, %v16462_v51, 0  ;;  %v12018_v23 = vmax.f32 %v16932_v54, 0.0  ;;  %v18728_v51 = vld [vmem:[%s25033_s15 + $0x2ac] ss:$28 sps:$4 sm:$0xff]   ;;  %v18723_v54 = vld [vmem:[%s25033_s15 + $0x2a0] ss:$28 sps:$4 sm:$0xff]  }
 0x9bf   :  { %12865 = vmatpush1.bf16.msra.mxu0 %v18575_v57  ;;  %12947 = vmatpush1.bf16.msra.mxu1 %v18578_v58  ;;  %v12812_v57 = vsel %vm2393_vm2, %v16464_v55, 0  ;;  %v18653_v58 = vld [vmem:[%s25033_s15 + $0x4] ss:$28 sps:$4 sm:$0xff]   ;;  %v18731_v55 = vld [vmem:[%s25033_s15 + $0x2dc] ss:$28 sps:$4 sm:$0xff]  }
 0x9c0   :  { %12866 = vmatprep.subr.bf16.mxu0 %v18583_v22  ;;  %12948 = vmatprep.subr.bf16.mxu1 %v18586_v32  ;;  %v18651_v22 = vld [vmem:[%s25033_s15] ss:$28 sps:$4 sm:$0xff]   ;;  %v18654_v32 = vld [vmem:[%s25033_s15 + $0x8] ss:$28 sps:$4 sm:$0xff]  }
 0x9c3   :  { %12867 = vmatpush1.bf16.msra.mxu0 %v18581_v4  ;;  %12949 = vmatpush1.bf16.msra.mxu1 %v18584_v59  ;;  %v12022_v4 = vpack.c.bf16 %v12018_v23, %v12018_v23  ;;  %v18659_v59 = vld [vmem:[%s25033_s15 + $0x3c] ss:$28 sps:$4 sm:$0xff]  }
 0x9c4   :  { %12868 = vmatprep.subr.bf16.mxu0 %v18589_v60  ;;  %12950 = vmatprep.subr.bf16.mxu1 %v18592_v39  ;;  %v18662_v60 = vld [vmem:[%s25033_s15 + $0x44] ss:$28 sps:$4 sm:$0xff]   ;;  %v18657_v39 = vld [vmem:[%s25033_s15 + $0x38] ss:$28 sps:$4 sm:$0xff]  }
 0x9c5   :  { %v18729_v23 = vld [vmem:[%s25033_s15 + $0x2d8] ss:$28 sps:$4 sm:$0xff]  }
 0x9c7   :  { %12869 = vmatpush1.bf16.msra.mxu0 %v18587_v1  ;;  %12951 = vmatpush1.bf16.msra.mxu1 %v18590_v62  ;;  %v18660_v1 = vld [vmem:[%s25033_s15 + $0x40] ss:$28 sps:$4 sm:$0xff]   ;;  %v18665_v62 = vld [vmem:[%s25033_s15 + $0x74] ss:$28 sps:$4 sm:$0xff]  }
 0x9c8   :  { %12870 = vmatprep.subr.bf16.mxu0 %v18595_v31  ;;  %12952 = vmatprep.subr.bf16.mxu1 %v18598_v35  ;;  %v18668_v31 = vld [vmem:[%s25033_s15 + $0x7c] ss:$28 sps:$4 sm:$0xff]   ;;  %v18663_v35 = vld [vmem:[%s25033_s15 + $0x70] ss:$28 sps:$4 sm:$0xff]  }
 0x9cb   :  { %12871 = vmatpush1.bf16.msra.mxu0 %v18593_v45  ;;  %12953 = vmatpush1.bf16.msra.mxu1 %v18596_v2  ;;  %v18666_v45 = vld [vmem:[%s25033_s15 + $0x78] ss:$28 sps:$4 sm:$0xff]   ;;  %v18671_v2 = vld [vmem:[%s25033_s15 + $0xac] ss:$28 sps:$4 sm:$0xff]  }
 0x9cc   :  { %12872 = vmatprep.subr.bf16.mxu0 %v18601_v40  ;;  %12954 = vmatprep.subr.bf16.mxu1 %v18604_v3  ;;  %v18674_v40 = vld [vmem:[%s25033_s15 + $0xb4] ss:$28 sps:$4 sm:$0xff]   ;;  %v18669_v3 = vld [vmem:[%s25033_s15 + $0xa8] ss:$28 sps:$4 sm:$0xff]  }
 0x9cf   :  { %12873 = vmatpush1.bf16.msra.mxu0 %v18599_v30  ;;  %12955 = vmatpush1.bf16.msra.mxu1 %v18602_v5  ;;  %v18672_v30 = vld [vmem:[%s25033_s15 + $0xb0] ss:$28 sps:$4 sm:$0xff]   ;;  %v18677_v5 = vld [vmem:[%s25033_s15 + $0xe4] ss:$28 sps:$4 sm:$0xff]  }
 0x9d0   :  { %12874 = vmatprep.subr.bf16.mxu0 %v18607_v61  ;;  %12956 = vmatprep.subr.bf16.mxu1 %v18610_v7  ;;  %v18680_v61 = vld [vmem:[%s25033_s15 + $0xec] ss:$28 sps:$4 sm:$0xff]   ;;  %v18675_v7 = vld [vmem:[%s25033_s15 + $0xe0] ss:$28 sps:$4 sm:$0xff]  }
 0x9d3   :  { %12875 = vmatpush1.bf16.msra.mxu0 %v18605_v50  ;;  %12957 = vmatpush1.bf16.msra.mxu1 %v18608_v8  ;;  %v18678_v50 = vld [vmem:[%s25033_s15 + $0xe8] ss:$28 sps:$4 sm:$0xff]   ;;  %v18683_v8 = vld [vmem:[%s25033_s15 + $0x11c] ss:$28 sps:$4 sm:$0xff]  }
 0x9d4   :  { %12876 = vmatprep.subr.bf16.mxu0 %v18613_v9  ;;  %12958 = vmatprep.subr.bf16.mxu1 %v18616_v34  ;;  %v18686_v9 = vld [vmem:[%s25033_s15 + $0x124] ss:$28 sps:$4 sm:$0xff]   ;;  %v18681_v34 = vld [vmem:[%s25033_s15 + $0x118] ss:$28 sps:$4 sm:$0xff]  }
 0x9d7   :  { %12877 = vmatpush1.bf16.msra.mxu0 %v18611_v14  ;;  %12959 = vmatpush1.bf16.msra.mxu1 %v18614_v15  ;;  %v18684_v14 = vld [vmem:[%s25033_s15 + $0x120] ss:$28 sps:$4 sm:$0xff]   ;;  %v18689_v15 = vld [vmem:[%s25033_s15 + $0x154] ss:$28 sps:$4 sm:$0xff]  }
 0x9d8   :  { %12878 = vmatprep.subr.bf16.mxu0 %v18619_v19  ;;  %12960 = vmatprep.subr.bf16.mxu1 %v18622_v12  ;;  %v18692_v19 = vld [vmem:[%s25033_s15 + $0x15c] ss:$28 sps:$4 sm:$0xff]   ;;  %v18687_v12 = vld [vmem:[%s25033_s15 + $0x150] ss:$28 sps:$4 sm:$0xff]  }
 0x9db   :  { %12879 = vmatpush1.bf16.msra.mxu0 %v18617_v20  ;;  %12961 = vmatpush1.bf16.msra.mxu1 %v18620_v33  ;;  %v18690_v20 = vld [vmem:[%s25033_s15 + $0x158] ss:$28 sps:$4 sm:$0xff]   ;;  %v18695_v33 = vld [vmem:[%s25033_s15 + $0x18c] ss:$28 sps:$4 sm:$0xff]  }
 0x9dc   :  { %12880 = vmatprep.subr.bf16.mxu0 %v18625_v37  ;;  %12962 = vmatprep.subr.bf16.mxu1 %v18628_v38  ;;  %v18698_v37 = vld [vmem:[%s25033_s15 + $0x194] ss:$28 sps:$4 sm:$0xff]   ;;  %v18693_v38 = vld [vmem:[%s25033_s15 + $0x188] ss:$28 sps:$4 sm:$0xff]  }
 0x9df   :  { %12881 = vmatpush1.bf16.msra.mxu0 %v18623_v47  ;;  %12963 = vmatpush1.bf16.msra.mxu1 %v18626_v0  ;;  %v18696_v47 = vld [vmem:[%s25033_s15 + $0x190] ss:$28 sps:$4 sm:$0xff]   ;;  %v18701_v0 = vld [vmem:[%s25033_s15 + $0x1c4] ss:$28 sps:$4 sm:$0xff]  }
 0x9e0   :  { %12882 = vmatprep.subr.bf16.mxu0 %v18631_v18  ;;  %12964 = vmatprep.subr.bf16.mxu1 %v18634_v17  ;;  %v18704_v18 = vld [vmem:[%s25033_s15 + $0x1cc] ss:$28 sps:$4 sm:$0xff]   ;;  %v18699_v17 = vld [vmem:[%s25033_s15 + $0x1c0] ss:$28 sps:$4 sm:$0xff]  }
 0x9e3   :  { %12883 = vmatpush1.bf16.msra.mxu0 %v18629_v49  ;;  %12965 = vmatpush1.bf16.msra.mxu1 %v18632_v42  ;;  %v18702_v49 = vld [vmem:[%s25033_s15 + $0x1c8] ss:$28 sps:$4 sm:$0xff]   ;;  %v18707_v42 = vld [vmem:[%s25033_s15 + $0x1fc] ss:$28 sps:$4 sm:$0xff]  }
 0x9e4   :  { %12884 = vmatprep.subr.bf16.mxu0 %v18637_v11  ;;  %12966 = vmatprep.subr.bf16.mxu1 %v18640_v44  ;;  %v18710_v11 = vld [vmem:[%s25033_s15 + $0x204] ss:$28 sps:$4 sm:$0xff]   ;;  %v18705_v44 = vld [vmem:[%s25033_s15 + $0x1f8] ss:$28 sps:$4 sm:$0xff]  }
 0x9e7   :  { %12885 = vmatpush1.bf16.msra.mxu0 %v18635_v28  ;;  %12967 = vmatpush1.bf16.msra.mxu1 %v18638_v53  ;;  %v18708_v28 = vld [vmem:[%s25033_s15 + $0x200] ss:$28 sps:$4 sm:$0xff]   ;;  %v18713_v53 = vld [vmem:[%s25033_s15 + $0x234] ss:$28 sps:$4 sm:$0xff]  }
 0x9e8   :  { %12886 = vmatprep.subr.bf16.mxu0 %v18643_v48  ;;  %12968 = vmatprep.subr.bf16.mxu1 %v18646_v43  ;;  %v18711_v48 = vld [vmem:[%s25033_s15 + $0x230] ss:$28 sps:$4 sm:$0xff]   ;;  %v18714_v43 = vld [vmem:[%s25033_s15 + $0x238] ss:$28 sps:$4 sm:$0xff]  }
 0x9eb   :  { %12887 = vmatpush1.bf16.msra.mxu0 %v18641_v46  ;;  %12969 = vmatpush1.bf16.msra.mxu1 %v18644_v13  ;;  %v18717_v46 = vld [vmem:[%s25033_s15 + $0x268] ss:$28 sps:$4 sm:$0xff]   ;;  %v18720_v13 = vld [vmem:[%s25033_s15 + $0x270] ss:$28 sps:$4 sm:$0xff]  }
 0x9ec   :  { %16466 = vmatprep.subr.msk.bf16.mxu0 %vm2393_vm2, %v16463_v25  ;;  %16468 = vmatprep.subr.msk.bf16.mxu1 %vm2393_vm2, %v16465_v16  ;;  %v18725_v25 = vld [vmem:[%s25033_s15 + $0x2a4] ss:$28 sps:$4 sm:$0xff]  }
 0x9ed   :  { %v18726_v16 = vld [vmem:[%s25033_s15 + $0x2a8] ss:$28 sps:$4 sm:$0xff]  }
 0x9ef   :  { %12889 = vmatpush1.bf16.msra.mxu0 %v12806_v56  ;;  %12971 = vmatpush1.bf16.msra.mxu1 %v12812_v57  ;;  %v18734_v56 = vld [vmem:[%s25033_s15 + $0x2e4] ss:$28 sps:$4 sm:$0xff]  }
 0x9f0   :  { %14436 = vmatprep.subr.bf16.mxu0 %v18653_v58  ;;  %14518 = vmatprep.subr.bf16.mxu1 %v18656_v29  ;;  %v18732_v57 = vld [vmem:[%s25033_s15 + $0x2e0] ss:$28 sps:$4 sm:$0xff]   ;;  %v18737_v58 = vld [vmem:[%s25033_s15 + $0x314] ss:$28 sps:$4 sm:$0xff]  }
 0x9f1   :  { %v18740_v29 = vld [vmem:[%s25033_s15 + $0x31c] ss:$28 sps:$4 sm:$0xff]  }
 0x9f2   :  { %12891 = vmatmul.mubr.bf16.vlgmr.msra.gmra.mrb[60].mxu0 %v12022_v4  ;;  %12973 = vmatmul.mubr.bf16.vlgmr.msra.gmra.mrb[60].mxu1 %v12022_v4  ;;  %v18743_v4 = vld [vmem:[%s25033_s15 + $0x34c] ss:$28 sps:$4 sm:$0xff]  }
 0x9f3   :  { %14437 = vmatpush1.bf16.msra.mxu0 %v18651_v22  ;;  %14519 = vmatpush1.bf16.msra.mxu1 %v18654_v32  ;;  %v18735_v22 = vld [vmem:[%s25033_s15 + $0x310] ss:$28 sps:$4 sm:$0xff]   ;;  %v18738_v32 = vld [vmem:[%s25033_s15 + $0x318] ss:$28 sps:$4 sm:$0xff]  }
 0x9f4   :  { %14438 = vmatprep.subr.bf16.mxu0 %v18659_v59  ;;  %14520 = vmatprep.subr.bf16.mxu1 %v18662_v60  ;;  %v18746_v59 = vld [vmem:[%s25033_s15 + $0x354] ss:$28 sps:$4 sm:$0xff]   ;;  %v18741_v60 = vld [vmem:[%s25033_s15 + $0x348] ss:$28 sps:$4 sm:$0xff]  }
 0x9f7   :  { %14439 = vmatpush1.bf16.msra.mxu0 %v18657_v39  ;;  %14521 = vmatpush1.bf16.msra.mxu1 %v18660_v1  ;;  %v18744_v39 = vld [vmem:[%s25033_s15 + $0x350] ss:$28 sps:$4 sm:$0xff]   ;;  %v18749_v1 = vld [vmem:[%s25033_s15 + $0x384] ss:$28 sps:$4 sm:$0xff]  }
 0x9f8   :  { %14440 = vmatprep.subr.bf16.mxu0 %v18665_v62  ;;  %14522 = vmatprep.subr.bf16.mxu1 %v18668_v31  ;;  %v18752_v62 = vld [vmem:[%s25033_s15 + $0x38c] ss:$28 sps:$4 sm:$0xff]   ;;  %v24465_v31 = vld [vmem:[%s25035_s14] sm:$0xf] }
 0x9fb   :  { %14441 = vmatpush1.bf16.msra.mxu0 %v18663_v35  ;;  %14523 = vmatpush1.bf16.msra.mxu1 %v18666_v45  ;;  %v12155_v35 = vrot.slane %v24465_v31, %v19907_v24  ;;  %v12159_v45 = vrot.slane %v24465_v31, %v19915_v26 }
 0x9fc   :  { %14442 = vmatprep.subr.bf16.mxu0 %v18671_v2  ;;  %14524 = vmatprep.subr.bf16.mxu1 %v18674_v40  ;;  %v12167_v2 = vrot.slane %v24465_v31, %v19918_v27 }
 0x9ff   :  { %14443 = vmatpush1.bf16.msra.mxu0 %v18669_v3  ;;  %14525 = vmatpush1.bf16.msra.mxu1 %v18672_v30 }
 0xa00   :  { %14444 = vmatprep.subr.bf16.mxu0 %v18677_v5  ;;  %14526 = vmatprep.subr.bf16.mxu1 %v18680_v61 }
 0xa03   :  { %14445 = vmatpush1.bf16.msra.mxu0 %v18675_v7  ;;  %14527 = vmatpush1.bf16.msra.mxu1 %v18678_v50 }
 0xa04   :  { %14446 = vmatprep.subr.bf16.mxu0 %v18683_v8  ;;  %14528 = vmatprep.subr.bf16.mxu1 %v18686_v9 }
 0xa07   :  { %14447 = vmatpush1.bf16.msra.mxu0 %v18681_v34  ;;  %14529 = vmatpush1.bf16.msra.mxu1 %v18684_v14 }
 0xa08   :  { %14448 = vmatprep.subr.bf16.mxu0 %v18689_v15  ;;  %14530 = vmatprep.subr.bf16.mxu1 %v18692_v19 }
 0xa0b   :  { %14449 = vmatpush1.bf16.msra.mxu0 %v18687_v12  ;;  %14531 = vmatpush1.bf16.msra.mxu1 %v18690_v20 }
 0xa0c   :  { %14450 = vmatprep.subr.bf16.mxu0 %v18695_v33  ;;  %14532 = vmatprep.subr.bf16.mxu1 %v18698_v37  ;;  %v18747_v33 = vld [vmem:[%s25033_s15 + $0x380] ss:$28 sps:$4 sm:$0xff]   ;;  %v18750_v37 = vld [vmem:[%s25033_s15 + $0x388] ss:$28 sps:$4 sm:$0xff]  }
 0xa0f   :  { %14451 = vmatpush1.bf16.msra.mxu0 %v18693_v38  ;;  %14533 = vmatpush1.bf16.msra.mxu1 %v18696_v47  ;;  %v18755_v47 = vld [vmem:[%s25033_s15 + $0x3bc] ss:$28 sps:$4 sm:$0xff]  }
 0xa10   :  { %14452 = vmatprep.subr.bf16.mxu0 %v18701_v0  ;;  %14534 = vmatprep.subr.bf16.mxu1 %v18704_v18  ;;  %v18758_v0 = vld [vmem:[%s25033_s15 + $0x3c4] ss:$28 sps:$4 sm:$0xff]  }
 0xa13   :  { %14453 = vmatpush1.bf16.msra.mxu0 %v18699_v17  ;;  %14535 = vmatpush1.bf16.msra.mxu1 %v18702_v49  ;;  %v18753_v17 = vld [vmem:[%s25033_s15 + $0x3b8] ss:$28 sps:$4 sm:$0xff]   ;;  %v18756_v49 = vld [vmem:[%s25033_s15 + $0x3c0] ss:$28 sps:$4 sm:$0xff]  }
 0xa14   :  { %14454 = vmatprep.subr.bf16.mxu0 %v18707_v42  ;;  %14536 = vmatprep.subr.bf16.mxu1 %v18710_v11  ;;  %v18761_v42 = vld [vmem:[%s25033_s15 + $0x3f4] ss:$28 sps:$4 sm:$0xff]   ;;  %v18764_v11 = vld [vmem:[%s25033_s15 + $0x3fc] ss:$28 sps:$4 sm:$0xff]  }
 0xa17   :  { %14455 = vmatpush1.bf16.msra.mxu0 %v18705_v44  ;;  %14537 = vmatpush1.bf16.msra.mxu1 %v18708_v28  ;;  %v18759_v44 = vld [vmem:[%s25033_s15 + $0x3f0] ss:$28 sps:$4 sm:$0xff]   ;;  %v18762_v28 = vld [vmem:[%s25033_s15 + $0x3f8] ss:$28 sps:$4 sm:$0xff]  }
 0xa18   :  { %14456 = vmatprep.subr.bf16.mxu0 %v18713_v53  ;;  %14538 = vmatprep.subr.bf16.mxu1 %v18716_v6  ;;  %v18767_v53 = vld [vmem:[%s25033_s15 + $0x42c] ss:$28 sps:$4 sm:$0xff]   ;;  %v18770_v6 = vld [vmem:[%s25033_s15 + $0x434] ss:$28 sps:$4 sm:$0xff]  }
 0xa1b   :  { %14457 = vmatpush1.bf16.msra.mxu0 %v18711_v48  ;;  %14539 = vmatpush1.bf16.msra.mxu1 %v18714_v43  ;;  %v18765_v48 = vld [vmem:[%s25033_s15 + $0x428] ss:$28 sps:$4 sm:$0xff]   ;;  %v18768_v43 = vld [vmem:[%s25033_s15 + $0x430] ss:$28 sps:$4 sm:$0xff]  }
 0xa1c   :  { %14458 = vmatprep.subr.bf16.mxu0 %v18719_v10  ;;  %14540 = vmatprep.subr.bf16.mxu1 %v18722_v63  ;;  %v18773_v10 = vld [vmem:[%s25033_s15 + $0x464] ss:$28 sps:$4 sm:$0xff]   ;;  %v18776_v63 = vld [vmem:[%s25033_s15 + $0x46c] ss:$28 sps:$4 sm:$0xff]  }
 0xa1f   :  { %14459 = vmatpush1.bf16.msra.mxu0 %v18717_v46  ;;  %14541 = vmatpush1.bf16.msra.mxu1 %v18720_v13  ;;  %v18771_v46 = vld [vmem:[%s25033_s15 + $0x460] ss:$28 sps:$4 sm:$0xff]   ;;  %v18774_v13 = vld [vmem:[%s25033_s15 + $0x468] ss:$28 sps:$4 sm:$0xff]  }
 0xa20   :  { %14460 = vmatprep.subr.bf16.mxu0 %v18725_v25  ;;  %14542 = vmatprep.subr.bf16.mxu1 %v18728_v51  ;;  %v18779_v25 = vld [vmem:[%s25033_s15 + $0x49c] ss:$28 sps:$4 sm:$0xff]   ;;  %v18782_v51 = vld [vmem:[%s25033_s15 + $0x4a4] ss:$28 sps:$4 sm:$0xff]  }
 0xa23   :  { %14461 = vmatpush1.bf16.msra.mxu0 %v18723_v54  ;;  %14543 = vmatpush1.bf16.msra.mxu1 %v18726_v16  ;;  %v18777_v54 = vld [vmem:[%s25033_s15 + $0x498] ss:$28 sps:$4 sm:$0xff]   ;;  %v18780_v16 = vld [vmem:[%s25033_s15 + $0x4a0] ss:$28 sps:$4 sm:$0xff]  }
 0xa24   :  { %14462 = vmatprep.subr.bf16.mxu0 %v18731_v55  ;;  %14544 = vmatprep.subr.bf16.mxu1 %v18734_v56  ;;  %v18785_v55 = vld [vmem:[%s25033_s15 + $0x4d4] ss:$28 sps:$4 sm:$0xff]   ;;  %v18788_v56 = vld [vmem:[%s25033_s15 + $0x4dc] ss:$28 sps:$4 sm:$0xff]  }
 0xa27   :  { %14463 = vmatpush1.bf16.msra.mxu0 %v18729_v23  ;;  %14545 = vmatpush1.bf16.msra.mxu1 %v18732_v57  ;;  %v18783_v23 = vld [vmem:[%s25033_s15 + $0x4d0] ss:$28 sps:$4 sm:$0xff]   ;;  %v18786_v57 = vld [vmem:[%s25033_s15 + $0x4d8] ss:$28 sps:$4 sm:$0xff]  }
 0xa28   :  { %14464 = vmatprep.subr.bf16.mxu0 %v18737_v58  ;;  %14546 = vmatprep.subr.bf16.mxu1 %v18740_v29  ;;  %v18791_v58 = vld [vmem:[%s25033_s15 + $0x50c] ss:$28 sps:$4 sm:$0xff]   ;;  %v18794_v29 = vld [vmem:[%s25033_s15 + $0x514] ss:$28 sps:$4 sm:$0xff]  }
 0xa2b   :  { %14465 = vmatpush1.bf16.msra.mxu0 %v18735_v22  ;;  %14547 = vmatpush1.bf16.msra.mxu1 %v18738_v32  ;;  %v18789_v22 = vld [vmem:[%s25033_s15 + $0x508] ss:$28 sps:$4 sm:$0xff]   ;;  %v18792_v32 = vld [vmem:[%s25033_s15 + $0x510] ss:$28 sps:$4 sm:$0xff]  }
 0xa2c   :  { %14466 = vmatprep.subr.bf16.mxu0 %v18743_v4  ;;  %14548 = vmatprep.subr.bf16.mxu1 %v18746_v59  ;;  %v18797_v4 = vld [vmem:[%s25033_s15 + $0x544] ss:$28 sps:$4 sm:$0xff]   ;;  %v18800_v59 = vld [vmem:[%s25033_s15 + $0x54c] ss:$28 sps:$4 sm:$0xff]  }
 0xa2f   :  { %14467 = vmatpush1.bf16.msra.mxu0 %v18741_v60  ;;  %14549 = vmatpush1.bf16.msra.mxu1 %v18744_v39  ;;  %v18795_v60 = vld [vmem:[%s25033_s15 + $0x540] ss:$28 sps:$4 sm:$0xff]   ;;  %v18798_v39 = vld [vmem:[%s25033_s15 + $0x548] ss:$28 sps:$4 sm:$0xff]  }
 0xa30   :  { %14477 = vmatprep.subr.bf16.mxu0 %v18749_v1  ;;  %14559 = vmatprep.subr.bf16.mxu1 %v18752_v62  ;;  %v18803_v1 = vld [vmem:[%s25033_s15 + $0x57c] ss:$28 sps:$4 sm:$0xff]   ;;  %v18806_v62 = vld [vmem:[%s25033_s15 + $0x584] ss:$28 sps:$4 sm:$0xff]  }
 0xac5   :  { %v12892_v40 = vpop.f32.mrb[60].mxu0  ;;  %v24473_v3 = vpop.f32.mrb[60].mxu1 }
 0xac6   :  { %v16934_v30 = vadd.f32 %v12892_v40, %v12155_v35  ;;  %v12894_v5 = vpop.f32.mrb[61].mxu0  ;;  %v12976_v61 = vpop.f32.mrb[61].mxu1  ;;  %v18801_v35 = vld [vmem:[%s25033_s15 + $0x578] ss:$28 sps:$4 sm:$0xff]  }
 0xac7   :  { %v16935_v7 = vadd.f32 %v12894_v5, %v12159_v45  ;;  %v16937_v50 = vadd.f32 %v12976_v61, %v12167_v2  ;;  %v12896_v8 = vpop.f32.mrb[62].mxu0  ;;  %v12978_v9 = vpop.f32.mrb[62].mxu1  ;;  %v18804_v45 = vld [vmem:[%s25033_s15 + $0x580] ss:$28 sps:$4 sm:$0xff]   ;;  %v18809_v2 = vld [vmem:[%s25033_s15 + $0x5b4] ss:$28 sps:$4 sm:$0xff]  }
 0xac8   :  { %v12981_v34 = vmax.f32 %v16934_v30, 0.0  ;;  %v12897_v14 = vpop.f32.mrb[63].mxu0  ;;  %v12979_v15 = vpop.f32.mrb[63].mxu1  ;;  %v18812_v40 = vld [vmem:[%s25033_s15 + $0x5bc] ss:$28 sps:$4 sm:$0xff]  }
 0xac9   :  { %v12982_v19 = vmax.f32 %v16935_v7, 0.0  ;;  %v12984_v12 = vmax.f32 %v16937_v50, 0.0  ;;  %v18807_v30 = vld [vmem:[%s25033_s15 + $0x5b0] ss:$28 sps:$4 sm:$0xff]   ;;  %v18810_v5 = vld [vmem:[%s25033_s15 + $0x5b8] ss:$28 sps:$4 sm:$0xff]  }
 0xaca   :  { %v24483_v38 = vpack.c.bf16 %v12981_v34, %v12981_v34  ;;  %v18815_v61 = vld [vmem:[%s25033_s15 + $0x5ec] ss:$28 sps:$4 sm:$0xff]   ;;  %v18818_v7 = vld [vmem:[%s25033_s15 + $0x5f4] ss:$28 sps:$4 sm:$0xff]   ;;  %v18821_v9 = vld [vmem:[%s25033_s15 + $0x624] ss:$28 sps:$4 sm:$0xff]  }
 0xacb   :  { %v24475_v20 = vpack.c.bf16 %v12982_v19, %v12982_v19  ;;  %v24493_v18 = vpack.c.bf16 %v12984_v12, %v12984_v12  ;;  %v18813_v50 = vld [vmem:[%s25033_s15 + $0x5e8] ss:$28 sps:$4 sm:$0xff]   ;;  %v18816_v8 = vld [vmem:[%s25033_s15 + $0x5f0] ss:$28 sps:$4 sm:$0xff]   ;;  %v18819_v14 = vld [vmem:[%s25033_s15 + $0x620] ss:$28 sps:$4 sm:$0xff]  }
 0xacc   :  { %v18824_v34 = vld [vmem:[%s25033_s15 + $0x62c] ss:$28 sps:$4 sm:$0xff]   ;;  %v18827_v19 = vld [vmem:[%s25033_s15 + $0x65c] ss:$28 sps:$4 sm:$0xff]   ;;  %v18830_v12 = vld [vmem:[%s25033_s15 + $0x664] ss:$28 sps:$4 sm:$0xff]  }
 0xacd   :  { %14468 = vmatprep.mubr.bf16.mxu0 %v24475_v20  ;;  %14550 = vmatprep.mubr.bf16.mxu1 %v24475_v20  ;;  %v18822_v15 = vld [vmem:[%s25033_s15 + $0x628] ss:$28 sps:$4 sm:$0xff]  }
 0xace   :  { %14469 = vmatmul.mubr.bf16.vlgmr.msra.gmra.mrb[64].mxu0 %v24483_v38  ;;  %14551 = vmatmul.mubr.bf16.vlgmr.msra.gmra.mrb[64].mxu1 %v24483_v38 }
 0xacf   :  { %14478 = vmatpush1.bf16.msra.mxu0 %v18747_v33  ;;  %14560 = vmatpush1.bf16.msra.mxu1 %v18750_v37  ;;  %v18825_v33 = vld [vmem:[%s25033_s15 + $0x658] ss:$28 sps:$4 sm:$0xff]   ;;  %v18828_v37 = vld [vmem:[%s25033_s15 + $0x660] ss:$28 sps:$4 sm:$0xff]  }
 0xad0   :  { %16695 = vmatprep.mubr.msk.bf16.mxu0 %vm2389_vm1, %v24493_v18  ;;  %16697 = vmatprep.mubr.msk.bf16.mxu1 %vm2389_vm1, %v24493_v18 }
 0xad1   :  { %14479 = vmatprep.subr.bf16.mxu0 %v18755_v47  ;;  %14561 = vmatprep.subr.bf16.mxu1 %v18758_v0  ;;  %v12163_v47 = vrot.slane %v24465_v31, %v20081_v41  ;;  %v18833_v0 = vld [vmem:[%s25033_s15 + $0x694] ss:$28 sps:$4 sm:$0xff]  }
 0xad2   :  { %v18831_v31 = vld [vmem:[%s25033_s15 + $0x690] ss:$28 sps:$4 sm:$0xff]  }
 0xad3   :  { %14480 = vmatpush1.bf16.msra.mxu0 %v18753_v17  ;;  %14562 = vmatpush1.bf16.msra.mxu1 %v18756_v49  ;;  %v18836_v17 = vld [vmem:[%s25033_s15 + $0x69c] ss:$28 sps:$4 sm:$0xff]   ;;  %v13237_v49 = vld [vmem:[%s25033_s15 + $0x6c8] sm:$0x33] }
 0xad4   :  { %14481 = vmatprep.subr.bf16.mxu0 %v18761_v42  ;;  %14563 = vmatprep.subr.bf16.mxu1 %v18764_v11  ;;  %v13238_v42 = vld [vmem:[%s25033_s15 + $0x6d0] sm:$0x33] }
 0xad5   :  { %v18834_v11 = vld [vmem:[%s25033_s15 + $0x698] ss:$28 sps:$4 sm:$0xff]  }
 0xad7   :  { %14482 = vmatpush1.bf16.msra.mxu0 %v18759_v44  ;;  %14564 = vmatpush1.bf16.msra.mxu1 %v18762_v28  ;;  %v16688_v44 = vcombine.high %v13237_v49, %v13237_v49  ;;  %v16687_v28 = vcombine.low %v13237_v49, %v13237_v49  ;;  %v18891_v49 = vld [vmem:[%s25033_s15 + $0x240] ss:$28 sps:$4 sm:$0xff]  }
 0xad8   :  { %14483 = vmatprep.subr.bf16.mxu0 %v18767_v53  ;;  %14565 = vmatprep.subr.bf16.mxu1 %v18770_v6  ;;  %v16936_v53 = vadd.f32 %v24473_v3, %v12163_v47  ;;  %v16690_v6 = vcombine.high %v13238_v42, %v13238_v42  ;;  %v18844_v3 = vld [vmem:[%s25033_s15 + $0x1d8] ss:$28 sps:$4 sm:$0xff]   ;;  %v18890_v47 = vld [vmem:[%s25033_s15 + $0x3d0] ss:$28 sps:$4 sm:$0xff]  }
 0xadb   :  { %14484 = vmatpush1.bf16.msra.mxu0 %v18765_v48  ;;  %14566 = vmatpush1.bf16.msra.mxu1 %v18768_v43  ;;  %v16689_v48 = vcombine.low %v13238_v42, %v13238_v42  ;;  %v14416_v43 = vsel %vm2393_vm2, %v16687_v28, 0  ;;  %v18895_v42 = vld [vmem:[%s25033_s15 + $0x408] ss:$28 sps:$4 sm:$0xff]   ;;  %v18900_v28 = vld [vmem:[%s25033_s15 + $0x440] ss:$28 sps:$4 sm:$0xff]  }
 0xadc   :  { %14485 = vmatprep.subr.bf16.mxu0 %v18773_v10  ;;  %14567 = vmatprep.subr.bf16.mxu1 %v18776_v63  ;;  %v12983_v10 = vmax.f32 %v16936_v53, 0.0  ;;  %v18903_v53 = vld [vmem:[%s25033_s15 + $0x2b4] ss:$28 sps:$4 sm:$0xff]  }
 0xadd   :  { %v14422_v63 = vsel %vm2393_vm2, %v16689_v48, 0  ;;  %v18901_v48 = vld [vmem:[%s25033_s15 + $0x2b0] ss:$28 sps:$4 sm:$0xff]  }
 0xadf   :  { %14486 = vmatpush1.bf16.msra.mxu0 %v18771_v46  ;;  %14568 = vmatpush1.bf16.msra.mxu1 %v18774_v13  ;;  %v18843_v46 = vld [vmem:[%s25033_s15 + $0x14] ss:$28 sps:$4 sm:$0xff]  }
 0xae0   :  { %14487 = vmatprep.subr.bf16.mxu0 %v18779_v25  ;;  %14569 = vmatprep.subr.bf16.mxu1 %v18782_v51  ;;  %v18841_v13 = vld [vmem:[%s25033_s15 + $0x10] ss:$28 sps:$4 sm:$0xff]   ;;  %v24685_v25 = vpack.c.bf16 %v12983_v10, %v12983_v10  ;;  %v18845_v51 = vld [vmem:[%s25033_s15 + $0x18] ss:$28 sps:$4 sm:$0xff]  }
 0xae1   :  { %v18908_v10 = vld [vmem:[%s25033_s15 + $0x2ec] ss:$28 sps:$4 sm:$0xff]  }
 0xae3   :  { %14488 = vmatpush1.bf16.msra.mxu0 %v18777_v54  ;;  %14570 = vmatpush1.bf16.msra.mxu1 %v18780_v16  ;;  %v18848_v54 = vld [vmem:[%s25033_s15 + $0x4c] ss:$28 sps:$4 sm:$0xff]  }
 0xae4   :  { %14489 = vmatprep.subr.bf16.mxu0 %v18785_v55  ;;  %14571 = vmatprep.subr.bf16.mxu1 %v18788_v56  ;;  %v18849_v16 = vld [vmem:[%s25033_s15 + $0x210] ss:$28 sps:$4 sm:$0xff]   ;;  %v18846_v55 = vld [vmem:[%s25033_s15 + $0x48] ss:$28 sps:$4 sm:$0xff]  }
 0xae5   :  { %v18850_v56 = vld [vmem:[%s25033_s15 + $0x50] ss:$28 sps:$4 sm:$0xff]  }
 0xae7   :  { %14490 = vmatpush1.bf16.msra.mxu0 %v18783_v23  ;;  %14572 = vmatpush1.bf16.msra.mxu1 %v18786_v57  ;;  %v18853_v23 = vld [vmem:[%s25033_s15 + $0x84] ss:$28 sps:$4 sm:$0xff]  }
 0xae8   :  { %14491 = vmatprep.subr.bf16.mxu0 %v18791_v58  ;;  %14573 = vmatprep.subr.bf16.mxu1 %v18794_v29  ;;  %v18854_v57 = vld [vmem:[%s25033_s15 + $0x248] ss:$28 sps:$4 sm:$0xff]   ;;  %v18851_v58 = vld [vmem:[%s25033_s15 + $0x80] ss:$28 sps:$4 sm:$0xff]  }
 0xae9   :  { %v18858_v29 = vld [vmem:[%s25033_s15 + $0xbc] ss:$28 sps:$4 sm:$0xff]  }
 0xaeb   :  { %14492 = vmatpush1.bf16.msra.mxu0 %v18789_v22  ;;  %14574 = vmatpush1.bf16.msra.mxu1 %v18792_v32  ;;  %v18859_v22 = vld [vmem:[%s25033_s15 + $0x280] ss:$28 sps:$4 sm:$0xff]   ;;  %v18856_v32 = vld [vmem:[%s25033_s15 + $0xb8] ss:$28 sps:$4 sm:$0xff]  }
 0xaec   :  { %14493 = vmatprep.subr.bf16.mxu0 %v18797_v4  ;;  %14575 = vmatprep.subr.bf16.mxu1 %v18800_v59  ;;  %v18860_v4 = vld [vmem:[%s25033_s15 + $0xc0] ss:$28 sps:$4 sm:$0xff]   ;;  %v18863_v59 = vld [vmem:[%s25033_s15 + $0xf4] ss:$28 sps:$4 sm:$0xff]  }
 0xaef   :  { %14494 = vmatpush1.bf16.msra.mxu0 %v18795_v60  ;;  %14576 = vmatpush1.bf16.msra.mxu1 %v18798_v39  ;;  %v18864_v60 = vld [vmem:[%s25033_s15 + $0x2b8] ss:$28 sps:$4 sm:$0xff]   ;;  %v18861_v39 = vld [vmem:[%s25033_s15 + $0xf0] ss:$28 sps:$4 sm:$0xff]  }
 0xaf0   :  { %14495 = vmatprep.subr.bf16.mxu0 %v18803_v1  ;;  %14577 = vmatprep.subr.bf16.mxu1 %v18806_v62  ;;  %v18865_v1 = vld [vmem:[%s25033_s15 + $0xf8] ss:$28 sps:$4 sm:$0xff]   ;;  %v18868_v62 = vld [vmem:[%s25033_s15 + $0x12c] ss:$28 sps:$4 sm:$0xff]  }
 0xaf3   :  { %14496 = vmatpush1.bf16.msra.mxu0 %v18801_v35  ;;  %14578 = vmatpush1.bf16.msra.mxu1 %v18804_v45  ;;  %v18869_v35 = vld [vmem:[%s25033_s15 + $0x2f0] ss:$28 sps:$4 sm:$0xff]   ;;  %v18866_v45 = vld [vmem:[%s25033_s15 + $0x128] ss:$28 sps:$4 sm:$0xff]  }
 0xaf4   :  { %14497 = vmatprep.subr.bf16.mxu0 %v18809_v2  ;;  %14579 = vmatprep.subr.bf16.mxu1 %v18812_v40  ;;  %v18870_v2 = vld [vmem:[%s25033_s15 + $0x130] ss:$28 sps:$4 sm:$0xff]   ;;  %v18873_v40 = vld [vmem:[%s25033_s15 + $0x164] ss:$28 sps:$4 sm:$0xff]  }
 0xaf7   :  { %14498 = vmatpush1.bf16.msra.mxu0 %v18807_v30  ;;  %14580 = vmatpush1.bf16.msra.mxu1 %v18810_v5  ;;  %v18874_v30 = vld [vmem:[%s25033_s15 + $0x328] ss:$28 sps:$4 sm:$0xff]   ;;  %v18871_v5 = vld [vmem:[%s25033_s15 + $0x160] ss:$28 sps:$4 sm:$0xff]  }
 0xaf8   :  { %14499 = vmatprep.subr.bf16.mxu0 %v18815_v61  ;;  %14581 = vmatprep.subr.bf16.mxu1 %v18818_v7  ;;  %v18875_v61 = vld [vmem:[%s25033_s15 + $0x168] ss:$28 sps:$4 sm:$0xff]   ;;  %v18878_v7 = vld [vmem:[%s25033_s15 + $0x19c] ss:$28 sps:$4 sm:$0xff]  }
 0xafb   :  { %14500 = vmatpush1.bf16.msra.mxu0 %v18813_v50  ;;  %14582 = vmatpush1.bf16.msra.mxu1 %v18816_v8  ;;  %v18879_v50 = vld [vmem:[%s25033_s15 + $0x360] ss:$28 sps:$4 sm:$0xff]   ;;  %v18876_v8 = vld [vmem:[%s25033_s15 + $0x198] ss:$28 sps:$4 sm:$0xff]  }
 0xafc   :  { %14501 = vmatprep.subr.bf16.mxu0 %v18821_v9  ;;  %14583 = vmatprep.subr.bf16.mxu1 %v18824_v34  ;;  %v18880_v9 = vld [vmem:[%s25033_s15 + $0x1a0] ss:$28 sps:$4 sm:$0xff]   ;;  %v18883_v34 = vld [vmem:[%s25033_s15 + $0x1d4] ss:$28 sps:$4 sm:$0xff]  }
 0xaff   :  { %14502 = vmatpush1.bf16.msra.mxu0 %v18819_v14  ;;  %14584 = vmatpush1.bf16.msra.mxu1 %v18822_v15  ;;  %v18884_v14 = vld [vmem:[%s25033_s15 + $0x558] ss:$28 sps:$4 sm:$0xff]   ;;  %v18881_v15 = vld [vmem:[%s25033_s15 + $0x1d0] ss:$28 sps:$4 sm:$0xff]  }
 0xb00   :  { %14503 = vmatprep.subr.bf16.mxu0 %v18827_v19  ;;  %14585 = vmatprep.subr.bf16.mxu1 %v18830_v12  ;;  %v18885_v19 = vld [vmem:[%s25033_s15 + $0x398] ss:$28 sps:$4 sm:$0xff]   ;;  %v18888_v12 = vld [vmem:[%s25033_s15 + $0x20c] ss:$28 sps:$4 sm:$0xff]  }
 0xb03   :  { %14504 = vmatpush1.bf16.msra.mxu0 %v18825_v33  ;;  %14586 = vmatpush1.bf16.msra.mxu1 %v18828_v37  ;;  %v18889_v33 = vld [vmem:[%s25033_s15 + $0x590] ss:$28 sps:$4 sm:$0xff]   ;;  %v18886_v37 = vld [vmem:[%s25033_s15 + $0x208] ss:$28 sps:$4 sm:$0xff]  }
 0xb04   :  { %14505 = vmatprep.subr.bf16.mxu0 %v18833_v0  ;;  %14587 = vmatprep.subr.bf16.mxu1 %v18836_v17  ;;  %v18893_v0 = vld [vmem:[%s25033_s15 + $0x244] ss:$28 sps:$4 sm:$0xff]  }
 0xb05   :  { %v18894_v17 = vld [vmem:[%s25033_s15 + $0x5c8] ss:$28 sps:$4 sm:$0xff]  }
 0xb07   :  { %14506 = vmatpush1.bf16.msra.mxu0 %v18831_v31  ;;  %14588 = vmatpush1.bf16.msra.mxu1 %v18834_v11  ;;  %v18898_v31 = vld [vmem:[%s25033_s15 + $0x27c] ss:$28 sps:$4 sm:$0xff]  }
 0xb08   :  { %16694 = vmatprep.subr.msk.bf16.mxu0 %vm2393_vm2, %v16688_v44  ;;  %16696 = vmatprep.subr.msk.bf16.mxu1 %vm2393_vm2, %v16690_v6  ;;  %v18899_v11 = vld [vmem:[%s25033_s15 + $0x600] ss:$28 sps:$4 sm:$0xff]   ;;  %v18896_v44 = vld [vmem:[%s25033_s15 + $0x278] ss:$28 sps:$4 sm:$0xff]  }
 0xb09   :  { %v18904_v6 = vld [vmem:[%s25033_s15 + $0x638] ss:$28 sps:$4 sm:$0xff]  }
 0xb0b   :  { %14508 = vmatpush1.bf16.msra.mxu0 %v14416_v43  ;;  %14590 = vmatpush1.bf16.msra.mxu1 %v14422_v63  ;;  %v18905_v43 = vld [vmem:[%s25033_s15 + $0x478] ss:$28 sps:$4 sm:$0xff]   ;;  %v18909_v63 = vld [vmem:[%s25033_s15 + $0x670] ss:$28 sps:$4 sm:$0xff]  }
 0xb0c   :  { %14600 = vmatprep.subr.bf16.mxu0 %v18843_v46  ;;  %16862 = vmatprep.subr.bf16.mxu1 %v18844_v3  ;;  %v18906_v46 = vld [vmem:[%s25033_s15 + $0x2e8] ss:$28 sps:$4 sm:$0xff]   ;;  %v18910_v3 = vld [vmem:[%s25033_s15 + $0x4b0] ss:$28 sps:$4 sm:$0xff]  }
 0xb0e   :  { %14510 = vmatmul.mubr.bf16.vlgmr.msra.gmra.mrb[64].mxu0 %v24685_v25  ;;  %14592 = vmatmul.mubr.bf16.vlgmr.msra.gmra.mrb[64].mxu1 %v24685_v25 }
 0xb0f   :  { %14601 = vmatpush1.bf16.msra.mxu0 %v18841_v13  ;;  %14632 = vmatprep.mubr.bf16.mxu0 %v24475_v20  ;;  %v18913_v13 = vld [vmem:[%s25033_s15 + $0x324] ss:$28 sps:$4 sm:$0xff]  }
 0xb10   :  { %16863 = vmatpush3.bf16.msra.mxu1 %v18845_v51  ;;  %14714 = vmatprep.mubr.bf16.mxu1 %v24475_v20  ;;  %v18855_v20 = vld [vmem:[%s25033_s15 + $0x88] ss:$28 sps:$4 sm:$0xff]  }
 0xb11   :  { %14602 = vmatprep.subr.bf16.mxu0 %v18848_v54  ;;  %16864 = vmatprep.subr.bf16.mxu1 %v18849_v16  ;;  %v18914_v51 = vld [vmem:[%s25033_s15 + $0x6a8] ss:$28 sps:$4 sm:$0xff]   ;;  %v18911_v54 = vld [vmem:[%s25033_s15 + $0x320] ss:$28 sps:$4 sm:$0xff]  }
 0xb12   :  { %v18915_v16 = vld [vmem:[%s25033_s15 + $0x4e8] ss:$28 sps:$4 sm:$0xff]  }
 0xb13   :  { %14603 = vmatpush1.bf16.msra.mxu0 %v18846_v55  ;;  %v18918_v55 = vld [vmem:[%s25033_s15 + $0x35c] ss:$28 sps:$4 sm:$0xff]  }
 0xb14   :  { %16865 = vmatpush3.bf16.msra.mxu1 %v18850_v56  ;;  %14604 = vmatprep.subr.bf16.mxu0 %v18853_v23  ;;  %v18919_v56 = vld [vmem:[%s25033_s15 + $0x6e0] ss:$0 sps:$4 sm:$0x33]   ;;  %v18916_v23 = vld [vmem:[%s25033_s15 + $0x358] ss:$28 sps:$4 sm:$0xff]  }
 0xb15   :  { %16866 = vmatprep.subr.bf16.mxu1 %v18854_v57  ;;  %v18920_v57 = vld [vmem:[%s25033_s15 + $0x520] ss:$28 sps:$4 sm:$0xff]  }
 0xb17   :  { %14605 = vmatpush1.bf16.msra.mxu0 %v18851_v58  ;;  %v18923_v58 = vld [vmem:[%s25033_s15 + $0x394] ss:$28 sps:$4 sm:$0xff]  }
 0xb18   :  { %16867 = vmatpush3.bf16.msra.mxu1 %v18855_v20  ;;  %14606 = vmatprep.subr.bf16.mxu0 %v18858_v29  ;;  %v18921_v20 = vld [vmem:[%s25033_s15 + $0x390] ss:$28 sps:$4 sm:$0xff]  }
 0xb19   :  { %16868 = vmatprep.subr.bf16.mxu1 %v18859_v22  ;;  %v18926_v29 = vld [vmem:[%s25033_s15 + $0x3cc] ss:$28 sps:$4 sm:$0xff]  }
 0xb1a   :  { %v18924_v22 = vld [vmem:[%s25033_s15 + $0x3c8] ss:$28 sps:$4 sm:$0xff]  }
 0xb1b   :  { %14607 = vmatpush1.bf16.msra.mxu0 %v18856_v32  ;;  %v18929_v32 = vld [vmem:[%s25033_s15 + $0x404] ss:$28 sps:$4 sm:$0xff]  }
 0xb1c   :  { %16869 = vmatpush3.bf16.msra.mxu1 %v18860_v4  ;;  %14608 = vmatprep.subr.bf16.mxu0 %v18863_v59  ;;  %v18932_v4 = vld [vmem:[%s25033_s15 + $0x43c] ss:$28 sps:$4 sm:$0xff]   ;;  %v18935_v59 = vld [vmem:[%s25033_s15 + $0x474] ss:$28 sps:$4 sm:$0xff]  }
 0xb1d   :  { %16870 = vmatprep.subr.bf16.mxu1 %v18864_v60  ;;  %v18933_v60 = vld [vmem:[%s25033_s15 + $0x470] ss:$28 sps:$4 sm:$0xff]  }
 0xb1f   :  { %14609 = vmatpush1.bf16.msra.mxu0 %v18861_v39  ;;  %v18938_v39 = vld [vmem:[%s25033_s15 + $0x4ac] ss:$28 sps:$4 sm:$0xff]  }
 0xb20   :  { %16871 = vmatpush3.bf16.msra.mxu1 %v18865_v1  ;;  %14610 = vmatprep.subr.bf16.mxu0 %v18868_v62  ;;  %v18936_v1 = vld [vmem:[%s25033_s15 + $0x4a8] ss:$28 sps:$4 sm:$0xff]  }
 0xb21   :  { %16872 = vmatprep.subr.bf16.mxu1 %v18869_v35  ;;  %v18941_v62 = vld [vmem:[%s25033_s15 + $0x4e4] ss:$28 sps:$4 sm:$0xff]  }
 0xb22   :  { %v18939_v35 = vld [vmem:[%s25033_s15 + $0x4e0] ss:$28 sps:$4 sm:$0xff]  }
 0xb23   :  { %14611 = vmatpush1.bf16.msra.mxu0 %v18866_v45  ;;  %v18944_v45 = vld [vmem:[%s25033_s15 + $0x51c] ss:$28 sps:$4 sm:$0xff]  }
 0xb24   :  { %16873 = vmatpush3.bf16.msra.mxu1 %v18870_v2  ;;  %14612 = vmatprep.subr.bf16.mxu0 %v18873_v40  ;;  %v18942_v2 = vld [vmem:[%s25033_s15 + $0x518] ss:$28 sps:$4 sm:$0xff]  }
 0xb25   :  { %16874 = vmatprep.subr.bf16.mxu1 %v18874_v30  ;;  %v18947_v40 = vld [vmem:[%s25033_s15 + $0x554] ss:$28 sps:$4 sm:$0xff]  }
 0xb26   :  { %v18945_v30 = vld [vmem:[%s25033_s15 + $0x550] ss:$28 sps:$4 sm:$0xff]  }
 0xb27   :  { %14613 = vmatpush1.bf16.msra.mxu0 %v18871_v5  ;;  %v18950_v5 = vld [vmem:[%s25033_s15 + $0x58c] ss:$28 sps:$4 sm:$0xff]  }
 0xb28   :  { %16875 = vmatpush3.bf16.msra.mxu1 %v18875_v61  ;;  %14614 = vmatprep.subr.bf16.mxu0 %v18878_v7  ;;  %v18948_v61 = vld [vmem:[%s25033_s15 + $0x588] ss:$28 sps:$4 sm:$0xff]  }
 0xb29   :  { %16876 = vmatprep.subr.bf16.mxu1 %v18879_v50  ;;  %v18953_v7 = vld [vmem:[%s25033_s15 + $0x5c4] ss:$28 sps:$4 sm:$0xff]  }
 0xb2a   :  { %v18951_v50 = vld [vmem:[%s25033_s15 + $0x5c0] ss:$28 sps:$4 sm:$0xff]  }
 0xb2b   :  { %14615 = vmatpush1.bf16.msra.mxu0 %v18876_v8  ;;  %v18956_v8 = vld [vmem:[%s25033_s15 + $0x5fc] ss:$28 sps:$4 sm:$0xff]  }
 0xb2c   :  { %16877 = vmatpush3.bf16.msra.mxu1 %v18880_v9  ;;  %14616 = vmatprep.subr.bf16.mxu0 %v18883_v34  ;;  %v18954_v9 = vld [vmem:[%s25033_s15 + $0x5f8] ss:$28 sps:$4 sm:$0xff]  }
 0xb2d   :  { %16884 = vmatprep.subr.bf16.mxu1 %v18884_v14  ;;  %v18959_v34 = vld [vmem:[%s25033_s15 + $0x634] ss:$28 sps:$4 sm:$0xff]  }
 0xb2e   :  { %v18957_v14 = vld [vmem:[%s25033_s15 + $0x630] ss:$28 sps:$4 sm:$0xff]  }
 0xb2f   :  { %14715 = vmatmul.mubr.bf16.vlgmr.msra.gmra.mrb[68].mxu1 %v24483_v38  ;;  %14617 = vmatpush1.bf16.msra.mxu0 %v18881_v15  ;;  %v18962_v15 = vld [vmem:[%s25033_s15 + $0x66c] ss:$28 sps:$4 sm:$0xff]  }
 0xb30   :  { %16885 = vmatpush3.bf16.msra.mxu1 %v18885_v19  ;;  %16700 = vmatprep.mubr.msk.bf16.mxu1 %vm2389_vm1, %v24493_v18  ;;  %v18960_v19 = vld [vmem:[%s25033_s15 + $0x668] ss:$28 sps:$4 sm:$0xff]  }
 0xb31   :  { %14618 = vmatprep.subr.bf16.mxu0 %v18888_v12  ;;  %16886 = vmatprep.subr.bf16.mxu1 %v18889_v33  ;;  %v18965_v12 = vld [vmem:[%s25033_s15 + $0x6a4] ss:$28 sps:$4 sm:$0xff]   ;;  %v13239_v33 = vld [vmem:[%s25033_s15 + $0x6d8] sm:$0x33] }
 0xb33   :  { %14619 = vmatpush1.bf16.msra.mxu0 %v18886_v37  ;;  %v18963_v37 = vld [vmem:[%s25033_s15 + $0x6a0] ss:$28 sps:$4 sm:$0xff]  }
 0xb34   :  { %16887 = vmatpush3.bf16.msra.mxu1 %v18890_v47  ;;  %14620 = vmatprep.subr.bf16.mxu0 %v18893_v0  ;;  %v16692_v47 = vcombine.high %v13239_v33, %v13239_v33  ;;  %v16691_v0 = vcombine.low %v13239_v33, %v13239_v33 }
 0xb35   :  { %16888 = vmatprep.subr.bf16.mxu1 %v18894_v17 }
 0xb36   :  { %v14428_v17 = vsel %vm2393_vm2, %v16691_v0, 0 }
 0xb37   :  { %14621 = vmatpush1.bf16.msra.mxu0 %v18891_v49  ;;  %v24981_v49 = vld [vmem:[%s25036_s16] sm:$0x7f] }
 0xb38   :  { %16889 = vmatpush3.bf16.msra.mxu1 %v18895_v42  ;;  %14622 = vmatprep.subr.bf16.mxu0 %v18898_v31  ;;  %v13246_v42 = vrot.slane %v24981_v49, %v19907_v24  ;;  %v13254_v31 = vrot.slane %v24981_v49, %v20081_v41 }
 0xb39   :  { %16890 = vmatprep.subr.bf16.mxu1 %v18899_v11  ;;  %v13250_v11 = vrot.slane %v24981_v49, %v19915_v26 }
 0xb3b   :  { %14623 = vmatpush1.bf16.msra.mxu0 %v18896_v44  ;;  %v13258_v44 = vrot.slane %v24981_v49, %v19918_v27 }
 0xb3c   :  { %16891 = vmatpush3.bf16.msra.mxu1 %v18900_v28  ;;  %14624 = vmatprep.subr.bf16.mxu0 %v18903_v53 }
 0xb3d   :  { %16892 = vmatprep.subr.bf16.mxu1 %v18904_v6 }
 0xb3f   :  { %14625 = vmatpush1.bf16.msra.mxu0 %v18901_v48 }
 0xb40   :  { %16893 = vmatpush3.bf16.msra.mxu1 %v18905_v43  ;;  %14626 = vmatprep.subr.bf16.mxu0 %v18908_v10 }
 0xb41   :  { %16894 = vmatprep.subr.bf16.mxu1 %v18909_v63 }
 0xb43   :  { %14627 = vmatpush1.bf16.msra.mxu0 %v18906_v46 }
 0xb44   :  { %16895 = vmatpush3.bf16.msra.mxu1 %v18910_v3  ;;  %14628 = vmatprep.subr.bf16.mxu0 %v18913_v13 }
 0xb45   :  { %16896 = vmatprep.subr.bf16.mxu1 %v18914_v51 }
 0xb47   :  { %14629 = vmatpush1.bf16.msra.mxu0 %v18911_v54 }
 0xb48   :  { %16897 = vmatpush3.bf16.msra.mxu1 %v18915_v16  ;;  %14630 = vmatprep.subr.bf16.mxu0 %v18918_v55 }
 0xb49   :  { %17084 = vmatprep.subr.msk.bf16.mxu1 %vm2393_vm2, %v18919_v56 }
 0xb4b   :  { %14631 = vmatpush1.bf16.msra.mxu0 %v18916_v23 }
 0xb4c   :  { %16899 = vmatpush3.bf16.msra.mxu1 %v18920_v57  ;;  %14641 = vmatprep.subr.bf16.mxu0 %v18923_v58 }
 0xb4e   :  { %14633 = vmatmul.mubr.bf16.vlgmr.msra.gmra.mrb[68].mxu0 %v24483_v38  ;;  %v18927_v38 = vld [vmem:[%s25033_s15 + $0x400] ss:$28 sps:$4 sm:$0xff]  }
 0xb4f   :  { %14755 = vmatmul.mubr.bf16.vlgmr.msra.gmra.mrb[72].mxu1 %v24685_v25  ;;  %14642 = vmatpush1.bf16.msra.mxu0 %v18921_v20 }
 0xb50   :  { %16699 = vmatprep.mubr.msk.bf16.mxu0 %vm2389_vm1, %v24493_v18  ;;  %14643 = vmatprep.subr.bf16.mxu0 %v18926_v29  ;;  %v18930_v18 = vld [vmem:[%s25033_s15 + $0x438] ss:$28 sps:$4 sm:$0xff]  }
 0xb53   :  { %14644 = vmatpush1.bf16.msra.mxu0 %v18924_v22 }
 0xb54   :  { %14645 = vmatprep.subr.bf16.mxu0 %v18929_v32 }
 0xb57   :  { %14646 = vmatpush1.bf16.msra.mxu0 %v18927_v38 }
 0xb58   :  { %14647 = vmatprep.subr.bf16.mxu0 %v18932_v4 }
 0xb5b   :  { %14648 = vmatpush1.bf16.msra.mxu0 %v18930_v18 }
 0xb5c   :  { %14649 = vmatprep.subr.bf16.mxu0 %v18935_v59 }
 0xb5f   :  { %14650 = vmatpush1.bf16.msra.mxu0 %v18933_v60 }
 0xb60   :  { %14651 = vmatprep.subr.bf16.mxu0 %v18938_v39 }
 0xb63   :  { %14652 = vmatpush1.bf16.msra.mxu0 %v18936_v1  ;;  %v13270_v1 = vrot.slane %v24981_v49, %v21994_v52  ;;  %v13262_v52 = vrot.slane %v24981_v49, %v21800_v21 }
 0xb64   :  { %14653 = vmatprep.subr.bf16.mxu0 %v18941_v62 }
 0xb67   :  { %14654 = vmatpush1.bf16.msra.mxu0 %v18939_v35 }
 0xb68   :  { %14655 = vmatprep.subr.bf16.mxu0 %v18944_v45 }
 0xb6b   :  { %14656 = vmatpush1.bf16.msra.mxu0 %v18942_v2 }
 0xb6c   :  { %14657 = vmatprep.subr.bf16.mxu0 %v18947_v40 }
 0xb6f   :  { %14658 = vmatpush1.bf16.msra.mxu0 %v18945_v30 }
 0xb70   :  { %14659 = vmatprep.subr.bf16.mxu0 %v18950_v5 }
 0xb73   :  { %14660 = vmatpush1.bf16.msra.mxu0 %v18948_v61 }
 0xb74   :  { %14661 = vmatprep.subr.bf16.mxu0 %v18953_v7 }
 0xb77   :  { %14662 = vmatpush1.bf16.msra.mxu0 %v18951_v50 }
 0xb78   :  { %14663 = vmatprep.subr.bf16.mxu0 %v18956_v8 }
 0xb7b   :  { %14664 = vmatpush1.bf16.msra.mxu0 %v18954_v9  ;;  %v13266_v9 = vrot.slane %v24981_v49, %v21719_v36 }
 0xb7c   :  { %14665 = vmatprep.subr.bf16.mxu0 %v18959_v34 }
 0xb7f   :  { %14666 = vmatpush1.bf16.msra.mxu0 %v18957_v14 }
 0xb80   :  { %14667 = vmatprep.subr.bf16.mxu0 %v18962_v15 }
 0xb83   :  { %14668 = vmatpush1.bf16.msra.mxu0 %v18960_v19 }
 0xb84   :  { %14669 = vmatprep.subr.bf16.mxu0 %v18965_v12 }
 0xb87   :  { %14670 = vmatpush1.bf16.msra.mxu0 %v18963_v37 }
 0xb88   :  { %16698 = vmatprep.subr.msk.bf16.mxu0 %vm2393_vm2, %v16692_v47 }
 0xb8b   :  { %14672 = vmatpush1.bf16.msra.mxu0 %v14428_v17 }
 0xb8e   :  { %14674 = vmatmul.mubr.bf16.vlgmr.msra.gmra.mrb[68].mxu0 %v24685_v25 }
 0xbe1   :  { %v14511_v28 = vpop.f32.mrb[64].mxu0  ;;  %v14593_v53 = vpop.f32.mrb[64].mxu1 }
 0xbe2   :  { %v16938_v25 = vadd.f32 %v14511_v28, %v13246_v42  ;;  %v16940_v6 = vadd.f32 %v14593_v53, %v13254_v31  ;;  %v14513_v48 = vpop.f32.mrb[65].mxu0  ;;  %v14595_v43 = vpop.f32.mrb[65].mxu1 }
 0xbe3   :  { %v16939_v10 = vadd.f32 %v14513_v48, %v13250_v11  ;;  %v16941_v63 = vadd.f32 %v14595_v43, %v13258_v44  ;;  %v14515_v46 = vpop.f32.mrb[66].mxu0  ;;  %v14597_v3 = vpop.f32.mrb[66].mxu1 }
 0xbe4   :  { %v16701_v24 = vmul.f32 -1.442695, %v16938_v25  ;;  %v16703_v13 = vmul.f32 -1.442695, %v16940_v6  ;;  %v14516_v51 = vpop.f32.mrb[67].mxu0  ;;  %v14598_v41 = vpop.f32.mrb[67].mxu1 }
 0xbe5   :  { %v16702_v54 = vmul.f32 -1.442695, %v16939_v10  ;;  %v16704_v16 = vmul.f32 -1.442695, %v16941_v63 }
 0xbe6   :  { %18968 = vpow2.f32 %v16701_v24 }
 0xbe7   :  { %18970 = vpow2.f32 %v16703_v13 }
 0xbe8   :  { %18972 = vpow2.f32 %v16702_v54 }
 0xbe9   :  { %18974 = vpow2.f32 %v16704_v16 }
 0xbf0   :  { %v18969_v26 = vpop.eup %18968 }
 0xbf1   :  { %v18971_v27 = vpop.eup %18970  ;;  %v14783_v55 = vadd.f32 1.0, %v18969_v26 }
 0xbf2   :  { %v18973_v56 = vpop.eup %18972  ;;  %v14785_v23 = vadd.f32 1.0, %v18971_v27 }
 0xbf3   :  { %v18975_v57 = vpop.eup %18974  ;;  %18976 = vrcp.f32 %v14783_v55  ;;  %v14784_v58 = vadd.f32 1.0, %v18973_v56 }
 0xbf4   :  { %18978 = vrcp.f32 %v14785_v23  ;;  %v14786_v20 = vadd.f32 1.0, %v18975_v57 }
 0xbf5   :  { %18980 = vrcp.f32 %v14784_v58 }
 0xbf6   :  { %18982 = vrcp.f32 %v14786_v20 }
 0xbfd   :  { %v18977_v29 = vpop.eup %18976 }
 0xbfe   :  { %v18979_v22 = vpop.eup %18978  ;;  %14804 = vst [vmem:[%s25037_s17] sm:$0xff] %v18977_v29 }
 0xbff   :  { %v18981_v32 = vpop.eup %18980  ;;  %14806 = vst [vmem:[%s25037_s17 + $0x10] sm:$0xff] %v18979_v22 }
 0xc00   :  { %v18983_v38 = vpop.eup %18982  ;;  %14805 = vst [vmem:[%s25037_s17 + $0x8] sm:$0xff] %v18981_v32 }
 0xc01   :  { %14807 = vst [vmem:[%s25037_s17 + $0x18] sm:$0xff] %v18983_v38 }
 0xc02   :  { %v16878_v4 = vpop.f32.mrb[68].mxu1 }
 0xc03   :  { %v16879_v18 = vpop.f32.mrb[69].mxu1 }
 0xc04   :  { %v16880_v59 = vadd.f32 %v16879_v18, %v16878_v4  ;;  %v16881_v60 = vpop.f32.mrb[70].mxu1 }
 0xc05   :  { %v16882_v39 = vpop.f32.mrb[71].mxu1 }
 0xc06   :  { %v14717_v45 = vadd.f32 %v16880_v59, %v13270_v1 }
 0xc22   :  { %v16900_v62 = vpop.f32.mrb[72].mxu1 }
 0xc23   :  { %v16901_v35 = vpop.f32.mrb[73].mxu1 }
 0xc24   :  { %v16902_v2 = vadd.f32 %v16901_v35, %v16900_v62  ;;  %v16903_v40 = vpop.f32.mrb[74].mxu1 }
 0xc25   :  { %v16904_v30 = vpop.f32.mrb[75].mxu1 }
 0xc26   :  { %v14757_v5 = vadd.f32 %v16902_v2, %v14717_v45 }
 0xc28   :  { %v16707_v61 = vmul.f32 -1.442695, %v14757_v5 }
 0xc2a   :  { %18984 = vpow2.f32 %v16707_v61 }
 0xc34   :  { %v18985_v7 = vpop.eup %18984 }
 0xc35   :  { %v14789_v50 = vadd.f32 1.0, %v18985_v7 }
 0xc37   :  { %18986 = vrcp.f32 %v14789_v50 }
 0xc41   :  { %v18987_v8 = vpop.eup %18986 }
 0xc42   :  { %14810 = vst.msk [vmem:[%s25037_s17 + $0x30] sm:$0xff] %vm1271_vm0, %v18987_v8 }
 0xc61   :  { %v14675_v34 = vpop.f32.mrb[68].mxu0 }
 0xc62   :  { %v16942_v14 = vadd.f32 %v14675_v34, %v13262_v52  ;;  %v14677_v15 = vpop.f32.mrb[69].mxu0 }
 0xc63   :  { %v16943_v19 = vadd.f32 %v14677_v15, %v13266_v9  ;;  %v14679_v12 = vpop.f32.mrb[70].mxu0 }
 0xc64   :  { %v16705_v33 = vmul.f32 -1.442695, %v16942_v14  ;;  %v14680_v37 = vpop.f32.mrb[71].mxu0 }
 0xc65   :  { %v16706_v47 = vmul.f32 -1.442695, %v16943_v19 }
 0xc66   :  { %18988 = vpow2.f32 %v16705_v33 }
 0xc67   :  { %18990 = vpow2.f32 %v16706_v47 }
 0xc70   :  { %v18989_v0 = vpop.eup %18988 }
 0xc71   :  { %v18991_v17 = vpop.eup %18990  ;;  %v14787_v42 = vadd.f32 1.0, %v18989_v0 }
 0xc72   :  { %v14788_v31 = vadd.f32 1.0, %v18991_v17 }
 0xc73   :  { %18992 = vrcp.f32 %v14787_v42 }
 0xc74   :  { %18994 = vrcp.f32 %v14788_v31 }
 0xc7d   :  { %v18993_v21 = vpop.eup %18992 }
 0xc7e   :  { %v18995_v11 = vpop.eup %18994  ;;  %14808 = vst [vmem:[%s25037_s17 + $0x20] sm:$0xff] %v18993_v21 }
 0xc7f   :  { %14809 = vst [vmem:[%s25037_s17 + $0x28] sm:$0xff] %v18995_v11 }

</bundles_post_ra>
